<compile_context>
chip_gen: v5e
topology: v5e:2x2
jax: 0.10.0
libtpu: 0.0.40
codegen_flags: <defaults>
</compile_context>

<pallas_src>
import math

import jax
import jax.numpy as jnp
from jax import lax
from jax.experimental import pallas as pl
from jax.experimental.pallas import tpu as pltpu

BN_EPS = 1e-5
_LANE = 128
_SUBLANE = 8


def _gelu_exact(x):
    # PyTorch nn.GELU() default = exact erf form (NOT the tanh approximation).
    return 0.5 * x * (1.0 + lax.erf(x * (1.0 / math.sqrt(2.0))))


def _round_up(x, m):
    return ((x + m - 1) // m) * m


def _make_sa_head_kernel(k_neighbors, tile_n):
    """Kernel closure over the (static) neighbor count K and tile size."""

    def kernel(x_ref, w1_ref, b1_ref, w2_ref, b2_ref, w3_ref, s3_ref, b3_ref,
               o_ref):
        # x_ref : (1, C_pad, K*tile_n) bf16 -- neighbors packed onto lanes
        # wX    : folded feature-major weights (out, in) bf16
        # bX/s3 : per-channel columns (out, 1) f32
        # o_ref : (C_out, tile_n) f32
        x = x_ref[0]                                        # (C_pad, K*tile_n)

        h = jnp.dot(w1_ref[...], x,
                    preferred_element_type=jnp.float32) + b1_ref[...]
        h = _gelu_exact(h)
        h = jnp.dot(w2_ref[...], h.astype(jnp.bfloat16),
                    preferred_element_type=jnp.float32) + b2_ref[...]
        h = _gelu_exact(h)
        h = jnp.dot(w3_ref[...], h.astype(jnp.bfloat16),
                    preferred_element_type=jnp.float32)     # (C_out, K*tile_n)

        # K-way max over static, 128-aligned lane slices (pure VPU, no relayout).
        acc = h[:, 0:tile_n]
        for kk in range(1, k_neighbors):
            acc = jnp.maximum(acc, h[:, kk * tile_n:(kk + 1) * tile_n])

        o_ref[...] = acc * s3_ref[...] + b3_ref[...]

    return kernel


def _fold_params(params, c_in):
    """Fold eval-mode BN scales into the bias-free Linear weights and produce
    feature-major (out, in) bf16 weights + f32 per-channel columns."""
    c_nbr = 3 + c_in
    c_pad = _round_up(c_nbr, _SUBLANE)
    w1 = params["w1"] * params["s1"]                       # (c_nbr, h1) * (1, h1)
    w1 = jnp.pad(w1, ((0, c_pad - c_nbr), (0, 0)))         # pad contraction 7->8
    w2 = params["w2"] * params["s2"]
    w3 = params["w3"]                                      # s3 applied after max
    return dict(
        w1=w1.T.astype(jnp.bfloat16),                      # (h1, c_pad)
        b1=params["b1"].T.astype(jnp.float32),             # (h1, 1)
        w2=w2.T.astype(jnp.bfloat16),                      # (h2, h1)
        b2=params["b2"].T.astype(jnp.float32),             # (h2, 1)
        w3=w3.T.astype(jnp.bfloat16),                      # (c_out, h2)
        s3=params["s3"].T.astype(jnp.float32),             # (c_out, 1)
        b3=params["b3"].T.astype(jnp.float32),             # (c_out, 1)
    )


def set_abstraction_head(p, f, p_nbr, group_idx, params, *, tile_n=512):
    """Forward of SetAbstraction with layer_index == 0 (is_head=True)."""
    n, c_in = f.shape
    k = group_idx.shape[1]
    c_out = params["w3"].shape[1]
    c_nbr = 3 + c_in
    c_pad = _round_up(c_nbr, _SUBLANE)

    assert tile_n % _LANE == 0, "tile_n must be a multiple of 128 lanes"
    num_tiles = pl.cdiv(n, tile_n)
    n_pad = num_tiles * tile_n

    # ---- XLA glue: gather neighbors, relative coords, pad, go feature-major
    #      with the K neighbors packed onto the lane axis per tile.
    rel = p_nbr - p[:, None, :]                            # p_nbr - p.unsqueeze(1)
    f_nbr = f[group_idx]                                   # f[group_idx]
    x = jnp.concatenate([rel, f_nbr], axis=-1)             # (N, K, 3 + C_in)
    x = jnp.pad(x, ((0, n_pad - n), (0, 0), (0, c_pad - c_nbr)))
    x = x.reshape(num_tiles, tile_n, k, c_pad)
    x = jnp.transpose(x, (0, 3, 2, 1))                     # (tiles, C_pad, K, tile_n)
    x_fm = x.reshape(num_tiles, c_pad, k * tile_n).astype(jnp.bfloat16)

    fp = _fold_params(params, c_in)
    h1 = fp["w1"].shape[0]
    h2 = fp["w2"].shape[0]

    def full(shp):
        return pl.BlockSpec(shp, lambda i, _n=len(shp): (0,) * _n)

    out_fm = pl.pallas_call(
        _make_sa_head_kernel(k, tile_n),
        out_shape=jax.ShapeDtypeStruct((c_out, n_pad), jnp.float32),
        grid_spec=pltpu.PrefetchScalarGridSpec(
            num_scalar_prefetch=0,
            grid=(num_tiles,),
            in_specs=[
                pl.BlockSpec((1, c_pad, k * tile_n), lambda i: (i, 0, 0)),
                full((h1, c_pad)), full((h1, 1)),
                full((h2, h1)), full((h2, 1)),
                full((c_out, h2)), full((c_out, 1)), full((c_out, 1)),
            ],
            out_specs=pl.BlockSpec((c_out, tile_n), lambda i: (0, i)),
        ),
        compiler_params=pltpu.CompilerParams(
            dimension_semantics=("parallel",)),
    )(x_fm, fp["w1"], fp["b1"], fp["w2"], fp["b2"], fp["w3"], fp["s3"], fp["b3"])

    _ = jax.nn.sigmoid(params["alpha"])   # evaluated by forward(), unused on head path
    return out_fm[:, :n].T                # (N, C_out);  f = f_nbr


def init_params(key, c_in, c_out):
    """Deterministic init matching SpatialEmbedding(is_head=True) shapes.

    NOTE: BN is folded assuming fresh eval stats (running_mean=0, running_var=1,
    beta=0). For a trained checkpoint, fold the real running stats into s*/b*."""
    c_nbr = 3 + c_in
    hidden = 32                           # nbr_hidden_channels for the head layer
    k1, k2, k3 = jax.random.split(key, 3)

    def linear_w(kk, fan_in, fan_out):
        bound = 1.0 / math.sqrt(fan_in)
        return jax.random.uniform(kk, (fan_in, fan_out), jnp.float32, -bound, bound)

    w1 = linear_w(k1, c_nbr, hidden)          # Linear(3+C_in -> 32, bias=False)
    w2 = linear_w(k2, hidden, hidden // 2)    # Linear(32 -> 16, bias=False)
    w3 = linear_w(k3, hidden // 2, c_out)     # Linear(16 -> C_out, bias=False)

    def bn_fold(gamma, c):
        scale = jnp.full((1, c), gamma / math.sqrt(1.0 + BN_EPS), jnp.float32)
        shift = jnp.zeros((1, c), jnp.float32)
        return scale, shift

    s1, b1 = bn_fold(1.0, hidden)
    s2, b2 = bn_fold(1.0, hidden // 2)
    s3, b3 = bn_fold(0.8, c_out)              # nn.init.constant_(bn.weight, 0.8)
    alpha = jnp.ones((1,), jnp.float32) * 100.0
    return dict(w1=w1, s1=s1, b1=b1, w2=w2, s2=s2, b2=b2,
                w3=w3, s3=s3, b3=b3, alpha=alpha)


if __name__ == "__main__":
    key = jax.random.PRNGKey(0)
    N, C_IN, C_OUT, K = 1000, 4, 32, 8        # N deliberately NOT a tile multiple
    TILE_N = 256                              # pads to 1024 -> 4 parallel grid steps
    kp, kf, kg, kw = jax.random.split(key, 4)

    p = jax.random.normal(kp, (N, 3), jnp.float32)
    f = jax.random.normal(kf, (N, C_IN), jnp.float32)
    group_idx = jax.random.randint(kg, (N, K), 0, N)
    p_nbr = p[group_idx]                      # == gs.gs_points.grouping('p', 0) result
    params = init_params(kw, C_IN, C_OUT)

    out = jax.block_until_ready(
        set_abstraction_head(p, f, p_nbr, group_idx, params, tile_n=TILE_N))
    assert out.shape == (N, C_OUT)
    assert bool(jnp.all(jnp.isfinite(out)))

    # --- reference 1: identical bf16/f32 mixed-precision math (tight check) ---
    c_nbr = 3 + C_IN
    c_pad = _round_up(c_nbr, _SUBLANE)
    rel = p_nbr - p[:, None, :]
    xcat = jnp.concatenate([rel, f[group_idx]], axis=-1)
    xpad = jnp.pad(xcat, ((0, 0), (0, 0), (0, c_pad - c_nbr)))
    x_fm = jnp.transpose(xpad, (1, 2, 0)).astype(jnp.bfloat16)   # (K, c_pad, N)
    fp = _fold_params(params, C_IN)
    acc = None
    for kk in range(K):
        h = jnp.dot(fp["w1"], x_fm[kk], preferred_element_type=jnp.float32) + fp["b1"]
        h = _gelu_exact(h)
        h = jnp.dot(fp["w2"], h.astype(jnp.bfloat16),
                    preferred_element_type=jnp.float32) + fp["b2"]
        h = _gelu_exact(h)
        h = jnp.dot(fp["w3"], h.astype(jnp.bfloat16),
                    preferred_element_type=jnp.float32)
        acc = h if acc is None else jnp.maximum(acc, h)
    ref_matched = (acc * fp["s3"] + fp["b3"]).T
    assert bool(jnp.allclose(out, ref_matched, rtol=1e-4, atol=1e-4))

    # --- reference 2: full-f32 PyTorch-semantics math (loose; bf16 trade-off) ---
    xr = xcat.reshape(N * K, c_nbr)
    hr = _gelu_exact(xr @ params["w1"] * params["s1"] + params["b1"])
    hr = _gelu_exact(hr @ params["w2"] * params["s2"] + params["b2"])
    hr = (hr @ params["w3"]).reshape(N, K, C_OUT).max(axis=1)
    ref_f32 = hr * params["s3"] + params["b3"]
    assert bool(jnp.allclose(out, ref_f32, rtol=2e-2, atol=2e-2))

    print("KERNEL_OK")
</pallas_src>

<mosaic_0001>
module attributes {stable_mosaic.version = 11 : i64} {
  func.func @kernel(%arg0: i32, %arg1: memref<1x8x2048xbf16, #tpu.memory_space<vmem>>, %arg2: memref<32x8xbf16, #tpu.memory_space<vmem>>, %arg3: memref<32x1xf32, #tpu.memory_space<vmem>>, %arg4: memref<16x32xbf16, #tpu.memory_space<vmem>>, %arg5: memref<16x1xf32, #tpu.memory_space<vmem>>, %arg6: memref<32x16xbf16, #tpu.memory_space<vmem>>, %arg7: memref<32x1xf32, #tpu.memory_space<vmem>>, %arg8: memref<32x1xf32, #tpu.memory_space<vmem>>, %arg9: memref<32x256xf32, #tpu.memory_space<vmem>>) attributes {dimension_semantics = [#tpu.dimension_semantics<parallel>], iteration_bounds = array<i64: 4>, scalar_prefetch = 0 : i64, scratch_operands = 0 : i64, tpu.core_type = #tpu.core_type<tc>, window_params = [{transform_indices = @transform_0, window_bounds = array<i64: 1, 8, 2048>}, {pipeline_mode = #tpu.pipeline_mode<synchronous>, transform_indices = @transform_1, window_bounds = array<i64: 32, 8>}, {pipeline_mode = #tpu.pipeline_mode<synchronous>, transform_indices = @transform_2, window_bounds = array<i64: 32, 1>}, {pipeline_mode = #tpu.pipeline_mode<synchronous>, transform_indices = @transform_3, window_bounds = array<i64: 16, 32>}, {pipeline_mode = #tpu.pipeline_mode<synchronous>, transform_indices = @transform_4, window_bounds = array<i64: 16, 1>}, {pipeline_mode = #tpu.pipeline_mode<synchronous>, transform_indices = @transform_5, window_bounds = array<i64: 32, 16>}, {pipeline_mode = #tpu.pipeline_mode<synchronous>, transform_indices = @transform_6, window_bounds = array<i64: 32, 1>}, {pipeline_mode = #tpu.pipeline_mode<synchronous>, transform_indices = @transform_7, window_bounds = array<i64: 32, 1>}, {transform_indices = @transform_8, window_bounds = array<i64: 32, 256>}]} {
    %c0 = arith.constant 0 : index
    %c0_0 = arith.constant 0 : index
    %c0_1 = arith.constant 0 : index
    %0 = vector.load %arg1[%c0, %c0_0, %c0_1] : memref<1x8x2048xbf16, #tpu.memory_space<vmem>>, vector<1x8x2048xbf16>
    %1 = vector.shape_cast %0 : vector<1x8x2048xbf16> to vector<8x2048xbf16>
    %c0_2 = arith.constant 0 : index
    %c0_3 = arith.constant 0 : index
    %2 = vector.load %arg2[%c0_2, %c0_3] : memref<32x8xbf16, #tpu.memory_space<vmem>>, vector<32x8xbf16>
    %cst = arith.constant dense<0.000000e+00> : vector<32x2048xf32>
    %3 = tpu.matmul %2, %1, %cst {dimension_numbers = #tpu.dot_dimension_numbers<[1], [0], [0], [1], [0, 0, 1, 1], [], []>} : vector<32x8xbf16>, vector<8x2048xbf16>, vector<32x2048xf32> -> vector<32x2048xf32>
    %c0_4 = arith.constant 0 : index
    %c0_5 = arith.constant 0 : index
    %4 = vector.load %arg3[%c0_4, %c0_5] : memref<32x1xf32, #tpu.memory_space<vmem>>, vector<32x1xf32>
    %5 = vector.broadcast %4 : vector<32x1xf32> to vector<32x2048xf32>
    %6 = arith.addf %3, %5 : vector<32x2048xf32>
    %cst_6 = arith.constant 5.000000e-01 : f32
    %7 = vector.broadcast %cst_6 : f32 to vector<32x2048xf32>
    %8 = arith.mulf %7, %6 : vector<32x2048xf32>
    %cst_7 = arith.constant 0.707106769 : f32
    %9 = vector.broadcast %cst_7 : f32 to vector<32x2048xf32>
    %10 = arith.mulf %6, %9 : vector<32x2048xf32>
    %11 = math.erf %10 : vector<32x2048xf32>
    %cst_8 = arith.constant 1.000000e+00 : f32
    %12 = vector.broadcast %cst_8 : f32 to vector<32x2048xf32>
    %13 = arith.addf %12, %11 : vector<32x2048xf32>
    %14 = arith.mulf %8, %13 : vector<32x2048xf32>
    %c0_9 = arith.constant 0 : index
    %c0_10 = arith.constant 0 : index
    %15 = vector.load %arg4[%c0_9, %c0_10] : memref<16x32xbf16, #tpu.memory_space<vmem>>, vector<16x32xbf16>
    %16 = arith.truncf %14 : vector<32x2048xf32> to vector<32x2048xbf16>
    %cst_11 = arith.constant dense<0.000000e+00> : vector<16x2048xf32>
    %17 = tpu.matmul %15, %16, %cst_11 {dimension_numbers = #tpu.dot_dimension_numbers<[1], [0], [0], [1], [0, 0, 1, 1], [], []>} : vector<16x32xbf16>, vector<32x2048xbf16>, vector<16x2048xf32> -> vector<16x2048xf32>
    %c0_12 = arith.constant 0 : index
    %c0_13 = arith.constant 0 : index
    %18 = vector.load %arg5[%c0_12, %c0_13] : memref<16x1xf32, #tpu.memory_space<vmem>>, vector<16x1xf32>
    %19 = vector.broadcast %18 : vector<16x1xf32> to vector<16x2048xf32>
    %20 = arith.addf %17, %19 : vector<16x2048xf32>
    %cst_14 = arith.constant 5.000000e-01 : f32
    %21 = vector.broadcast %cst_14 : f32 to vector<16x2048xf32>
    %22 = arith.mulf %21, %20 : vector<16x2048xf32>
    %cst_15 = arith.constant 0.707106769 : f32
    %23 = vector.broadcast %cst_15 : f32 to vector<16x2048xf32>
    %24 = arith.mulf %20, %23 : vector<16x2048xf32>
    %25 = math.erf %24 : vector<16x2048xf32>
    %cst_16 = arith.constant 1.000000e+00 : f32
    %26 = vector.broadcast %cst_16 : f32 to vector<16x2048xf32>
    %27 = arith.addf %26, %25 : vector<16x2048xf32>
    %28 = arith.mulf %22, %27 : vector<16x2048xf32>
    %c0_17 = arith.constant 0 : index
    %c0_18 = arith.constant 0 : index
    %29 = vector.load %arg6[%c0_17, %c0_18] : memref<32x16xbf16, #tpu.memory_space<vmem>>, vector<32x16xbf16>
    %30 = arith.truncf %28 : vector<16x2048xf32> to vector<16x2048xbf16>
    %cst_19 = arith.constant dense<0.000000e+00> : vector<32x2048xf32>
    %31 = tpu.matmul %29, %30, %cst_19 {dimension_numbers = #tpu.dot_dimension_numbers<[1], [0], [0], [1], [0, 0, 1, 1], [], []>} : vector<32x16xbf16>, vector<16x2048xbf16>, vector<32x2048xf32> -> vector<32x2048xf32>
    %32 = vector.extract_strided_slice %31 {offsets = [0, 0], sizes = [32, 256], strides = [1, 1]} : vector<32x2048xf32> to vector<32x256xf32>
    %33 = vector.extract_strided_slice %31 {offsets = [0, 256], sizes = [32, 256], strides = [1, 1]} : vector<32x2048xf32> to vector<32x256xf32>
    %34 = arith.maximumf %32, %33 : vector<32x256xf32>
    %35 = vector.extract_strided_slice %31 {offsets = [0, 512], sizes = [32, 256], strides = [1, 1]} : vector<32x2048xf32> to vector<32x256xf32>
    %36 = arith.maximumf %34, %35 : vector<32x256xf32>
    %37 = vector.extract_strided_slice %31 {offsets = [0, 768], sizes = [32, 256], strides = [1, 1]} : vector<32x2048xf32> to vector<32x256xf32>
    %38 = arith.maximumf %36, %37 : vector<32x256xf32>
    %39 = vector.extract_strided_slice %31 {offsets = [0, 1024], sizes = [32, 256], strides = [1, 1]} : vector<32x2048xf32> to vector<32x256xf32>
    %40 = arith.maximumf %38, %39 : vector<32x256xf32>
    %41 = vector.extract_strided_slice %31 {offsets = [0, 1280], sizes = [32, 256], strides = [1, 1]} : vector<32x2048xf32> to vector<32x256xf32>
    %42 = arith.maximumf %40, %41 : vector<32x256xf32>
    %43 = vector.extract_strided_slice %31 {offsets = [0, 1536], sizes = [32, 256], strides = [1, 1]} : vector<32x2048xf32> to vector<32x256xf32>
    %44 = arith.maximumf %42, %43 : vector<32x256xf32>
    %45 = vector.extract_strided_slice %31 {offsets = [0, 1792], sizes = [32, 256], strides = [1, 1]} : vector<32x2048xf32> to vector<32x256xf32>
    %46 = arith.maximumf %44, %45 : vector<32x256xf32>
    %c0_20 = arith.constant 0 : index
    %c0_21 = arith.constant 0 : index
    %47 = vector.load %arg7[%c0_20, %c0_21] : memref<32x1xf32, #tpu.memory_space<vmem>>, vector<32x1xf32>
    %48 = vector.broadcast %47 : vector<32x1xf32> to vector<32x256xf32>
    %49 = arith.mulf %46, %48 : vector<32x256xf32>
    %c0_22 = arith.constant 0 : index
    %c0_23 = arith.constant 0 : index
    %50 = vector.load %arg8[%c0_22, %c0_23] : memref<32x1xf32, #tpu.memory_space<vmem>>, vector<32x1xf32>
    %51 = vector.broadcast %50 : vector<32x1xf32> to vector<32x256xf32>
    %52 = arith.addf %49, %51 : vector<32x256xf32>
    %c0_24 = arith.constant 0 : index
    %c0_25 = arith.constant 0 : index
    %53 = vector.load %arg9[%c0_24, %c0_25] : memref<32x256xf32, #tpu.memory_space<vmem>>, vector<32x256xf32>
    tpu.vector_store %arg9[%c0_24, %c0_25], %52 {strides = array<i32>} : memref<32x256xf32, #tpu.memory_space<vmem>>, vector<32x256xf32>,
    return
  }
  func.func @transform_0(%arg0: i32) -> (i32, i32, i32) {
    %c0_i32 = arith.constant 0 : i32
    %c0_i32_0 = arith.constant 0 : i32
    %c0_i32_1 = arith.constant 0 : i32
    return %arg0, %c0_i32, %c0_i32_0 : i32, i32, i32
  }
  func.func @transform_1(%arg0: i32) -> (i32, i32) {
    %c0_i32 = arith.constant 0 : i32
    %c0_i32_0 = arith.constant 0 : i32
    %c0_i32_1 = arith.constant 0 : i32
    return %c0_i32, %c0_i32_0 : i32, i32
  }
  func.func @transform_2(%arg0: i32) -> (i32, i32) {
    %c0_i32 = arith.constant 0 : i32
    %c0_i32_0 = arith.constant 0 : i32
    %c0_i32_1 = arith.constant 0 : i32
    return %c0_i32, %c0_i32_0 : i32, i32
  }
  func.func @transform_3(%arg0: i32) -> (i32, i32) {
    %c0_i32 = arith.constant 0 : i32
    %c0_i32_0 = arith.constant 0 : i32
    %c0_i32_1 = arith.constant 0 : i32
    return %c0_i32, %c0_i32_0 : i32, i32
  }
  func.func @transform_4(%arg0: i32) -> (i32, i32) {
    %c0_i32 = arith.constant 0 : i32
    %c0_i32_0 = arith.constant 0 : i32
    %c0_i32_1 = arith.constant 0 : i32
    return %c0_i32, %c0_i32_0 : i32, i32
  }
  func.func @transform_5(%arg0: i32) -> (i32, i32) {
    %c0_i32 = arith.constant 0 : i32
    %c0_i32_0 = arith.constant 0 : i32
    %c0_i32_1 = arith.constant 0 : i32
    return %c0_i32, %c0_i32_0 : i32, i32
  }
  func.func @transform_6(%arg0: i32) -> (i32, i32) {
    %c0_i32 = arith.constant 0 : i32
    %c0_i32_0 = arith.constant 0 : i32
    %c0_i32_1 = arith.constant 0 : i32
    return %c0_i32, %c0_i32_0 : i32, i32
  }
  func.func @transform_7(%arg0: i32) -> (i32, i32) {
    %c0_i32 = arith.constant 0 : i32
    %c0_i32_0 = arith.constant 0 : i32
    %c0_i32_1 = arith.constant 0 : i32
    return %c0_i32, %c0_i32_0 : i32, i32
  }
  func.func @transform_8(%arg0: i32) -> (i32, i32) {
    %c0_i32 = arith.constant 0 : i32
    %c0_i32_0 = arith.constant 0 : i32
    return %c0_i32, %arg0 : i32, i32
  }
}

</mosaic_0001>

<bundles_post_ra>
// kernel: tpu_custom_call.1
= control target key start
LH: loop header
LB: loop body
LE: loop exit
PB: predicated region body
PF: predicated region fallthrough
CT: control target
= control target key end

     0   :  { %13 = vsyncpa [#allocation3], 0  ;;  %s11633_s0 = inlined_call_operand.hbm [shape: bf16[4,8,2048], index: 0, kind: input, shape index: {}]   ;;  %s11634_s1 = inlined_call_operand.vmem [shape: bf16[32,8], index: 1, kind: input, shape index: {}]   ;;  %s11635_s2 = inlined_call_operand.vmem [shape: f32[32,1], index: 2, kind: input, shape index: {}]   ;;  %s11636_s3 = inlined_call_operand.vmem [shape: bf16[16,32], index: 3, kind: input, shape index: {}]   ;;  %s11637_s4 = inlined_call_operand.vmem [shape: f32[16,1], index: 4, kind: input, shape index: {}]   ;;  %s11638_s5 = inlined_call_operand.vmem [shape: bf16[32,16], index: 5, kind: input, shape index: {}]   ;;  %s11639_s6 = inlined_call_operand.vmem [shape: f32[32,1], index: 6, kind: input, shape index: {}]   ;;  %s11640_s7 = inlined_call_operand.vmem [shape: f32[32,1], index: 7, kind: input, shape index: {}]   ;;  %s11641_s8 = inlined_call_operand.hbm [shape: f32[32,1024], index: 8, kind: output, shape index: {}]  }
   0x1   :  { %15 = vsyncpa [#allocation3 + $0x1], 0 }
   0x2   :  { %16 = vsyncpa [#allocation4], 0 }
   0x3   :  { %18 = vsyncpa [#allocation4 + $0x1], 0  ;;  %s6446_s27 = smov 0   ;;  %s6448_s28 = smov 0  }
   0x4   :  { %s6450_s29 = smov 0   ;;  %s6452_s30 = smov 0  }
   0x5 LB: > { %11648 = sst [smem:[#allocation8_spill]] %s6391_s29  ;;  %s6467_s9 = sadd.s32 4294967295, %s6395_s30   ;;  %s6395_s30 = sphi %s6452_s30, %s11973_s30   ;;  %s6391_s29 = sphi %s6450_s29, %s11970_s29   ;;  %s6387_s28 = sphi %s6448_s28, %s11972_s28   ;;  %s6383_s27 = sphi %s6446_s27, %s11971_s27  }
   0x6   : > { %s5833_s10 = sadd.s32 4294967294, %s6395_s30   ;;  %s6471_s11 = sadd.s32 1, %s6395_s30  }
   0x7   : > { %s31_s12 = sadd.s32 1, %s6391_s29  ;;  %s28_s13 = ssub.s32 %s6395_s30, %s6471_s11 }
   0x8   : > { %p38_p0 = scmp.ne.s32.totalorder %s6391_s29, %s6387_s28  ;;  %p29_p1 = scmp.eq.s32.totalorder %s28_s13, 0 }
   0x9   : > { %p39_p2 = scmp.eq.s32.totalorder %s6395_s30, 0  ;;  %p44_p3 = scmp.ne.s32.totalorder %s6387_s28, %s6383_s27 }
   0xa   : > { %p45_p4 = scmp.eq.s32.totalorder %s6467_s9, 0  ;;  %p215_p7 = scmp.eq.s32.totalorder %s6467_s9, 3 }
   0xb   : > { %s6483_s14 = scalar_select %p29_p1, %s6391_s29, %s31_s12  }
   0xc   : > { %p6485_p5 = por %p39_p2, %p38_p0  ;;  %p6489_p6 = por %p45_p4, %p44_p3 }
   0xd   : > { %11649 = sst [smem:[#allocation9_spill]] %s6483_s14  ;;  %p221_p8 = scmp.eq.s32.totalorder %s5833_s10, 3 }
   0xe   : > { %p6062_p9 = scmp.lt.s32.totalorder %s6395_s30, 4  ;;  %p6495_p10 = por %p215_p7, %p38_p0 }
   0xf   : > { %p6499_p11 = por %p221_p8, %p44_p3  ;;  %s262_s19 = sand.u32 1, %s6391_s29  }
  0x10   : > { %s6043_s20 = sshll.u32 %s6395_s30, 6  ;;  %s5836_s21 = sshll.u32 %s262_s19, 6 }
  0x11   : > { %s271_s24 = scalar_lea.hbm %s11633_s0, %s6043_s20  ;;  %s266_s26 = scalar_lea.vmem [#allocation2], %s5836_s21 }
  0x12   : > { %s273_s25 = sshll.u32 %s271_s24, 4  ;;  %s275_s12 = sshll.u32 %s266_s26, 4  ;;  %s274_s25 = int_to_ptr.hbm [resolvable:$true] %s273_s25  ;;  %s276_s12 = int_to_ptr.vmem [resolvable:$true] %s275_s12 }
  0x13   : > { %p6510_p12 = pnand %p6062_p9, %p6485_p5  ;;  %p5839_p13 = scmp.ge.s32.totalorder %s6395_s30, 1 }
  0x14   : > { %p280_p0 = scmp.lt.s32.totalorder %s6395_s30, 5  ;;  %s263_s13 = scalar_lea.sflag [#allocation3], %s262_s19 }
  0x15   : > { %s6299_s14 = sshra.s32 %s274_s25, 4  ;;  %p6303_p2 = pneg %p6510_p12  ;;  %s6300_s14 = int_to_ptr.hbm [resolvable:$true] %s6299_s14 }
  0x16   : > { %s6301_s29 = scalar_lea.hbm %s6300_s14, 64  ;;  %s6306_s15 = scalar_lea.hbm %s11633_s0, 256 }
  0x17   : > { %p6302_p1 = scmp.ne.s32.totalorder %s6300_s14, %s6301_s29  ;;  %p6307_p5 = scmp.lt.s32.totalorder %s6300_s14, %s11633_s0 }
  0x18   : > { %p6308_p7 = scmp.lt.s32.totalorder %s6306_s15, %s6301_s29 }
  0x19   : > { %p6304_p3 = pnand %p6303_p2, %p6302_p1 }
  0x1a   : > { %p6309_p8 = por %p6308_p7, %p6307_p5 }
  0x1b   : > { %p6305_p4 = pneg %p6304_p3 }
  0x1d   : > { %p6310_p9 = pnand %p6309_p8, %p6305_p4 }
  0x1f   : > { %6313 = shalt.err (!%p6310_p9)
}
  0x20   : > { %6057 = dma.hbm_to_vmem [thread:$0]  (!%p6510_p12), %s274_s25, 1024, %s276_s12, %s263_s13  }
  0x21   : > { %p281_p1 = pnand %p5839_p13, %p280_p0 }
  0x23   : > { %284 = sbr.rel (%p281_p1) target bundleno = 1419 (0x58b), region = 52 }
  0x28   : > { %s6531_s19 = sand.u32 1, %s6387_s28  }
  0x29   : > { %s5840_s29 = sshll.u32 %s6531_s19, 6  ;;  %s287_s14 = scalar_lea.sflag [#allocation3], %s6531_s19 }
  0x2a   : > { %s6537_s24 = scalar_lea.vmem [#allocation2], %s5840_s29 }
  0x2b   : > { %6374 = dma.done.wait (%p6489_p6), %s287_s14, 1024  }
  0x2c   : > { %6376 = vsyncadd (%p6489_p6), %s287_s14, 4294966272  ;;  %v6397_v0 = vmov 0   ;;  %v326_v1 = vld [vmem:[%s6537_s24] sm:$0xff]  ;;  %v327_v2 = vld [vmem:[%s6537_s24 + $0x8] sm:$0xff]  ;;  %vm419_vm0 = vcmask 1043456   ;;  %vm412_vm1 = vcmask 64512  }
  0x2d   : > { %6100 = vset.pattern.permute.xlu0 %v6397_v0  ;;  %6101 = vset.pattern.permute.xlu1 %v6397_v0  ;;  %v380_v3 = vunpack.c.l.b16 %v326_v1  ;;  %v381_v4 = vunpack.c.h.b16 %v326_v1  ;;  %v382_v5 = vunpack.c.l.b16 %v327_v2  ;;  %v383_v6 = vunpack.c.h.b16 %v327_v2  ;;  %v340_v7 = vld [vmem:[%s11635_s2 + $0x10] sm:$0xff]  ;;  %v338_v8 = vld [vmem:[%s11635_s2] sm:$0xff]  ;;  %v329_v14 = vld [vmem:[%s6537_s24 + $0x18] sm:$0xff]  ;;  %s11556_s15 = scalar_lea.vmem [#allocation5], %s5840_s29  ;;  %s6049_s29 = sshll.u32 %s6467_s9, 4 }
  0x2e   : > { %6102 = vset.pattern.permute.xlu2 %v6397_v0  ;;  %354 = vperm.xlu0 %6100, %v340_v7   ;;  %v328_v13 = vld [vmem:[%s6537_s24 + $0x10] sm:$0xff]  ;;  %v386_v17 = vunpack.c.l.b16 %v329_v14  ;;  %v387_v18 = vunpack.c.h.b16 %v329_v14  ;;  %v6560_v23 = vld [vmem:[%s11634_s1] sm:$0xff]  ;;  %v341_v28 = vld [vmem:[%s11635_s2 + $0x18] sm:$0xff]  ;;  %s5756_s14 = scalar_lea.hbm %s11641_s8, %s6049_s29  ;;  %s5745_s9 = scalar_lea.sflag [#allocation4], %s6531_s19 }
  0x2f   : > { %344 = vperm.xlu1 %6101, %v338_v8   ;;  %v396_v9 = vpack.c.b16 %v380_v3, %v380_v3  ;;  %v397_v10 = vpack.c.b16 %v381_v4, %v381_v4  ;;  %v398_v11 = vpack.c.b16 %v382_v5, %v382_v5  ;;  %v399_v12 = vpack.c.b16 %v383_v6, %v383_v6  ;;  %v339_v29 = vld [vmem:[%s11635_s2 + $0x8] sm:$0xff]  ;;  %v5672_v34 = vld [vmem:[%s11639_s6] sm:$0xff]  ;;  %v5675_v37 = vld [vmem:[%s11639_s6 + $0x18] sm:$0xff]  ;;  %s5759_s25 = sshll.u32 %s5756_s14, 4  ;;  %s6349_s13 = scalar_lea.hbm %s11641_s8, 256  ;;  %s5760_s25 = int_to_ptr.hbm [resolvable:$true] %s5759_s25 }
  0x30   : > { %v384_v15 = vunpack.c.l.b16 %v328_v13  ;;  %v385_v16 = vunpack.c.h.b16 %v328_v13  ;;  %v402_v26 = vpack.c.b16 %v386_v17, %v386_v17  ;;  %v403_v27 = vpack.c.b16 %v387_v18, %v387_v18  ;;  %v5673_v35 = vld [vmem:[%s11639_s6 + $0x8] sm:$0xff]  ;;  %v5704_v38 = vld [vmem:[%s11640_s7] sm:$0xff]  ;;  %v5706_v53 = vld [vmem:[%s11640_s7 + $0x10] sm:$0xff]  ;;  %s6343_s26 = sshra.s32 %s5760_s25, 4  ;;  %s6344_s26 = int_to_ptr.hbm [resolvable:$true] %s6343_s26 }
  0x31   : > { %v421_v19 = vsel %vm419_vm0, %v396_v9, 0  ;;  %v424_v20 = vsel %vm419_vm0, %v397_v10, 0  ;;  %v427_v21 = vsel %vm419_vm0, %v398_v11, 0  ;;  %v430_v22 = vsel %vm419_vm0, %v399_v12, 0  ;;  %v6589_v36 = vld [vmem:[%s11634_s1 + $0x8] sm:$0xff]  ;;  %v330_v39 = vld [vmem:[%s6537_s24 + $0x20] sm:$0xff]  ;;  %p6350_p0 = scmp.lt.s32.totalorder %s6344_s26, %s11641_s8 }
  0x32   : > { %475 = vmatpush.bf16.msra.mxu0 %v421_v19  ;;  %494 = vmatpush.bf16.msra.mxu1 %v424_v20  ;;  %v400_v24 = vpack.c.b16 %v384_v15, %v384_v15  ;;  %v401_v25 = vpack.c.b16 %v385_v16, %v385_v16  ;;  %v439_v32 = vsel %vm419_vm0, %v402_v26, 0  ;;  %v442_v33 = vsel %vm419_vm0, %v403_v27, 0  ;;  %v331_v40 = vld [vmem:[%s6537_s24 + $0x28] sm:$0xff]  ;;  %v5707_v54 = vld [vmem:[%s11640_s7 + $0x18] sm:$0xff]  ;;  %v332_v55 = vld [vmem:[%s6537_s24 + $0x30] sm:$0xff]  ;;  %s6345_s16 = scalar_lea.hbm %s6344_s26, 64 }
  0x33   : > { %513 = vmatpush.bf16.msra.mxu2 %v427_v21  ;;  %532 = vmatpush.bf16.msra.mxu3 %v430_v22  ;;  %v388_v41 = vunpack.c.l.b16 %v330_v39  ;;  %v389_v42 = vunpack.c.h.b16 %v330_v39  ;;  %v390_v43 = vunpack.c.l.b16 %v331_v40  ;;  %v391_v44 = vunpack.c.h.b16 %v331_v40  ;;  %v333_v56 = vld [vmem:[%s6537_s24 + $0x38] sm:$0xff]  ;;  %s5757_s24 = sshll.u32 %s11556_s15, 4  ;;  %p6346_p6 = scmp.ne.s32.totalorder %s6344_s26, %s6345_s16  ;;  %s5758_s24 = int_to_ptr.vmem [resolvable:$true] %s5757_s24 }
  0x34   : > { %v433_v30 = vsel %vm419_vm0, %v400_v24, 0  ;;  %v436_v31 = vsel %vm419_vm0, %v401_v25, 0  ;;  %v392_v57 = vunpack.c.l.b16 %v332_v55  ;;  %v393_v58 = vunpack.c.h.b16 %v332_v55  ;;  %p6351_p2 = scmp.lt.s32.totalorder %s6349_s13, %s6345_s16 }
  0x35   : > { %5850 = vmatmul.msk.bf16.vlgmr.msra.gmra.mxu0 %vm412_vm1, %v6560_v23  ;;  %5852 = vmatmul.msk.bf16.vlgmr.msra.gmra.mxu1 %vm412_vm1, %v6560_v23  ;;  %v404_v45 = vpack.c.b16 %v388_v41, %v388_v41  ;;  %v405_v46 = vpack.c.b16 %v389_v42, %v389_v42  ;;  %v406_v47 = vpack.c.b16 %v390_v43, %v390_v43  ;;  %v394_v59 = vunpack.c.l.b16 %v333_v56  ;;  %p6347_p12 = pnand %p6346_p6, %p6495_p10 }
  0x36   : > { %5854 = vmatmul.msk.bf16.vlgmr.msra.gmra.mxu2 %vm412_vm1, %v6560_v23  ;;  %5856 = vmatmul.msk.bf16.vlgmr.msra.gmra.mxu3 %vm412_vm1, %v6560_v23  ;;  %v407_v48 = vpack.c.b16 %v391_v44, %v391_v44  ;;  %v395_v60 = vunpack.c.h.b16 %v333_v56  ;;  %v408_v61 = vpack.c.b16 %v392_v57, %v392_v57  ;;  %v409_v62 = vpack.c.b16 %v393_v58, %v393_v58  ;;  %p6352_p3 = por %p6351_p2, %p6350_p0 }
  0x37   : > { %359 = vperm.xlu0 %6100, %v341_v28   ;;  %349 = vperm.xlu1 %6101, %v339_v29   ;;  %v445_v49 = vsel %vm419_vm0, %v404_v45, 0  ;;  %v448_v50 = vsel %vm419_vm0, %v405_v46, 0  ;;  %v451_v51 = vsel %vm419_vm0, %v406_v47, 0  ;;  %v410_v63 = vpack.c.b16 %v394_v59, %v394_v59  ;;  %p6348_p13 = pneg %p6347_p12 }
  0x38   : > { %551 = vmatpush.bf16.msrb.mxu0 %v433_v30  ;;  %570 = vmatpush.bf16.msrb.mxu1 %v436_v31  ;;  %v454_v52 = vsel %vm419_vm0, %v407_v48, 0  ;;  %v411_v0 = vpack.c.b16 %v395_v60, %v395_v60  ;;  %v457_v1 = vsel %vm419_vm0, %v408_v61, 0  ;;  %v460_v2 = vsel %vm419_vm0, %v409_v62, 0 }
  0x39   : > { %589 = vmatpush.bf16.msrb.mxu2 %v439_v32  ;;  %608 = vmatpush.bf16.msrb.mxu3 %v442_v33  ;;  %v463_v3 = vsel %vm419_vm0, %v410_v63, 0  ;;  %p6353_p4 = pnand %p6352_p3, %p6348_p13 }
  0x3a   : > { %v466_v4 = vsel %vm419_vm0, %v411_v0, 0 }
  0x3c   : > { %627 = vmatpush.bf16.msra.mxu0 %v445_v49  ;;  %646 = vmatpush.bf16.msra.mxu1 %v448_v50 }
  0x3d   : > { %665 = vmatpush.bf16.msra.mxu2 %v451_v51  ;;  %684 = vmatpush.bf16.msra.mxu3 %v454_v52 }
  0x3f   : > { %5678 = vperm.xlu0 %6100, %v5672_v34   ;;  %5683 = vperm.xlu1 %6101, %v5673_v35  }
  0x45   : > { %5851 = vmatmul.msk.bf16.gmra.mxu0 %vm412_vm1, %v6589_v36  ;;  %5853 = vmatmul.msk.bf16.gmra.mxu1 %vm412_vm1, %v6589_v36 }
  0x46   : > { %5855 = vmatmul.msk.bf16.gmra.mxu2 %vm412_vm1, %v6589_v36  ;;  %5857 = vmatmul.msk.bf16.gmra.mxu3 %vm412_vm1, %v6589_v36 }
  0x47   : > { %5693 = vperm.xlu0 %6100, %v5675_v37   ;;  %5710 = vperm.xlu1 %6101, %v5704_v38  }
  0x4f   : > { %5720 = vperm.xlu0 %6100, %v5706_v53   ;;  %5725 = vperm.xlu1 %6101, %v5707_v54  }
  0x55   : > { %5858 = vmatmul.msk.bf16.vlgmr.msrb.gmra.mxu0 %vm412_vm1, %v6560_v23  ;;  %5860 = vmatmul.msk.bf16.vlgmr.msrb.gmra.mxu1 %vm412_vm1, %v6560_v23 }
  0x56   : > { %5862 = vmatmul.msk.bf16.vlgmr.msrb.gmra.mxu2 %vm412_vm1, %v6560_v23  ;;  %5864 = vmatmul.msk.bf16.vlgmr.msrb.gmra.mxu3 %vm412_vm1, %v6560_v23 }
  0x57   : > { %703 = vmatpush.bf16.msrb.mxu0 %v457_v1  ;;  %722 = vmatpush.bf16.msrb.mxu1 %v460_v2 }
  0x58   : > { %741 = vmatpush.bf16.msrb.mxu2 %v463_v3  ;;  %760 = vmatpush.bf16.msrb.mxu3 %v466_v4 }
  0x65   : > { %5859 = vmatmul.msk.bf16.gmra.mxu0 %vm412_vm1, %v6589_v36  ;;  %5861 = vmatmul.msk.bf16.gmra.mxu1 %vm412_vm1, %v6589_v36 }
  0x66   : > { %5863 = vmatmul.msk.bf16.gmra.mxu2 %vm412_vm1, %v6589_v36  ;;  %5865 = vmatmul.msk.bf16.gmra.mxu3 %vm412_vm1, %v6589_v36 }
  0x75   : > { %5866 = vmatmul.msk.bf16.vlgmr.msra.gmra.mxu0 %vm412_vm1, %v6560_v23  ;;  %5868 = vmatmul.msk.bf16.vlgmr.msra.gmra.mxu1 %vm412_vm1, %v6560_v23 }
  0x76   : > { %5870 = vmatmul.msk.bf16.vlgmr.msra.gmra.mxu2 %vm412_vm1, %v6560_v23  ;;  %5872 = vmatmul.msk.bf16.vlgmr.msra.gmra.mxu3 %vm412_vm1, %v6560_v23 }
  0x85   : > { %5867 = vmatmul.msk.bf16.gmra.mxu0 %vm412_vm1, %v6589_v36  ;;  %5869 = vmatmul.msk.bf16.gmra.mxu1 %vm412_vm1, %v6589_v36 }
  0x86   : > { %5871 = vmatmul.msk.bf16.gmra.mxu2 %vm412_vm1, %v6589_v36  ;;  %5873 = vmatmul.msk.bf16.gmra.mxu3 %vm412_vm1, %v6589_v36 }
  0x95   : > { %5874 = vmatmul.msk.bf16.vlgmr.msrb.gmra.mxu0 %vm412_vm1, %v6560_v23  ;;  %5876 = vmatmul.msk.bf16.vlgmr.msrb.gmra.mxu1 %vm412_vm1, %v6560_v23 }
  0x96   : > { %5878 = vmatmul.msk.bf16.vlgmr.msrb.gmra.mxu2 %vm412_vm1, %v6560_v23  ;;  %5880 = vmatmul.msk.bf16.vlgmr.msrb.gmra.mxu3 %vm412_vm1, %v6560_v23 }
  0xa1   : > { %v6671_v5 = vpop.permute.xlu1 %344 }
  0xa5   : > { %5875 = vmatmul.msk.bf16.gmra.mxu0 %vm412_vm1, %v6589_v36  ;;  %5877 = vmatmul.msk.bf16.gmra.mxu1 %vm412_vm1, %v6589_v36 }
  0xa6   : > { %5879 = vmatmul.msk.bf16.gmra.mxu2 %vm412_vm1, %v6589_v36  ;;  %5881 = vmatmul.msk.bf16.gmra.mxu3 %vm412_vm1, %v6589_v36 }
  0xa9   : > { %v6723_v42 = vpop.permute.xlu1 %349 }
  0xb2   : > { %v477_v6 = vpop.f32.mrf.mxu0  ;;  %v496_v7 = vpop.f32.mrf.mxu1 }
  0xb3   : > { %v6674_v8 = vadd.f32 %v477_v6, %v6671_v5  ;;  %v6677_v9 = vadd.f32 %v496_v7, %v6671_v5 }
  0xb5   : > { %v6680_v10 = vmul.f32 0.70710677, %v6674_v8  ;;  %v6683_v11 = vmul.f32 0.70710677, %v6677_v9 }
  0xb7   : > { %v900_v12 = vmul.f32 %v6680_v10, %v6680_v10  ;;  %v940_v13 = vmul.f32 %v6683_v11, %v6683_v11 }
  0xb9   : > { %v6689_v14 = vmin.f32 %v900_v12, 16.0  ;;  %v6691_v15 = vmin.f32 %v940_v13, 16.0  ;;  %v515_v16 = vpop.f32.mrf.mxu2  ;;  %v534_v17 = vpop.f32.mrf.mxu3 }
  0xba   : > { %v6694_v18 = vadd.f32 %v515_v16, %v6671_v5  ;;  %v6697_v19 = vadd.f32 %v534_v17, %v6671_v5  ;;  %v479_v38 = vpop.f32.mrf.mxu0  ;;  %v498_v2 = vpop.f32.mrf.mxu1 }
  0xbb   : > { %v913_v20 = vmul.f32 3.8918573e-05, %v6689_v14  ;;  %v953_v21 = vmul.f32 3.8918573e-05, %v6691_v15  ;;  %v902_v35 = vmul.f32 2.1237322e-06, %v6689_v14  ;;  %v6726_v45 = vadd.f32 %v479_v38, %v6723_v42 }
  0xbc   : > { %v6702_v22 = vmul.f32 0.70710677, %v6694_v18  ;;  %v6707_v26 = vmul.f32 0.70710677, %v6697_v19  ;;  %v942_v36 = vmul.f32 2.1237322e-06, %v6691_v15  ;;  %v6747_v13 = vadd.f32 %v498_v2, %v6723_v42 }
  0xbd   : > { %v914_v23 = vadd.f32 0.001143296, %v913_v20  ;;  %v954_v24 = vadd.f32 0.001143296, %v953_v21  ;;  %v903_v43 = vadd.f32 0.00028619796, %v902_v35 }
  0xbe   : > { %v980_v25 = vmul.f32 %v6702_v22, %v6702_v22  ;;  %v1020_v29 = vmul.f32 %v6707_v26, %v6707_v26  ;;  %v943_v44 = vadd.f32 0.00028619796, %v942_v36  ;;  %v6732_v52 = vmul.f32 0.70710677, %v6726_v45 }
  0xbf   : > { %v915_v27 = vmul.f32 %v914_v23, %v6689_v14  ;;  %v955_v30 = vmul.f32 %v954_v24, %v6691_v15  ;;  %v904_v50 = vmul.f32 %v903_v43, %v6689_v14 }
  0xc0   : > { %v6710_v28 = vmin.f32 %v980_v25, 16.0  ;;  %v6716_v33 = vmin.f32 %v1020_v29, 16.0  ;;  %v944_v51 = vmul.f32 %v943_v44, %v6691_v15  ;;  %v1540_v60 = vmul.f32 %v6732_v52, %v6732_v52 }
  0xc1   : > { %v916_v32 = vadd.f32 0.014752088, %v915_v27  ;;  %v956_v37 = vadd.f32 0.014752088, %v955_v30  ;;  %v905_v58 = vadd.f32 0.0036580483, %v904_v50  ;;  %v517_v25 = vpop.f32.mrf.mxu2 }
  0xc2   : > { %v993_v31 = vmul.f32 3.8918573e-05, %v6710_v28  ;;  %v1033_v41 = vmul.f32 3.8918573e-05, %v6716_v33  ;;  %v982_v54 = vmul.f32 2.1237322e-06, %v6710_v28  ;;  %v6761_v36 = vadd.f32 %v517_v25, %v6723_v42 }
  0xc3   : > { %v917_v39 = vmul.f32 %v916_v32, %v6689_v14  ;;  %v957_v46 = vmul.f32 %v956_v37, %v6691_v15  ;;  %v945_v59 = vadd.f32 0.0036580483, %v944_v51  ;;  %v906_v3 = vmul.f32 %v905_v58, %v6689_v14 }
  0xc4   : > { %v994_v34 = vadd.f32 0.001143296, %v993_v31  ;;  %v1034_v49 = vadd.f32 0.001143296, %v1033_v41  ;;  %v983_v62 = vadd.f32 0.00028619796, %v982_v54 }
  0xc5   : > { %v918_v47 = vadd.f32 0.112945676, %v917_v39  ;;  %v958_v53 = vadd.f32 0.112945676, %v957_v46  ;;  %v946_v4 = vmul.f32 %v945_v59, %v6691_v15  ;;  %v6743_v6 = vmin.f32 %v1540_v60, 16.0 }
  0xc6   : > { %v995_v40 = vmul.f32 %v994_v34, %v6710_v28  ;;  %v1035_v57 = vmul.f32 %v1034_v49, %v6716_v33  ;;  %v984_v12 = vmul.f32 %v983_v62, %v6710_v28  ;;  %v907_v21 = vadd.f32 0.05243302, %v906_v3 }
  0xc7   : > { %v919_v55 = vmul.f32 %v918_v47, %v6689_v14  ;;  %v959_v61 = vmul.f32 %v958_v53, %v6691_v15  ;;  %v947_v23 = vadd.f32 0.05243302, %v946_v4  ;;  %v1553_v24 = vmul.f32 3.8918573e-05, %v6743_v6 }
  0xc8   : > { %v996_v48 = vadd.f32 0.014752088, %v995_v40  ;;  %v1036_v1 = vadd.f32 0.014752088, %v1035_v57  ;;  %v985_v29 = vadd.f32 0.0036580483, %v984_v12  ;;  %v908_v37 = vmul.f32 %v907_v21, %v6689_v14 }
  0xc9   : > { %v920_v63 = vadd.f32 0.4994258, %v919_v55  ;;  %v960_v7 = vadd.f32 0.4994258, %v959_v61  ;;  %v1022_v30 = vmul.f32 2.1237322e-06, %v6716_v33  ;;  %v948_v38 = vmul.f32 %v947_v23, %v6691_v15 }
  0xca   : > { %v997_v56 = vmul.f32 %v996_v48, %v6710_v28  ;;  %v1037_v20 = vmul.f32 %v1036_v1, %v6716_v33  ;;  %v6756_v31 = vmul.f32 0.70710677, %v6747_v13  ;;  %v1554_v39 = vadd.f32 0.001143296, %v1553_v24 }
  0xcb   : > { %v921_v16 = vmul.f32 %v920_v63, %v6689_v14  ;;  %v961_v27 = vmul.f32 %v960_v7, %v6691_v15  ;;  %v986_v41 = vmul.f32 %v985_v29, %v6710_v28  ;;  %v1023_v43 = vadd.f32 0.00028619796, %v1022_v30 }
  0xcc   : > { %v998_v0 = vadd.f32 0.112945676, %v997_v56  ;;  %v1038_v35 = vadd.f32 0.112945676, %v1037_v20  ;;  %v1580_v44 = vmul.f32 %v6756_v31, %v6756_v31  ;;  %v6774_v48 = vmul.f32 0.70710677, %v6761_v36 }
  0xcd   : > { %v6758_v32 = vadd.f32 1.0, %v921_v16  ;;  %v6765_v40 = vadd.f32 1.0, %v961_v27  ;;  %v909_v49 = vadd.f32 0.18741608, %v908_v37  ;;  %v949_v50 = vadd.f32 0.18741608, %v948_v38 }
  0xce   : > { %v999_v17 = vmul.f32 %v998_v0, %v6710_v28  ;;  %v1039_v47 = vmul.f32 %v1038_v35, %v6716_v33  ;;  %v1555_v51 = vmul.f32 %v1554_v39, %v6743_v6  ;;  %v987_v53 = vadd.f32 0.05243302, %v986_v41 }
  0xcf   : > { %6103 = vrcp.f32 %v6758_v32  ;;  %v1024_v54 = vmul.f32 %v1023_v43, %v6716_v33  ;;  %v6779_v55 = vmin.f32 %v1580_v44, 16.0  ;;  %v1620_v58 = vmul.f32 %v6774_v48, %v6774_v48 }
  0xd0   : > { %v1000_v34 = vadd.f32 0.4994258, %v999_v17  ;;  %6105 = vrcp.f32 %v6765_v40  ;;  %v1040_v57 = vadd.f32 0.4994258, %v1039_v47  ;;  %v910_v60 = vmul.f32 %v909_v49, %v6689_v14 }
  0xd1   : > { %v1556_v61 = vadd.f32 0.014752088, %v1555_v51  ;;  %v950_v62 = vmul.f32 %v949_v50, %v6691_v15  ;;  %v988_v63 = vmul.f32 %v987_v53, %v6710_v28  ;;  %v1025_v0 = vadd.f32 0.0036580483, %v1024_v54 }
  0xd2   : > { %v1001_v46 = vmul.f32 %v1000_v34, %v6710_v28  ;;  %v1593_v1 = vmul.f32 3.8918573e-05, %v6779_v55  ;;  %v1041_v2 = vmul.f32 %v1040_v57, %v6716_v33  ;;  %v1542_v3 = vmul.f32 2.1237322e-06, %v6743_v6  ;;  %v536_v34 = vpop.f32.mrf.mxu3 }
  0xd3   : > { %v6798_v12 = vmin.f32 %v1620_v58, 16.0  ;;  %v6801_v15 = vmul.f32 0.5, %v6674_v8  ;;  %v911_v16 = vadd.f32 1.1283791, %v910_v60  ;;  %v6804_v17 = vmul.f32 0.5, %v6677_v9 }
  0xd4   : > { %v6781_v56 = vadd.f32 1.0, %v1001_v46  ;;  %v1594_v14 = vadd.f32 0.001143296, %v1593_v1  ;;  %v1557_v20 = vmul.f32 %v1556_v61, %v6743_v6  ;;  %v951_v21 = vadd.f32 1.1283791, %v950_v62  ;;  %v482_v1 = vpop.f32.mrf.mxu0 }
  0xd5   : > { %v6785_v59 = vpop.eup %6103  ;;  %v6808_v23 = vmul.f32 0.5, %v6694_v18  ;;  %v989_v24 = vadd.f32 0.18741608, %v988_v63  ;;  %v1026_v25 = vmul.f32 %v1025_v0, %v6716_v33  ;;  %v6813_v29 = vadd.f32 1.0, %v1041_v2 }
  0xd6   : > { %6107 = vrcp.f32 %v6781_v56  ;;  %v6794_v4 = vpop.eup %6105  ;;  %v924_v7 = vmul.f32 %v6785_v59, %v6758_v32  ;;  %v1543_v8 = vadd.f32 0.00028619796, %v1542_v3  ;;  %v1595_v30 = vmul.f32 %v1594_v14, %v6779_v55  ;;  %v6860_v14 = vpop.permute.xlu0 %354 }
  0xd7   : > { %v964_v27 = vmul.f32 %v6794_v4, %v6765_v40  ;;  %v6817_v35 = vmul.f32 0.5, %v6697_v19  ;;  %v6820_v37 = vmul.f32 0.5, %v6726_v45  ;;  %v1633_v18 = vmul.f32 3.8918573e-05, %v6798_v12 }
  0xd8   : > { %v925_v9 = vsub.f32 1.0, %v924_v7  ;;  %v6826_v39 = vmul.f32 %v911_v16, %v6680_v10  ;;  %v932_v41 = vand.u32 2147483647, %v6758_v32  ;;  %v934_v43 = vand.u32 2147483648, %v6758_v32 }
  0xd9   : > { %v1558_v44 = vadd.f32 0.112945676, %v1557_v20  ;;  %vm928_vm2 = vweird.f32 %v6758_v32  ;;  %v6832_v19 = vmul.f32 %v951_v21, %v6683_v11  ;;  %v990_v45 = vmul.f32 %v989_v24, %v6710_v28 }
  0xda   : > { %v1027_v46 = vadd.f32 0.05243302, %v1026_v25  ;;  %v6836_v47 = vadd.f32 %v536_v34, %v6723_v42  ;;  %v965_v49 = vsub.f32 1.0, %v964_v27  ;;  %6109 = vrcp.f32 %v6813_v29 }
  0xdb   : > { %v1544_v10 = vmul.f32 %v1543_v8, %v6743_v6  ;;  %v1596_v50 = vadd.f32 0.014752088, %v1595_v30  ;;  %v926_v51 = vmul.f32 %v6785_v59, %v925_v9  ;;  %v1582_v11 = vmul.f32 2.1237322e-06, %v6779_v55 }
  0xdc   : > { %v6823_v38 = vpop.eup %6107  ;;  %v1634_v54 = vadd.f32 0.001143296, %v1633_v18  ;;  %vm968_vm3 = vweird.f32 %v6765_v40  ;;  %v972_v28 = vand.u32 2147483647, %v6765_v40  ;;  %v974_v57 = vand.u32 2147483648, %v6765_v40 }
  0xdd   : > { %v1004_v53 = vmul.f32 %v6823_v38, %v6781_v56  ;;  %v1559_v58 = vmul.f32 %v1558_v44, %v6743_v6  ;;  %vm6848_vm4 = vcmp.eq.f32.partialorder %v932_v41, 8.507059e+37  ;;  %v991_v61 = vadd.f32 1.1283791, %v990_v45 }
  0xde   : > { %v1028_v62 = vmul.f32 %v1027_v46, %v6716_v33  ;;  %v1635_v63 = vmul.f32 %v1634_v54, %v6798_v12  ;;  %v6855_v0 = vmul.f32 0.70710677, %v6836_v47  ;;  %vm929_vm5 = vweird.f32 %v6785_v59 }
  0xdf   : > { %v966_v2 = vmul.f32 %v6794_v4, %v965_v49  ;;  %v1545_v3 = vadd.f32 0.0036580483, %v1544_v10  ;;  %v1597_v7 = vmul.f32 %v1596_v50, %v6779_v55  ;;  %v927_v16 = vadd.f32 %v6785_v59, %v926_v51  ;;  %vm6881_vm8 = vmor %vm928_vm2, %vm929_vm5 }
  0xe0   : > { %v1005_v20 = vsub.f32 1.0, %v1004_v53  ;;  %v1583_v21 = vadd.f32 0.00028619796, %v1582_v11  ;;  %v1660_v24 = vmul.f32 %v6855_v0, %v6855_v0  ;;  %v6865_v25 = vpop.eup %6109  ;;  %v935_v27 = vor.u32 1.1754944e-38, %v934_v43 }
  0xe1   : > { %v1560_v8 = vadd.f32 0.4994258, %v1559_v58  ;;  %v1636_v30 = vadd.f32 0.014752088, %v1635_v63  ;;  %v6868_v34 = vadd.f32 %v482_v1, %v6860_v14  ;;  %vm969_vm6 = vweird.f32 %v6794_v4 }
  0xe2   : > { %vm6871_vm7 = vcmp.eq.f32.partialorder %v972_v28, 8.507059e+37  ;;  %v975_v18 = vor.u32 1.1754944e-38, %v974_v57  ;;  %v1029_v41 = vadd.f32 0.18741608, %v1028_v62  ;;  %v6875_v44 = vmin.f32 %v1660_v24, 16.0  ;;  %vm6907_vm9 = vmor %vm968_vm3, %vm969_vm6 }
  0xe3   : > { %v967_v45 = vadd.f32 %v6794_v4, %v966_v2  ;;  %v6887_v46 = vmul.f32 %v991_v61, %v6702_v22  ;;  %v1546_v49 = vmul.f32 %v1545_v3, %v6743_v6  ;;  %v1598_v10 = vadd.f32 0.112945676, %v1597_v7  ;;  %v501_v2 = vpop.f32.mrf.mxu1 }
  0xe4   : > { %v931_v50 = vsel %vm6881_vm8, %v6785_v59, %v927_v16  ;;  %v1006_v51 = vmul.f32 %v6823_v38, %v1005_v20  ;;  %v1044_v32 = vmul.f32 %v6865_v25, %v6813_v29  ;;  %v1584_v53 = vmul.f32 %v1583_v21, %v6779_v55 }
  0xe5   : > { %v1561_v11 = vmul.f32 %v1560_v8, %v6743_v6  ;;  %v1637_v54 = vmul.f32 %v1636_v30, %v6798_v12  ;;  %v1673_v22 = vmul.f32 3.8918573e-05, %v6875_v44  ;;  %v6901_v28 = vmul.f32 0.70710677, %v6868_v34 }
  0xe6   : > { %vm1008_vm10 = vweird.f32 %v6781_v56  ;;  %v1012_v57 = vand.u32 2147483647, %v6781_v56  ;;  %v1014_v58 = vand.u32 2147483648, %v6781_v56  ;;  %v1030_v61 = vmul.f32 %v1029_v41, %v6716_v33 }
  0xe7   : > { %v936_v62 = vsel %vm6848_vm4, %v935_v27, %v931_v50  ;;  %v971_v63 = vsel %vm6907_vm9, %v6794_v4, %v967_v45  ;;  %v1547_v40 = vadd.f32 0.05243302, %v1546_v49  ;;  %v1599_v1 = vmul.f32 %v1598_v10, %v6779_v55 }
  0xe8   : > { %vm1009_vm11 = vweird.f32 %v6823_v38  ;;  %v1045_v3 = vsub.f32 1.0, %v1044_v32  ;;  %v1674_v7 = vadd.f32 0.001143296, %v1673_v22  ;;  %v2180_v16 = vmul.f32 %v6901_v28, %v6901_v28 }
  0xe9   : > { %v1007_v33 = vadd.f32 %v6823_v38, %v1006_v51  ;;  %v6925_v20 = vadd.f32 1.0, %v1561_v11  ;;  %v1585_v60 = vadd.f32 0.0036580483, %v1584_v53  ;;  %v1638_v21 = vadd.f32 0.112945676, %v1637_v54  ;;  %vm6943_vm13 = vmor %vm1008_vm10, %vm1009_vm11 }
  0xea   : > { %v937_v24 = vmul.f32 %v936_v62, %v6826_v39  ;;  %vm6928_vm12 = vcmp.eq.f32.partialorder %v1012_v57, 8.507059e+37  ;;  %v1031_v27 = vadd.f32 1.1283791, %v1030_v61  ;;  %v6933_v8 = vadd.f32 %v501_v2, %v6860_v14  ;;  %v520_v39 = vpop.f32.mrf.mxu2 }
  0xeb   : > { %v976_v30 = vsel %vm6871_vm7, %v975_v18, %v971_v63  ;;  %v1548_v41 = vmul.f32 %v1547_v40, %v6743_v6  ;;  %v1600_v43 = vadd.f32 0.4994258, %v1599_v1  ;;  %v1622_v45 = vmul.f32 2.1237322e-06, %v6798_v12 }
  0xec   : > { %v1015_v49 = vor.u32 1.1754944e-38, %v1014_v58  ;;  %v1046_v10 = vmul.f32 %v6865_v25, %v1045_v3  ;;  %v1675_v50 = vmul.f32 %v1674_v7, %v6875_v44  ;;  %v6949_v9 = vmin.f32 %v2180_v16, 16.0 }
  0xed   : > { %v1011_v18 = vsel %vm6943_vm13, %v6823_v38, %v1007_v33  ;;  %6111 = vrcp.f32 %v6925_v20  ;;  %v1586_v51 = vmul.f32 %v1585_v60, %v6779_v55  ;;  %v1639_v56 = vmul.f32 %v1638_v21, %v6798_v12 }
  0xee   : > { %v977_v32 = vmul.f32 %v976_v30, %v6832_v19  ;;  %v1032_v53 = vmul.f32 %v1031_v27, %v6707_v26  ;;  %v2193_v11 = vmul.f32 3.8918573e-05, %v6949_v9  ;;  %v6961_v54 = vmul.f32 0.70710677, %v6933_v8 }
  0xef   : > { %v5882_v22 = vclamps-f32 %v937_v24, 1.0  ;;  %v1549_v59 = vadd.f32 0.18741608, %v1548_v41  ;;  %v1601_v57 = vmul.f32 %v1600_v43, %v6779_v55  ;;  %v1623_v38 = vadd.f32 0.00028619796, %v1622_v45 }
  0xf0   : > { %v1016_v58 = vsel %vm6928_vm12, %v1015_v49, %v1011_v18  ;;  %v1047_v61 = vadd.f32 %v6865_v25, %v1046_v10  ;;  %vm1049_vm14 = vweird.f32 %v6865_v25  ;;  %v1676_v19 = vadd.f32 0.014752088, %v1675_v50 }
  0xf1   : > { %vm1048_vm15 = vweird.f32 %v6813_v29  ;;  %v1054_v26 = vand.u32 2147483648, %v6813_v29  ;;  %v1587_v62 = vadd.f32 0.05243302, %v1586_v51  ;;  %v1640_v63 = vadd.f32 0.4994258, %v1639_v56 }
  0xf2   : > { %v5883_v40 = vclamps-f32 %v977_v32, 1.0  ;;  %v1052_v1 = vand.u32 2147483647, %v6813_v29  ;;  %v2194_v2 = vadd.f32 0.001143296, %v2193_v11  ;;  %v2220_v3 = vmul.f32 %v6961_v54, %v6961_v54  ;;  %vm6976_vm0 = vmor %vm1048_vm15, %vm1049_vm14 }
  0xf3   : > { %v6973_v7 = vpop.eup %6111  ;;  %v3460_v16 = vadd.f32 1.0, %v5882_v22  ;;  %v1017_v33 = vmul.f32 %v1016_v58, %v6887_v46  ;;  %v6980_v21 = vadd.f32 1.0, %v1601_v57  ;;  %v1624_v24 = vmul.f32 %v1623_v38, %v6798_v12 }
  0xf4   : > { %v1051_v29 = vsel %vm6976_vm0, %v6865_v25, %v1047_v61  ;;  %v1550_v4 = vmul.f32 %v1549_v59, %v6743_v6  ;;  %v1677_v27 = vmul.f32 %v1676_v19, %v6875_v44  ;;  %v2195_v30 = vmul.f32 %v2194_v2, %v6949_v9 }
  0xf5   : > { %v1055_v41 = vor.u32 1.1754944e-38, %v1054_v26  ;;  %v1588_v46 = vmul.f32 %v1587_v62, %v6779_v55  ;;  %v1641_v43 = vmul.f32 %v1640_v63, %v6798_v12  ;;  %v1662_v45 = vmul.f32 2.1237322e-06, %v6875_v44 }
  0xf6   : > { %vm1053_vm1 = vcmp.eq.f32.partialorder %v1052_v1, 8.507059e+37  ;;  %v1564_v49 = vmul.f32 %v6973_v7, %v6925_v20  ;;  %v2196_v10 = vadd.f32 0.014752088, %v2195_v30  ;;  %v6994_v25 = vmin.f32 %v2220_v3, 16.0 }
  0xf7   : > { %v3461_v6 = vadd.f32 1.0, %v5883_v40  ;;  %v1056_v50 = vsel %vm1053_vm1, %v1055_v41, %v1051_v29  ;;  %6113 = vrcp.f32 %v6980_v21  ;;  %v1625_v18 = vadd.f32 0.0036580483, %v1624_v24 }
  0xf8   : > { %v5884_v51 = vclamps-f32 %v1017_v33, 1.0  ;;  %v1551_v56 = vadd.f32 1.1283791, %v1550_v4  ;;  %v1678_v32 = vadd.f32 0.112945676, %v1677_v27  ;;  %v6998_v11 = vadd.f32 %v520_v39, %v6860_v14 }
  0xf9   : > { %v7001_v22 = vmul.f32 0.5, %v6747_v13  ;;  %v1589_v59 = vadd.f32 0.18741608, %v1588_v46  ;;  %v7003_v57 = vadd.f32 1.0, %v1641_v43  ;;  %v1663_v38 = vadd.f32 0.00028619796, %v1662_v45 }
  0xfa   : > { %v1057_v58 = vmul.f32 %v1056_v50, %v1032_v53  ;;  %v1565_v61 = vsub.f32 1.0, %v1564_v49  ;;  %v2197_v19 = vmul.f32 %v2196_v10, %v6949_v9  ;;  %v2233_v26 = vmul.f32 3.8918573e-05, %v6994_v25  ;;  %v539_v10 = vpop.f32.mrf.mxu3 }
  0xfb   : > { %v7008_v62 = vmul.f32 %v3460_v16, %v6801_v15  ;;  %v7011_v63 = vmul.f32 %v3461_v6, %v6804_v17  ;;  %v7014_v40 = vmul.f32 0.5, %v6761_v36  ;;  %v1626_v13 = vmul.f32 %v1625_v18, %v6798_v12 }
  0xfc   : > { %v3462_v1 = vadd.f32 1.0, %v5884_v51  ;;  %v1572_v2 = vand.u32 2147483647, %v6925_v20  ;;  %v1679_v53 = vmul.f32 %v1678_v32, %v6875_v44  ;;  %v7020_v3 = vmul.f32 0.70710677, %v6998_v11 }
  0xfd   : > { %v7022_v33 = vpop.eup %6113  ;;  %v1590_v15 = vmul.f32 %v1589_v59, %v6779_v55  ;;  %6115 = vrcp.f32 %v7003_v57  ;;  %v1664_v17 = vmul.f32 %v1663_v38, %v6875_v44  ;;  %v2234_v36 = vadd.f32 0.001143296, %v2233_v26  ;;  %v484_v26 = vpop.f32.mrf.mxu0 }
  0xfe   : > { %v5885_v16 = vclamps-f32 %v1057_v58, 1.0  ;;  %v7028_v60 = vmul.f32 %v1551_v56, %v6732_v52  ;;  %v1566_v24 = vmul.f32 %v6973_v7, %v1565_v61  ;;  %v2198_v29 = vadd.f32 0.112945676, %v2197_v19 }
  0xff   : > { %vm1568_vm2 = vweird.f32 %v6925_v20  ;;  %v1574_v4 = vand.u32 2147483648, %v6925_v20  ;;  %v1627_v27 = vadd.f32 0.05243302, %v1626_v13  ;;  %v2235_v30 = vmul.f32 %v2234_v36, %v6994_v25 }
 0x100   : > { %v1604_v55 = vmul.f32 %v7022_v33, %v6980_v21  ;;  %v1680_v41 = vadd.f32 0.4994258, %v1679_v53  ;;  %v2182_v46 = vmul.f32 2.1237322e-06, %v6949_v9  ;;  %v2260_v52 = vmul.f32 %v7020_v3, %v7020_v3 }
 0x101   : > { %v7040_v43 = vmul.f32 %v3462_v1, %v6808_v23  ;;  %vm7042_vm3 = vcmp.eq.f32.partialorder %v1572_v2, 8.507059e+37  ;;  %v1591_v39 = vadd.f32 1.1283791, %v1590_v15  ;;  %v1665_v49 = vadd.f32 0.0036580483, %v1664_v17  ;;  %v7074_v17 = vpop.permute.xlu0 %359 }
 0x102   : > { %v3463_v6 = vadd.f32 1.0, %v5885_v16  ;;  %v1567_v50 = vadd.f32 %v6973_v7, %v1566_v24  ;;  %vm1569_vm4 = vweird.f32 %v6973_v7  ;;  %v2199_v18 = vmul.f32 %v2198_v29, %v6949_v9 }
 0x103   : > { %11669 = vst [vmem:[#allocation10_spill] sm:$0xff] %v7040_v43  ;;  %v7049_v51 = vpop.eup %6115  ;;  %v1575_v56 = vor.u32 1.1754944e-38, %v1574_v4  ;;  %v1628_v23 = vmul.f32 %v1627_v27, %v6798_v12  ;;  %v2236_v32 = vadd.f32 0.014752088, %v2235_v30  ;;  %v7052_v59 = vmin.f32 %v2260_v52, 16.0  ;;  %vm7060_vm5 = vmor %vm1568_vm2, %vm1569_vm4 }
 0x104   : > { %v1605_v38 = vsub.f32 1.0, %v1604_v55  ;;  %v1681_v58 = vmul.f32 %v1680_v41, %v6875_v44  ;;  %v2183_v61 = vadd.f32 0.00028619796, %v2182_v46  ;;  %v7056_v19 = vadd.f32 %v539_v10, %v6860_v14 }
 0x105   : > { %v7065_v1 = vmul.f32 %v1591_v39, %v6756_v31  ;;  %v7068_v2 = vmul.f32 0.5, %v6836_v47  ;;  %v1666_v53 = vmul.f32 %v1665_v49, %v6875_v44  ;;  %v7072_v15 = vmul.f32 0.5, %v6868_v34 }
 0x106   : > { %v7077_v36 = vmul.f32 %v3463_v6, %v6817_v35  ;;  %v1571_v20 = vsel %vm7060_vm5, %v6973_v7, %v1567_v50  ;;  %v1644_v31 = vmul.f32 %v7049_v51, %v7003_v57  ;;  %v2200_v16 = vadd.f32 0.4994258, %v2199_v18 }
 0x107   : > { %v1629_v47 = vadd.f32 0.18741608, %v1628_v23  ;;  %v2237_v24 = vmul.f32 %v2236_v32, %v6994_v25  ;;  %v2273_v29 = vmul.f32 3.8918573e-05, %v7052_v59  ;;  %v7087_v34 = vadd.f32 %v484_v26, %v7074_v17 }
 0x108   : > { %11674 = vst [vmem:[#allocation11_spill] sm:$0xff] %v7077_v36  ;;  %v1606_v4 = vmul.f32 %v7022_v33, %v1605_v38  ;;  %v7090_v35 = vadd.f32 1.0, %v1681_v58  ;;  %v2184_v27 = vmul.f32 %v2183_v61, %v6949_v9  ;;  %v7094_v7 = vmul.f32 0.70710677, %v7056_v19 }
 0x109   : > { %v1576_v30 = vsel %vm7042_vm3, %v1575_v56, %v1571_v20  ;;  %vm1608_vm6 = vweird.f32 %v6980_v21  ;;  %v1612_v55 = vand.u32 2147483647, %v6980_v21  ;;  %v1667_v41 = vadd.f32 0.05243302, %v1666_v53 }
 0x10a   : > { %v1645_v46 = vsub.f32 1.0, %v1644_v31  ;;  %v2201_v52 = vmul.f32 %v2200_v16, %v6949_v9  ;;  %v2274_v39 = vadd.f32 0.001143296, %v2273_v29  ;;  %v2300_v49 = vmul.f32 %v7094_v7, %v7094_v7 }
 0x10b   : > { %vm1609_vm7 = vweird.f32 %v7022_v33  ;;  %v1614_v10 = vand.u32 2147483648, %v6980_v21  ;;  %v2238_v6 = vadd.f32 0.112945676, %v2237_v24  ;;  %v7106_v45 = vmul.f32 0.70710677, %v7087_v34 }
 0x10c   : > { %v1607_v50 = vadd.f32 %v7022_v33, %v1606_v4  ;;  %6117 = vrcp.f32 %v7090_v35  ;;  %v2185_v18 = vadd.f32 0.0036580483, %v2184_v27  ;;  %v2222_v56 = vmul.f32 2.1237322e-06, %v6994_v25  ;;  %vm7126_vm8 = vmor %vm1608_vm6, %vm1609_vm7 }
 0x10d   : > { %v1577_v23 = vmul.f32 %v1576_v30, %v7028_v60  ;;  %v1630_v32 = vmul.f32 %v1629_v47, %v6798_v12  ;;  %v1668_v38 = vmul.f32 %v1667_v41, %v6875_v44  ;;  %v7114_v58 = vmin.f32 %v2300_v49, 16.0 }
 0x10e   : > { %v1646_v61 = vmul.f32 %v7049_v51, %v1645_v46  ;;  %v7117_v26 = vadd.f32 1.0, %v2201_v52  ;;  %v2275_v13 = vmul.f32 %v2274_v39, %v7052_v59  ;;  %v2820_v53 = vmul.f32 %v7106_v45, %v7106_v45 }
 0x10f   : > { %vm7130_vm9 = vcmp.eq.f32.partialorder %v1612_v55, 8.507059e+37  ;;  %v1615_v20 = vor.u32 1.1754944e-38, %v1614_v10  ;;  %v7135_v31 = vmul.f32 0.5, %v6933_v8  ;;  %v2239_v16 = vmul.f32 %v2238_v6, %v6994_v25 }
 0x110   : > { %v1611_v47 = vsel %vm7126_vm8, %v7022_v33, %v1607_v50  ;;  %v2186_v21 = vmul.f32 %v2185_v18, %v6949_v9  ;;  %v2223_v24 = vadd.f32 0.00028619796, %v2222_v56  ;;  %v2313_v29 = vmul.f32 3.8918573e-05, %v7114_v58 }
 0x111   : > { %v5898_v4 = vclamps-f32 %v1577_v23, 1.0  ;;  %v1631_v27 = vadd.f32 1.1283791, %v1630_v32  ;;  %vm1649_vm10 = vweird.f32 %v7049_v51  ;;  %v1669_v30 = vadd.f32 0.18741608, %v1668_v38 }
 0x112   : > { %v7144_v55 = vpop.eup %6117  ;;  %v1647_v8 = vadd.f32 %v7049_v51, %v1646_v61  ;;  %6119 = vrcp.f32 %v7117_v26  ;;  %v2276_v41 = vadd.f32 0.014752088, %v2275_v13  ;;  %v7148_v46 = vmin.f32 %v2820_v53, 16.0 }
 0x113   : > { %v1616_v33 = vsel %vm7130_vm9, %v1615_v20, %v1611_v47  ;;  %v1654_v52 = vand.u32 2147483648, %v7003_v57  ;;  %v2240_v39 = vadd.f32 0.4994258, %v2239_v16  ;;  %v2314_v49 = vadd.f32 0.001143296, %v2313_v29 }
 0x114   : > { %vm1648_vm11 = vweird.f32 %v7003_v57  ;;  %v1652_v10 = vand.u32 2147483647, %v7003_v57  ;;  %v2187_v6 = vadd.f32 0.05243302, %v2186_v21  ;;  %v2224_v50 = vmul.f32 %v2223_v24, %v6994_v25  ;;  %v503_v24 = vpop.f32.mrf.mxu1 }
 0x115   : > { %v3476_v18 = vadd.f32 1.0, %v5898_v4  ;;  %vm7158_vm12 = vmor %vm1648_vm11, %vm1649_vm10  ;;  %v1670_v23 = vmul.f32 %v1669_v30, %v6875_v44  ;;  %v1684_v32 = vmul.f32 %v7144_v55, %v7090_v35  ;;  %v2315_v38 = vmul.f32 %v2314_v49, %v7114_v58 }
 0x116   : > { %v1617_v61 = vmul.f32 %v1616_v33, %v7065_v1  ;;  %v1651_v57 = vsel %vm7158_vm12, %v7049_v51, %v1647_v8  ;;  %v2277_v13 = vmul.f32 %v2276_v41, %v7052_v59  ;;  %v2833_v53 = vmul.f32 3.8918573e-05, %v7148_v46 }
 0x117   : > { %v1632_v60 = vmul.f32 %v1631_v27, %v6774_v48  ;;  %v1655_v12 = vor.u32 1.1754944e-38, %v1654_v52  ;;  %v2241_v44 = vmul.f32 %v2240_v39, %v6994_v25  ;;  %v2262_v20 = vmul.f32 2.1237322e-06, %v7052_v59 }
 0x118   : > { %v7175_v16 = vpop.eup %6119  ;;  %vm1653_vm13 = vcmp.eq.f32.partialorder %v1652_v10, 8.507059e+37  ;;  %v2188_v1 = vmul.f32 %v2187_v6, %v6949_v9  ;;  %v2225_v47 = vadd.f32 0.0036580483, %v2224_v50  ;;  %v2316_v21 = vadd.f32 0.014752088, %v2315_v38 }
 0x119   : > { %v7179_v51 = vmul.f32 %v3476_v18, %v6820_v37  ;;  %v1656_v29 = vsel %vm1653_vm13, %v1655_v12, %v1651_v57  ;;  %v1671_v4 = vadd.f32 1.1283791, %v1670_v23  ;;  %v1685_v30 = vsub.f32 1.0, %v1684_v32  ;;  %v522_v37 = vpop.f32.mrf.mxu2 }
 0x11a   : > { %v5899_v48 = vclamps-f32 %v1617_v61, 1.0  ;;  %v7182_v27 = vmul.f32 0.5, %v6998_v11  ;;  %v2278_v8 = vadd.f32 0.112945676, %v2277_v13  ;;  %v2834_v41 = vadd.f32 0.001143296, %v2833_v53 }
 0x11b   : > { %v2204_v33 = vmul.f32 %v7175_v16, %v7117_v26  ;;  %v7186_v52 = vadd.f32 1.0, %v2241_v44  ;;  %v2263_v39 = vadd.f32 0.00028619796, %v2262_v20  ;;  %v7189_v49 = vadd.f32 %v503_v24, %v7074_v17 }
 0x11c   : > { %v1657_v10 = vmul.f32 %v1656_v29, %v1632_v60  ;;  %v2189_v6 = vadd.f32 0.18741608, %v2188_v1  ;;  %v2226_v50 = vmul.f32 %v2225_v47, %v6994_v25  ;;  %v2317_v18 = vmul.f32 %v2316_v21, %v7114_v58 }
 0x11d   : > { %v7194_v11 = vmul.f32 %v1671_v4, %v6855_v0  ;;  %v1686_v56 = vmul.f32 %v7144_v55, %v1685_v30  ;;  %v1692_v23 = vand.u32 2147483647, %v7090_v35  ;;  %v1694_v32 = vand.u32 2147483648, %v7090_v35 }
 0x11e   : > { %v3477_v38 = vadd.f32 1.0, %v5899_v48  ;;  %v2279_v61 = vmul.f32 %v2278_v8, %v7052_v59  ;;  %v2835_v57 = vmul.f32 %v2834_v41, %v7148_v46  ;;  %v7202_v13 = vadd.f32 %v522_v37, %v7074_v17 }
 0x11f   : > { %v2205_v53 = vsub.f32 1.0, %v2204_v33  ;;  %6121 = vrcp.f32 %v7186_v52  ;;  %v2264_v0 = vmul.f32 %v2263_v39, %v7052_v59  ;;  %v7207_v60 = vmul.f32 0.70710677, %v7189_v49 }
 0x120   : > { %v5900_v12 = vclamps-f32 %v1657_v10, 1.0  ;;  %v2190_v44 = vmul.f32 %v2189_v6, %v6949_v9  ;;  %v2227_v20 = vadd.f32 0.05243302, %v2226_v50  ;;  %v2318_v1 = vadd.f32 0.112945676, %v2317_v18 }
 0x121   : > { %v1687_v47 = vadd.f32 %v7144_v55, %v1686_v56  ;;  %vm1689_vm14 = vweird.f32 %v7144_v55  ;;  %v2302_v21 = vmul.f32 2.1237322e-06, %v7114_v58  ;;  %v2860_v24 = vmul.f32 %v7207_v60, %v7207_v60 }
 0x122   : > { %vm1688_vm15 = vweird.f32 %v7090_v35  ;;  %v2280_v29 = vadd.f32 0.4994258, %v2279_v61  ;;  %v2836_v4 = vadd.f32 0.014752088, %v2835_v57  ;;  %v7217_v30 = vmul.f32 0.70710677, %v7202_v13 }
 0x123   : > { %vm7219_vm0 = vcmp.eq.f32.partialorder %v1692_v23, 8.507059e+37  ;;  %v2206_v48 = vmul.f32 %v7175_v16, %v2205_v53  ;;  %v2265_v8 = vadd.f32 0.0036580483, %v2264_v0  ;;  %v7224_v41 = vmin.f32 %v2860_v24, 16.0  ;;  %vm7229_vm1 = vmor %vm1688_vm15, %vm1689_vm14 }
 0x124   : > { %v7227_v33 = vmul.f32 %v3477_v38, %v7001_v22  ;;  %v1695_v35 = vor.u32 1.1754944e-38, %v1694_v32  ;;  %v2228_v37 = vmul.f32 %v2227_v20, %v6994_v25  ;;  %v2319_v10 = vmul.f32 %v2318_v1, %v7114_v58  ;;  %v541_v1 = vpop.f32.mrf.mxu3 }
 0x125   : > { %v7235_v6 = vpop.eup %6121  ;;  %v3478_v50 = vadd.f32 1.0, %v5900_v12  ;;  %v1691_v18 = vsel %vm7229_vm1, %v7144_v55, %v1687_v47  ;;  %v2191_v56 = vadd.f32 1.1283791, %v2190_v44  ;;  %v2303_v23 = vadd.f32 0.00028619796, %v2302_v21 }
 0x126   : > { %11683 = vst [vmem:[#allocation12_spill] sm:$0xff] %v7227_v33  ;;  %v2281_v22 = vmul.f32 %v2280_v29, %v7052_v59  ;;  %v2837_v38 = vmul.f32 %v2836_v4, %v7148_v46  ;;  %v2873_v61 = vmul.f32 3.8918573e-05, %v7224_v41  ;;  %v2900_v32 = vmul.f32 %v7217_v30, %v7217_v30 }
 0x127   : > { %v2207_v57 = vadd.f32 %v7175_v16, %v2206_v48  ;;  %vm2209_vm2 = vweird.f32 %v7175_v16  ;;  %v2212_v53 = vand.u32 2147483647, %v7117_v26  ;;  %v2266_v0 = vmul.f32 %v2265_v8, %v7052_v59 }
 0x128   : > { %v2214_v55 = vand.u32 2147483648, %v7117_v26  ;;  %v2229_v12 = vadd.f32 0.18741608, %v2228_v37  ;;  %v2244_v44 = vmul.f32 %v7235_v6, %v7186_v52  ;;  %v2320_v20 = vadd.f32 0.4994258, %v2319_v10 }
 0x129   : > { %v1696_v47 = vsel %vm7219_vm0, %v1695_v35, %v1691_v18  ;;  %vm2208_vm3 = vweird.f32 %v7117_v26  ;;  %v2304_v21 = vmul.f32 %v2303_v23, %v7114_v58  ;;  %v2874_v24 = vadd.f32 0.001143296, %v2873_v61 }
 0x12a   : > { %vm7256_vm4 = vmor %vm2208_vm3, %vm2209_vm2  ;;  %v7260_v4 = vadd.f32 1.0, %v2281_v22  ;;  %v2822_v48 = vmul.f32 2.1237322e-06, %v7148_v46  ;;  %v2838_v8 = vadd.f32 0.112945676, %v2837_v38  ;;  %v7263_v39 = vmin.f32 %v2900_v32, 16.0 }
 0x12b   : > { %v2211_v9 = vsel %vm7256_vm4, %v7175_v16, %v2207_v57  ;;  %vm2213_vm5 = vcmp.eq.f32.partialorder %v2212_v53, 8.507059e+37  ;;  %v2267_v26 = vadd.f32 0.05243302, %v2266_v0  ;;  %v7269_v35 = vadd.f32 %v541_v1, %v7074_v17 }
 0x12c   : > { %v2215_v37 = vor.u32 1.1754944e-38, %v2214_v55  ;;  %v2230_v10 = vmul.f32 %v2229_v12, %v6994_v25  ;;  %v2245_v18 = vsub.f32 1.0, %v2244_v44  ;;  %v2321_v23 = vmul.f32 %v2320_v20, %v7114_v58 }
 0x12d   : > { %v1697_v22 = vmul.f32 %v1696_v47, %v7194_v11  ;;  %v2305_v38 = vadd.f32 0.0036580483, %v2304_v21  ;;  %v2875_v61 = vmul.f32 %v2874_v24, %v7224_v41  ;;  %v2913_v32 = vmul.f32 3.8918573e-05, %v7263_v39 }
 0x12e   : > { %v2216_v29 = vsel %vm2213_vm5, %v2215_v37, %v2211_v9  ;;  %6123 = vrcp.f32 %v7260_v4  ;;  %v2823_v16 = vadd.f32 0.00028619796, %v2822_v48  ;;  %v2839_v57 = vmul.f32 %v2838_v8, %v7148_v46 }
 0x12f   : > { %v2192_v53 = vmul.f32 %v2191_v56, %v6901_v28  ;;  %v2268_v25 = vmul.f32 %v2267_v26, %v7052_v59  ;;  %v7281_v0 = vmul.f32 0.5, %v7056_v19  ;;  %v7284_v11 = vmul.f32 0.70710677, %v7269_v35 }
 0x130   : > { %v7287_v55 = vmul.f32 %v3478_v50, %v7014_v40  ;;  %v2231_v12 = vadd.f32 1.1283791, %v2230_v10  ;;  %v2246_v44 = vmul.f32 %v7235_v6, %v2245_v18  ;;  %v7290_v20 = vadd.f32 1.0, %v2321_v23 }
 0x131   : > { %v2217_v1 = vmul.f32 %v2216_v29, %v2192_v53  ;;  %v2306_v47 = vmul.f32 %v2305_v38, %v7114_v58  ;;  %v2876_v28 = vadd.f32 0.014752088, %v2875_v61  ;;  %v2914_v56 = vadd.f32 0.001143296, %v2913_v32 }
 0x132   : > { %11688 = vst [vmem:[#allocation13_spill] sm:$0xff] %v7287_v55  ;;  %v5901_v21 = vclamps-f32 %v1697_v22, 1.0  ;;  %vm2248_vm6 = vweird.f32 %v7186_v52  ;;  %v2824_v19 = vmul.f32 %v2823_v16, %v7148_v46  ;;  %v2840_v24 = vadd.f32 0.4994258, %v2839_v57 }
 0x133   : > { %v2269_v48 = vadd.f32 0.18741608, %v2268_v25  ;;  %v2862_v40 = vmul.f32 2.1237322e-06, %v7224_v41  ;;  %v2915_v50 = vmul.f32 %v2914_v56, %v7263_v39  ;;  %v2940_v8 = vmul.f32 %v7284_v11, %v7284_v11 }
 0x134   : > { %v7299_v9 = vpop.eup %6123  ;;  %v2247_v26 = vadd.f32 %v7235_v6, %v2246_v44  ;;  %vm2249_vm7 = vweird.f32 %v7235_v6  ;;  %v2252_v37 = vand.u32 2147483647, %v7186_v52  ;;  %6125 = vrcp.f32 %v7290_v20 }
 0x135   : > { %v5914_v10 = vclamps-f32 %v2217_v1, 1.0  ;;  %v2254_v18 = vand.u32 2147483648, %v7186_v52  ;;  %v2307_v23 = vadd.f32 0.05243302, %v2306_v47  ;;  %v2877_v22 = vmul.f32 %v2876_v28, %v7224_v41  ;;  %vm7312_vm8 = vmor %vm2248_vm6, %vm2249_vm7 }
 0x136   : > { %v2825_v38 = vadd.f32 0.0036580483, %v2824_v19  ;;  %v2841_v61 = vmul.f32 %v2840_v24, %v7148_v46  ;;  %v2916_v32 = vadd.f32 0.014752088, %v2915_v50  ;;  %v7308_v29 = vmin.f32 %v2940_v8, 16.0  ;;  %v553_v24 = vpop.f32.mrf.mxu0 }
 0x137   : > { %v2270_v57 = vmul.f32 %v2269_v48, %v7052_v59  ;;  %v2284_v53 = vmul.f32 %v7299_v9, %v7260_v4  ;;  %v7320_v25 = vmul.f32 0.5, %v7087_v34  ;;  %v2863_v44 = vadd.f32 0.00028619796, %v2862_v40 }
 0x138   : > { %v3479_v1 = vadd.f32 1.0, %v5901_v21  ;;  %v2232_v47 = vmul.f32 %v2231_v12, %v6961_v54  ;;  %v2251_v52 = vsel %vm7312_vm8, %v7235_v6, %v2247_v26  ;;  %vm2253_vm9 = vcmp.eq.f32.partialorder %v2252_v37, 8.507059e+37 }
 0x139   : > { %v2255_v28 = vor.u32 1.1754944e-38, %v2254_v18  ;;  %v2308_v56 = vmul.f32 %v2307_v23, %v7114_v58  ;;  %v2878_v19 = vadd.f32 0.112945676, %v2877_v22  ;;  %v2953_v59 = vmul.f32 3.8918573e-05, %v7308_v29 }
 0x13a   : > { %v7328_v48 = vpop.eup %6125  ;;  %v3492_v34 = vadd.f32 1.0, %v5914_v10  ;;  %v2826_v40 = vmul.f32 %v2825_v38, %v7148_v46  ;;  %v7331_v21 = vadd.f32 1.0, %v2841_v61  ;;  %v2917_v54 = vmul.f32 %v2916_v32, %v7263_v39 }
 0x13b   : > { %v2256_v12 = vsel %vm2253_vm9, %v2255_v28, %v2251_v52  ;;  %v2271_v50 = vadd.f32 1.1283791, %v2270_v57  ;;  %v2285_v6 = vsub.f32 1.0, %v2284_v53  ;;  %v2864_v8 = vmul.f32 %v2863_v44, %v7224_v41 }
 0x13c   : > { %v7336_v26 = vmul.f32 %v3479_v1, %v7068_v2  ;;  %v7339_v37 = vmul.f32 0.5, %v7189_v49  ;;  %v2954_v18 = vadd.f32 0.001143296, %v2953_v59  ;;  %v7342_v10 = vadd.f32 %v553_v24, %v6671_v5 }
 0x13d   : > { %v2309_v23 = vadd.f32 0.18741608, %v2308_v56  ;;  %v2324_v22 = vmul.f32 %v7328_v48, %v7290_v20  ;;  %v2879_v38 = vmul.f32 %v2878_v19, %v7224_v41  ;;  %v7348_v61 = vmul.f32 0.5, %v7202_v13 }
 0x13e   : > { %11691 = vst [vmem:[#allocation14_spill] sm:$0xff] %v7336_v26  ;;  %v2257_v32 = vmul.f32 %v2256_v12, %v2232_v47  ;;  %v2827_v16 = vadd.f32 0.05243302, %v2826_v40  ;;  %6127 = vrcp.f32 %v7331_v21  ;;  %v2918_v2 = vadd.f32 0.112945676, %v2917_v54 }
 0x13f   : > { %v7352_v49 = vmul.f32 %v3492_v34, %v7072_v15  ;;  %v7355_v57 = vmul.f32 %v2271_v50, %v7020_v3  ;;  %v2286_v53 = vmul.f32 %v7299_v9, %v2285_v6  ;;  %v2865_v44 = vadd.f32 0.0036580483, %v2864_v8  ;;  %v572_v3 = vpop.f32.mrf.mxu1 }
 0x140   : > { %v2292_v1 = vand.u32 2147483647, %v7260_v4  ;;  %v2294_v52 = vand.u32 2147483648, %v7260_v4  ;;  %v2955_v13 = vmul.f32 %v2954_v18, %v7308_v29  ;;  %v7362_v47 = vmul.f32 0.70710677, %v7342_v10 }
 0x141   : > { %v2310_v28 = vmul.f32 %v2309_v23, %v7114_v58  ;;  %v2325_v56 = vsub.f32 1.0, %v2324_v22  ;;  %v2880_v15 = vadd.f32 0.4994258, %v2879_v38  ;;  %v2902_v19 = vmul.f32 2.1237322e-06, %v7263_v39 }
 0x142   : > { %v5915_v59 = vclamps-f32 %v2257_v32, 1.0  ;;  %v2828_v24 = vmul.f32 %v2827_v16, %v7148_v46  ;;  %v2919_v34 = vmul.f32 %v2918_v2, %v7263_v39  ;;  %v1060_v40 = vmul.f32 %v7362_v47, %v7362_v47  ;;  %v591_v32 = vpop.f32.mrf.mxu2 }
 0x143   : > { %v2287_v54 = vadd.f32 %v7299_v9, %v2286_v53  ;;  %vm2288_vm10 = vweird.f32 %v7260_v4  ;;  %vm2289_vm11 = vweird.f32 %v7299_v9  ;;  %v2866_v58 = vmul.f32 %v2865_v44, %v7224_v41 }
 0x144   : > { %v7374_v12 = vpop.eup %6127  ;;  %vm7376_vm12 = vcmp.eq.f32.partialorder %v2292_v1, 8.507059e+37  ;;  %v2295_v6 = vor.u32 1.1754944e-38, %v2294_v52  ;;  %v2956_v8 = vadd.f32 0.014752088, %v2955_v13  ;;  %v7381_v18 = vadd.f32 %v572_v3, %v6671_v5  ;;  %vm7385_vm13 = vmor %vm2288_vm10, %vm2289_vm11 }
 0x145   : > { %v2311_v23 = vadd.f32 1.1283791, %v2310_v28  ;;  %v2326_v22 = vmul.f32 %v7328_v48, %v2325_v56  ;;  %v2881_v4 = vmul.f32 %v2880_v15, %v7224_v41  ;;  %v2903_v38 = vadd.f32 0.00028619796, %v2902_v19 }
 0x146   : > { %v3493_v16 = vadd.f32 1.0, %v5915_v59  ;;  %v2829_v53 = vadd.f32 0.18741608, %v2828_v24  ;;  %v2920_v44 = vadd.f32 0.4994258, %v2919_v34  ;;  %v7389_v1 = vmin.f32 %v1060_v40, 16.0 }
 0x147   : > { %v2291_v52 = vsel %vm7385_vm13, %v7299_v9, %v2287_v54  ;;  %vm2329_vm14 = vweird.f32 %v7328_v48  ;;  %v2844_v13 = vmul.f32 %v7374_v12, %v7331_v21  ;;  %v2867_v28 = vadd.f32 0.05243302, %v2866_v58 }
 0x148   : > { %v2957_v56 = vmul.f32 %v2956_v8, %v7308_v29  ;;  %v1073_v15 = vmul.f32 3.8918573e-05, %v7389_v1  ;;  %v7400_v19 = vmul.f32 0.70710677, %v7381_v18  ;;  %v7403_v3 = vadd.f32 %v591_v32, %v6671_v5 }
 0x149   : > { %v2327_v59 = vadd.f32 %v7328_v48, %v2326_v22  ;;  %v7406_v24 = vadd.f32 1.0, %v2881_v4  ;;  %v2904_v9 = vmul.f32 %v2903_v38, %v7263_v39  ;;  %v2942_v34 = vmul.f32 2.1237322e-06, %v7308_v29 }
 0x14a   : > { %vm2328_vm15 = vweird.f32 %v7290_v20  ;;  %v2334_v40 = vand.u32 2147483648, %v7290_v20  ;;  %v2921_v54 = vmul.f32 %v2920_v44, %v7263_v39  ;;  %v1074_v58 = vadd.f32 0.001143296, %v1073_v15 }
 0x14b   : > { %v2296_v8 = vsel %vm7376_vm12, %v2295_v6, %v2291_v52  ;;  %v2332_v32 = vand.u32 2147483647, %v7290_v20  ;;  %v2845_v2 = vsub.f32 1.0, %v2844_v13  ;;  %v2868_v22 = vmul.f32 %v2867_v28, %v7224_v41  ;;  %vm7419_vm0 = vmor %vm2328_vm15, %vm2329_vm14 }
 0x14c   : > { %v2958_v38 = vadd.f32 0.112945676, %v2957_v56  ;;  %v1075_v26 = vmul.f32 %v1074_v58, %v7389_v1  ;;  %v1100_v44 = vmul.f32 %v7400_v19, %v7400_v19  ;;  %v7427_v50 = vmul.f32 0.70710677, %v7403_v3 }
 0x14d   : > { %v2331_v20 = vsel %vm7419_vm0, %v7328_v48, %v2327_v59  ;;  %6129 = vrcp.f32 %v7406_v24  ;;  %v2905_v6 = vadd.f32 0.0036580483, %v2904_v9  ;;  %v2943_v52 = vadd.f32 0.00028619796, %v2942_v34 }
 0x14e   : > { %v2297_v13 = vmul.f32 %v2296_v8, %v7355_v57  ;;  %v2335_v28 = vor.u32 1.1754944e-38, %v2334_v40  ;;  %v2830_v56 = vmul.f32 %v2829_v53, %v7148_v46  ;;  %v7435_v15 = vadd.f32 1.0, %v2921_v54 }
 0x14f   : > { %vm2333_vm1 = vcmp.eq.f32.partialorder %v2332_v32, 8.507059e+37  ;;  %v2846_v58 = vmul.f32 %v7374_v12, %v2845_v2  ;;  %v2869_v36 = vadd.f32 0.18741608, %v2868_v22  ;;  %v1076_v55 = vadd.f32 0.014752088, %v1075_v26 }
 0x150   : > { %v2336_v43 = vsel %vm2333_vm1, %v2335_v28, %v2331_v20  ;;  %v2959_v4 = vmul.f32 %v2958_v38, %v7308_v29  ;;  %v7439_v48 = vmin.f32 %v1100_v44, 16.0  ;;  %v1140_v59 = vmul.f32 %v7427_v50, %v7427_v50 }
 0x151   : > { %v7444_v57 = vmul.f32 %v3493_v16, %v7135_v31  ;;  %v2312_v46 = vmul.f32 %v2311_v23, %v7094_v7  ;;  %v2906_v53 = vmul.f32 %v2905_v6, %v7263_v39  ;;  %v2944_v9 = vmul.f32 %v2943_v52, %v7308_v29  ;;  %v610_v6 = vpop.f32.mrf.mxu3 }
 0x152   : > { %v5916_v34 = vclamps-f32 %v2297_v13, 1.0  ;;  %v2831_v40 = vadd.f32 1.1283791, %v2830_v56  ;;  %vm2849_vm2 = vweird.f32 %v7374_v12  ;;  %6131 = vrcp.f32 %v7435_v15 }
 0x153   : > { %v7451_v26 = vpop.eup %6129  ;;  %v2337_v54 = vmul.f32 %v2336_v43, %v2312_v46  ;;  %v2847_v8 = vadd.f32 %v7374_v12, %v2846_v58  ;;  %v2870_v31 = vmul.f32 %v2869_v36, %v7224_v41  ;;  %v1077_v16 = vmul.f32 %v1076_v55, %v7389_v1 }
 0x154   : > { %v2854_v7 = vand.u32 2147483648, %v7331_v21  ;;  %v2960_v23 = vadd.f32 0.4994258, %v2959_v4  ;;  %v1113_v32 = vmul.f32 3.8918573e-05, %v7439_v48  ;;  %v7458_v2 = vmin.f32 %v1140_v59, 16.0 }
 0x155   : > { %vm2848_vm3 = vweird.f32 %v7331_v21  ;;  %v2852_v22 = vand.u32 2147483647, %v7331_v21  ;;  %v2907_v38 = vadd.f32 0.05243302, %v2906_v53  ;;  %v2945_v44 = vadd.f32 0.0036580483, %v2944_v9 }
 0x156   : > { %v3494_v43 = vadd.f32 1.0, %v5916_v34  ;;  %v2832_v20 = vmul.f32 %v2831_v40, %v7106_v45  ;;  %vm7465_vm4 = vmor %vm2848_vm3, %vm2849_vm2  ;;  %v2884_v41 = vmul.f32 %v7451_v26, %v7406_v24  ;;  %v7472_v55 = vmul.f32 0.5, %v7269_v35 }
 0x157   : > { %v5917_v52 = vclamps-f32 %v2337_v54, 1.0  ;;  %v2851_v21 = vsel %vm7465_vm4, %v7374_v12, %v2847_v8  ;;  %v2871_v13 = vadd.f32 1.1283791, %v2870_v31  ;;  %v1078_v45 = vadd.f32 0.112945676, %v1077_v16 }
 0x158   : > { %v7477_v28 = vpop.eup %6131  ;;  %v2855_v56 = vor.u32 1.1754944e-38, %v2854_v7  ;;  %v2961_v58 = vmul.f32 %v2960_v23, %v7308_v29  ;;  %v1114_v4 = vadd.f32 0.001143296, %v1113_v32  ;;  %v1153_v59 = vmul.f32 3.8918573e-05, %v7458_v2 }
 0x159   : > { %vm2853_vm5 = vcmp.eq.f32.partialorder %v2852_v22, 8.507059e+37  ;;  %v2908_v35 = vmul.f32 %v2907_v38, %v7263_v39  ;;  %v2946_v46 = vmul.f32 %v2945_v44, %v7308_v29  ;;  %v7484_v53 = vadd.f32 %v610_v6, %v6671_v5  ;;  %v555_v22 = vpop.f32.mrf.mxu0 }
 0x15a   : > { %v7487_v12 = vmul.f32 %v3494_v43, %v7182_v27  ;;  %v2856_v9 = vsel %vm2853_vm5, %v2855_v56, %v2851_v21  ;;  %v2885_v34 = vsub.f32 1.0, %v2884_v41  ;;  %v1062_v40 = vmul.f32 2.1237322e-06, %v7389_v1 }
 0x15b   : > { %v3495_v54 = vadd.f32 1.0, %v5917_v52  ;;  %v7491_v8 = vmul.f32 %v2871_v13, %v7207_v60  ;;  %v2924_v31 = vmul.f32 %v7477_v28, %v7435_v15  ;;  %v1079_v16 = vmul.f32 %v1078_v45, %v7389_v1 }
 0x15c   : > { %11700 = vst [vmem:[#allocation15_spill] sm:$0xff] %v7487_v12  ;;  %vm2888_vm6 = vweird.f32 %v7406_v24  ;;  %v2892_v7 = vand.u32 2147483647, %v7406_v24  ;;  %v7498_v23 = vadd.f32 1.0, %v2961_v58  ;;  %v1115_v27 = vmul.f32 %v1114_v4, %v7439_v48 }
 0x15d   : > { %v1154_v32 = vadd.f32 0.001143296, %v1153_v59  ;;  %v2857_v38 = vmul.f32 %v2856_v9, %v2832_v20  ;;  %v2909_v44 = vadd.f32 0.18741608, %v2908_v35  ;;  %v2947_v43 = vadd.f32 0.05243302, %v2946_v46 }
 0x15e   : > { %v7502_v60 = vmul.f32 0.70710677, %v7484_v53  ;;  %v2886_v36 = vmul.f32 %v7451_v26, %v2885_v34  ;;  %v2894_v41 = vand.u32 2147483648, %v7406_v24  ;;  %v1063_v6 = vadd.f32 0.00028619796, %v1062_v40 }
 0x15f   : > { %v1102_v52 = vmul.f32 2.1237322e-06, %v7439_v48  ;;  %v7508_v21 = vmul.f32 %v3495_v54, %v7281_v0  ;;  %v2925_v13 = vsub.f32 1.0, %v2924_v31  ;;  %v1080_v45 = vadd.f32 0.4994258, %v1079_v16 }
 0x160   : > { %v7511_v56 = vadd.f32 %v555_v22, %v6723_v42  ;;  %6133 = vrcp.f32 %v7498_v23  ;;  %v1116_v20 = vadd.f32 0.014752088, %v1115_v27  ;;  %v1155_v58 = vmul.f32 %v1154_v32, %v7458_v2 }
 0x161   : > { %11701 = vst [vmem:[#allocation16_spill] sm:$0xff] %v7508_v21  ;;  %v1180_v4 = vmul.f32 %v7502_v60, %v7502_v60  ;;  %v5930_v59 = vclamps-f32 %v2857_v38, 1.0  ;;  %vm2889_vm7 = vweird.f32 %v7451_v26  ;;  %v2910_v35 = vmul.f32 %v2909_v44, %v7263_v39 }
 0x162   : > { %v2948_v0 = vmul.f32 %v2947_v43, %v7308_v29  ;;  %v2887_v46 = vadd.f32 %v7451_v26, %v2886_v36  ;;  %v1064_v9 = vmul.f32 %v1063_v6, %v7389_v1  ;;  %v1103_v34 = vadd.f32 0.00028619796, %v1102_v52  ;;  %vm7539_vm9 = vmor %vm2888_vm6, %vm2889_vm7 }
 0x163   : > { %v7522_v40 = vmin.f32 %v1180_v4, 16.0  ;;  %vm7524_vm8 = vcmp.eq.f32.partialorder %v2892_v7, 8.507059e+37  ;;  %v2895_v31 = vor.u32 1.1754944e-38, %v2894_v41  ;;  %v2926_v16 = vmul.f32 %v7477_v28, %v2925_v13 }
 0x164   : > { %v1081_v27 = vmul.f32 %v1080_v45, %v7389_v1  ;;  %v1117_v39 = vmul.f32 %v1116_v20, %v7439_v48  ;;  %v1156_v32 = vadd.f32 0.014752088, %v1155_v58  ;;  %v7533_v38 = vmul.f32 0.70710677, %v7511_v56 }
 0x165   : > { %v1193_v22 = vmul.f32 3.8918573e-05, %v7522_v40  ;;  %v3508_v44 = vadd.f32 1.0, %v5930_v59  ;;  %v2911_v43 = vadd.f32 1.1283791, %v2910_v35  ;;  %v7544_v41 = vmul.f32 0.5, %v7342_v10 }
 0x166   : > { %v2949_v36 = vadd.f32 0.18741608, %v2948_v0  ;;  %v7546_v6 = vpop.eup %6133  ;;  %v2891_v52 = vsel %vm7539_vm9, %v7451_v26, %v2887_v46  ;;  %vm2929_vm10 = vweird.f32 %v7477_v28  ;;  %v1065_v13 = vadd.f32 0.0036580483, %v1064_v9 }
 0x167   : > { %v1104_v24 = vmul.f32 %v1103_v34, %v7439_v48  ;;  %v2927_v45 = vadd.f32 %v7477_v28, %v2926_v16  ;;  %v1142_v20 = vmul.f32 2.1237322e-06, %v7458_v2  ;;  %v1194_v58 = vadd.f32 0.001143296, %v1193_v22 }
 0x168   : > { %v1700_v10 = vmul.f32 %v7533_v38, %v7533_v38  ;;  %v2934_v4 = vand.u32 2147483648, %v7435_v15  ;;  %v7558_v59 = vadd.f32 1.0, %v1081_v27  ;;  %v1118_v35 = vadd.f32 0.112945676, %v1117_v39 }
 0x169   : > { %v1157_v26 = vmul.f32 %v1156_v32, %v7458_v2  ;;  %v2912_v0 = vmul.f32 %v2911_v43, %v7217_v30  ;;  %vm2928_vm11 = vweird.f32 %v7435_v15  ;;  %v2932_v46 = vand.u32 2147483647, %v7435_v15 }
 0x16a   : > { %v2964_v9 = vmul.f32 %v7546_v6, %v7498_v23  ;;  %v2896_v34 = vsel %vm7524_vm8, %v2895_v31, %v2891_v52  ;;  %vm7570_vm12 = vmor %vm2928_vm11, %vm2929_vm10  ;;  %v1066_v27 = vmul.f32 %v1065_v13, %v7389_v1  ;;  %v1105_v39 = vadd.f32 0.0036580483, %v1104_v24  ;;  %v574_v52 = vpop.f32.mrf.mxu1 }
 0x16b   : > { %v1195_v30 = vmul.f32 %v1194_v58, %v7522_v40  ;;  %v2931_v15 = vsel %vm7570_vm12, %v7477_v28, %v2927_v45  ;;  %v2950_v32 = vmul.f32 %v2949_v36, %v7308_v29  ;;  %v1143_v22 = vadd.f32 0.00028619796, %v1142_v20 }
 0x16c   : > { %v7580_v54 = vmin.f32 %v1700_v10, 16.0  ;;  %v2935_v31 = vor.u32 1.1754944e-38, %v2934_v4  ;;  %6135 = vrcp.f32 %v7558_v59  ;;  %v1119_v7 = vmul.f32 %v1118_v35, %v7439_v48 }
 0x16d   : > { %v1158_v43 = vadd.f32 0.112945676, %v1157_v26  ;;  %v7585_v13 = vmul.f32 %v3508_v44, %v7320_v25  ;;  %v2897_v24 = vmul.f32 %v2896_v34, %v7491_v8  ;;  %vm2933_vm13 = vcmp.eq.f32.partialorder %v2932_v46, 8.507059e+37 }
 0x16e   : > { %v2965_v58 = vsub.f32 1.0, %v2964_v9  ;;  %v2936_v28 = vsel %vm2933_vm13, %v2935_v31, %v2931_v15  ;;  %v1067_v45 = vadd.f32 0.05243302, %v1066_v27  ;;  %v1106_v29 = vmul.f32 %v1105_v39, %v7439_v48 }
 0x16f   : > { %v1196_v36 = vadd.f32 0.014752088, %v1195_v30  ;;  %v2951_v20 = vadd.f32 1.1283791, %v2950_v32  ;;  %v1144_v10 = vmul.f32 %v1143_v22, %v7458_v2  ;;  %v1713_v4 = vmul.f32 3.8918573e-05, %v7580_v54 }
 0x170   : > { %v7592_v35 = vadd.f32 %v574_v52, %v6723_v42  ;;  %v7595_v25 = vmul.f32 0.5, %v7381_v18  ;;  %v1120_v44 = vadd.f32 0.4994258, %v1119_v7  ;;  %v1159_v8 = vmul.f32 %v1158_v43, %v7458_v2  ;;  %v593_v52 = vpop.f32.mrf.mxu2 }
 0x171   : > { %v1182_v26 = vmul.f32 2.1237322e-06, %v7522_v40  ;;  %v5931_v46 = vclamps-f32 %v2897_v24, 1.0  ;;  %v2937_v9 = vmul.f32 %v2936_v28, %v2912_v0  ;;  %v2966_v34 = vmul.f32 %v7546_v6, %v2965_v58 }
 0x172   : > { %v7601_v16 = vmul.f32 0.5, %v7403_v3  ;;  %v7603_v27 = vpop.eup %6135  ;;  %v1068_v39 = vmul.f32 %v1067_v45, %v7389_v1  ;;  %v1107_v30 = vadd.f32 0.05243302, %v1106_v29  ;;  %v1197_v18 = vmul.f32 %v1196_v36, %v7522_v40 }
 0x173   : > { %v1714_v15 = vadd.f32 0.001143296, %v1713_v4  ;;  %v2952_v32 = vmul.f32 %v2951_v20, %v7284_v11  ;;  %vm2968_vm14 = vweird.f32 %v7498_v23  ;;  %v1145_v22 = vadd.f32 0.0036580483, %v1144_v10 }
 0x174   : > { %v7610_v0 = vmul.f32 0.70710677, %v7592_v35  ;;  %v2974_v31 = vand.u32 2147483648, %v7498_v23  ;;  %v1121_v3 = vmul.f32 %v1120_v44, %v7439_v48  ;;  %v1160_v7 = vadd.f32 0.4994258, %v1159_v8 }
 0x175   : > { %v1183_v43 = vadd.f32 0.00028619796, %v1182_v26  ;;  %v5932_v24 = vclamps-f32 %v2937_v9, 1.0  ;;  %v2967_v58 = vadd.f32 %v7546_v6, %v2966_v34  ;;  %vm2969_vm15 = vweird.f32 %v7546_v6 }
 0x176   : > { %v1084_v11 = vmul.f32 %v7603_v27, %v7558_v59  ;;  %v1069_v28 = vadd.f32 0.18741608, %v1068_v39  ;;  %v1108_v45 = vmul.f32 %v1107_v30, %v7439_v48  ;;  %v1198_v29 = vadd.f32 0.112945676, %v1197_v18  ;;  %vm7629_vm0 = vmor %vm2968_vm14, %vm2969_vm15 }
 0x177   : > { %v1715_v36 = vmul.f32 %v1714_v15, %v7580_v54  ;;  %v2972_v20 = vand.u32 2147483647, %v7498_v23  ;;  %v1146_v10 = vmul.f32 %v1145_v22, %v7458_v2  ;;  %v1740_v4 = vmul.f32 %v7610_v0, %v7610_v0 }
 0x178   : > { %v7625_v44 = vadd.f32 %v593_v52, %v6723_v42  ;;  %v3509_v8 = vadd.f32 1.0, %v5931_v46  ;;  %v7633_v9 = vadd.f32 1.0, %v1121_v3  ;;  %v1161_v34 = vmul.f32 %v1160_v7, %v7458_v2 }
 0x179   : > { %v1184_v39 = vmul.f32 %v1183_v43, %v7522_v40  ;;  %v3510_v30 = vadd.f32 1.0, %v5932_v24  ;;  %v2971_v18 = vsel %vm7629_vm0, %v7546_v6, %v2967_v58  ;;  %v2975_v15 = vor.u32 1.1754944e-38, %v2974_v31 }
 0x17a   : > { %v1085_v22 = vsub.f32 1.0, %v1084_v11  ;;  %v1070_v46 = vmul.f32 %v1069_v28, %v7389_v1  ;;  %v1109_v23 = vadd.f32 0.18741608, %v1108_v45  ;;  %v1199_v52 = vmul.f32 %v1198_v29, %v7522_v40 }
 0x17b   : > { %v1716_v21 = vadd.f32 0.014752088, %v1715_v36  ;;  %vm2973_vm1 = vcmp.eq.f32.partialorder %v2972_v20, 8.507059e+37  ;;  %v1147_v3 = vadd.f32 0.05243302, %v1146_v10  ;;  %v7642_v12 = vmin.f32 %v1740_v4, 16.0  ;;  %v612_v4 = vpop.f32.mrf.mxu3 }
 0x17c   : > { %v7645_v7 = vmul.f32 0.70710677, %v7625_v44  ;;  %v2976_v43 = vsel %vm2973_vm1, %v2975_v15, %v2971_v18  ;;  %6137 = vrcp.f32 %v7633_v9  ;;  %v7648_v24 = vadd.f32 1.0, %v1161_v34 }
 0x17d   : > { %v1185_v6 = vadd.f32 0.0036580483, %v1184_v39  ;;  %v7651_v31 = vmul.f32 %v3509_v8, %v7339_v37  ;;  %v7654_v1 = vmul.f32 %v3510_v30, %v7348_v61  ;;  %v1086_v58 = vmul.f32 %v7603_v27, %v1085_v22 }
 0x17e   : > { %v7658_v11 = vmul.f32 0.5, %v7484_v53  ;;  %v1071_v28 = vadd.f32 1.1283791, %v1070_v46  ;;  %v1110_v45 = vmul.f32 %v1109_v23, %v7439_v48  ;;  %v1200_v29 = vadd.f32 0.4994258, %v1199_v52 }
 0x17f   : > { %11710 = vst [vmem:[#allocation17_spill] sm:$0xff] %v7654_v1  ;;  %v1717_v36 = vmul.f32 %v1716_v21, %v7580_v54  ;;  %v2977_v20 = vmul.f32 %v2976_v43, %v2952_v32  ;;  %v1148_v10 = vmul.f32 %v1147_v3, %v7458_v2  ;;  %v1753_v37 = vmul.f32 3.8918573e-05, %v7642_v12 }
 0x180   : > { %v1780_v61 = vmul.f32 %v7645_v7, %v7645_v7  ;;  %v1094_v8 = vand.u32 2147483648, %v7558_v59  ;;  %6139 = vrcp.f32 %v7648_v24  ;;  %v1186_v53 = vmul.f32 %v1185_v6, %v7522_v40 }
 0x181   : > { %v1702_v48 = vmul.f32 2.1237322e-06, %v7580_v54  ;;  %v1087_v26 = vadd.f32 %v7603_v27, %v1086_v58  ;;  %vm1089_vm2 = vweird.f32 %v7603_v27  ;;  %v1754_v21 = vadd.f32 0.001143296, %v1753_v37 }
 0x182   : > { %v7672_v32 = vmin.f32 %v1780_v61, 16.0  ;;  %v7674_v34 = vpop.eup %6137  ;;  %v1092_v39 = vand.u32 2147483647, %v7558_v59  ;;  %v1201_v30 = vmul.f32 %v1200_v29, %v7522_v40  ;;  %v1718_v18 = vadd.f32 0.112945676, %v1717_v36 }
 0x183   : > { %v7679_v15 = vadd.f32 %v612_v4, %v6723_v42  ;;  %v5933_v22 = vclamps-f32 %v2977_v20, 1.0  ;;  %vm1088_vm3 = vweird.f32 %v7558_v59  ;;  %v1111_v46 = vadd.f32 1.1283791, %v1110_v45 }
 0x184   : > { %v1149_v23 = vadd.f32 0.18741608, %v1148_v10  ;;  %v1072_v52 = vmul.f32 %v1071_v28, %v7362_v47  ;;  %vm7683_vm4 = vmor %vm1088_vm3, %vm1089_vm2  ;;  %v1187_v43 = vadd.f32 0.05243302, %v1186_v53  ;;  %v1703_v6 = vadd.f32 0.00028619796, %v1702_v48 }
 0x185   : > { %v1793_v58 = vmul.f32 3.8918573e-05, %v7672_v32  ;;  %v1091_v29 = vsel %vm7683_vm4, %v7603_v27, %v1087_v26  ;;  %v1095_v36 = vor.u32 1.1754944e-38, %v1094_v8  ;;  %v1124_v59 = vmul.f32 %v7674_v34, %v7633_v9  ;;  %v558_v8 = vpop.f32.mrf.mxu0 }
 0x186   : > { %v1755_v45 = vmul.f32 %v1754_v21, %v7642_v12  ;;  %v7694_v20 = vpop.eup %6139  ;;  %v7696_v47 = vadd.f32 1.0, %v1201_v30  ;;  %v1719_v28 = vmul.f32 %v1718_v18, %v7580_v54  ;;  %v7700_v37 = vmul.f32 0.70710677, %v7679_v15 }
 0x187   : > { %v1794_v10 = vadd.f32 0.001143296, %v1793_v58  ;;  %vm1093_vm5 = vcmp.eq.f32.partialorder %v1092_v39, 8.507059e+37  ;;  %v7703_v61 = vmul.f32 %v1111_v46, %v7400_v19  ;;  %v1150_v27 = vmul.f32 %v1149_v23, %v7458_v2 }
 0x188   : > { %v7707_v4 = vmul.f32 0.5, %v7511_v56  ;;  %v3511_v53 = vadd.f32 1.0, %v5933_v22  ;;  %v1096_v48 = vsel %vm1093_vm5, %v1095_v36, %v1091_v29  ;;  %v1188_v26 = vmul.f32 %v1187_v43, %v7522_v40 }
 0x189   : > { %v1704_v21 = vmul.f32 %v1703_v6, %v7580_v54  ;;  %v1125_v30 = vsub.f32 1.0, %v1124_v59  ;;  %v1164_v18 = vmul.f32 %v7694_v20, %v7648_v24  ;;  %v1756_v39 = vadd.f32 0.014752088, %v1755_v45 }
 0x18a   : > { %v1820_v19 = vmul.f32 %v7700_v37, %v7700_v37  ;;  %6141 = vrcp.f32 %v7696_v47  ;;  %v1720_v2 = vadd.f32 0.4994258, %v1719_v28  ;;  %v1795_v56 = vmul.f32 %v1794_v10, %v7672_v32 }
 0x18b   : > { %v7718_v22 = vadd.f32 %v558_v8, %v6860_v14  ;;  %v1132_v46 = vand.u32 2147483647, %v7633_v9  ;;  %v1134_v23 = vand.u32 2147483648, %v7633_v9  ;;  %v1151_v3 = vadd.f32 1.1283791, %v1150_v27 }
 0x18c   : > { %v7722_v43 = vmin.f32 %v1820_v19, 16.0  ;;  %v7725_v6 = vmul.f32 %v3511_v53, %v7472_v55  ;;  %v1097_v58 = vmul.f32 %v1096_v48, %v1072_v52  ;;  %v1189_v29 = vadd.f32 0.18741608, %v1188_v26 }
 0x18d   : > { %v1705_v36 = vadd.f32 0.0036580483, %v1704_v21  ;;  %v1126_v59 = vmul.f32 %v7674_v34, %v1125_v30  ;;  %v1742_v45 = vmul.f32 2.1237322e-06, %v7642_v12  ;;  %v1757_v28 = vmul.f32 %v1756_v39, %v7642_v12 }
 0x18e   : > { %11713 = vst [vmem:[#allocation18_spill] sm:$0xff] %v7725_v6  ;;  %v1833_v10 = vmul.f32 3.8918573e-05, %v7722_v43  ;;  %v1165_v8 = vsub.f32 1.0, %v1164_v18  ;;  %v1721_v1 = vmul.f32 %v1720_v2, %v7580_v54  ;;  %v1796_v27 = vadd.f32 0.014752088, %v1795_v56 }
 0x18f   : > { %v7733_v19 = vmul.f32 0.70710677, %v7718_v22  ;;  %vm1128_vm6 = vweird.f32 %v7633_v9  ;;  %vm7736_vm7 = vcmp.eq.f32.partialorder %v1132_v46, 8.507059e+37  ;;  %v1135_v52 = vor.u32 1.1754944e-38, %v1134_v23 }
 0x190   : > { %v7741_v53 = vmul.f32 %v1151_v3, %v7427_v50  ;;  %v7743_v48 = vpop.eup %6141  ;;  %v5886_v26 = vclamps-f32 %v1097_v58, 1.0  ;;  %vm1129_vm8 = vweird.f32 %v7674_v34  ;;  %v1190_v21 = vmul.f32 %v1189_v29, %v7522_v40 }
 0x191   : > { %v1706_v30 = vmul.f32 %v1705_v36, %v7580_v54  ;;  %v1127_v18 = vadd.f32 %v7674_v34, %v1126_v59  ;;  %v1743_v39 = vadd.f32 0.00028619796, %v1742_v45  ;;  %v1758_v2 = vadd.f32 0.112945676, %v1757_v28  ;;  %vm7764_vm9 = vmor %vm1128_vm6, %vm1129_vm8 }
 0x192   : > { %v1834_v56 = vadd.f32 0.001143296, %v1833_v10  ;;  %v1166_v46 = vmul.f32 %v7694_v20, %v1165_v8  ;;  %v7750_v23 = vadd.f32 1.0, %v1721_v1  ;;  %v1797_v50 = vmul.f32 %v1796_v27, %v7672_v32 }
 0x193   : > { %v2340_v3 = vmul.f32 %v7733_v19, %v7733_v19  ;;  %v1172_v58 = vand.u32 2147483647, %v7648_v24  ;;  %v1174_v40 = vand.u32 2147483648, %v7648_v24  ;;  %v1204_v29 = vmul.f32 %v7743_v48, %v7696_v47 }
 0x194   : > { %v1835_v36 = vmul.f32 %v1834_v56, %v7722_v43  ;;  %v3464_v59 = vadd.f32 1.0, %v5886_v26  ;;  %vm1169_vm10 = vweird.f32 %v7694_v20  ;;  %v1191_v45 = vadd.f32 1.1283791, %v1190_v21 }
 0x195   : > { %v1707_v28 = vadd.f32 0.05243302, %v1706_v30  ;;  %v1131_v10 = vsel %vm7764_vm9, %v7674_v34, %v1127_v18  ;;  %v1744_v8 = vmul.f32 %v1743_v39, %v7642_v12  ;;  %v1759_v27 = vmul.f32 %v1758_v2, %v7642_v12 }
 0x196   : > { %v1782_v26 = vmul.f32 2.1237322e-06, %v7672_v32  ;;  %v1167_v9 = vadd.f32 %v7694_v20, %v1166_v46  ;;  %6143 = vrcp.f32 %v7750_v23  ;;  %v1798_v56 = vadd.f32 0.112945676, %v1797_v50  ;;  %v577_v50 = vpop.f32.mrf.mxu1 }
 0x197   : > { %v7777_v6 = vmin.f32 %v2340_v3, 16.0  ;;  %vm1168_vm11 = vweird.f32 %v7648_v24  ;;  %vm7780_vm12 = vcmp.eq.f32.partialorder %v1172_v58, 8.507059e+37  ;;  %v1205_v34 = vsub.f32 1.0, %v1204_v29 }
 0x198   : > { %v1836_v30 = vadd.f32 0.014752088, %v1835_v36  ;;  %v1136_v18 = vsel %vm7736_vm7, %v1135_v52, %v1131_v10  ;;  %v1175_v39 = vor.u32 1.1754944e-38, %v1174_v40  ;;  %v1708_v2 = vmul.f32 %v1707_v28, %v7580_v54  ;;  %vm7795_vm13 = vmor %vm1168_vm11, %vm1169_vm10 }
 0x199   : > { %v7788_v46 = vmul.f32 0.5, %v7592_v35  ;;  %v7791_v3 = vmul.f32 %v3464_v59, %v7544_v41  ;;  %v1745_v58 = vadd.f32 0.0036580483, %v1744_v8  ;;  %v1760_v29 = vadd.f32 0.4994258, %v1759_v27 }
 0x19a   : > { %v1783_v55 = vadd.f32 0.00028619796, %v1782_v26  ;;  %v1171_v52 = vsel %vm7795_vm13, %v7694_v20, %v1167_v9  ;;  %v1192_v35 = vmul.f32 %v1191_v45, %v7502_v60  ;;  %v1799_v40 = vmul.f32 %v1798_v56, %v7672_v32 }
 0x19b   : > { %11720 = vst [vmem:[#allocation19_spill] sm:$0xff] %v7791_v3  ;;  %v2353_v41 = vmul.f32 3.8918573e-05, %v7777_v6  ;;  %v1137_v36 = vmul.f32 %v1136_v18, %v7703_v61  ;;  %v1206_v59 = vmul.f32 %v7743_v48, %v1205_v34  ;;  %v1837_v1 = vmul.f32 %v1836_v30, %v7722_v43 }
 0x19c   : > { %v7809_v28 = vadd.f32 %v577_v50, %v6860_v14  ;;  %v7811_v10 = vpop.eup %6143  ;;  %vm1208_vm14 = vweird.f32 %v7696_v47  ;;  %v1212_v20 = vand.u32 2147483647, %v7696_v47  ;;  %v1214_v60 = vand.u32 2147483648, %v7696_v47  ;;  %v596_v47 = vpop.f32.mrf.mxu2 }
 0x19d   : > { %v1709_v45 = vadd.f32 0.18741608, %v1708_v2  ;;  %v1176_v8 = vsel %vm7780_vm12, %v1175_v39, %v1171_v52  ;;  %v1746_v61 = vmul.f32 %v1745_v58, %v7642_v12  ;;  %v1761_v27 = vmul.f32 %v1760_v29, %v7642_v12 }
 0x19e   : > { %v1784_v26 = vmul.f32 %v1783_v55, %v7672_v32  ;;  %vm1209_vm15 = vweird.f32 %v7743_v48  ;;  %v1800_v9 = vadd.f32 0.4994258, %v1799_v40  ;;  %v1822_v56 = vmul.f32 2.1237322e-06, %v7722_v43 }
 0x19f   : > { %v2354_v34 = vadd.f32 0.001143296, %v2353_v41  ;;  %v1207_v30 = vadd.f32 %v7743_v48, %v1206_v59  ;;  %v1724_v18 = vmul.f32 %v7811_v10, %v7750_v23  ;;  %v1838_v2 = vadd.f32 0.112945676, %v1837_v1  ;;  %vm7842_vm1 = vmor %vm1208_vm14, %vm1209_vm15 }
 0x1a0   : > { %v7827_v21 = vmul.f32 0.70710677, %v7809_v28  ;;  %v5887_v39 = vclamps-f32 %v1137_v36, 1.0  ;;  %v1177_v50 = vmul.f32 %v1176_v8, %v7741_v53  ;;  %vm7830_vm0 = vcmp.eq.f32.partialorder %v1212_v20, 8.507059e+37 }
 0x1a1   : > { %v2355_v58 = vmul.f32 %v2354_v34, %v7777_v6  ;;  %v1710_v29 = vmul.f32 %v1709_v45, %v7580_v54  ;;  %v1747_v55 = vadd.f32 0.05243302, %v1746_v61  ;;  %v7836_v52 = vadd.f32 1.0, %v1761_v27 }
 0x1a2   : > { %v1785_v40 = vadd.f32 0.0036580483, %v1784_v26  ;;  %v1801_v53 = vmul.f32 %v1800_v9, %v7672_v32  ;;  %v1823_v36 = vadd.f32 0.00028619796, %v1822_v56  ;;  %v2380_v1 = vmul.f32 %v7827_v21, %v7827_v21 }
 0x1a3   : > { %v2356_v59 = vadd.f32 0.014752088, %v2355_v58  ;;  %v1211_v54 = vsel %vm7842_vm1, %v7743_v48, %v1207_v30  ;;  %v1215_v20 = vor.u32 1.1754944e-38, %v1214_v60  ;;  %v1725_v45 = vsub.f32 1.0, %v1724_v18 }
 0x1a4   : > { %v1839_v8 = vmul.f32 %v1838_v2, %v7722_v43  ;;  %v3465_v61 = vadd.f32 1.0, %v5887_v39  ;;  %v5888_v27 = vclamps-f32 %v1177_v50, 1.0  ;;  %v7854_v34 = vmin.f32 %v2380_v1, 16.0 }
 0x1a5   : > { %v2357_v26 = vmul.f32 %v2356_v59, %v7777_v6  ;;  %v1711_v9 = vadd.f32 1.1283791, %v1710_v29  ;;  %v1748_v56 = vmul.f32 %v1747_v55, %v7642_v12  ;;  %6145 = vrcp.f32 %v7836_v52 }
 0x1a6   : > { %v1786_v58 = vmul.f32 %v1785_v40, %v7672_v32  ;;  %v1216_v48 = vsel %vm7830_vm0, %v1215_v20, %v1211_v54  ;;  %v7861_v60 = vadd.f32 1.0, %v1801_v53  ;;  %v1824_v30 = vmul.f32 %v1823_v36, %v7722_v43  ;;  %v615_v54 = vpop.f32.mrf.mxu3 }
 0x1a7   : > { %v7865_v18 = vadd.f32 %v596_v47, %v6860_v14  ;;  %v1726_v2 = vmul.f32 %v7811_v10, %v1725_v45  ;;  %v1840_v39 = vadd.f32 0.4994258, %v1839_v8  ;;  %v2342_v50 = vmul.f32 2.1237322e-06, %v7777_v6 }
 0x1a8   : > { %v2393_v29 = vmul.f32 3.8918573e-05, %v7854_v34  ;;  %v7871_v55 = vmul.f32 %v3465_v61, %v7595_v25  ;;  %v3466_v40 = vadd.f32 1.0, %v5888_v27  ;;  %v7874_v24 = vmul.f32 0.5, %v7625_v44 }
 0x1a9   : > { %v2358_v41 = vadd.f32 0.112945676, %v2357_v26  ;;  %v1217_v53 = vmul.f32 %v1216_v48, %v1192_v35  ;;  %v1712_v36 = vmul.f32 %v1711_v9, %v7533_v38  ;;  %v1787_v59 = vadd.f32 0.05243302, %v1786_v58 }
 0x1aa   : > { %11727 = vst [vmem:[#allocation20_spill] sm:$0xff] %v7871_v55  ;;  %v2394_v1 = vadd.f32 0.001143296, %v2393_v29  ;;  %vm1729_vm2 = vweird.f32 %v7811_v10  ;;  %v1749_v20 = vadd.f32 0.18741608, %v1748_v56  ;;  %v1727_v47 = vadd.f32 %v7811_v10, %v1726_v2 }
 0x1ab   : > { %v1825_v45 = vadd.f32 0.0036580483, %v1824_v30  ;;  %v7879_v8 = vmul.f32 0.70710677, %v7865_v18  ;;  %v7881_v25 = vpop.eup %6145  ;;  %6147 = vrcp.f32 %v7861_v60  ;;  %v1841_v44 = vmul.f32 %v1840_v39, %v7722_v43 }
 0x1ac   : > { %v2343_v35 = vadd.f32 0.00028619796, %v2342_v50  ;;  %vm1728_vm3 = vweird.f32 %v7750_v23  ;;  %v1734_v38 = vand.u32 2147483648, %v7750_v23  ;;  %v2359_v61 = vmul.f32 %v2358_v41, %v7777_v6 }
 0x1ad   : > { %v7890_v27 = vadd.f32 %v615_v54, %v6860_v14  ;;  %v5889_v26 = vclamps-f32 %v1217_v53, 1.0  ;;  %v1732_v9 = vand.u32 2147483647, %v7750_v23  ;;  %v1788_v56 = vmul.f32 %v1787_v59, %v7672_v32  ;;  %vm7897_vm4 = vmor %vm1728_vm3, %vm1729_vm2 }
 0x1ae   : > { %v2395_v58 = vmul.f32 %v2394_v1, %v7854_v34  ;;  %v1750_v30 = vmul.f32 %v1749_v20, %v7642_v12  ;;  %v1764_v2 = vmul.f32 %v7881_v25, %v7836_v52  ;;  %v1826_v39 = vmul.f32 %v1825_v45, %v7722_v43 }
 0x1af   : > { %v2420_v23 = vmul.f32 %v7879_v8, %v7879_v8  ;;  %v7908_v50 = vmul.f32 %v3466_v40, %v7601_v16  ;;  %v1731_v29 = vsel %vm7897_vm4, %v7811_v10, %v1727_v47  ;;  %v7913_v41 = vadd.f32 1.0, %v1841_v44 }
 0x1b0   : > { %v2344_v53 = vmul.f32 %v2343_v35, %v7777_v6  ;;  %v1735_v12 = vor.u32 1.1754944e-38, %v1734_v38  ;;  %v2360_v59 = vadd.f32 0.4994258, %v2359_v61  ;;  %v7919_v54 = vmul.f32 0.70710677, %v7890_v27 }
 0x1b1   : > { %11730 = vst [vmem:[#allocation21_spill] sm:$0xff] %v7908_v50  ;;  %v7916_v1 = vmin.f32 %v2420_v23, 16.0  ;;  %v7921_v20 = vpop.eup %6147  ;;  %v3467_v45 = vadd.f32 1.0, %v5889_v26  ;;  %vm1733_vm5 = vcmp.eq.f32.partialorder %v1732_v9, 8.507059e+37  ;;  %v1789_v16 = vadd.f32 0.18741608, %v1788_v56 }
 0x1b2   : > { %v2396_v40 = vadd.f32 0.014752088, %v2395_v58  ;;  %v1736_v50 = vsel %vm1733_vm5, %v1735_v12, %v1731_v29  ;;  %v1751_v48 = vadd.f32 1.1283791, %v1750_v30  ;;  %v1765_v10 = vsub.f32 1.0, %v1764_v2 }
 0x1b3   : > { %v1827_v47 = vadd.f32 0.05243302, %v1826_v39  ;;  %6149 = vrcp.f32 %v7913_v41  ;;  %v2345_v44 = vadd.f32 0.0036580483, %v2344_v53  ;;  %v2433_v35 = vmul.f32 3.8918573e-05, %v7916_v1 }
 0x1b4   : > { %v2460_v38 = vmul.f32 %v7919_v54, %v7919_v54  ;;  %v1774_v61 = vand.u32 2147483648, %v7836_v52  ;;  %v1804_v26 = vmul.f32 %v7921_v20, %v7861_v60  ;;  %v7931_v9 = vmul.f32 0.5, %v7679_v15 }
 0x1b5   : > { %v2361_v56 = vmul.f32 %v2360_v59, %v7777_v6  ;;  %v1790_v58 = vmul.f32 %v1789_v16, %v7672_v32  ;;  %v2397_v30 = vmul.f32 %v2396_v40, %v7854_v34  ;;  %v2434_v2 = vadd.f32 0.001143296, %v2433_v35 }
 0x1b6   : > { %v7936_v39 = vmin.f32 %v2460_v38, 16.0  ;;  %v7939_v23 = vmul.f32 %v3467_v45, %v7658_v11  ;;  %v1737_v29 = vmul.f32 %v1736_v50, %v1712_v36  ;;  %v1772_v53 = vand.u32 2147483647, %v7836_v52  ;;  %v560_v36 = vpop.f32.mrf.mxu0 }
 0x1b7   : > { %v7943_v12 = vmul.f32 0.5, %v7718_v22  ;;  %v7946_v15 = vmul.f32 %v1751_v48, %v7610_v0  ;;  %v1766_v59 = vmul.f32 %v7881_v25, %v1765_v10  ;;  %v1828_v32 = vmul.f32 %v1827_v47, %v7722_v43 }
 0x1b8   : > { %11731 = vst [vmem:[#allocation22_spill] sm:$0xff] %v7939_v23  ;;  %v2346_v16 = vmul.f32 %v2345_v44, %v7777_v6  ;;  %v1775_v40 = vor.u32 1.1754944e-38, %v1774_v61  ;;  %v1805_v35 = vsub.f32 1.0, %v1804_v26  ;;  %v7951_v38 = vadd.f32 1.0, %v2361_v56 }
 0x1b9   : > { %v2435_v11 = vmul.f32 %v2434_v2, %v7916_v1  ;;  %v7954_v50 = vpop.eup %6149  ;;  %vm1768_vm6 = vweird.f32 %v7836_v52  ;;  %v1791_v22 = vadd.f32 1.1283791, %v1790_v58  ;;  %v2398_v0 = vadd.f32 0.112945676, %v2397_v30 }
 0x1ba   : > { %v2473_v45 = vmul.f32 3.8918573e-05, %v7936_v39  ;;  %v5902_v48 = vclamps-f32 %v1737_v29, 1.0  ;;  %vm1769_vm7 = vweird.f32 %v7881_v25  ;;  %vm7959_vm8 = vcmp.eq.f32.partialorder %v1772_v53, 8.507059e+37 }
 0x1bb   : > { %v7964_v47 = vmul.f32 0.5, %v7809_v28  ;;  %v2382_v44 = vmul.f32 2.1237322e-06, %v7854_v34  ;;  %v1767_v61 = vadd.f32 %v7881_v25, %v1766_v59  ;;  %v1829_v26 = vadd.f32 0.18741608, %v1828_v32  ;;  %vm7984_vm10 = vmor %vm1768_vm6, %vm1769_vm7 }
 0x1bc   : > { %v2347_v56 = vadd.f32 0.05243302, %v2346_v16  ;;  %v7969_v58 = vadd.f32 %v560_v36, %v7074_v17  ;;  %v1806_v30 = vmul.f32 %v7921_v20, %v1805_v35  ;;  %v1844_v2 = vmul.f32 %v7954_v50, %v7913_v41  ;;  %v579_v35 = vpop.f32.mrf.mxu1 }
 0x1bd   : > { %6151 = vrcp.f32 %v7951_v38  ;;  %v2436_v29 = vadd.f32 0.014752088, %v2435_v11  ;;  %v1792_v28 = vmul.f32 %v1791_v22, %v7645_v7  ;;  %vm1808_vm9 = vweird.f32 %v7861_v60 }
 0x1be   : > { %v2399_v53 = vmul.f32 %v2398_v0, %v7854_v34  ;;  %v2474_v59 = vadd.f32 0.001143296, %v2473_v45  ;;  %v3480_v32 = vadd.f32 1.0, %v5902_v48  ;;  %v1812_v16 = vand.u32 2147483647, %v7861_v60 }
 0x1bf   : > { %v1814_v36 = vand.u32 2147483648, %v7861_v60  ;;  %v2383_v23 = vadd.f32 0.00028619796, %v2382_v44  ;;  %vm1809_vm11 = vweird.f32 %v7921_v20  ;;  %v1830_v7 = vmul.f32 %v1829_v26, %v7722_v43 }
 0x1c0   : > { %v2348_v22 = vmul.f32 %v2347_v56, %v7777_v6  ;;  %v7992_v0 = vmul.f32 0.70710677, %v7969_v58  ;;  %v1771_v45 = vsel %vm7984_vm10, %v7881_v25, %v1767_v61  ;;  %v1807_v48 = vadd.f32 %v7921_v20, %v1806_v30  ;;  %vm8019_vm13 = vmor %vm1808_vm9, %vm1809_vm11 }
 0x1c1   : > { %v1845_v52 = vsub.f32 1.0, %v1844_v2  ;;  %v2437_v44 = vmul.f32 %v2436_v29, %v7916_v1  ;;  %v2400_v55 = vadd.f32 0.4994258, %v2399_v53  ;;  %v2475_v3 = vmul.f32 %v2474_v59, %v7936_v39 }
 0x1c2   : > { %v2980_v43 = vmul.f32 %v7992_v0, %v7992_v0  ;;  %v8003_v26 = vadd.f32 %v579_v35, %v7074_v17  ;;  %vm8007_vm12 = vcmp.eq.f32.partialorder %v1812_v16, 8.507059e+37  ;;  %v1815_v25 = vor.u32 1.1754944e-38, %v1814_v36 }
 0x1c3   : > { %v8005_v56 = vpop.eup %6151  ;;  %v2384_v61 = vmul.f32 %v2383_v23, %v7854_v34  ;;  %v2422_v30 = vmul.f32 2.1237322e-06, %v7916_v1  ;;  %v1776_v2 = vsel %vm7959_vm8, %v1775_v40, %v1771_v45  ;;  %v2349_v53 = vadd.f32 0.18741608, %v2348_v22 }
 0x1c4   : > { %v8023_v59 = vmin.f32 %v2980_v43, 16.0  ;;  %v8026_v16 = vmul.f32 0.70710677, %v8003_v26  ;;  %v8029_v23 = vmul.f32 %v3480_v32, %v7707_v4  ;;  %v1811_v40 = vsel %vm8019_vm13, %v7921_v20, %v1807_v48 }
 0x1c5   : > { %v1846_v10 = vmul.f32 %v7954_v50, %v1845_v52  ;;  %v2438_v60 = vadd.f32 0.112945676, %v2437_v44  ;;  %v1831_v36 = vadd.f32 1.1283791, %v1830_v7  ;;  %v2364_v35 = vmul.f32 %v8005_v56, %v7951_v38 }
 0x1c6   : > { %11740 = vst [vmem:[#allocation23_spill] sm:$0xff] %v8029_v23  ;;  %v2401_v11 = vmul.f32 %v2400_v55, %v7854_v34  ;;  %v2476_v22 = vadd.f32 0.014752088, %v2475_v3  ;;  %v1777_v45 = vmul.f32 %v1776_v2, %v7946_v15  ;;  %v1854_v43 = vand.u32 2147483648, %v7913_v41 }
 0x1c7   : > { %v2385_v4 = vadd.f32 0.0036580483, %v2384_v61  ;;  %v2423_v32 = vadd.f32 0.00028619796, %v2422_v30  ;;  %v1816_v29 = vsel %vm8007_vm12, %v1815_v25, %v1811_v40  ;;  %v2350_v20 = vmul.f32 %v2349_v53, %v7777_v6 }
 0x1c8   : > { %v2993_v48 = vmul.f32 3.8918573e-05, %v8023_v59  ;;  %v3020_v7 = vmul.f32 %v8026_v16, %v8026_v16  ;;  %v1847_v52 = vadd.f32 %v7954_v50, %v1846_v10  ;;  %vm1849_vm14 = vweird.f32 %v7954_v50 }
 0x1c9   : > { %v2439_v3 = vmul.f32 %v2438_v60, %v7916_v1  ;;  %v2462_v55 = vmul.f32 2.1237322e-06, %v7936_v39  ;;  %vm1848_vm15 = vweird.f32 %v7913_v41  ;;  %v2365_v15 = vsub.f32 1.0, %v2364_v35 }
 0x1ca   : > { %v8051_v33 = vadd.f32 1.0, %v2401_v11  ;;  %v2477_v6 = vmul.f32 %v2476_v22, %v7936_v39  ;;  %v5903_v44 = vclamps-f32 %v1777_v45, 1.0  ;;  %v1852_v25 = vand.u32 2147483647, %v7913_v41  ;;  %vm8057_vm0 = vmor %vm1848_vm15, %vm1849_vm14 }
 0x1cb   : > { %v2386_v61 = vmul.f32 %v2385_v4, %v7854_v34  ;;  %v2424_v30 = vmul.f32 %v2423_v32, %v7916_v1  ;;  %v1817_v2 = vmul.f32 %v1816_v29, %v1792_v28  ;;  %v1855_v40 = vor.u32 1.1754944e-38, %v1854_v43 }
 0x1cc   : > { %v2994_v10 = vadd.f32 0.001143296, %v2993_v48  ;;  %v8061_v60 = vmin.f32 %v3020_v7, 16.0  ;;  %v1851_v35 = vsel %vm8057_vm0, %v7954_v50, %v1847_v52  ;;  %v2351_v11 = vadd.f32 1.1283791, %v2350_v20 }
 0x1cd   : > { %v2440_v22 = vadd.f32 0.4994258, %v2439_v3  ;;  %v2463_v41 = vadd.f32 0.00028619796, %v2462_v55  ;;  %v2366_v45 = vmul.f32 %v8005_v56, %v2365_v15  ;;  %6153 = vrcp.f32 %v8051_v33  ;;  %v598_v15 = vpop.f32.mrf.mxu2 }
 0x1ce   : > { %v2478_v28 = vadd.f32 0.112945676, %v2477_v6  ;;  %v2995_v4 = vmul.f32 %v2994_v10, %v8023_v59  ;;  %v1832_v32 = vmul.f32 %v1831_v36, %v7700_v37  ;;  %v2387_v43 = vadd.f32 0.05243302, %v2386_v61 }
 0x1cf   : > { %v2425_v29 = vadd.f32 0.0036580483, %v2424_v30  ;;  %v3033_v48 = vmul.f32 3.8918573e-05, %v8061_v60  ;;  %v3481_v7 = vadd.f32 1.0, %v5903_v44  ;;  %v5904_v23 = vclamps-f32 %v1817_v2, 1.0 }
 0x1d0   : > { %vm1853_vm1 = vcmp.eq.f32.partialorder %v1852_v25, 8.507059e+37  ;;  %v8072_v50 = vmul.f32 0.5, %v7865_v18  ;;  %v2374_v52 = vand.u32 2147483648, %v7951_v38  ;;  %v2441_v3 = vmul.f32 %v2440_v22, %v7916_v1 }
 0x1d1   : > { %v1856_v20 = vsel %vm1853_vm1, %v1855_v40, %v1851_v35  ;;  %v2464_v55 = vmul.f32 %v2463_v41, %v7936_v39  ;;  %v2367_v37 = vadd.f32 %v8005_v56, %v2366_v45  ;;  %vm2369_vm2 = vweird.f32 %v8005_v56 }
 0x1d2   : > { %v2479_v36 = vmul.f32 %v2478_v28, %v7936_v39  ;;  %v2996_v6 = vadd.f32 0.014752088, %v2995_v4  ;;  %v2352_v44 = vmul.f32 %v2351_v11, %v7733_v19  ;;  %v2388_v18 = vmul.f32 %v2387_v43, %v7854_v34 }
 0x1d3   : > { %v2426_v25 = vmul.f32 %v2425_v29, %v7916_v1  ;;  %v3034_v61 = vadd.f32 0.001143296, %v3033_v48  ;;  %v8083_v30 = vpop.eup %6153  ;;  %v1857_v2 = vmul.f32 %v1856_v20, %v1832_v32  ;;  %vm2368_vm3 = vweird.f32 %v7951_v38  ;;  %v617_v48 = vpop.f32.mrf.mxu3 }
 0x1d4   : > { %v2372_v53 = vand.u32 2147483647, %v7951_v38  ;;  %v8088_v40 = vadd.f32 %v598_v15, %v7074_v17  ;;  %vm8090_vm4 = vmor %vm2368_vm3, %vm2369_vm2  ;;  %v8094_v19 = vadd.f32 1.0, %v2441_v3  ;;  %v2465_v35 = vadd.f32 0.0036580483, %v2464_v55 }
 0x1d5   : > { %v2982_v11 = vmul.f32 2.1237322e-06, %v8023_v59  ;;  %v3035_v22 = vmul.f32 %v3034_v61, %v8061_v60  ;;  %v2371_v41 = vsel %vm8090_vm4, %v8005_v56, %v2367_v37  ;;  %v2375_v45 = vor.u32 1.1754944e-38, %v2374_v52 }
 0x1d6   : > { %v2480_v38 = vadd.f32 0.4994258, %v2479_v36  ;;  %v2997_v28 = vmul.f32 %v2996_v6, %v8023_v59  ;;  %v2389_v4 = vadd.f32 0.18741608, %v2388_v18  ;;  %v2404_v32 = vmul.f32 %v8083_v30, %v8051_v33 }
 0x1d7   : > { %v2427_v43 = vadd.f32 0.05243302, %v2426_v25  ;;  %v3036_v29 = vadd.f32 0.014752088, %v3035_v22  ;;  %v3482_v20 = vadd.f32 1.0, %v5904_v23  ;;  %v5905_v3 = vclamps-f32 %v1857_v2, 1.0 }
 0x1d8   : > { %vm2373_vm5 = vcmp.eq.f32.partialorder %v2372_v53, 8.507059e+37  ;;  %v8105_v55 = vmul.f32 0.70710677, %v8088_v40  ;;  %6155 = vrcp.f32 %v8094_v19  ;;  %v2466_v56 = vmul.f32 %v2465_v35, %v7936_v39 }
 0x1d9   : > { %v2376_v15 = vsel %vm2373_vm5, %v2375_v45, %v2371_v41  ;;  %v2983_v52 = vadd.f32 0.00028619796, %v2982_v11  ;;  %v2481_v37 = vmul.f32 %v2480_v38, %v7936_v39  ;;  %v2998_v36 = vadd.f32 0.112945676, %v2997_v28 }
 0x1da   : > { %v3037_v6 = vmul.f32 %v3036_v29, %v8061_v60  ;;  %v8112_v18 = vadd.f32 %v617_v48, %v7074_v17  ;;  %v2390_v23 = vmul.f32 %v2389_v4, %v7854_v34  ;;  %v2405_v25 = vsub.f32 1.0, %v2404_v32 }
 0x1db   : > { %v2428_v61 = vmul.f32 %v2427_v43, %v7916_v1  ;;  %v3060_v2 = vmul.f32 %v8105_v55, %v8105_v55  ;;  %v8119_v53 = vmul.f32 %v3481_v7, %v7788_v46  ;;  %v3483_v10 = vadd.f32 1.0, %v5905_v3 }
 0x1dc   : > { %v2377_v35 = vmul.f32 %v2376_v15, %v2352_v44  ;;  %v8122_v11 = vmul.f32 0.5, %v7890_v27  ;;  %v8125_v22 = vmul.f32 %v3482_v20, %v7874_v24  ;;  %v2467_v41 = vadd.f32 0.05243302, %v2466_v56 }
 0x1dd   : > { %11745 = vst [vmem:[#allocation24_spill] sm:$0xff] %v8119_v53  ;;  %v2984_v34 = vmul.f32 %v2983_v52, %v8023_v59  ;;  %v8128_v45 = vmin.f32 %v3060_v2, 16.0  ;;  %v8130_v38 = vadd.f32 1.0, %v2481_v37  ;;  %v2999_v28 = vmul.f32 %v2998_v36, %v8023_v59 }
 0x1de   : > { %11746 = vst [vmem:[#allocation25_spill] sm:$0xff] %v8125_v22  ;;  %v3038_v4 = vadd.f32 0.112945676, %v3037_v6  ;;  %v8134_v46 = vmul.f32 0.70710677, %v8112_v18  ;;  %v8136_v7 = vpop.eup %6155  ;;  %v2406_v44 = vmul.f32 %v8083_v30, %v2405_v25  ;;  %v8140_v32 = vmul.f32 0.5, %v7969_v58  ;;  %v629_v25 = vpop.f32.mrf.mxu0 }
 0x1df   : > { %v2391_v27 = vadd.f32 1.1283791, %v2390_v23  ;;  %v2429_v24 = vadd.f32 0.18741608, %v2428_v61  ;;  %v8143_v43 = vmul.f32 %v3483_v10, %v7931_v9  ;;  %v5918_v29 = vclamps-f32 %v2377_v35, 1.0 }
 0x1e0   : > { %vm2409_vm6 = vweird.f32 %v8083_v30  ;;  %v2412_v48 = vand.u32 2147483647, %v8051_v33  ;;  %v2468_v20 = vmul.f32 %v2467_v41, %v7936_v39  ;;  %v2985_v3 = vadd.f32 0.0036580483, %v2984_v34 }
 0x1e1   : > { %11747 = vst [vmem:[#allocation26_spill] sm:$0xff] %v8143_v43  ;;  %v3022_v15 = vmul.f32 2.1237322e-06, %v8061_v60  ;;  %v3073_v56 = vmul.f32 3.8918573e-05, %v8128_v45  ;;  %6157 = vrcp.f32 %v8130_v38  ;;  %v3039_v58 = vmul.f32 %v3038_v4, %v8061_v60 }
 0x1e2   : > { %v3000_v52 = vadd.f32 0.4994258, %v2999_v28  ;;  %v3100_v9 = vmul.f32 %v8134_v46, %v8134_v46  ;;  %v2407_v37 = vadd.f32 %v8083_v30, %v2406_v44  ;;  %v2430_v36 = vmul.f32 %v2429_v24, %v7916_v1 }
 0x1e3   : > { %v2444_v6 = vmul.f32 %v8136_v7, %v8094_v19  ;;  %v3074_v23 = vadd.f32 0.001143296, %v3073_v56  ;;  %v3496_v61 = vadd.f32 1.0, %v5918_v29  ;;  %vm2408_vm7 = vweird.f32 %v8051_v33 }
 0x1e4   : > { %v2414_v2 = vand.u32 2147483648, %v8051_v33  ;;  %v8160_v10 = vmin.f32 %v3100_v9, 16.0  ;;  %v2469_v35 = vadd.f32 0.18741608, %v2468_v20  ;;  %v2986_v41 = vmul.f32 %v2985_v3, %v8023_v59  ;;  %vm8167_vm8 = vmor %vm2408_vm7, %vm2409_vm6 }
 0x1e5   : > { %v3023_v34 = vadd.f32 0.00028619796, %v3022_v15  ;;  %v3075_v28 = vmul.f32 %v3074_v23, %v8128_v45  ;;  %v2392_v1 = vmul.f32 %v2391_v27, %v7827_v21  ;;  %v3001_v44 = vmul.f32 %v3000_v52, %v8023_v59 }
 0x1e6   : > { %v3040_v24 = vadd.f32 0.4994258, %v3039_v58  ;;  %v8173_v33 = vadd.f32 %v629_v25, %v6671_v5  ;;  %v2411_v29 = vsel %vm8167_vm8, %v8083_v30, %v2407_v37  ;;  %vm2413_vm9 = vcmp.eq.f32.partialorder %v2412_v48, 8.507059e+37  ;;  %v648_v48 = vpop.f32.mrf.mxu1 }
 0x1e7   : > { %v2431_v20 = vadd.f32 1.1283791, %v2430_v36  ;;  %v2445_v3 = vsub.f32 1.0, %v2444_v6  ;;  %v8178_v21 = vpop.eup %6157  ;;  %v2415_v27 = vor.u32 1.1754944e-38, %v2414_v2  ;;  %v8181_v15 = vmul.f32 0.5, %v8003_v26 }
 0x1e8   : > { %v3076_v56 = vadd.f32 0.014752088, %v3075_v28  ;;  %v3113_v52 = vmul.f32 3.8918573e-05, %v8160_v10  ;;  %v8185_v58 = vmul.f32 %v3496_v61, %v7943_v12  ;;  %v2470_v9 = vmul.f32 %v2469_v35, %v7936_v39 }
 0x1e9   : > { %v2987_v23 = vadd.f32 0.05243302, %v2986_v41  ;;  %v3024_v30 = vmul.f32 %v3023_v34, %v8061_v60  ;;  %v2416_v37 = vsel %vm2413_vm9, %v2415_v27, %v2411_v29  ;;  %v8189_v36 = vadd.f32 1.0, %v3001_v44 }
 0x1ea   : > { %v3041_v6 = vmul.f32 %v3040_v24, %v8061_v60  ;;  %v8193_v26 = vmul.f32 0.70710677, %v8173_v33  ;;  %v2432_v25 = vmul.f32 %v2431_v20, %v7879_v8  ;;  %v2446_v2 = vmul.f32 %v8136_v7, %v2445_v3 }
 0x1eb   : > { %v2452_v12 = vand.u32 2147483647, %v8094_v19  ;;  %v2484_v39 = vmul.f32 %v8178_v21, %v8130_v38  ;;  %v3077_v61 = vmul.f32 %v3076_v56, %v8128_v45  ;;  %v3114_v35 = vadd.f32 0.001143296, %v3113_v52 }
 0x1ec   : > { %v1220_v41 = vmul.f32 %v8193_v26, %v8193_v26  ;;  %v8204_v34 = vadd.f32 %v648_v48, %v6671_v5  ;;  %v2417_v28 = vmul.f32 %v2416_v37, %v2392_v1  ;;  %vm2448_vm10 = vweird.f32 %v8094_v19 }
 0x1ed   : > { %v2988_v8 = vmul.f32 %v2987_v23, %v8023_v59  ;;  %v3025_v4 = vadd.f32 0.0036580483, %v3024_v30  ;;  %v2454_v44 = vand.u32 2147483648, %v8094_v19  ;;  %v2471_v24 = vadd.f32 1.1283791, %v2470_v9 }
 0x1ee   : > { %6159 = vrcp.f32 %v8189_v36  ;;  %v8210_v29 = vadd.f32 1.0, %v3041_v6  ;;  %v2447_v20 = vadd.f32 %v8136_v7, %v2446_v2  ;;  %vm2449_vm11 = vweird.f32 %v8136_v7 }
 0x1ef   : > { %v2485_v3 = vsub.f32 1.0, %v2484_v39  ;;  %v8214_v27 = vmin.f32 %v1220_v41, 16.0  ;;  %vm8216_vm12 = vcmp.eq.f32.partialorder %v2452_v12, 8.507059e+37  ;;  %v3078_v56 = vadd.f32 0.112945676, %v3077_v61  ;;  %vm8228_vm13 = vmor %vm2448_vm10, %vm2449_vm11 }
 0x1f0   : > { %v3115_v52 = vmul.f32 %v3114_v35, %v8160_v10  ;;  %v8222_v9 = vmul.f32 0.70710677, %v8204_v34  ;;  %v5919_v23 = vclamps-f32 %v2417_v28, 1.0  ;;  %v2492_v30 = vand.u32 2147483647, %v8130_v38 }
 0x1f1   : > { %v2989_v48 = vadd.f32 0.18741608, %v2988_v8  ;;  %v3026_v37 = vmul.f32 %v3025_v4, %v8061_v60  ;;  %v2494_v2 = vand.u32 2147483648, %v8130_v38  ;;  %6161 = vrcp.f32 %v8210_v29 }
 0x1f2   : > { %v3062_v12 = vmul.f32 2.1237322e-06, %v8128_v45  ;;  %v1233_v39 = vmul.f32 3.8918573e-05, %v8214_v27  ;;  %v2451_v61 = vsel %vm8228_vm13, %v8136_v7, %v2447_v20  ;;  %v2455_v35 = vor.u32 1.1754944e-38, %v2454_v44  ;;  %v667_v44 = vpop.f32.mrf.mxu2 }
 0x1f3   : > { %v2472_v41 = vmul.f32 %v2471_v24, %v7919_v54  ;;  %v2486_v19 = vmul.f32 %v8178_v21, %v2485_v3  ;;  %vm2488_vm14 = vweird.f32 %v8130_v38  ;;  %v3079_v8 = vmul.f32 %v3078_v56, %v8128_v45 }
 0x1f4   : > { %v8241_v28 = vpop.eup %6159  ;;  %v3116_v4 = vadd.f32 0.014752088, %v3115_v52  ;;  %v1260_v43 = vmul.f32 %v8222_v9, %v8222_v9  ;;  %v3497_v22 = vadd.f32 1.0, %v5919_v23  ;;  %vm8247_vm15 = vcmp.eq.f32.partialorder %v2492_v30, 8.507059e+37 }
 0x1f5   : > { %v2990_v7 = vmul.f32 %v2989_v48, %v8023_v59  ;;  %v3027_v54 = vadd.f32 0.05243302, %v3026_v37  ;;  %v2456_v24 = vsel %vm8216_vm12, %v2455_v35, %v2451_v61  ;;  %v2495_v20 = vor.u32 1.1754944e-38, %v2494_v2 }
 0x1f6   : > { %v3063_v3 = vadd.f32 0.00028619796, %v3062_v12  ;;  %v1234_v6 = vadd.f32 0.001143296, %v1233_v39  ;;  %v2487_v56 = vadd.f32 %v8178_v21, %v2486_v19  ;;  %vm2489_vm0 = vweird.f32 %v8178_v21 }
 0x1f7   : > { %v3004_v52 = vmul.f32 %v8241_v28, %v8189_v36  ;;  %v3102_v23 = vmul.f32 2.1237322e-06, %v8160_v10  ;;  %v8259_v30 = vpop.eup %6161  ;;  %v3080_v59 = vadd.f32 0.4994258, %v3079_v8  ;;  %v3117_v48 = vmul.f32 %v3116_v4, %v8160_v10  ;;  %vm8273_vm1 = vmor %vm2488_vm14, %vm2489_vm0 }
 0x1f8   : > { %v8262_v37 = vmin.f32 %v1260_v43, 16.0  ;;  %v8265_v1 = vadd.f32 %v667_v44, %v6671_v5  ;;  %v8268_v2 = vmul.f32 %v3497_v22, %v7964_v47  ;;  %v2457_v12 = vmul.f32 %v2456_v24, %v2432_v25 }
 0x1f9   : > { %v2991_v39 = vadd.f32 1.1283791, %v2990_v7  ;;  %v3028_v61 = vmul.f32 %v3027_v54, %v8061_v60  ;;  %v8278_v19 = vmul.f32 0.5, %v8088_v40  ;;  %v3064_v43 = vmul.f32 %v3063_v3, %v8128_v45 }
 0x1fa   : > { %11756 = vst [vmem:[#allocation27_spill] sm:$0xff] %v8268_v2  ;;  %v1235_v8 = vmul.f32 %v1234_v6, %v8214_v27  ;;  %v1273_v47 = vmul.f32 3.8918573e-05, %v8262_v37  ;;  %v2491_v22 = vsel %vm8273_vm1, %v8178_v21, %v2487_v56  ;;  %v3005_v25 = vsub.f32 1.0, %v3004_v52 }
 0x1fb   : > { %v3044_v38 = vmul.f32 %v8259_v30, %v8210_v29  ;;  %v3103_v4 = vadd.f32 0.00028619796, %v3102_v23  ;;  %v3081_v7 = vmul.f32 %v3080_v59, %v8128_v45  ;;  %v3118_v54 = vadd.f32 0.112945676, %v3117_v48 }
 0x1fc   : > { %v1274_v40 = vadd.f32 0.001143296, %v1273_v47  ;;  %v8290_v44 = vmul.f32 0.70710677, %v8265_v1  ;;  %v5920_v24 = vclamps-f32 %v2457_v12, 1.0  ;;  %v8293_v3 = vmul.f32 %v2991_v39, %v7992_v0 }
 0x1fd   : > { %v3029_v6 = vadd.f32 0.18741608, %v3028_v61  ;;  %v8296_v35 = vmul.f32 0.5, %v8112_v18  ;;  %v2496_v21 = vsel %vm8247_vm15, %v2495_v20, %v2491_v22  ;;  %vm3008_vm2 = vweird.f32 %v8189_v36 }
 0x1fe   : > { %v3065_v56 = vadd.f32 0.0036580483, %v3064_v43  ;;  %v1236_v52 = vadd.f32 0.014752088, %v1235_v8  ;;  %v3006_v23 = vmul.f32 %v8241_v28, %v3005_v25  ;;  %v3045_v59 = vsub.f32 1.0, %v3044_v38 }
 0x1ff   : > { %v3104_v48 = vmul.f32 %v3103_v4, %v8160_v10  ;;  %v1222_v12 = vmul.f32 2.1237322e-06, %v8214_v27  ;;  %v8304_v0 = vadd.f32 1.0, %v3081_v7  ;;  %v3119_v39 = vmul.f32 %v3118_v54, %v8160_v10 }
 0x200   : > { %v1275_v18 = vmul.f32 %v1274_v40, %v8262_v37  ;;  %v1300_v53 = vmul.f32 %v8290_v44, %v8290_v44  ;;  %v3498_v20 = vadd.f32 1.0, %v5920_v24  ;;  %v2497_v61 = vmul.f32 %v2496_v21, %v2472_v41  ;;  %v686_v40 = vpop.f32.mrf.mxu3 }
 0x201   : > { %v3012_v43 = vand.u32 2147483647, %v8189_v36  ;;  %v3014_v8 = vand.u32 2147483648, %v8189_v36  ;;  %vm3009_vm3 = vweird.f32 %v8241_v28  ;;  %v1237_v47 = vmul.f32 %v1236_v52, %v8214_v27 }
 0x202   : > { %v1276_v22 = vadd.f32 0.014752088, %v1275_v18  ;;  %v8314_v25 = vmin.f32 %v1300_v53, 16.0  ;;  %v3007_v38 = vadd.f32 %v8241_v28, %v3006_v23  ;;  %v3066_v4 = vmul.f32 %v3065_v56, %v8128_v45  ;;  %vm8333_vm5 = vmor %vm3008_vm2, %vm3009_vm3 }
 0x203   : > { %v3105_v7 = vadd.f32 0.0036580483, %v3104_v48  ;;  %v1223_v54 = vadd.f32 0.00028619796, %v1222_v12  ;;  %v3046_v41 = vmul.f32 %v8259_v30, %v3045_v59  ;;  %6163 = vrcp.f32 %v8304_v0 }
 0x204   : > { %v3120_v24 = vadd.f32 0.4994258, %v3119_v39  ;;  %v1277_v21 = vmul.f32 %v1276_v22, %v8262_v37  ;;  %v8322_v2 = vmul.f32 %v3498_v20, %v8072_v50  ;;  %vm8324_vm4 = vcmp.eq.f32.partialorder %v3012_v43, 8.507059e+37 }
 0x205   : > { %v3015_v23 = vor.u32 1.1754944e-38, %v3014_v8  ;;  %v3030_v56 = vmul.f32 %v3029_v6, %v8061_v60  ;;  %v5921_v48 = vclamps-f32 %v2497_v61, 1.0  ;;  %v1238_v12 = vadd.f32 0.112945676, %v1237_v47 }
 0x206   : > { %11759 = vst [vmem:[#allocation28_spill] sm:$0xff] %v8322_v2  ;;  %v1313_v50 = vmul.f32 3.8918573e-05, %v8314_v25  ;;  %v8339_v39 = vadd.f32 %v686_v40, %v6671_v5  ;;  %v3011_v18 = vsel %vm8333_vm5, %v8241_v28, %v3007_v38  ;;  %v3067_v60 = vadd.f32 0.05243302, %v3066_v4 }
 0x207   : > { %v3106_v6 = vmul.f32 %v3105_v7, %v8160_v10  ;;  %v1224_v53 = vmul.f32 %v1223_v54, %v8214_v27  ;;  %v3047_v36 = vadd.f32 %v8259_v30, %v3046_v41  ;;  %vm3049_vm6 = vweird.f32 %v8259_v30 }
 0x208   : > { %v3121_v20 = vmul.f32 %v3120_v24, %v8160_v10  ;;  %v1278_v61 = vadd.f32 0.112945676, %v1277_v21  ;;  %v3031_v43 = vadd.f32 1.1283791, %v3030_v56  ;;  %vm3048_vm7 = vweird.f32 %v8210_v29  ;;  %v631_v21 = vpop.f32.mrf.mxu0 }
 0x209   : > { %v3052_v8 = vand.u32 2147483647, %v8210_v29  ;;  %v3054_v47 = vand.u32 2147483648, %v8210_v29  ;;  %v8352_v28 = vpop.eup %6163  ;;  %v3016_v22 = vsel %vm8324_vm4, %v3015_v23, %v3011_v18  ;;  %v1239_v38 = vmul.f32 %v1238_v12, %v8214_v27  ;;  %vm8360_vm8 = vmor %vm3048_vm7, %vm3049_vm6 }
 0x20a   : > { %v1314_v4 = vadd.f32 0.001143296, %v1313_v50  ;;  %v8358_v7 = vmul.f32 0.70710677, %v8339_v39  ;;  %v3499_v54 = vadd.f32 1.0, %v5921_v48  ;;  %v3068_v41 = vmul.f32 %v3067_v60, %v8128_v45 }
 0x20b   : > { %v3107_v24 = vadd.f32 0.05243302, %v3106_v6  ;;  %v1225_v29 = vadd.f32 0.0036580483, %v1224_v53  ;;  %v3051_v52 = vsel %vm8360_vm8, %v8259_v30, %v3047_v36  ;;  %v8368_v23 = vadd.f32 1.0, %v3121_v20 }
 0x20c   : > { %v1262_v56 = vmul.f32 2.1237322e-06, %v8262_v37  ;;  %v1279_v59 = vmul.f32 %v1278_v61, %v8262_v37  ;;  %v3017_v48 = vmul.f32 %v3016_v22, %v8293_v3  ;;  %vm3053_vm9 = vcmp.eq.f32.partialorder %v3052_v8, 8.507059e+37 }
 0x20d   : > { %v3055_v12 = vor.u32 1.1754944e-38, %v3054_v47  ;;  %v3084_v50 = vmul.f32 %v8352_v28, %v8304_v0  ;;  %v1240_v18 = vadd.f32 0.4994258, %v1239_v38  ;;  %v1315_v60 = vmul.f32 %v1314_v4, %v8314_v25 }
 0x20e   : > { %v1340_v6 = vmul.f32 %v8358_v7, %v8358_v7  ;;  %v8379_v30 = vadd.f32 %v631_v21, %v6723_v42  ;;  %v3069_v36 = vadd.f32 0.18741608, %v3068_v41  ;;  %v3108_v20 = vmul.f32 %v3107_v24, %v8160_v10 }
 0x20f   : > { %v3056_v53 = vsel %vm3053_vm9, %v3055_v12, %v3051_v52  ;;  %v1226_v3 = vmul.f32 %v1225_v29, %v8214_v27  ;;  %6165 = vrcp.f32 %v8368_v23  ;;  %v1263_v61 = vadd.f32 0.00028619796, %v1262_v56 }
 0x210   : > { %v1280_v8 = vadd.f32 0.4994258, %v1279_v59  ;;  %v8384_v47 = vmin.f32 %v1340_v6, 16.0  ;;  %v5934_v22 = vclamps-f32 %v3017_v48, 1.0  ;;  %v3032_v38 = vmul.f32 %v3031_v43, %v8026_v16 }
 0x211   : > { %v3085_v4 = vsub.f32 1.0, %v3084_v50  ;;  %v8388_v40 = vmul.f32 0.5, %v8173_v33  ;;  %v8391_v21 = vmul.f32 %v3499_v54, %v8122_v11  ;;  %v1241_v41 = vmul.f32 %v1240_v18, %v8214_v27 }
 0x212   : > { %v1316_v24 = vadd.f32 0.014752088, %v1315_v60  ;;  %v8395_v29 = vmul.f32 0.70710677, %v8379_v30  ;;  %v3057_v52 = vmul.f32 %v3056_v53, %v3032_v38  ;;  %v3070_v56 = vmul.f32 %v3069_v36, %v8128_v45 }
 0x213   : > { %11766 = vst [vmem:[#allocation29_spill] sm:$0xff] %v8391_v21  ;;  %v1227_v59 = vadd.f32 0.05243302, %v1226_v3  ;;  %v8399_v48 = vmul.f32 0.5, %v8204_v34  ;;  %v3109_v16 = vadd.f32 0.18741608, %v3108_v20  ;;  %v1264_v33 = vmul.f32 %v1263_v61, %v8262_v37 }
 0x214   : > { %v1281_v43 = vmul.f32 %v1280_v8, %v8262_v37  ;;  %v1353_v11 = vmul.f32 3.8918573e-05, %v8384_v47  ;;  %v3512_v54 = vadd.f32 1.0, %v5934_v22  ;;  %v3086_v12 = vmul.f32 %v8352_v28, %v3085_v4 }
 0x215   : > { %v8406_v50 = vmul.f32 0.5, %v8265_v1  ;;  %v1302_v18 = vmul.f32 2.1237322e-06, %v8314_v25  ;;  %v8409_v45 = vpop.eup %6165  ;;  %v8411_v60 = vadd.f32 1.0, %v1241_v41  ;;  %v1317_v34 = vmul.f32 %v1316_v24, %v8314_v25  ;;  %v650_v1 = vpop.f32.mrf.mxu1 }
 0x216   : > { %v1354_v6 = vadd.f32 0.001143296, %v1353_v11  ;;  %v1860_v53 = vmul.f32 %v8395_v29, %v8395_v29  ;;  %v5935_v36 = vclamps-f32 %v3057_v52, 1.0  ;;  %v3071_v20 = vadd.f32 1.1283791, %v3070_v56 }
 0x217   : > { %v3094_v3 = vand.u32 2147483648, %v8304_v0  ;;  %v1228_v61 = vmul.f32 %v1227_v59, %v8214_v27  ;;  %vm3089_vm10 = vweird.f32 %v8352_v28  ;;  %v3110_v8 = vmul.f32 %v3109_v16, %v8160_v10 }
 0x218   : > { %v1265_v22 = vadd.f32 0.0036580483, %v1264_v33  ;;  %v8420_v38 = vadd.f32 1.0, %v1281_v43  ;;  %v3087_v4 = vadd.f32 %v8352_v28, %v3086_v12  ;;  %v3124_v41 = vmul.f32 %v8409_v45, %v8368_v23 }
 0x219   : > { %v1303_v24 = vadd.f32 0.00028619796, %v1302_v18  ;;  %v1355_v52 = vmul.f32 %v1354_v6, %v8384_v47  ;;  %6167 = vrcp.f32 %v8411_v60  ;;  %v1318_v56 = vadd.f32 0.112945676, %v1317_v34 }
 0x21a   : > { %v8427_v59 = vmin.f32 %v1860_v53, 16.0  ;;  %v8430_v11 = vadd.f32 %v650_v1, %v6723_v42  ;;  %v3513_v10 = vadd.f32 1.0, %v5935_v36  ;;  %vm3088_vm11 = vweird.f32 %v8304_v0 }
 0x21b   : > { %v3092_v16 = vand.u32 2147483647, %v8304_v0  ;;  %v1229_v33 = vadd.f32 0.18741608, %v1228_v61  ;;  %v8435_v43 = vmul.f32 %v3512_v54, %v8140_v32  ;;  %vm8439_vm12 = vmor %vm3088_vm11, %vm3089_vm10  ;;  %v3095_v18 = vor.u32 1.1754944e-38, %v3094_v3 }
 0x21c   : > { %v1266_v34 = vmul.f32 %v1265_v22, %v8262_v37  ;;  %6169 = vrcp.f32 %v8420_v38  ;;  %v3091_v6 = vsel %vm8439_vm12, %v8352_v28, %v3087_v4  ;;  %v3111_v0 = vadd.f32 1.1283791, %v3110_v8 }
 0x21d   : > { %11767 = vst [vmem:[#allocation30_spill] sm:$0xff] %v8435_v43  ;;  %v1304_v53 = vmul.f32 %v1303_v24, %v8314_v25  ;;  %v1356_v32 = vadd.f32 0.014752088, %v1355_v52  ;;  %v3125_v54 = vsub.f32 1.0, %v3124_v41  ;;  %v1319_v36 = vmul.f32 %v1318_v56, %v8314_v25 }
 0x21e   : > { %v1873_v61 = vmul.f32 3.8918573e-05, %v8427_v59  ;;  %v8452_v1 = vmul.f32 0.70710677, %v8430_v11  ;;  %v8455_v3 = vmul.f32 %v3513_v10, %v8181_v15  ;;  %v3072_v22 = vmul.f32 %v3071_v20, %v8105_v55  ;;  %v669_v55 = vpop.f32.mrf.mxu2 }
 0x21f   : > { %vm3093_vm13 = vcmp.eq.f32.partialorder %v3092_v16, 8.507059e+37  ;;  %v1230_v28 = vmul.f32 %v1229_v33, %v8214_v27  ;;  %v8459_v8 = vpop.eup %6167  ;;  %v3132_v41 = vand.u32 2147483647, %v8368_v23  ;;  %v1267_v24 = vadd.f32 0.05243302, %v1266_v34 }
 0x220   : > { %11770 = vst [vmem:[#allocation31_spill] sm:$0xff] %v8455_v3  ;;  %v3096_v4 = vsel %vm3093_vm13, %v3095_v18, %v3091_v6  ;;  %v1342_v52 = vmul.f32 2.1237322e-06, %v8384_v47  ;;  %v8464_v56 = vmul.f32 %v3111_v0, %v8134_v46  ;;  %v3134_v12 = vand.u32 2147483648, %v8368_v23 }
 0x221   : > { %v1305_v15 = vadd.f32 0.0036580483, %v1304_v53  ;;  %v1357_v10 = vmul.f32 %v1356_v32, %v8384_v47  ;;  %v3126_v27 = vmul.f32 %v8409_v45, %v3125_v54  ;;  %v1320_v16 = vadd.f32 0.4994258, %v1319_v36 }
 0x222   : > { %v8468_v20 = vpop.eup %6169  ;;  %v1874_v33 = vadd.f32 0.001143296, %v1873_v61  ;;  %v1900_v18 = vmul.f32 %v8452_v1, %v8452_v1  ;;  %v3097_v34 = vmul.f32 %v3096_v4, %v3072_v22  ;;  %vm3128_vm14 = vweird.f32 %v8368_v23 }
 0x223   : > { %v1231_v46 = vadd.f32 1.1283791, %v1230_v28  ;;  %v1244_v6 = vmul.f32 %v8459_v8, %v8411_v60  ;;  %vm8476_vm15 = vcmp.eq.f32.partialorder %v3132_v41, 8.507059e+37  ;;  %v1268_v53 = vmul.f32 %v1267_v24, %v8262_v37 }
 0x224   : > { %v1343_v32 = vadd.f32 0.00028619796, %v1342_v52  ;;  %v8481_v54 = vmin.f32 %v1900_v18, 16.0  ;;  %v8484_v36 = vadd.f32 %v669_v55, %v6723_v42  ;;  %v3135_v61 = vor.u32 1.1754944e-38, %v3134_v12 }
 0x225   : > { %v1284_v22 = vmul.f32 %v8468_v20, %v8420_v38  ;;  %v1306_v28 = vmul.f32 %v1305_v15, %v8314_v25  ;;  %v1358_v4 = vadd.f32 0.112945676, %v1357_v10  ;;  %v3127_v41 = vadd.f32 %v8409_v45, %v3126_v27 }
 0x226   : > { %vm3129_vm0 = vweird.f32 %v8409_v45  ;;  %v1321_v21 = vmul.f32 %v1320_v16, %v8314_v25  ;;  %v1875_v24 = vmul.f32 %v1874_v33, %v8427_v59  ;;  %v5936_v52 = vclamps-f32 %v3097_v34, 1.0 }
 0x227   : > { %v1245_v18 = vsub.f32 1.0, %v1244_v6  ;;  %v8494_v55 = vmul.f32 0.5, %v8339_v39  ;;  %v1913_v12 = vmul.f32 3.8918573e-05, %v8481_v54  ;;  %v8498_v2 = vmul.f32 %v1231_v46, %v8193_v26  ;;  %vm8506_vm1 = vmor %vm3128_vm14, %vm3129_vm0 }
 0x228   : > { %v1269_v15 = vadd.f32 0.18741608, %v1268_v53  ;;  %v1344_v10 = vmul.f32 %v1343_v32, %v8384_v47  ;;  %v8502_v27 = vmul.f32 0.70710677, %v8484_v36  ;;  %vm1248_vm2 = vweird.f32 %v8411_v60 }
 0x229   : > { %v1285_v39 = vsub.f32 1.0, %v1284_v22  ;;  %v1307_v33 = vadd.f32 0.05243302, %v1306_v28  ;;  %v1359_v34 = vmul.f32 %v1358_v4, %v8384_v47  ;;  %v1914_v26 = vadd.f32 0.001143296, %v1913_v12 }
 0x22a   : > { %v3131_v46 = vsel %vm8506_vm1, %v8409_v45, %v3127_v41  ;;  %v8515_v6 = vadd.f32 1.0, %v1321_v21  ;;  %v1862_v53 = vmul.f32 2.1237322e-06, %v8427_v59  ;;  %v1876_v23 = vadd.f32 0.014752088, %v1875_v24 }
 0x22b   : > { %v8518_v32 = vadd.f32 1.0, %v5936_v52  ;;  %v1246_v3 = vmul.f32 %v8459_v8, %v1245_v18  ;;  %v1252_v43 = vand.u32 2147483647, %v8411_v60  ;;  %v1254_v22 = vand.u32 2147483648, %v8411_v60 }
 0x22c   : > { %v1270_v28 = vmul.f32 %v1269_v15, %v8262_v37  ;;  %v1345_v4 = vadd.f32 0.0036580483, %v1344_v10  ;;  %v1915_v12 = vmul.f32 %v1914_v26, %v8481_v54  ;;  %v1940_v21 = vmul.f32 %v8502_v27, %v8502_v27  ;;  %v688_v26 = vpop.f32.mrf.mxu3 }
 0x22d   : > { %v3136_v45 = vsel %vm8476_vm15, %v3135_v61, %v3131_v46  ;;  %v1286_v41 = vmul.f32 %v8468_v20, %v1285_v39  ;;  %v1308_v24 = vmul.f32 %v1307_v33, %v8314_v25  ;;  %v1360_v52 = vadd.f32 0.4994258, %v1359_v34 }
 0x22e   : > { %6171 = vrcp.f32 %v8515_v6  ;;  %v1863_v18 = vadd.f32 0.00028619796, %v1862_v53  ;;  %v1877_v16 = vmul.f32 %v1876_v23, %v8427_v59  ;;  %v1916_v37 = vadd.f32 0.014752088, %v1915_v12 }
 0x22f   : > { %v1247_v15 = vadd.f32 %v8459_v8, %v1246_v3  ;;  %vm1249_vm3 = vweird.f32 %v8459_v8  ;;  %vm8535_vm4 = vcmp.eq.f32.partialorder %v1252_v43, 8.507059e+37  ;;  %v8539_v0 = vmin.f32 %v1940_v21, 16.0 }
 0x230   : > { %v3137_v61 = vmul.f32 %v3136_v45, %v8464_v56  ;;  %v1255_v39 = vor.u32 1.1754944e-38, %v1254_v22  ;;  %v1346_v33 = vmul.f32 %v1345_v4, %v8384_v47  ;;  %v1917_v34 = vmul.f32 %v1916_v37, %v8481_v54  ;;  %vm8548_vm5 = vmor %vm1248_vm2, %vm1249_vm3 }
 0x231   : > { %v1271_v46 = vadd.f32 1.1283791, %v1270_v28  ;;  %v1294_v53 = vand.u32 2147483648, %v8420_v38  ;;  %v1309_v3 = vadd.f32 0.18741608, %v1308_v24  ;;  %v1361_v23 = vmul.f32 %v1360_v52, %v8384_v47 }
 0x232   : > { %v1287_v56 = vadd.f32 %v8468_v20, %v1286_v41  ;;  %vm1289_vm6 = vweird.f32 %v8468_v20  ;;  %v1864_v22 = vmul.f32 %v1863_v18, %v8427_v59  ;;  %v1878_v4 = vadd.f32 0.112945676, %v1877_v16 }
 0x233   : > { %v1251_v28 = vsel %vm8548_vm5, %v8459_v8, %v1247_v15  ;;  %v1918_v12 = vadd.f32 0.112945676, %v1917_v34  ;;  %v1953_v21 = vmul.f32 3.8918573e-05, %v8539_v0  ;;  %v8560_v60 = vadd.f32 %v688_v26, %v6723_v42 }
 0x234   : > { %v8562_v45 = vpop.eup %6171  ;;  %v5937_v24 = vclamps-f32 %v3137_v61, 1.0  ;;  %vm1288_vm7 = vweird.f32 %v8420_v38  ;;  %v1292_v41 = vand.u32 2147483647, %v8420_v38  ;;  %v1347_v52 = vadd.f32 0.05243302, %v1346_v33 }
 0x235   : > { %vm8566_vm8 = vmor %vm1288_vm7, %vm1289_vm6  ;;  %v1295_v16 = vor.u32 1.1754944e-38, %v1294_v53  ;;  %v1310_v8 = vmul.f32 %v1309_v3, %v8314_v25  ;;  %v8571_v37 = vadd.f32 1.0, %v1361_v23  ;;  %v1902_v15 = vmul.f32 2.1237322e-06, %v8481_v54  ;;  %v634_v23 = vpop.f32.mrf.mxu0 }
 0x236   : > { %v1256_v34 = vsel %vm8535_vm4, %v1255_v39, %v1251_v28  ;;  %v1291_v61 = vsel %vm8566_vm8, %v8468_v20, %v1287_v56  ;;  %v1865_v38 = vadd.f32 0.0036580483, %v1864_v22  ;;  %v1879_v33 = vmul.f32 %v1878_v4, %v8427_v59 }
 0x237   : > { %v1324_v26 = vmul.f32 %v8562_v45, %v8515_v6  ;;  %v1919_v53 = vmul.f32 %v1918_v12, %v8481_v54  ;;  %v1954_v25 = vadd.f32 0.001143296, %v1953_v21  ;;  %v8584_v3 = vmul.f32 0.70710677, %v8560_v60 }
 0x238   : > { %v3515_v43 = vadd.f32 1.0, %v5937_v24  ;;  %v1272_v10 = vmul.f32 %v1271_v46, %v8222_v9  ;;  %vm1293_vm9 = vcmp.eq.f32.partialorder %v1292_v41, 8.507059e+37  ;;  %v1348_v39 = vmul.f32 %v1347_v52, %v8384_v47 }
 0x239   : > { %v1296_v20 = vsel %vm1293_vm9, %v1295_v16, %v1291_v61  ;;  %6173 = vrcp.f32 %v8571_v37  ;;  %v1903_v56 = vadd.f32 0.00028619796, %v1902_v15  ;;  %v1980_v22 = vmul.f32 %v8584_v3, %v8584_v3 }
 0x23a   : > { %v1257_v4 = vmul.f32 %v1256_v34, %v8498_v2  ;;  %v1311_v28 = vadd.f32 1.1283791, %v1310_v8  ;;  %v1880_v12 = vadd.f32 0.4994258, %v1879_v33  ;;  %v8593_v21 = vadd.f32 %v634_v23, %v6860_v14 }
 0x23b   : > { %v1325_v24 = vsub.f32 1.0, %v1324_v26  ;;  %v1866_v9 = vmul.f32 %v1865_v38, %v8427_v59  ;;  %v1920_v46 = vadd.f32 0.4994258, %v1919_v53  ;;  %v1955_v41 = vmul.f32 %v1954_v25, %v8539_v0 }
 0x23c   : > { %v8599_v52 = vmul.f32 %v8518_v32, %v8278_v19  ;;  %v1297_v18 = vmul.f32 %v1296_v20, %v1272_v10  ;;  %v8602_v16 = vmul.f32 0.5, %v8379_v30  ;;  %v8604_v2 = vmin.f32 %v1980_v22, 16.0 }
 0x23d   : > { %v8607_v8 = vmul.f32 %v3515_v43, %v8296_v35  ;;  %v1349_v15 = vadd.f32 0.18741608, %v1348_v39  ;;  %v8610_v34 = vmul.f32 0.5, %v8430_v11  ;;  %v1904_v61 = vmul.f32 %v1903_v56, %v8481_v54 }
 0x23e   : > { %v5890_v38 = vclamps-f32 %v1257_v4, 1.0  ;;  %v8614_v33 = vmul.f32 %v1311_v28, %v8290_v44  ;;  %v1881_v19 = vmul.f32 %v1880_v12, %v8427_v59  ;;  %v8618_v30 = vmul.f32 0.70710677, %v8593_v21 }
 0x23f   : > { %v8620_v32 = vpop.eup %6173  ;;  %v1326_v35 = vmul.f32 %v8562_v45, %v1325_v24  ;;  %v1867_v26 = vadd.f32 0.05243302, %v1866_v9  ;;  %v1921_v53 = vmul.f32 %v1920_v46, %v8481_v54  ;;  %v1956_v11 = vadd.f32 0.014752088, %v1955_v41  ;;  %v653_v9 = vpop.f32.mrf.mxu1 }
 0x240   : > { %v5891_v25 = vclamps-f32 %v1297_v18, 1.0  ;;  %vm1328_vm10 = vweird.f32 %v8515_v6  ;;  %v1332_v23 = vand.u32 2147483647, %v8515_v6  ;;  %v1993_v44 = vmul.f32 3.8918573e-05, %v8604_v2 }
 0x241   : > { %vm1329_vm11 = vweird.f32 %v8562_v45  ;;  %v1350_v43 = vmul.f32 %v1349_v15, %v8384_v47  ;;  %v1905_v10 = vadd.f32 0.0036580483, %v1904_v61  ;;  %v1942_v39 = vmul.f32 2.1237322e-06, %v8539_v0 }
 0x242   : > { %v1364_v20 = vmul.f32 %v8620_v32, %v8571_v37  ;;  %v8632_v56 = vadd.f32 1.0, %v1881_v19  ;;  %v1994_v22 = vadd.f32 0.001143296, %v1993_v44  ;;  %v2500_v4 = vmul.f32 %v8618_v30, %v8618_v30  ;;  %vm8652_vm13 = vmor %vm1328_vm10, %vm1329_vm11 }
 0x243   : > { %v1327_v28 = vadd.f32 %v8562_v45, %v1326_v35  ;;  %v1868_v12 = vmul.f32 %v1867_v26, %v8427_v59  ;;  %v8638_v24 = vadd.f32 1.0, %v1921_v53  ;;  %v1957_v47 = vmul.f32 %v1956_v11, %v8539_v0 }
 0x244   : > { %v3468_v46 = vadd.f32 1.0, %v5890_v38  ;;  %vm8641_vm12 = vcmp.eq.f32.partialorder %v1332_v23, 8.507059e+37  ;;  %v1334_v18 = vand.u32 2147483648, %v8515_v6  ;;  %v1995_v15 = vmul.f32 %v1994_v22, %v8604_v2 }
 0x245   : > { %v3469_v61 = vadd.f32 1.0, %v5891_v25  ;;  %v1351_v19 = vadd.f32 1.1283791, %v1350_v43  ;;  %v1906_v35 = vmul.f32 %v1905_v10, %v8481_v54  ;;  %v1943_v44 = vadd.f32 0.00028619796, %v1942_v39 }
 0x246   : > { %v1365_v38 = vsub.f32 1.0, %v1364_v20  ;;  %6175 = vrcp.f32 %v8632_v56  ;;  %v8657_v53 = vmin.f32 %v2500_v4, 16.0  ;;  %v8660_v11 = vadd.f32 %v653_v9, %v6860_v14 }
 0x247   : > { %v1331_v25 = vsel %vm8652_vm13, %v8562_v45, %v1327_v28  ;;  %v1869_v23 = vadd.f32 0.18741608, %v1868_v12  ;;  %6177 = vrcp.f32 %v8638_v24  ;;  %v1958_v6 = vadd.f32 0.112945676, %v1957_v47 }
 0x248   : > { %v8667_v43 = vmul.f32 %v3468_v46, %v8388_v40  ;;  %v1335_v10 = vor.u32 1.1754944e-38, %v1334_v18  ;;  %v8670_v39 = vmul.f32 0.5, %v8484_v36  ;;  %v1996_v20 = vadd.f32 0.014752088, %v1995_v15 }
 0x249   : > { %v8673_v22 = vmul.f32 %v3469_v61, %v8399_v48  ;;  %v8676_v4 = vmul.f32 %v1351_v19, %v8358_v7  ;;  %v1907_v9 = vadd.f32 0.05243302, %v1906_v35  ;;  %v1944_v45 = vmul.f32 %v1943_v44, %v8539_v0 }
 0x24a   : > { %v1336_v28 = vsel %vm8641_vm12, %v1335_v10, %v1331_v25  ;;  %v1366_v40 = vmul.f32 %v8620_v32, %v1365_v38  ;;  %v2513_v12 = vmul.f32 3.8918573e-05, %v8657_v53  ;;  %v8684_v36 = vmul.f32 0.70710677, %v8660_v11 }
 0x24b   : > { %v1372_v47 = vand.u32 2147483647, %v8571_v37  ;;  %v1870_v48 = vmul.f32 %v1869_v23, %v8427_v59  ;;  %v1959_v7 = vmul.f32 %v1958_v6, %v8539_v0  ;;  %v1982_v46 = vmul.f32 2.1237322e-06, %v8604_v2 }
 0x24c   : > { %v8690_v18 = vpop.eup %6175  ;;  %v1374_v41 = vand.u32 2147483648, %v8571_v37  ;;  %v1997_v15 = vmul.f32 %v1996_v20, %v8604_v2  ;;  %v2514_v61 = vadd.f32 0.001143296, %v2513_v12  ;;  %v3606_v19 = vpack.c.bf16 %v7585_v13, %v7352_v49 }
 0x24d   : > { %v8696_v35 = vpop.eup %6177  ;;  %v1337_v44 = vmul.f32 %v1336_v28, %v8614_v33  ;;  %v1908_v59 = vmul.f32 %v1907_v9, %v8481_v54  ;;  %v1945_v26 = vadd.f32 0.0036580483, %v1944_v45  ;;  %v3607_v38 = vpack.c.bf16 %v7651_v31, %v7444_v57 }
 0x24e   : > { %v1367_v25 = vadd.f32 %v8620_v32, %v1366_v40  ;;  %vm1369_vm14 = vweird.f32 %v8620_v32  ;;  %v2515_v23 = vmul.f32 %v2514_v61, %v8657_v53  ;;  %v2540_v6 = vmul.f32 %v8684_v36, %v8684_v36  ;;  %3649 = vmatpush.bf16.msra.mxu0 %v3606_v19 }
 0x24f   : > { %v1871_v49 = vadd.f32 1.1283791, %v1870_v48  ;;  %v1884_v13 = vmul.f32 %v8690_v18, %v8632_v56  ;;  %v1960_v33 = vadd.f32 0.4994258, %v1959_v7  ;;  %v1983_v10 = vadd.f32 0.00028619796, %v1982_v46  ;;  %3663 = vmatpush.bf16.msra.mxu1 %v3607_v38 }
 0x250   : > { %vm1368_vm15 = vweird.f32 %v8571_v37  ;;  %v1924_v57 = vmul.f32 %v8696_v35, %v8638_v24  ;;  %v1998_v31 = vadd.f32 0.112945676, %v1997_v15  ;;  %v3590_v20 = vpack.c.bf16 %v7179_v51, %v7008_v62 }
 0x251   : > { %vm8714_vm0 = vmor %vm1368_vm15, %vm1369_vm14  ;;  %vm8718_vm1 = vcmp.eq.f32.partialorder %v1372_v47, 8.507059e+37  ;;  %v1909_v28 = vadd.f32 0.18741608, %v1908_v59  ;;  %v1946_v40 = vmul.f32 %v1945_v26, %v8539_v0  ;;  %v2516_v12 = vadd.f32 0.014752088, %v2515_v23  ;;  %v11789_v59 = vld [vmem:[#allocation12_spill] sm:$0xff] }
 0x252   : > { %v5892_v37 = vclamps-f32 %v1337_v44, 1.0  ;;  %v1371_v48 = vsel %vm8714_vm0, %v8620_v32, %v1367_v25  ;;  %v1375_v7 = vor.u32 1.1754944e-38, %v1374_v41  ;;  %v8726_v46 = vmin.f32 %v2540_v6, 16.0  ;;  %3650 = vmatpush.bf16.msra.mxu0 %v3590_v20 }
 0x253   : > { %v8729_v62 = vmul.f32 %v1871_v49, %v8395_v29  ;;  %v1885_v51 = vsub.f32 1.0, %v1884_v13  ;;  %v1961_v47 = vmul.f32 %v1960_v33, %v8539_v0  ;;  %v1984_v15 = vmul.f32 %v1983_v10, %v8604_v2  ;;  %v691_v10 = vpop.f32.mrf.mxu3 }
 0x254   : > { %v1894_v61 = vand.u32 2147483648, %v8632_v56  ;;  %v1925_v19 = vsub.f32 1.0, %v1924_v57  ;;  %v1999_v44 = vmul.f32 %v1998_v31, %v8604_v2  ;;  %v3591_v32 = vpack.c.bf16 %v11789_v59, %v7011_v63 }
 0x255   : > { %v1376_v41 = vsel %vm8718_vm1, %v1375_v7, %v1371_v48  ;;  %v1910_v26 = vmul.f32 %v1909_v28, %v8481_v54  ;;  %v1947_v29 = vadd.f32 0.05243302, %v1946_v40  ;;  %v2517_v38 = vmul.f32 %v2516_v12, %v8657_v53  ;;  %v672_v54 = vpop.f32.mrf.mxu2  ;;  %v11792_v7 = vld [vmem:[#allocation15_spill] sm:$0xff] }
 0x256   : > { %v8741_v25 = vadd.f32 1.0, %v5892_v37  ;;  %vm1888_vm2 = vweird.f32 %v8632_v56  ;;  %v1892_v23 = vand.u32 2147483647, %v8632_v56  ;;  %v2553_v6 = vmul.f32 3.8918573e-05, %v8726_v46  ;;  %3664 = vmatpush.bf16.msra.mxu1 %v3591_v32 }
 0x257   : > { %v1886_v49 = vmul.f32 %v8690_v18, %v1885_v51  ;;  %v8747_v63 = vadd.f32 1.0, %v1961_v47  ;;  %v1985_v13 = vadd.f32 0.0036580483, %v1984_v15  ;;  %v2502_v33 = vmul.f32 2.1237322e-06, %v8657_v53  ;;  %v11793_v51 = vld [vmem:[#allocation17_spill] sm:$0xff] }
 0x258   : > { %v8751_v57 = vmul.f32 %v1376_v41, %v8676_v4  ;;  %v1895_v31 = vor.u32 1.1754944e-38, %v1894_v61  ;;  %v1926_v20 = vmul.f32 %v8696_v35, %v1925_v19  ;;  %v2000_v9 = vadd.f32 0.4994258, %v1999_v44 }
 0x259   : > { %vm1889_vm3 = vweird.f32 %v8690_v18  ;;  %v1911_v45 = vadd.f32 1.1283791, %v1910_v26  ;;  %v1948_v28 = vmul.f32 %v1947_v29, %v8539_v0  ;;  %v2518_v40 = vadd.f32 0.112945676, %v2517_v38 }
 0x25a   : > { %vm8756_vm4 = vcmp.eq.f32.partialorder %v1892_v23, 8.507059e+37  ;;  %v2554_v37 = vadd.f32 0.001143296, %v2553_v6  ;;  %v8761_v48 = vadd.f32 %v672_v54, %v6860_v14  ;;  %v8764_v4 = vadd.f32 %v691_v10, %v6860_v14  ;;  %vm8785_vm7 = vmor %vm1888_vm2, %vm1889_vm3 }
 0x25b   : > { %v3608_v47 = vpack.c.bf16 %v11793_v51, %v11792_v7  ;;  %v1887_v15 = vadd.f32 %v8690_v18, %v1886_v49  ;;  %6179 = vrcp.f32 %v8747_v63  ;;  %v1986_v61 = vmul.f32 %v1985_v13, %v8604_v2  ;;  %v11798_v7 = vld [vmem:[#allocation16_spill] sm:$0xff]  ;;  %v11799_v51 = vld [vmem:[#allocation18_spill] sm:$0xff] }
 0x25c   : > { %v2503_v19 = vadd.f32 0.00028619796, %v2502_v33  ;;  %v1927_v44 = vadd.f32 %v8696_v35, %v1926_v20  ;;  %vm1929_vm5 = vweird.f32 %v8696_v35  ;;  %v2001_v59 = vmul.f32 %v2000_v9, %v8604_v2 }
 0x25d   : > { %v8775_v32 = vmul.f32 0.70710677, %v8761_v48  ;;  %3677 = vmatpush.bf16.msra.mxu2 %v3608_v47  ;;  %vm1928_vm6 = vweird.f32 %v8638_v24  ;;  %v1932_v41 = vand.u32 2147483647, %v8638_v24  ;;  %v1934_v26 = vand.u32 2147483648, %v8638_v24 }
 0x25e   : > { %v2519_v29 = vmul.f32 %v2518_v40, %v8657_v53  ;;  %v1949_v23 = vadd.f32 0.18741608, %v1948_v28  ;;  %v2555_v6 = vmul.f32 %v2554_v37, %v8726_v46  ;;  %v8793_v13 = vmul.f32 0.70710677, %v8764_v4  ;;  %vm8799_vm8 = vmor %vm1928_vm6, %vm1929_vm5 }
 0x25f   : > { %v2580_v49 = vmul.f32 %v8775_v32, %v8775_v32  ;;  %v5893_v24 = vclamps-f32 %v8751_v57, 1.0  ;;  %v1912_v33 = vmul.f32 %v1911_v45, %v8452_v1  ;;  %v1987_v54 = vadd.f32 0.05243302, %v1986_v61 }
 0x260   : > { %v2504_v10 = vmul.f32 %v2503_v19, %v8657_v53  ;;  %v1891_v20 = vsel %vm8785_vm7, %v8690_v18, %v1887_v15  ;;  %v1931_v9 = vsel %vm8799_vm8, %v8696_v35, %v1927_v44  ;;  %v8810_v57 = vadd.f32 1.0, %v2001_v59  ;;  %v8824_v18 = vld [vmem:[%s11636_s3] sm:$0xff] }
 0x261   : > { %v2542_v1 = vmul.f32 2.1237322e-06, %v8726_v46  ;;  %v8813_v45 = vpop.eup %6179  ;;  %v2520_v28 = vadd.f32 0.4994258, %v2519_v29  ;;  %v8815_v40 = vmin.f32 %v2580_v49, 16.0  ;;  %v2620_v37 = vmul.f32 %v8793_v13, %v8793_v13 }
 0x262   : > { %v3609_v47 = vpack.c.bf16 %v11799_v51, %v11798_v7  ;;  %vm1933_vm9 = vcmp.eq.f32.partialorder %v1932_v41, 8.507059e+37  ;;  %v1935_v35 = vor.u32 1.1754944e-38, %v1934_v26  ;;  %v1950_v15 = vmul.f32 %v1949_v23, %v8539_v0 }
 0x263   : > { %v2556_v61 = vadd.f32 0.014752088, %v2555_v6  ;;  %v1896_v19 = vsel %vm8756_vm4, %v1895_v31, %v1891_v20  ;;  %v1988_v44 = vmul.f32 %v1987_v54, %v8604_v2  ;;  %v2505_v59 = vadd.f32 0.0036580483, %v2504_v10 }
 0x264   : > { %v2593_v29 = vmul.f32 3.8918573e-05, %v8815_v40  ;;  %3691 = vmatpush.bf16.msra.mxu3 %v3609_v47  ;;  %v1936_v38 = vsel %vm1933_vm9, %v1935_v35, %v1931_v9  ;;  %v1964_v49 = vmul.f32 %v8813_v45, %v8747_v63  ;;  %v8833_v56 = vmin.f32 %v2620_v37, 16.0 }
 0x265   : > { %vm3639_vm10 = vcmask 261120   ;;  %6181 = vrcp.f32 %v8810_v57  ;;  %v2521_v0 = vmul.f32 %v2520_v28, %v8657_v53  ;;  %v2543_v41 = vadd.f32 0.00028619796, %v2542_v1  ;;  %v636_v1 = vpop.f32.mrf.mxu0 }
 0x266   : > { %v2594_v12 = vadd.f32 0.001143296, %v2593_v29  ;;  %5950 = vmatmul.msk.bf16.vlgmr.msra.gmra.mxu0 %vm3639_vm10, %v8824_v18  ;;  %5951 = vmatmul.msk.bf16.vlgmr.msra.gmra.mxu1 %vm3639_vm10, %v8824_v18  ;;  %v3471_v31 = vadd.f32 1.0, %v5893_v24  ;;  %v1897_v26 = vmul.f32 %v1896_v19, %v8729_v62  ;;  %v8843_v23 = vmul.f32 0.5, %v8560_v60 }
 0x267   : > { %v2557_v6 = vmul.f32 %v2556_v61, %v8726_v46  ;;  %v1937_v54 = vmul.f32 %v1936_v38, %v1912_v33  ;;  %v1951_v10 = vadd.f32 1.1283791, %v1950_v15  ;;  %v2506_v20 = vmul.f32 %v2505_v59, %v8657_v53 }
 0x268   : > { %v2595_v9 = vmul.f32 %v2594_v12, %v8815_v40  ;;  %v8850_v28 = vmul.f32 %v8741_v25, %v8406_v50  ;;  %v1965_v37 = vsub.f32 1.0, %v1964_v49  ;;  %v8853_v24 = vmul.f32 0.5, %v8593_v21 }
 0x269   : > { %v2633_v60 = vmul.f32 3.8918573e-05, %v8833_v56  ;;  %v1989_v62 = vadd.f32 0.18741608, %v1988_v44  ;;  %v8856_v7 = vadd.f32 1.0, %v2521_v0  ;;  %v2544_v33 = vmul.f32 %v2543_v41, %v8726_v46 }
 0x26a   : > { %11800 = vst [vmem:[#allocation12_spill] sm:$0xff] %v8850_v28  ;;  %v2596_v51 = vadd.f32 0.014752088, %v2595_v9  ;;  %v8860_v47 = vmul.f32 %v3471_v31, %v8494_v55  ;;  %v8863_v35 = vmul.f32 0.5, %v8660_v11  ;;  %v2558_v50 = vadd.f32 0.112945676, %v2557_v6 }
 0x26b   : > { %v8866_v25 = vadd.f32 %v636_v1, %v7074_v17  ;;  %v8868_v21 = vpop.eup %6181  ;;  %v5906_v15 = vclamps-f32 %v1897_v26, 1.0  ;;  %v5907_v61 = vclamps-f32 %v1937_v54, 1.0  ;;  %v8871_v19 = vmul.f32 %v1951_v10, %v8502_v27 }
 0x26c   : > { %11801 = vst [vmem:[#allocation15_spill] sm:$0xff] %v8860_v47  ;;  %v2507_v44 = vadd.f32 0.05243302, %v2506_v20  ;;  %v1966_v59 = vmul.f32 %v8813_v45, %v1965_v37  ;;  %v1972_v55 = vand.u32 2147483647, %v8747_v63  ;;  %v2597_v29 = vmul.f32 %v2596_v51, %v8815_v40 }
 0x26d   : > { %v2634_v11 = vadd.f32 0.001143296, %v2633_v60  ;;  %v1974_v38 = vand.u32 2147483648, %v8747_v63  ;;  %v1990_v49 = vmul.f32 %v1989_v62, %v8604_v2  ;;  %6183 = vrcp.f32 %v8856_v7 }
 0x26e   : > { %v2545_v0 = vadd.f32 0.0036580483, %v2544_v33  ;;  %v2004_v41 = vmul.f32 %v8868_v21, %v8810_v57  ;;  %v2559_v27 = vmul.f32 %v2558_v50, %v8726_v46  ;;  %v8884_v31 = vmul.f32 0.70710677, %v8866_v25 }
 0x26f   : > { %v2635_v12 = vmul.f32 %v2634_v11, %v8833_v56  ;;  %v3484_v26 = vadd.f32 1.0, %v5906_v15  ;;  %v3485_v6 = vadd.f32 1.0, %v5907_v61  ;;  %vm1969_vm11 = vweird.f32 %v8813_v45 }
 0x270   : > { %v2508_v54 = vmul.f32 %v2507_v44, %v8657_v53  ;;  %v1967_v2 = vadd.f32 %v8813_v45, %v1966_v59  ;;  %v2598_v10 = vadd.f32 0.112945676, %v2597_v29  ;;  %v3140_v9 = vmul.f32 %v8884_v31, %v8884_v31 }
 0x271   : > { %v2636_v20 = vadd.f32 0.014752088, %v2635_v12  ;;  %vm1968_vm12 = vweird.f32 %v8747_v63  ;;  %vm8892_vm13 = vcmp.eq.f32.partialorder %v1972_v55, 8.507059e+37  ;;  %v1991_v37 = vadd.f32 1.1283791, %v1990_v49  ;;  %v11807_v49 = vld [vmem:[#allocation10_spill] sm:$0xff] }
 0x272   : > { %v2546_v60 = vmul.f32 %v2545_v0, %v8726_v46  ;;  %v2005_v62 = vsub.f32 1.0, %v2004_v41  ;;  %v2560_v33 = vadd.f32 0.4994258, %v2559_v27  ;;  %v8898_v50 = vmin.f32 %v3140_v9, 16.0  ;;  %vm8907_vm14 = vmor %vm1968_vm12, %vm1969_vm11  ;;  %v11808_v0 = vld [vmem:[#allocation13_spill] sm:$0xff] }
 0x273   : > { %v2637_v51 = vmul.f32 %v2636_v20, %v8833_v56  ;;  %v8900_v15 = vpop.eup %6183  ;;  %v8903_v61 = vmul.f32 %v3484_v26, %v8602_v16  ;;  %v1975_v44 = vor.u32 1.1754944e-38, %v1974_v38  ;;  %v2509_v59 = vadd.f32 0.18741608, %v2508_v54  ;;  %v655_v26 = vpop.f32.mrf.mxu1 }
 0x274   : > { %v2582_v55 = vmul.f32 2.1237322e-06, %v8815_v40  ;;  %v8913_v29 = vmul.f32 %v3485_v6, %v8610_v34  ;;  %v1971_v11 = vsel %vm8907_vm14, %v8813_v45, %v1967_v2  ;;  %v2599_v16 = vmul.f32 %v2598_v10, %v8815_v40 }
 0x275   : > { %v3592_v41 = vpack.c.bf16 %v11808_v0, %v11807_v49  ;;  %v8922_v27 = vmul.f32 %v1991_v37, %v8584_v3  ;;  %vm2008_vm15 = vweird.f32 %v8810_v57  ;;  %v2547_v38 = vadd.f32 0.05243302, %v2546_v60 }
 0x276   : > { %11806 = vst [vmem:[#allocation17_spill] sm:$0xff] %v8913_v29  ;;  %v2638_v12 = vadd.f32 0.112945676, %v2637_v51  ;;  %v2006_v34 = vmul.f32 %v8868_v21, %v2005_v62  ;;  %v2524_v6 = vmul.f32 %v8900_v15, %v8856_v7  ;;  %v2561_v45 = vmul.f32 %v2560_v33, %v8726_v46  ;;  %v11809_v62 = vld [vmem:[#allocation11_spill] sm:$0xff]  ;;  %v11810_v51 = vld [vmem:[#allocation14_spill] sm:$0xff] }
 0x277   : > { %v3153_v54 = vmul.f32 3.8918573e-05, %v8898_v50  ;;  %3678 = vmatpush.bf16.msra.mxu2 %v3592_v41  ;;  %v1976_v2 = vsel %vm8892_vm13, %v1975_v44, %v1971_v11  ;;  %v2012_v3 = vand.u32 2147483647, %v8810_v57  ;;  %v2510_v10 = vmul.f32 %v2509_v59, %v8657_v53  ;;  %v674_v11 = vpop.f32.mrf.mxu2 }
 0x278   : > { %v2583_v20 = vadd.f32 0.00028619796, %v2582_v55  ;;  %v2600_v9 = vadd.f32 0.4994258, %v2599_v16  ;;  %v2622_v37 = vmul.f32 2.1237322e-06, %v8833_v56  ;;  %v8936_v60 = vadd.f32 %v655_v26, %v7074_v17 }
 0x279   : > { %v3593_v33 = vpack.c.bf16 %v11810_v51, %v11809_v62  ;;  %v2014_v63 = vand.u32 2147483648, %v8810_v57  ;;  %v2548_v49 = vmul.f32 %v2547_v38, %v8726_v46  ;;  %v2639_v1 = vmul.f32 %v2638_v12, %v8833_v56 }
 0x27a   : > { %v3154_v44 = vadd.f32 0.001143296, %v3153_v54  ;;  %5952 = vmatmul.msk.bf16.vlgmr.msra.gmra.mxu2 %vm3639_vm10, %v8824_v18  ;;  %v2007_v53 = vadd.f32 %v8868_v21, %v2006_v34  ;;  %vm2009_vm0 = vweird.f32 %v8868_v21  ;;  %v2525_v59 = vsub.f32 1.0, %v2524_v6 }
 0x27b   : > { %v8947_v55 = vadd.f32 1.0, %v2561_v45  ;;  %3692 = vmatpush.bf16.msra.mxu3 %v3593_v33  ;;  %v1977_v16 = vmul.f32 %v1976_v2, %v8871_v19  ;;  %v2511_v0 = vadd.f32 1.1283791, %v2510_v10  ;;  %v2584_v41 = vmul.f32 %v2583_v20, %v8815_v40  ;;  %vm8962_vm2 = vmor %vm2008_vm15, %vm2009_vm0 }
 0x27c   : > { %v3155_v38 = vmul.f32 %v3154_v44, %v8898_v50  ;;  %vm8952_vm1 = vcmp.eq.f32.partialorder %v2012_v3, 8.507059e+37  ;;  %v2601_v26 = vmul.f32 %v2600_v9, %v8815_v40  ;;  %v2623_v34 = vadd.f32 0.00028619796, %v2622_v37 }
 0x27d   : > { %v8958_v6 = vmul.f32 0.70710677, %v8936_v60  ;;  %v2549_v19 = vadd.f32 0.18741608, %v2548_v49  ;;  %v2640_v54 = vadd.f32 0.4994258, %v2639_v1  ;;  %v8969_v3 = vadd.f32 %v674_v11, %v7074_v17 }
 0x27e   : > { %v3156_v2 = vadd.f32 0.014752088, %v3155_v38  ;;  %5953 = vmatmul.msk.bf16.vlgmr.msra.gmra.mxu3 %vm3639_vm10, %v8824_v18  ;;  %v2011_v10 = vsel %vm8962_vm2, %v8868_v21, %v2007_v53  ;;  %v2526_v20 = vmul.f32 %v8900_v15, %v2525_v59  ;;  %6185 = vrcp.f32 %v8947_v55 }
 0x27f   : > { %v3180_v57 = vmul.f32 %v8958_v6, %v8958_v6  ;;  %v5908_v9 = vclamps-f32 %v1977_v16, 1.0  ;;  %v2015_v37 = vor.u32 1.1754944e-38, %v2014_v63  ;;  %v2512_v62 = vmul.f32 %v2511_v0, %v8618_v30 }
 0x280   : > { %v2585_v51 = vadd.f32 0.0036580483, %v2584_v41  ;;  %vm2528_vm3 = vweird.f32 %v8856_v7  ;;  %v8980_v18 = vadd.f32 1.0, %v2601_v26  ;;  %v2624_v33 = vmul.f32 %v2623_v34, %v8833_v56 }
 0x281   : > { %v3157_v21 = vmul.f32 %v3156_v2, %v8898_v50  ;;  %v2016_v49 = vsel %vm8952_vm1, %v2015_v37, %v2011_v10  ;;  %v2641_v1 = vmul.f32 %v2640_v54, %v8833_v56  ;;  %v8987_v44 = vmin.f32 %v3180_v57, 16.0  ;;  %v693_v57 = vpop.f32.mrf.mxu3 }
 0x282   : > { %v8990_v63 = vmul.f32 0.70710677, %v8969_v3  ;;  %v2527_v30 = vadd.f32 %v8900_v15, %v2526_v20  ;;  %vm2529_vm4 = vweird.f32 %v8900_v15  ;;  %v2550_v53 = vmul.f32 %v2549_v19, %v8726_v46 }
 0x283   : > { %v3158_v59 = vadd.f32 0.112945676, %v3157_v21  ;;  %v2534_v11 = vand.u32 2147483648, %v8856_v7  ;;  %v2586_v16 = vmul.f32 %v2585_v51, %v8815_v40  ;;  %v3193_v0 = vmul.f32 3.8918573e-05, %v8987_v44  ;;  %vm9007_vm5 = vmor %vm2528_vm3, %vm2529_vm4 }
 0x284   : > { %v3220_v41 = vmul.f32 %v8990_v63, %v8990_v63  ;;  %v9000_v38 = vpop.eup %6185  ;;  %v2017_v12 = vmul.f32 %v2016_v49, %v8922_v27  ;;  %v2532_v26 = vand.u32 2147483647, %v8856_v7  ;;  %6187 = vrcp.f32 %v8980_v18 }
 0x285   : > { %v2625_v34 = vadd.f32 0.0036580483, %v2624_v33  ;;  %v9012_v45 = vmul.f32 0.5, %v8761_v48  ;;  %v9014_v19 = vadd.f32 1.0, %v2641_v1  ;;  %v3194_v54 = vadd.f32 0.001143296, %v3193_v0 }
 0x286   : > { %v9016_v2 = vmin.f32 %v3220_v41, 16.0  ;;  %v3486_v27 = vadd.f32 1.0, %v5908_v9  ;;  %v2531_v10 = vsel %vm9007_vm5, %v8900_v15, %v2527_v30  ;;  %v2551_v20 = vadd.f32 1.1283791, %v2550_v53  ;;  %v705_v41 = vpop.f32.mrf.mxu0 }
 0x287   : > { %v3159_v7 = vmul.f32 %v3158_v59, %v8898_v50  ;;  %v2535_v37 = vor.u32 1.1754944e-38, %v2534_v11  ;;  %v2564_v51 = vmul.f32 %v9000_v38, %v8947_v55  ;;  %v2587_v48 = vadd.f32 0.05243302, %v2586_v16 }
 0x288   : > { %v3195_v33 = vmul.f32 %v3194_v54, %v8987_v44  ;;  %v5909_v21 = vclamps-f32 %v2017_v12, 1.0  ;;  %vm2533_vm6 = vcmp.eq.f32.partialorder %v2532_v26, 8.507059e+37  ;;  %v2626_v49 = vmul.f32 %v2625_v34, %v8833_v56 }
 0x289   : > { %v3142_v9 = vmul.f32 2.1237322e-06, %v8898_v50  ;;  %v2536_v1 = vsel %vm2533_vm6, %v2535_v37, %v2531_v10  ;;  %6189 = vrcp.f32 %v9014_v19  ;;  %v3233_v15 = vmul.f32 3.8918573e-05, %v9016_v2 }
 0x28a   : > { %v9030_v30 = vadd.f32 %v693_v57, %v7074_v17  ;;  %v9032_v53 = vpop.eup %6187  ;;  %v9035_v59 = vmul.f32 %v3486_v27, %v8670_v39  ;;  %v9038_v11 = vmul.f32 %v2551_v20, %v8684_v36  ;;  %v9041_v16 = vmul.f32 0.5, %v8764_v4 }
 0x28b   : > { %v3160_v0 = vadd.f32 0.4994258, %v3159_v7  ;;  %v2565_v12 = vsub.f32 1.0, %v2564_v51  ;;  %v2572_v26 = vand.u32 2147483647, %v8947_v55  ;;  %v2588_v34 = vmul.f32 %v2587_v48, %v8815_v40 }
 0x28c   : > { %11817 = vst [vmem:[#allocation16_spill] sm:$0xff] %v9035_v59  ;;  %v3196_v46 = vadd.f32 0.014752088, %v3195_v33  ;;  %v3487_v54 = vadd.f32 1.0, %v5909_v21  ;;  %v2537_v10 = vmul.f32 %v2536_v1, %v2512_v62  ;;  %v3143_v57 = vadd.f32 0.00028619796, %v3142_v9 }
 0x28d   : > { %v3234_v37 = vadd.f32 0.001143296, %v3233_v15  ;;  %v2604_v39 = vmul.f32 %v9032_v53, %v8980_v18  ;;  %v2627_v36 = vadd.f32 0.05243302, %v2626_v49  ;;  %v9048_v27 = vmul.f32 0.70710677, %v9030_v30 }
 0x28e   : > { %v9051_v4 = vadd.f32 %v705_v41, %v6671_v5  ;;  %vm2568_vm7 = vweird.f32 %v8947_v55  ;;  %v9055_v20 = vmul.f32 0.5, %v8866_v25  ;;  %v3161_v7 = vmul.f32 %v3160_v0, %v8898_v50 }
 0x28f   : > { %v3182_v62 = vmul.f32 2.1237322e-06, %v8987_v44  ;;  %v9059_v51 = vpop.eup %6189  ;;  %v2566_v48 = vmul.f32 %v9000_v38, %v2565_v12  ;;  %v2574_v33 = vand.u32 2147483648, %v8947_v55  ;;  %v2589_v21 = vadd.f32 0.18741608, %v2588_v34 }
 0x290   : > { %v3197_v49 = vmul.f32 %v3196_v46, %v8987_v44  ;;  %v9065_v9 = vmul.f32 %v3487_v54, %v8843_v23  ;;  %v5922_v1 = vclamps-f32 %v2537_v10, 1.0  ;;  %v3144_v25 = vmul.f32 %v3143_v57, %v8898_v50 }
 0x291   : > { %v3235_v15 = vmul.f32 %v3234_v37, %v9016_v2  ;;  %vm9069_vm8 = vcmp.eq.f32.partialorder %v2572_v26, 8.507059e+37  ;;  %v2605_v41 = vsub.f32 1.0, %v2604_v39  ;;  %v2628_v12 = vmul.f32 %v2627_v36, %v8833_v56 }
 0x292   : > { %11818 = vst [vmem:[#allocation18_spill] sm:$0xff] %v9065_v9  ;;  %v3260_v34 = vmul.f32 %v9048_v27, %v9048_v27  ;;  %v9077_v46 = vmul.f32 0.70710677, %v9051_v4  ;;  %vm2569_vm9 = vweird.f32 %v9000_v38  ;;  %v2644_v23 = vmul.f32 %v9059_v51, %v9014_v19 }
 0x293   : > { %v9082_v54 = vadd.f32 1.0, %v3161_v7  ;;  %v3183_v26 = vadd.f32 0.00028619796, %v3182_v62  ;;  %v2567_v10 = vadd.f32 %v9000_v38, %v2566_v48  ;;  %v2590_v57 = vmul.f32 %v2589_v21, %v8815_v40  ;;  %vm9100_vm11 = vmor %vm2568_vm7, %vm2569_vm9 }
 0x294   : > { %v3198_v37 = vadd.f32 0.112945676, %v3197_v49  ;;  %v9086_v39 = vmin.f32 %v3260_v34, 16.0  ;;  %v2575_v36 = vor.u32 1.1754944e-38, %v2574_v33  ;;  %v3145_v9 = vadd.f32 0.0036580483, %v3144_v25 }
 0x295   : > { %v9089_v47 = vmul.f32 0.5, %v8936_v60  ;;  %v3236_v59 = vadd.f32 0.014752088, %v3235_v15  ;;  %v9091_v28 = vadd.f32 1.0, %v5922_v1  ;;  %v2606_v29 = vmul.f32 %v9032_v53, %v2605_v41 }
 0x296   : > { %v2629_v7 = vadd.f32 0.18741608, %v2628_v12  ;;  %v1380_v62 = vmul.f32 %v9077_v46, %v9077_v46  ;;  %v2645_v48 = vsub.f32 1.0, %v2644_v23  ;;  %6191 = vrcp.f32 %v9082_v54 }
 0x297   : > { %v3184_v60 = vmul.f32 %v3183_v26, %v8987_v44  ;;  %v3273_v33 = vmul.f32 3.8918573e-05, %v9086_v39  ;;  %v2571_v21 = vsel %vm9100_vm11, %v9000_v38, %v2567_v10  ;;  %v2591_v49 = vadd.f32 1.1283791, %v2590_v57 }
 0x298   : > { %v2612_v1 = vand.u32 2147483647, %v8980_v18  ;;  %v3199_v55 = vmul.f32 %v3198_v37, %v8987_v44  ;;  %v2614_v25 = vand.u32 2147483648, %v8980_v18  ;;  %v3146_v15 = vmul.f32 %v3145_v9, %v8898_v50 }
 0x299   : > { %v3237_v41 = vmul.f32 %v3236_v59, %v9016_v2  ;;  %v3274_v12 = vadd.f32 0.001143296, %v3273_v33  ;;  %v2607_v34 = vadd.f32 %v9032_v53, %v2606_v29  ;;  %vm2609_vm12 = vweird.f32 %v9032_v53 }
 0x29a   : > { %v2630_v23 = vmul.f32 %v2629_v7, %v8833_v56  ;;  %v9118_v26 = vmin.f32 %v1380_v62, 16.0  ;;  %v2576_v38 = vsel %vm9069_vm8, %v2575_v36, %v2571_v21  ;;  %v2646_v10 = vmul.f32 %v9059_v51, %v2645_v48 }
 0x29b   : > { %v3185_v57 = vadd.f32 0.0036580483, %v3184_v60  ;;  %v3222_v37 = vmul.f32 2.1237322e-06, %v9016_v2  ;;  %v2592_v9 = vmul.f32 %v2591_v49, %v8775_v32  ;;  %vm2608_vm13 = vweird.f32 %v8980_v18 }
 0x29c   : > { %v3200_v59 = vadd.f32 0.4994258, %v3199_v55  ;;  %v3275_v29 = vmul.f32 %v3274_v12, %v9086_v39  ;;  %v9127_v40 = vpop.eup %6191  ;;  %vm9129_vm14 = vmor %vm2608_vm13, %vm2609_vm12  ;;  %vm9133_vm15 = vcmp.eq.f32.partialorder %v2612_v1, 8.507059e+37  ;;  %v2615_v36 = vor.u32 1.1754944e-38, %v2614_v25 }
 0x29d   : > { %v3147_v7 = vadd.f32 0.05243302, %v3146_v15  ;;  %v3238_v62 = vadd.f32 0.112945676, %v3237_v41  ;;  %v2577_v32 = vmul.f32 %v2576_v38, %v9038_v11  ;;  %v2611_v18 = vsel %vm9129_vm14, %v9032_v53, %v2607_v34  ;;  %v724_v53 = vpop.f32.mrf.mxu1 }
 0x29e   : > { %v2654_v48 = vand.u32 2147483648, %v9014_v19  ;;  %v1393_v60 = vmul.f32 3.8918573e-05, %v9118_v26  ;;  %v2647_v33 = vadd.f32 %v9059_v51, %v2646_v10  ;;  %vm2649_vm0 = vweird.f32 %v9059_v51 }
 0x29f   : > { %v3186_v21 = vmul.f32 %v3185_v57, %v8987_v44  ;;  %v3223_v49 = vadd.f32 0.00028619796, %v3222_v37  ;;  %vm2648_vm1 = vweird.f32 %v9014_v19  ;;  %v3164_v11 = vmul.f32 %v9127_v40, %v9082_v54 }
 0x2a0   : > { %v3201_v1 = vmul.f32 %v3200_v59, %v8987_v44  ;;  %v3276_v55 = vadd.f32 0.014752088, %v3275_v29  ;;  %v2652_v25 = vand.u32 2147483647, %v9014_v19  ;;  %v3148_v15 = vmul.f32 %v3147_v7, %v8898_v50  ;;  %vm9157_vm2 = vmor %vm2648_vm1, %vm2649_vm0 }
 0x2a1   : > { %v3239_v41 = vmul.f32 %v3238_v62, %v9016_v2  ;;  %v1394_v12 = vadd.f32 0.001143296, %v1393_v60  ;;  %v5923_v34 = vclamps-f32 %v2577_v32, 1.0  ;;  %v2616_v38 = vsel %vm9133_vm15, %v2615_v36, %v2611_v18  ;;  %v743_v62 = vpop.f32.mrf.mxu2 }
 0x2a2   : > { %v2631_v10 = vadd.f32 1.1283791, %v2630_v23  ;;  %v2655_v37 = vor.u32 1.1754944e-38, %v2654_v48  ;;  %v2651_v19 = vsel %vm9157_vm2, %v9059_v51, %v2647_v33  ;;  %v3187_v59 = vadd.f32 0.05243302, %v3186_v21 }
 0x2a3   : > { %v3224_v29 = vmul.f32 %v3223_v49, %v9016_v2  ;;  %v9166_v56 = vadd.f32 %v724_v53, %v6671_v5  ;;  %v3165_v0 = vsub.f32 1.0, %v3164_v11  ;;  %v9168_v36 = vadd.f32 1.0, %v3201_v1 }
 0x2a4   : > { %v3262_v23 = vmul.f32 2.1237322e-06, %v9086_v39  ;;  %v3277_v7 = vmul.f32 %v3276_v55, %v9086_v39  ;;  %vm2653_vm3 = vcmp.eq.f32.partialorder %v2652_v25, 8.507059e+37  ;;  %v3149_v32 = vadd.f32 0.18741608, %v3148_v15 }
 0x2a5   : > { %v3240_v18 = vadd.f32 0.4994258, %v3239_v41  ;;  %v1395_v48 = vmul.f32 %v1394_v12, %v9118_v26  ;;  %v3501_v51 = vadd.f32 1.0, %v5923_v34  ;;  %v2617_v60 = vmul.f32 %v2616_v38, %v2592_v9 }
 0x2a6   : > { %v2632_v33 = vmul.f32 %v2631_v10, %v8793_v13  ;;  %v2656_v21 = vsel %vm2653_vm3, %v2655_v37, %v2651_v19  ;;  %v3188_v49 = vmul.f32 %v3187_v59, %v8987_v44  ;;  %v3225_v11 = vadd.f32 0.0036580483, %v3224_v29 }
 0x2a7   : > { %v9176_v1 = vmul.f32 0.70710677, %v9166_v56  ;;  %v9179_v53 = vadd.f32 %v743_v62, %v6671_v5  ;;  %v3166_v55 = vmul.f32 %v9127_v40, %v3165_v0  ;;  %6193 = vrcp.f32 %v9168_v36 }
 0x2a8   : > { %v3263_v25 = vadd.f32 0.00028619796, %v3262_v23  ;;  %v3278_v15 = vadd.f32 0.112945676, %v3277_v7  ;;  %v3150_v9 = vmul.f32 %v3149_v32, %v8898_v50  ;;  %v3241_v13 = vmul.f32 %v3240_v18, %v9016_v2 }
 0x2a9   : > { %v1396_v41 = vadd.f32 0.014752088, %v1395_v48  ;;  %v1420_v12 = vmul.f32 %v9176_v1, %v9176_v1  ;;  %v9189_v34 = vmul.f32 %v9091_v28, %v8853_v24  ;;  %v9192_v38 = vmul.f32 %v3501_v51, %v8863_v35 }
 0x2aa   : > { %v2657_v10 = vmul.f32 %v2656_v21, %v2632_v33  ;;  %v9195_v57 = vmul.f32 0.5, %v8969_v3  ;;  %vm3169_vm4 = vweird.f32 %v9127_v40  ;;  %v3189_v50 = vadd.f32 0.18741608, %v3188_v49 }
 0x2ab   : > { %v3226_v37 = vmul.f32 %v3225_v11, %v9016_v2  ;;  %v9200_v19 = vmul.f32 0.70710677, %v9179_v53  ;;  %v3167_v59 = vadd.f32 %v9127_v40, %v3166_v55  ;;  %v3264_v28 = vmul.f32 %v3263_v25, %v9086_v39 }
 0x2ac   : > { %v3279_v24 = vmul.f32 %v3278_v15, %v9086_v39  ;;  %v9205_v35 = vmin.f32 %v1420_v12, 16.0  ;;  %v5924_v29 = vclamps-f32 %v2617_v60, 1.0  ;;  %v3151_v0 = vadd.f32 1.1283791, %v3150_v9 }
 0x2ad   : > { %v9207_v3 = vadd.f32 1.0, %v3241_v13  ;;  %v1397_v23 = vmul.f32 %v1396_v41, %v9118_v26  ;;  %v9210_v7 = vpop.eup %6193  ;;  %v5925_v62 = vclamps-f32 %v2657_v10, 1.0  ;;  %vm3168_vm5 = vweird.f32 %v9082_v54 }
 0x2ae   : > { %v3172_v32 = vand.u32 2147483647, %v9082_v54  ;;  %v3174_v18 = vand.u32 2147483648, %v9082_v54  ;;  %vm9217_vm6 = vmor %vm3168_vm5, %vm3169_vm4  ;;  %v3227_v51 = vadd.f32 0.05243302, %v3226_v37  ;;  %v1460_v21 = vmul.f32 %v9200_v19, %v9200_v19 }
 0x2af   : > { %v1382_v60 = vmul.f32 2.1237322e-06, %v9118_v26  ;;  %v1433_v33 = vmul.f32 3.8918573e-05, %v9205_v35  ;;  %v3171_v49 = vsel %vm9217_vm6, %v9127_v40, %v3167_v59  ;;  %v3190_v54 = vmul.f32 %v3189_v50, %v8987_v44 }
 0x2b0   : > { %v3265_v11 = vadd.f32 0.0036580483, %v3264_v28  ;;  %v3280_v55 = vadd.f32 0.4994258, %v3279_v24  ;;  %v3204_v25 = vmul.f32 %v9210_v7, %v9168_v36  ;;  %6195 = vrcp.f32 %v9207_v3 }
 0x2b1   : > { %v1398_v15 = vadd.f32 0.112945676, %v1397_v23  ;;  %v1434_v9 = vadd.f32 0.001143296, %v1433_v33  ;;  %v3502_v13 = vadd.f32 1.0, %v5924_v29  ;;  %v3503_v41 = vadd.f32 1.0, %v5925_v62 }
 0x2b2   : > { %vm3173_vm7 = vcmp.eq.f32.partialorder %v3172_v32, 8.507059e+37  ;;  %v3175_v12 = vor.u32 1.1754944e-38, %v3174_v18  ;;  %v3228_v10 = vmul.f32 %v3227_v51, %v9016_v2  ;;  %v1383_v37 = vadd.f32 0.00028619796, %v1382_v60  ;;  %v762_v18 = vpop.f32.mrf.mxu3 }
 0x2b3   : > { %v1435_v40 = vmul.f32 %v1434_v9, %v9205_v35  ;;  %v9234_v59 = vmin.f32 %v1460_v21, 16.0  ;;  %v9237_v50 = vmul.f32 0.5, %v9030_v30  ;;  %v3266_v28 = vmul.f32 %v3265_v11, %v9086_v39 }
 0x2b4   : > { %v3176_v44 = vsel %vm3173_vm7, %v3175_v12, %v3171_v49  ;;  %v3281_v24 = vmul.f32 %v3280_v55, %v9086_v39  ;;  %v3152_v29 = vmul.f32 %v3151_v0, %v8884_v31  ;;  %v3191_v23 = vadd.f32 1.1283791, %v3190_v54 }
 0x2b5   : > { %v3205_v62 = vsub.f32 1.0, %v3204_v25  ;;  %v1399_v32 = vmul.f32 %v1398_v15, %v9118_v26  ;;  %v9244_v48 = vmul.f32 %v3502_v13, %v9012_v45  ;;  %v9247_v51 = vmul.f32 %v3503_v41, %v9041_v16 }
 0x2b6   : > { %v9250_v30 = vmul.f32 0.5, %v9051_v4  ;;  %v1436_v60 = vadd.f32 0.014752088, %v1435_v40  ;;  %v9252_v33 = vpop.eup %6195  ;;  %v3177_v21 = vmul.f32 %v3176_v44, %v3152_v29  ;;  %v3229_v49 = vadd.f32 0.18741608, %v3228_v10  ;;  %v707_v44 = vpop.f32.mrf.mxu0 }
 0x2b7   : > { %11831 = vst [vmem:[#allocation10_spill] sm:$0xff] %v9247_v51  ;;  %v1384_v31 = vmul.f32 %v1383_v37, %v9118_v26  ;;  %v1473_v0 = vmul.f32 3.8918573e-05, %v9234_v59  ;;  %v3267_v54 = vadd.f32 0.05243302, %v3266_v28  ;;  %v9256_v11 = vadd.f32 1.0, %v3281_v24 }
 0x2b8   : > { %v1437_v45 = vmul.f32 %v1436_v60, %v9205_v35  ;;  %v9260_v16 = vadd.f32 %v762_v18, %v6671_v5  ;;  %v3192_v4 = vmul.f32 %v3191_v23, %v8958_v6  ;;  %v3206_v55 = vmul.f32 %v9210_v7, %v3205_v62 }
 0x2b9   : > { %v1400_v25 = vadd.f32 0.4994258, %v1399_v32  ;;  %v1474_v15 = vadd.f32 0.001143296, %v1473_v0  ;;  %v3212_v9 = vand.u32 2147483647, %v9168_v36  ;;  %v3244_v41 = vmul.f32 %v9252_v33, %v9207_v3 }
 0x2ba   : > { %11832 = vst [vmem:[#allocation13_spill] sm:$0xff] %v9260_v16  ;;  %v3214_v13 = vand.u32 2147483648, %v9168_v36  ;;  %v1438_v12 = vadd.f32 0.112945676, %v1437_v45  ;;  %v5938_v10 = vclamps-f32 %v3177_v21, 1.0  ;;  %v3230_v37 = vmul.f32 %v3229_v49, %v9016_v2 }
 0x2bb   : > { %v1385_v40 = vadd.f32 0.0036580483, %v1384_v31  ;;  %v1475_v5 = vmul.f32 %v1474_v15, %v9234_v59  ;;  %vm3209_vm8 = vweird.f32 %v9210_v7  ;;  %v3268_v6 = vmul.f32 %v3267_v54, %v9086_v39 }
 0x2bc   : > { %6197 = vrcp.f32 %v9256_v11  ;;  %v9274_v28 = vmul.f32 0.70710677, %v9260_v16  ;;  %v3207_v24 = vadd.f32 %v9210_v7, %v3206_v55  ;;  %v1401_v29 = vmul.f32 %v1400_v25, %v9118_v26 }
 0x2bd   : > { %v1422_v23 = vmul.f32 2.1237322e-06, %v9205_v35  ;;  %v1476_v2 = vadd.f32 0.014752088, %v1475_v5  ;;  %v3245_v62 = vsub.f32 1.0, %v3244_v41  ;;  %v1439_v32 = vmul.f32 %v1438_v12, %v9205_v35 }
 0x2be   : > { %v1500_v18 = vmul.f32 %v9274_v28, %v9274_v28  ;;  %v9283_v60 = vadd.f32 %v707_v44, %v6723_v42  ;;  %vm3208_vm9 = vweird.f32 %v9168_v36  ;;  %v3231_v21 = vadd.f32 1.1283791, %v3230_v37 }
 0x2bf   : > { %v1386_v49 = vmul.f32 %v1385_v40, %v9118_v26  ;;  %v1477_v31 = vmul.f32 %v1476_v2, %v9234_v59  ;;  %vm9290_vm11 = vmor %vm3208_vm9, %vm3209_vm8  ;;  %vm9294_vm12 = vcmp.eq.f32.partialorder %v3212_v9, 8.507059e+37  ;;  %v3215_v45 = vor.u32 1.1754944e-38, %v3214_v13 }
 0x2c0   : > { %v3269_v55 = vadd.f32 0.18741608, %v3268_v6  ;;  %v9298_v25 = vmin.f32 %v1500_v18, 16.0  ;;  %v3211_v36 = vsel %vm9290_vm11, %v9210_v7, %v3207_v24  ;;  %v9303_v15 = vadd.f32 1.0, %v1401_v29 }
 0x2c1   : > { %v9306_v41 = vmul.f32 0.5, %v9166_v56  ;;  %v1423_v12 = vadd.f32 0.00028619796, %v1422_v23  ;;  %v3516_v9 = vadd.f32 1.0, %v5938_v10  ;;  %v3246_v40 = vmul.f32 %v9252_v33, %v3245_v62 }
 0x2c2   : > { %v9308_v37 = vpop.eup %6197  ;;  %v1440_v5 = vadd.f32 0.4994258, %v1439_v32  ;;  %v9312_v13 = vmul.f32 0.70710677, %v9283_v60  ;;  %v3232_v44 = vmul.f32 %v3231_v21, %v8990_v63  ;;  %v1387_v6 = vadd.f32 0.05243302, %v1386_v49 }
 0x2c3   : > { %v1478_v2 = vadd.f32 0.112945676, %v1477_v31  ;;  %v1513_v7 = vmul.f32 3.8918573e-05, %v9298_v25  ;;  %v3216_v56 = vsel %vm9294_vm12, %v3215_v45, %v3211_v36  ;;  %v3252_v24 = vand.u32 2147483647, %v9207_v3 }
 0x2c4   : > { %v3254_v29 = vand.u32 2147483648, %v9207_v3  ;;  %v3270_v10 = vmul.f32 %v3269_v55, %v9086_v39  ;;  %v3284_v23 = vmul.f32 %v9308_v37, %v9256_v11  ;;  %6199 = vrcp.f32 %v9303_v15 }
 0x2c5   : > { %v1424_v63 = vmul.f32 %v1423_v12, %v9205_v35  ;;  %v1462_v62 = vmul.f32 2.1237322e-06, %v9234_v59  ;;  %v3247_v32 = vadd.f32 %v9252_v33, %v3246_v40  ;;  %vm3249_vm13 = vweird.f32 %v9252_v33 }
 0x2c6   : > { %v1441_v18 = vmul.f32 %v1440_v5, %v9205_v35  ;;  %v2020_v21 = vmul.f32 %v9312_v13, %v9312_v13  ;;  %v3217_v49 = vmul.f32 %v3216_v56, %v3192_v4  ;;  %v1388_v39 = vmul.f32 %v1387_v6, %v9118_v26  ;;  %v726_v6 = vpop.f32.mrf.mxu1 }
 0x2c7   : > { %v1479_v31 = vmul.f32 %v1478_v2, %v9234_v59  ;;  %v1514_v0 = vadd.f32 0.001143296, %v1513_v7  ;;  %v9334_v54 = vmul.f32 %v3516_v9, %v9055_v20  ;;  %vm3248_vm14 = vweird.f32 %v9207_v3 }
 0x2c8   : > { %vm9337_vm15 = vcmp.eq.f32.partialorder %v3252_v24, 8.507059e+37  ;;  %v3271_v55 = vadd.f32 1.1283791, %v3270_v10  ;;  %vm9341_vm0 = vmor %vm3248_vm14, %vm3249_vm13  ;;  %v3255_v4 = vor.u32 1.1754944e-38, %v3254_v29  ;;  %v3285_v12 = vsub.f32 1.0, %v3284_v23 }
 0x2c9   : > { %v1425_v40 = vadd.f32 0.0036580483, %v1424_v63  ;;  %v1463_v5 = vadd.f32 0.00028619796, %v1462_v62  ;;  %v3251_v20 = vsel %vm9341_vm0, %v9252_v33, %v3247_v32  ;;  %v9348_v9 = vadd.f32 1.0, %v1441_v18 }
 0x2ca   : > { %v9351_v3 = vmul.f32 0.5, %v9179_v53  ;;  %v9353_v2 = vmin.f32 %v2020_v21, 16.0  ;;  %v9355_v7 = vpop.eup %6199  ;;  %v5939_v56 = vclamps-f32 %v3217_v49, 1.0  ;;  %v1389_v24 = vadd.f32 0.18741608, %v1388_v39 }
 0x2cb   : > { %v1480_v29 = vadd.f32 0.4994258, %v1479_v31  ;;  %v1515_v10 = vmul.f32 %v1514_v0, %v9298_v25  ;;  %v9359_v23 = vmul.f32 %v3271_v55, %v9048_v27  ;;  %vm3288_vm1 = vweird.f32 %v9256_v11  ;;  %v745_v55 = vpop.f32.mrf.mxu2 }
 0x2cc   : > { %11841 = vst [vmem:[#allocation11_spill] sm:$0xff] %v9351_v3  ;;  %v3292_v33 = vand.u32 2147483647, %v9256_v11  ;;  %v9364_v63 = vadd.f32 %v726_v6, %v6723_v42  ;;  %v3256_v53 = vsel %vm9337_vm15, %v3255_v4, %v3251_v20  ;;  %v3286_v62 = vmul.f32 %v9308_v37, %v3285_v12 }
 0x2cd   : > { %v1426_v32 = vmul.f32 %v1425_v40, %v9205_v35  ;;  %v1464_v18 = vmul.f32 %v1463_v5, %v9234_v59  ;;  %v3294_v21 = vand.u32 2147483648, %v9256_v11  ;;  %v1404_v27 = vmul.f32 %v9355_v7, %v9303_v15 }
 0x2ce   : > { %6201 = vrcp.f32 %v9348_v9  ;;  %v2033_v49 = vmul.f32 3.8918573e-05, %v9353_v2  ;;  %v3517_v39 = vadd.f32 1.0, %v5939_v56  ;;  %v1390_v31 = vmul.f32 %v1389_v24, %v9118_v26 }
 0x2cf   : > { %v1481_v0 = vmul.f32 %v1480_v29, %v9234_v59  ;;  %v1516_v45 = vadd.f32 0.014752088, %v1515_v10  ;;  %v3257_v36 = vmul.f32 %v3256_v53, %v3232_v44  ;;  %v1502_v4 = vmul.f32 2.1237322e-06, %v9298_v25 }
 0x2d0   : > { %v2034_v12 = vadd.f32 0.001143296, %v2033_v49  ;;  %v9380_v40 = vmul.f32 0.70710677, %v9364_v63  ;;  %v3287_v5 = vadd.f32 %v9308_v37, %v3286_v62  ;;  %vm3289_vm2 = vweird.f32 %v9308_v37 }
 0x2d1   : > { %v1427_v6 = vadd.f32 0.05243302, %v1426_v32  ;;  %v1465_v20 = vadd.f32 0.0036580483, %v1464_v18  ;;  %v1405_v56 = vsub.f32 1.0, %v1404_v27  ;;  %v9388_v44 = vadd.f32 %v745_v55, %v6723_v42  ;;  %vm9406_vm4 = vmor %vm3288_vm1, %vm3289_vm2 }
 0x2d2   : > { %v2035_v26 = vmul.f32 %v2034_v12, %v9353_v2  ;;  %v2060_v24 = vmul.f32 %v9380_v40, %v9380_v40  ;;  %vm9390_vm3 = vcmp.eq.f32.partialorder %v3292_v33, 8.507059e+37  ;;  %v1391_v10 = vadd.f32 1.1283791, %v1390_v31 }
 0x2d3   : > { %v9394_v53 = vadd.f32 1.0, %v1481_v0  ;;  %v1517_v62 = vmul.f32 %v1516_v45, %v9298_v25  ;;  %v5940_v18 = vclamps-f32 %v3257_v36, 1.0  ;;  %v3295_v27 = vor.u32 1.1754944e-38, %v3294_v21 }
 0x2d4   : > { %v9397_v32 = vpop.eup %6201  ;;  %v1503_v49 = vadd.f32 0.00028619796, %v1502_v4  ;;  %v2036_v12 = vadd.f32 0.014752088, %v2035_v26  ;;  %v9400_v16 = vmul.f32 %v3517_v39, %v9089_v47  ;;  %v1428_v31 = vmul.f32 %v1427_v6, %v9205_v35 }
 0x2d5   : > { %v1466_v0 = vmul.f32 %v1465_v20, %v9234_v59  ;;  %v9412_v45 = vmin.f32 %v2060_v24, 16.0  ;;  %v3291_v21 = vsel %vm9406_vm4, %v9308_v37, %v3287_v5  ;;  %v1406_v47 = vmul.f32 %v9355_v7, %v1405_v56 }
 0x2d6   : > { %v2022_v39 = vmul.f32 2.1237322e-06, %v9353_v2  ;;  %v9420_v11 = vmul.f32 0.70710677, %v9388_v44  ;;  %v1412_v55 = vand.u32 2147483647, %v9303_v15  ;;  %v1444_v36 = vmul.f32 %v9397_v32, %v9348_v9 }
 0x2d7   : > { %6203 = vrcp.f32 %v9394_v53  ;;  %v1518_v4 = vadd.f32 0.112945676, %v1517_v62  ;;  %v3518_v6 = vadd.f32 1.0, %v5940_v18  ;;  %v1414_v20 = vand.u32 2147483648, %v9303_v15 }
 0x2d8   : > { %v1504_v37 = vmul.f32 %v1503_v49, %v9298_v25  ;;  %v2037_v5 = vmul.f32 %v2036_v12, %v9353_v2  ;;  %v3296_v56 = vsel %vm9390_vm3, %v3295_v27, %v3291_v21  ;;  %v1429_v26 = vadd.f32 0.18741608, %v1428_v31 }
 0x2d9   : > { %v1467_v24 = vadd.f32 0.05243302, %v1466_v0  ;;  %v2073_v33 = vmul.f32 3.8918573e-05, %v9412_v45  ;;  %v1407_v3 = vadd.f32 %v9355_v7, %v1406_v47  ;;  %vm1409_vm5 = vweird.f32 %v9355_v7 }
 0x2da   : > { %v2023_v51 = vadd.f32 0.00028619796, %v2022_v39  ;;  %v2100_v62 = vmul.f32 %v9420_v11, %v9420_v11  ;;  %v1392_v18 = vmul.f32 %v1391_v10, %v9077_v46  ;;  %vm1408_vm6 = vweird.f32 %v9303_v15 }
 0x2db   : > { %v1445_v49 = vsub.f32 1.0, %v1444_v36  ;;  %v1519_v29 = vmul.f32 %v1518_v4, %v9298_v25  ;;  %v3297_v27 = vmul.f32 %v3296_v56, %v9359_v23  ;;  %vm9440_vm7 = vcmp.eq.f32.partialorder %v1412_v55, 8.507059e+37  ;;  %vm9446_vm8 = vmor %vm1408_vm6, %vm1409_vm5 }
 0x2dc   : > { %v1505_v31 = vadd.f32 0.0036580483, %v1504_v37  ;;  %v2038_v0 = vadd.f32 0.112945676, %v2037_v5  ;;  %v1415_v46 = vor.u32 1.1754944e-38, %v1414_v20  ;;  %v1430_v15 = vmul.f32 %v1429_v26, %v9205_v35  ;;  %v764_v37 = vpop.f32.mrf.mxu3 }
 0x2dd   : > { %v9444_v21 = vpop.eup %6203  ;;  %v1468_v10 = vmul.f32 %v1467_v24, %v9234_v59  ;;  %v2074_v39 = vadd.f32 0.001143296, %v2073_v33  ;;  %v9453_v23 = vmul.f32 %v3518_v6, %v9195_v57  ;;  %v1411_v55 = vsel %vm9446_vm8, %v9355_v7, %v1407_v3 }
 0x2de   : > { %v2024_v36 = vmul.f32 %v2023_v51, %v9353_v2  ;;  %v9459_v4 = vmin.f32 %v2100_v62, 16.0  ;;  %v1446_v5 = vmul.f32 %v9397_v32, %v1445_v49  ;;  %v1520_v20 = vadd.f32 0.4994258, %v1519_v29 }
 0x2df   : > { %v9463_v35 = vmul.f32 0.5, %v9283_v60  ;;  %v2075_v56 = vmul.f32 %v2074_v39, %v9412_v45  ;;  %v5941_v26 = vclamps-f32 %v3297_v27, 1.0  ;;  %v1484_v57 = vmul.f32 %v9444_v21, %v9394_v53 }
 0x2e0   : > { %v1506_v6 = vmul.f32 %v1505_v31, %v9298_v25  ;;  %v2039_v3 = vmul.f32 %v2038_v0, %v9353_v2  ;;  %v1416_v51 = vsel %vm9440_vm7, %v1415_v46, %v1411_v55  ;;  %v1431_v7 = vadd.f32 1.1283791, %v1430_v15 }
 0x2e1   : > { %v1469_v24 = vadd.f32 0.18741608, %v1468_v10  ;;  %v9473_v33 = vadd.f32 %v764_v37, %v6723_v42  ;;  %vm1448_vm9 = vweird.f32 %v9348_v9  ;;  %v2025_v60 = vadd.f32 0.0036580483, %v2024_v36 }
 0x2e2   : > { %v2076_v62 = vadd.f32 0.014752088, %v2075_v56  ;;  %v2113_v49 = vmul.f32 3.8918573e-05, %v9459_v4  ;;  %v1447_v29 = vadd.f32 %v9397_v32, %v1446_v5  ;;  %vm1449_vm11 = vweird.f32 %v9397_v32 }
 0x2e3   : > { %11850 = vst [vmem:[#allocation14_spill] sm:$0xff] %v9473_v33  ;;  %v1521_v27 = vmul.f32 %v1520_v20, %v9298_v25  ;;  %v2062_v12 = vmul.f32 2.1237322e-06, %v9412_v45  ;;  %v1454_v31 = vand.u32 2147483648, %v9348_v9  ;;  %v1485_v0 = vsub.f32 1.0, %v1484_v57  ;;  %vm9490_vm12 = vmor %vm1448_vm9, %vm1449_vm11 }
 0x2e4   : > { %v1507_v47 = vadd.f32 0.05243302, %v1506_v6  ;;  %v2040_v42 = vadd.f32 0.4994258, %v2039_v3  ;;  %v1417_v46 = vmul.f32 %v1416_v51, %v1392_v18  ;;  %v1452_v15 = vand.u32 2147483647, %v9348_v9  ;;  %v710_v51 = vpop.f32.mrf.mxu0 }
 0x2e5   : > { %v2077_v10 = vmul.f32 %v2076_v62, %v9412_v45  ;;  %v9485_v39 = vmul.f32 0.70710677, %v9473_v33  ;;  %v3519_v55 = vadd.f32 1.0, %v5941_v26  ;;  %v1432_v36 = vmul.f32 %v1431_v7, %v9176_v1  ;;  %v11882_v33 = vld [vmem:[#allocation29_spill] sm:$0xff] }
 0x2e6   : > { %v2026_v5 = vmul.f32 %v2025_v60, %v9353_v2  ;;  %v2114_v20 = vadd.f32 0.001143296, %v2113_v49  ;;  %v1451_v18 = vsel %vm9490_vm12, %v9397_v32, %v1447_v29  ;;  %v9498_v56 = vadd.f32 1.0, %v1521_v27 }
 0x2e7   : > { %v2063_v57 = vadd.f32 0.00028619796, %v2062_v12  ;;  %v2078_v6 = vadd.f32 0.112945676, %v2077_v10  ;;  %v1455_v26 = vor.u32 1.1754944e-38, %v1454_v31  ;;  %v1486_v1 = vmul.f32 %v9444_v21, %v1485_v0 }
 0x2e8   : > { %v1508_v9 = vmul.f32 %v1507_v47, %v9298_v25  ;;  %v2041_v3 = vmul.f32 %v2040_v42, %v9353_v2  ;;  %v5894_v7 = vclamps-f32 %v1417_v46, 1.0  ;;  %vm1453_vm13 = vcmp.eq.f32.partialorder %v1452_v15, 8.507059e+37 }
 0x2e9   : > { %v1470_v60 = vmul.f32 %v1469_v24, %v9234_v59  ;;  %v2140_v62 = vmul.f32 %v9485_v39, %v9485_v39  ;;  %v1456_v32 = vsel %vm1453_vm13, %v1455_v26, %v1451_v18  ;;  %vm1489_vm14 = vweird.f32 %v9444_v21 }
 0x2ea   : > { %v2027_v49 = vadd.f32 0.05243302, %v2026_v5  ;;  %v2115_v29 = vmul.f32 %v2114_v20, %v9459_v4  ;;  %6205 = vrcp.f32 %v9498_v56  ;;  %v2064_v27 = vmul.f32 %v2063_v57, %v9412_v45 }
 0x2eb   : > { %v2079_v12 = vmul.f32 %v2078_v6, %v9412_v45  ;;  %v9512_v31 = vadd.f32 %v710_v51, %v6860_v14  ;;  %v1487_v59 = vadd.f32 %v9444_v21, %v1486_v1  ;;  %v1509_v24 = vadd.f32 0.18741608, %v1508_v9 }
 0x2ec   : > { %v9515_v0 = vadd.f32 1.0, %v2041_v3  ;;  %v2102_v47 = vmul.f32 2.1237322e-06, %v9459_v4  ;;  %v1471_v42 = vadd.f32 1.1283791, %v1470_v60  ;;  %vm1488_vm15 = vweird.f32 %v9394_v53 }
 0x2ed   : > { %v1494_v46 = vand.u32 2147483648, %v9394_v53  ;;  %v9520_v15 = vmin.f32 %v2140_v62, 16.0  ;;  %v1457_v10 = vmul.f32 %v1456_v32, %v1432_v36  ;;  %v1492_v37 = vand.u32 2147483647, %v9394_v53  ;;  %vm9529_vm0 = vmor %vm1488_vm15, %vm1489_vm14  ;;  %v729_v62 = vpop.f32.mrf.mxu1 }
 0x2ee   : > { %v2028_v5 = vmul.f32 %v2027_v49, %v9353_v2  ;;  %v2116_v20 = vadd.f32 0.014752088, %v2115_v29  ;;  %v9525_v18 = vmul.f32 %v3519_v55, %v9237_v50  ;;  %v2065_v6 = vadd.f32 0.0036580483, %v2064_v27 }
 0x2ef   : > { %v2080_v26 = vadd.f32 0.4994258, %v2079_v12  ;;  %v9534_v1 = vmul.f32 0.70710677, %v9512_v31  ;;  %v1491_v53 = vsel %vm9529_vm0, %v9444_v21, %v1487_v59  ;;  %v1510_v36 = vmul.f32 %v1509_v24, %v9298_v25 }
 0x2f0   : > { %6207 = vrcp.f32 %v9515_v0  ;;  %v2103_v50 = vadd.f32 0.00028619796, %v2102_v47  ;;  %v9541_v55 = vpop.eup %6205  ;;  %v3472_v9 = vadd.f32 1.0, %v5894_v7  ;;  %v1472_v3 = vmul.f32 %v1471_v42, %v9200_v19 }
 0x2f1   : > { %v1495_v51 = vor.u32 1.1754944e-38, %v1494_v46  ;;  %v2153_v60 = vmul.f32 3.8918573e-05, %v9520_v15  ;;  %v5895_v32 = vclamps-f32 %v1457_v10, 1.0  ;;  %vm1493_vm1 = vcmp.eq.f32.partialorder %v1492_v37, 8.507059e+37 }
 0x2f2   : > { %v2029_v49 = vadd.f32 0.18741608, %v2028_v5  ;;  %v2117_v29 = vmul.f32 %v2116_v20, %v9459_v4  ;;  %v2066_v25 = vmul.f32 %v2065_v6, %v9412_v45  ;;  %v2081_v27 = vmul.f32 %v2080_v26, %v9412_v45 }
 0x2f3   : > { %v1496_v21 = vsel %vm1493_vm1, %v1495_v51, %v1491_v53  ;;  %v2660_v12 = vmul.f32 %v9534_v1, %v9534_v1  ;;  %v1511_v7 = vadd.f32 1.1283791, %v1510_v36  ;;  %v1524_v19 = vmul.f32 %v9541_v55, %v9498_v56 }
 0x2f4   : > { %v2104_v59 = vmul.f32 %v2103_v50, %v9459_v4  ;;  %v9554_v24 = vadd.f32 %v729_v62, %v6860_v14  ;;  %v9557_v47 = vmul.f32 %v3472_v9, %v9250_v30  ;;  %v9560_v42 = vmul.f32 0.5, %v9364_v63 }
 0x2f5   : > { %v9563_v46 = vmul.f32 0.5, %v9388_v44  ;;  %v2154_v10 = vadd.f32 0.001143296, %v2153_v60  ;;  %v3473_v5 = vadd.f32 1.0, %v5895_v32  ;;  %v1497_v20 = vmul.f32 %v1496_v21, %v1472_v3 }
 0x2f6   : > { %v9565_v37 = vpop.eup %6207  ;;  %v2030_v57 = vmul.f32 %v2029_v49, %v9353_v2  ;;  %v2118_v6 = vadd.f32 0.112945676, %v2117_v29  ;;  %v2067_v26 = vadd.f32 0.05243302, %v2066_v25  ;;  %v9568_v53 = vadd.f32 1.0, %v2081_v27 }
 0x2f7   : > { %11855 = vst [vmem:[#allocation32_spill] sm:$0xff] %v9563_v46  ;;  %v2142_v30 = vmul.f32 2.1237322e-06, %v9520_v15  ;;  %v9571_v36 = vmin.f32 %v2660_v12, 16.0  ;;  %v9574_v63 = vmul.f32 %v1511_v7, %v9274_v28  ;;  %v1525_v44 = vsub.f32 1.0, %v1524_v19  ;;  %v11857_v7 = vld [vmem:[#allocation30_spill] sm:$0xff] }
 0x2f8   : > { %v2105_v50 = vadd.f32 0.0036580483, %v2104_v59  ;;  %v9577_v9 = vmul.f32 0.70710677, %v9554_v24  ;;  %v1532_v3 = vand.u32 2147483647, %v9498_v56  ;;  %v2044_v51 = vmul.f32 %v9565_v37, %v9515_v0 }
 0x2f9   : > { %11856 = vst [vmem:[#allocation33_spill] sm:$0xff] %v9574_v63  ;;  %v1534_v2 = vand.u32 2147483648, %v9498_v56  ;;  %v2155_v60 = vmul.f32 %v2154_v10, %v9520_v15  ;;  %v9585_v62 = vmul.f32 %v3473_v5, %v9306_v41  ;;  %v5896_v32 = vclamps-f32 %v1497_v20, 1.0  ;;  %v3622_v59 = vld [vmem:[%s11637_s4] sm:$0xff] }
 0x2fa   : > { %vm1528_vm2 = vweird.f32 %v9498_v56  ;;  %v2031_v28 = vadd.f32 1.1283791, %v2030_v57  ;;  %v2119_v49 = vmul.f32 %v2118_v6, %v9459_v4  ;;  %v2068_v29 = vmul.f32 %v2067_v26, %v9412_v45  ;;  %v11858_v57 = vld [vmem:[#allocation27_spill] sm:$0xff]  ;;  %3626 = vperm.xlu2 %6102, %v3622_v59  }
 0x2fb   : > { %6209 = vrcp.f32 %v9568_v53  ;;  %v2143_v21 = vadd.f32 0.00028619796, %v2142_v30  ;;  %v2673_v25 = vmul.f32 3.8918573e-05, %v9571_v36  ;;  %v1526_v27 = vmul.f32 %v9541_v55, %v1525_v44  ;;  %v11859_v6 = vld [vmem:[#allocation31_spill] sm:$0xff] }
 0x2fc   : > { %v2106_v12 = vmul.f32 %v2105_v50, %v9459_v4  ;;  %v2700_v41 = vmul.f32 %v9577_v9, %v9577_v9  ;;  %v3610_v19 = vpack.c.bf16 %v11857_v7, %v8185_v58  ;;  %v2045_v10 = vsub.f32 1.0, %v2044_v51 }
 0x2fd   : > { %v2156_v5 = vadd.f32 0.014752088, %v2155_v60  ;;  %v2674_v20 = vadd.f32 0.001143296, %v2673_v25  ;;  %v3611_v26 = vpack.c.bf16 %v11859_v6, %v11858_v57  ;;  %v9603_v30 = vadd.f32 1.0, %v5896_v32  ;;  %v11867_v6 = vld [vmem:[#allocation20_spill] sm:$0xff] }
 0x2fe   : > { %vm1529_vm3 = vweird.f32 %v9541_v55  ;;  %v1535_v44 = vor.u32 1.1754944e-38, %v1534_v2  ;;  %v2120_v50 = vadd.f32 0.4994258, %v2119_v49  ;;  %3705 = vmatpush.bf16.msrb.mxu0 %v3610_v19  ;;  %vm9606_vm4 = vcmp.eq.f32.partialorder %v1532_v3, 8.507059e+37  ;;  %v11863_v3 = vld [vmem:[#allocation19_spill] sm:$0xff] }
 0x2ff   : > { %11860 = vst [vmem:[#allocation30_spill] sm:$0xff] %v9603_v30  ;;  %v9611_v7 = vmul.f32 %v2031_v28, %v9312_v13  ;;  %v2069_v51 = vadd.f32 0.18741608, %v2068_v29  ;;  %v2144_v60 = vmul.f32 %v2143_v21, %v9520_v15  ;;  %v9615_v25 = vmul.f32 0.5, %v9512_v31  ;;  %3719 = vmatpush.bf16.msrb.mxu1 %v3611_v26  ;;  %v11864_v19 = vld [vmem:[#allocation23_spill] sm:$0xff]  ;;  %vm9635_vm6 = vmor %vm1528_vm2, %vm1529_vm3  ;;  %v11868_v26 = vld [vmem:[#allocation24_spill] sm:$0xff] }
 0x300   : > { %v1527_v32 = vadd.f32 %v9541_v55, %v1526_v27  ;;  %v2675_v2 = vmul.f32 %v2674_v20, %v9571_v36  ;;  %v9619_v49 = vmin.f32 %v2700_v41, 16.0  ;;  %v3594_v59 = vpack.c.bf16 %v11864_v19, %v11863_v3  ;;  %v748_v19 = vpop.f32.mrf.mxu2 }
 0x301   : > { %v9623_v57 = vpop.eup %6209  ;;  %v2046_v13 = vmul.f32 %v9565_v37, %v2045_v10  ;;  %vm2048_vm5 = vweird.f32 %v9515_v0  ;;  %v2107_v28 = vadd.f32 0.05243302, %v2106_v12  ;;  %v2157_v31 = vmul.f32 %v2156_v5, %v9520_v15 }
 0x302   : > { %v2052_v29 = vand.u32 2147483647, %v9515_v0  ;;  %v2054_v21 = vand.u32 2147483648, %v9515_v0  ;;  %v2121_v27 = vmul.f32 %v2120_v50, %v9459_v4  ;;  %v2676_v41 = vadd.f32 0.014752088, %v2675_v2  ;;  %3706 = vmatpush.bf16.msrb.mxu0 %v3594_v59 }
 0x303   : > { %v2070_v12 = vmul.f32 %v2069_v51, %v9412_v45  ;;  %v2145_v10 = vadd.f32 0.0036580483, %v2144_v60  ;;  %v2713_v5 = vmul.f32 3.8918573e-05, %v9619_v49  ;;  %v3595_v3 = vpack.c.bf16 %v11868_v26, %v11867_v6 }
 0x304   : > { %v1531_v50 = vsel %vm9635_vm6, %v9541_v55, %v1527_v32  ;;  %vm2049_vm7 = vweird.f32 %v9565_v37  ;;  %v2084_v56 = vmul.f32 %v9623_v57, %v9568_v53  ;;  %v2677_v2 = vmul.f32 %v2676_v41, %v9571_v36  ;;  %v9656_v55 = vld [vmem:[%s11636_s3] sm:$0xff] }
 0x305   : > { %v2047_v45 = vadd.f32 %v9565_v37, %v2046_v13  ;;  %v2108_v51 = vmul.f32 %v2107_v28, %v9459_v4  ;;  %v2158_v60 = vadd.f32 0.112945676, %v2157_v31  ;;  %v2662_v59 = vmul.f32 2.1237322e-06, %v9571_v36  ;;  %3720 = vmatpush.bf16.msrb.mxu1 %v3595_v3  ;;  %5954 = vmatmul.msk.bf16.vlgmr.msrb.gmra.mxu0 %vm3639_vm10, %v9656_v55  ;;  %vm9678_vm9 = vmor %vm2048_vm5, %vm2049_vm7 }
 0x306   : > { %vm9660_vm8 = vcmp.eq.f32.partialorder %v2052_v29, 8.507059e+37  ;;  %v9664_v41 = vadd.f32 1.0, %v2121_v27  ;;  %v2678_v13 = vadd.f32 0.112945676, %v2677_v2  ;;  %v2714_v28 = vadd.f32 0.001143296, %v2713_v5 }
 0x307   : > { %v2055_v31 = vor.u32 1.1754944e-38, %v2054_v21  ;;  %v2071_v20 = vadd.f32 1.1283791, %v2070_v12  ;;  %v2146_v6 = vmul.f32 %v2145_v10, %v9520_v15  ;;  %v9668_v26 = vadd.f32 %v748_v19, %v6860_v14  ;;  %v767_v10 = vpop.f32.mrf.mxu3 }
 0x308   : > { %v9672_v3 = vsel %vm9606_vm4, %v1535_v44, %v1531_v50  ;;  %v2085_v27 = vsub.f32 1.0, %v2084_v56  ;;  %v2679_v21 = vmul.f32 %v2678_v13, %v9571_v36  ;;  %v2715_v12 = vmul.f32 %v2714_v28, %v9619_v49  ;;  %5955 = vmatmul.msk.bf16.vlgmr.msrb.gmra.mxu1 %vm3639_vm10, %v9656_v55 }
 0x309   : > { %11871 = vst [vmem:[#allocation27_spill] sm:$0xff] %v9668_v26  ;;  %v2051_v44 = vsel %vm9678_vm9, %v9565_v37, %v2047_v45  ;;  %v2109_v58 = vadd.f32 0.18741608, %v2108_v51  ;;  %v2663_v5 = vadd.f32 0.00028619796, %v2662_v59  ;;  %6211 = vrcp.f32 %v9664_v41 }
 0x30a   : > { %11872 = vst [vmem:[#allocation31_spill] sm:$0xff] %v9672_v3  ;;  %v2702_v0 = vmul.f32 2.1237322e-06, %v9619_v49  ;;  %v2159_v50 = vmul.f32 %v2158_v60, %v9520_v15  ;;  %v2680_v56 = vadd.f32 0.4994258, %v2679_v21  ;;  %v9693_v19 = vmul.f32 %v2071_v20, %v9380_v40 }
 0x30b   : > { %v2716_v2 = vadd.f32 0.014752088, %v2715_v12  ;;  %v2147_v13 = vadd.f32 0.05243302, %v2146_v6  ;;  %v9696_v28 = vmul.f32 0.70710677, %v9668_v26  ;;  %v9699_v29 = vadd.f32 %v767_v10, %v6860_v14 }
 0x30c   : > { %v2086_v37 = vmul.f32 %v9623_v57, %v2085_v27  ;;  %v2092_v45 = vand.u32 2147483647, %v9568_v53  ;;  %v2681_v51 = vmul.f32 %v2680_v56, %v9571_v36  ;;  %v2056_v59 = vsel %vm9660_vm8, %v2055_v31, %v2051_v44 }
 0x30d   : > { %11875 = vst [vmem:[#allocation19_spill] sm:$0xff] %v9699_v29  ;;  %v2717_v60 = vmul.f32 %v2716_v2, %v9619_v49  ;;  %v2664_v40 = vmul.f32 %v2663_v5, %v9571_v36  ;;  %v2703_v20 = vadd.f32 0.00028619796, %v2702_v0  ;;  %v2740_v6 = vmul.f32 %v9696_v28, %v9696_v28 }
 0x30e   : > { %v2094_v14 = vand.u32 2147483648, %v9568_v53  ;;  %v2110_v21 = vmul.f32 %v2109_v58, %v9459_v4  ;;  %v2160_v27 = vadd.f32 0.4994258, %v2159_v50  ;;  %v9712_v12 = vadd.f32 1.0, %v2681_v51 }
 0x30f   : > { %v2148_v10 = vmul.f32 %v2147_v13, %v9520_v15  ;;  %v2718_v56 = vadd.f32 0.112945676, %v2717_v60  ;;  %v9715_v2 = vmin.f32 %v2740_v6, 16.0  ;;  %v9718_v32 = vmul.f32 0.70710677, %v9699_v29  ;;  %v9720_v31 = vpop.eup %6211 }
 0x310   : > { %v2057_v44 = vmul.f32 %v2056_v59, %v9611_v7  ;;  %v2087_v5 = vadd.f32 %v9623_v57, %v2086_v37  ;;  %vm2088_vm11 = vweird.f32 %v9568_v53  ;;  %vm2089_vm12 = vweird.f32 %v9623_v57 }
 0x311   : > { %11876 = vst [vmem:[#allocation23_spill] sm:$0xff] %v9718_v32  ;;  %v2665_v4 = vadd.f32 0.0036580483, %v2664_v40  ;;  %6213 = vrcp.f32 %v9712_v12  ;;  %v2704_v58 = vmul.f32 %v2703_v20, %v9619_v49  ;;  %v2719_v0 = vmul.f32 %v2718_v56, %v9619_v49  ;;  %vm9741_vm14 = vmor %vm2088_vm11, %vm2089_vm12 }
 0x312   : > { %vm9729_vm13 = vcmp.eq.f32.partialorder %v2092_v45, 8.507059e+37  ;;  %v2161_v13 = vmul.f32 %v2160_v27, %v9520_v15  ;;  %v2753_v7 = vmul.f32 3.8918573e-05, %v9715_v2  ;;  %v2780_v37 = vmul.f32 %v9718_v32, %v9718_v32  ;;  %v11881_v27 = vld [vmem:[#allocation28_spill] sm:$0xff] }
 0x313   : > { %v2095_v51 = vor.u32 1.1754944e-38, %v2094_v14  ;;  %v2111_v60 = vadd.f32 1.1283791, %v2110_v21  ;;  %v2124_v59 = vmul.f32 %v9720_v31, %v9664_v41  ;;  %v2149_v40 = vadd.f32 0.18741608, %v2148_v10 }
 0x314   : > { %v5910_v20 = vclamps-f32 %v2057_v44, 1.0  ;;  %v2754_v6 = vadd.f32 0.001143296, %v2753_v7  ;;  %v3612_v56 = vpack.c.bf16 %v8599_v52, %v11881_v27  ;;  %v3613_v29 = vpack.c.bf16 %v8607_v8, %v11882_v33  ;;  %v712_v52 = vpop.f32.mrf.mxu0 }
 0x315   : > { %v2091_v14 = vsel %vm9741_vm14, %v9623_v57, %v2087_v5  ;;  %v2666_v21 = vmul.f32 %v2665_v4, %v9571_v36  ;;  %v2705_v10 = vadd.f32 0.0036580483, %v2704_v58  ;;  %v2720_v44 = vadd.f32 0.4994258, %v2719_v0 }
 0x316   : > { %v9753_v53 = vadd.f32 1.0, %v2161_v13  ;;  %v9756_v3 = vmul.f32 0.5, %v9554_v24  ;;  %v2755_v7 = vmul.f32 %v2754_v6, %v9715_v2  ;;  %v9759_v63 = vmin.f32 %v2780_v37, 16.0  ;;  %3733 = vmatpush.bf16.msrb.mxu2 %v3612_v56  ;;  %3747 = vmatpush.bf16.msrb.mxu3 %v3613_v29 }
 0x317   : > { %v9761_v8 = vpop.eup %6213  ;;  %v9764_v33 = vmul.f32 %v2111_v60, %v9420_v11  ;;  %v2125_v57 = vsub.f32 1.0, %v2124_v59  ;;  %v2134_v5 = vand.u32 2147483648, %v9664_v41  ;;  %v2150_v4 = vmul.f32 %v2149_v40, %v9520_v15 }
 0x318   : > { %v3488_v58 = vadd.f32 1.0, %v5910_v20  ;;  %v2096_v24 = vsel %vm9729_vm13, %v2095_v51, %v2091_v14  ;;  %v2742_v0 = vmul.f32 2.1237322e-06, %v9715_v2  ;;  %v2756_v13 = vadd.f32 0.014752088, %v2755_v7  ;;  %v731_v14 = vpop.f32.mrf.mxu1  ;;  %v3623_v7 = vld [vmem:[%s11637_s4 + $0x8] sm:$0xff] }
 0x319   : > { %v2667_v37 = vadd.f32 0.05243302, %v2666_v21  ;;  %v2706_v29 = vmul.f32 %v2705_v10, %v9619_v49  ;;  %v2721_v45 = vmul.f32 %v2720_v44, %v9619_v49  ;;  %v9774_v11 = vadd.f32 %v712_v52, %v7074_v17  ;;  %3631 = vperm.xlu2 %6102, %v3623_v7  }
 0x31a   : > { %v2132_v60 = vand.u32 2147483647, %v9664_v41  ;;  %6215 = vrcp.f32 %v9753_v53  ;;  %v2684_v15 = vmul.f32 %v9761_v8, %v9712_v12  ;;  %v2793_v50 = vmul.f32 3.8918573e-05, %v9759_v63 }
 0x31b   : > { %v2097_v51 = vmul.f32 %v2096_v24, %v9693_v19  ;;  %v2126_v59 = vmul.f32 %v9720_v31, %v2125_v57  ;;  %vm2128_vm15 = vweird.f32 %v9664_v41  ;;  %v2135_v40 = vor.u32 1.1754944e-38, %v2134_v5  ;;  %v11885_v5 = vld [vmem:[#allocation21_spill] sm:$0xff] }
 0x31c   : > { %v9785_v20 = vmul.f32 %v3488_v58, %v9463_v35  ;;  %v2151_v6 = vadd.f32 1.1283791, %v2150_v4  ;;  %v2743_v27 = vadd.f32 0.00028619796, %v2742_v0  ;;  %v2757_v56 = vmul.f32 %v2756_v13, %v9715_v2  ;;  %v11886_v4 = vld [vmem:[#allocation25_spill] sm:$0xff] }
 0x31d   : > { %v2668_v21 = vmul.f32 %v2667_v37, %v9571_v36  ;;  %v2707_v10 = vadd.f32 0.05243302, %v2706_v29  ;;  %v9789_v44 = vadd.f32 1.0, %v2721_v45  ;;  %v9792_v19 = vmul.f32 0.70710677, %v9774_v11 }
 0x31e   : > { %vm2129_vm0 = vweird.f32 %v9720_v31  ;;  %vm9798_vm1 = vcmp.eq.f32.partialorder %v2132_v60, 8.507059e+37  ;;  %v2685_v52 = vsub.f32 1.0, %v2684_v15  ;;  %v2794_v57 = vadd.f32 0.001143296, %v2793_v50 }
 0x31f   : > { %v3596_v58 = vpack.c.bf16 %v11886_v4, %v11885_v5  ;;  %v5911_v24 = vclamps-f32 %v2097_v51, 1.0  ;;  %v2127_v0 = vadd.f32 %v9720_v31, %v2126_v59  ;;  %v3300_v13 = vmul.f32 %v9792_v19, %v9792_v19  ;;  %vm9824_vm2 = vmor %vm2128_vm15, %vm2129_vm0 }
 0x320   : > { %v9808_v37 = vadd.f32 %v731_v14, %v7074_v17  ;;  %v9810_v29 = vpop.eup %6215  ;;  %v9813_v45 = vmul.f32 %v2151_v6, %v9485_v39  ;;  %v2744_v15 = vmul.f32 %v2743_v27, %v9715_v2  ;;  %v2758_v50 = vadd.f32 0.112945676, %v2757_v56 }
 0x321   : > { %3734 = vmatpush.bf16.msrb.mxu2 %v3596_v58  ;;  %v2669_v51 = vadd.f32 0.18741608, %v2668_v21  ;;  %v2708_v59 = vmul.f32 %v2707_v10, %v9619_v49  ;;  %6217 = vrcp.f32 %v9789_v44  ;;  %v2782_v7 = vmul.f32 2.1237322e-06, %v9759_v63 }
 0x322   : > { %11887 = vst [vmem:[#allocation20_spill] sm:$0xff] %v9813_v45  ;;  %v2686_v27 = vmul.f32 %v9761_v8, %v2685_v52  ;;  %v2795_v56 = vmul.f32 %v2794_v57, %v9759_v63  ;;  %v9831_v14 = vmin.f32 %v3300_v13, 16.0  ;;  %v9833_v21 = vadd.f32 1.0, %v5911_v24  ;;  %v5674_v13 = vld [vmem:[%s11639_s6 + $0x10] sm:$0xff] }
 0x323   : > { %v2131_v10 = vsel %vm9824_vm2, %v9720_v31, %v2127_v0  ;;  %v9840_v41 = vmul.f32 %v9810_v29, %v9753_v53  ;;  %v9843_v5 = vmul.f32 0.70710677, %v9808_v37  ;;  %v2745_v52 = vadd.f32 0.0036580483, %v2744_v15  ;;  %5688 = vperm.xlu2 %6102, %v5674_v13  }
 0x324   : > { %5956 = vmatmul.msk.bf16.vlgmr.msrb.gmra.mxu2 %vm3639_vm10, %v9656_v55  ;;  %v2759_v57 = vmul.f32 %v2758_v50, %v9715_v2  ;;  %v3302_v4 = vmul.f32 2.1237322e-06, %v9831_v14  ;;  %v3313_v58 = vmul.f32 3.8918573e-05, %v9831_v14  ;;  %v2670_v24 = vmul.f32 %v2669_v51, %v9571_v36 }
 0x325   : > { %vm2689_vm3 = vweird.f32 %v9761_v8  ;;  %v2709_v31 = vadd.f32 0.18741608, %v2708_v59  ;;  %v2783_v0 = vadd.f32 0.00028619796, %v2782_v7  ;;  %v2687_v39 = vadd.f32 %v9761_v8, %v2686_v27 }
 0x326   : > { %v2796_v6 = vadd.f32 0.014752088, %v2795_v56  ;;  %v3303_v15 = vadd.f32 0.00028619796, %v3302_v4  ;;  %v3314_v60 = vadd.f32 0.001143296, %v3313_v58  ;;  %v2136_v45 = vsel %vm9798_vm1, %v2135_v40, %v2131_v10 }
 0x327   : > { %v9856_v50 = vpop.eup %6217  ;;  %v2165_v36 = vsub.f32 1.0, %v9840_v41  ;;  %vm2688_vm4 = vweird.f32 %v9712_v12  ;;  %v3340_v51 = vmul.f32 %v9843_v5, %v9843_v5  ;;  %v2692_v59 = vand.u32 2147483647, %v9712_v12 }
 0x328   : > { %v2694_v7 = vand.u32 2147483648, %v9712_v12  ;;  %v2746_v27 = vmul.f32 %v2745_v52, %v9715_v2  ;;  %v2760_v56 = vadd.f32 0.4994258, %v2759_v57  ;;  %v2671_v4 = vadd.f32 1.1283791, %v2670_v24  ;;  %vm9869_vm5 = vmor %vm2688_vm4, %vm2689_vm3 }
 0x329   : > { %v2710_v40 = vmul.f32 %v2709_v31, %v9619_v49  ;;  %v3304_v10 = vmul.f32 %v3303_v15, %v9831_v14  ;;  %v3315_v41 = vmul.f32 %v3314_v60, %v9831_v14  ;;  %v2691_v12 = vsel %vm9869_vm5, %v9761_v8, %v2687_v39  ;;  %v11892_v49 = vld [vmem:[#allocation22_spill] sm:$0xff]  ;;  %v750_v8 = vpop.f32.mrf.mxu2  ;;  %v5705_v39 = vld [vmem:[%s11640_s7 + $0x8] sm:$0xff] }
 0x32a   : > { %v2724_v52 = vmul.f32 %v9856_v50, %v9789_v44  ;;  %v2784_v57 = vmul.f32 %v2783_v0, %v9759_v63  ;;  %v2797_v58 = vmul.f32 %v2796_v6, %v9759_v63  ;;  %v9883_v46 = vmin.f32 %v3340_v51, 16.0  ;;  %v11893_v31 = vld [vmem:[#allocation26_spill] sm:$0xff] }
 0x32b   : > { %v3305_v24 = vadd.f32 0.0036580483, %v3304_v10  ;;  %v3316_v13 = vadd.f32 0.014752088, %v3315_v41  ;;  %v3597_v15 = vpack.c.bf16 %v11893_v31, %v11892_v49  ;;  %vm2693_vm6 = vcmp.eq.f32.partialorder %v2692_v59, 8.507059e+37  ;;  %5715 = vperm.xlu2 %6102, %v5705_v39  }
 0x32c   : > { %v2695_v60 = vor.u32 1.1754944e-38, %v2694_v7  ;;  %v2747_v30 = vadd.f32 0.05243302, %v2746_v27  ;;  %v2761_v35 = vmul.f32 %v2760_v56, %v9715_v2  ;;  %v2711_v0 = vadd.f32 1.1283791, %v2710_v40 }
 0x32d   : > { %v3317_v6 = vmul.f32 %v3316_v13, %v9831_v14  ;;  %v3342_v10 = vmul.f32 2.1237322e-06, %v9883_v46  ;;  %v3353_v51 = vmul.f32 3.8918573e-05, %v9883_v46  ;;  %3748 = vmatpush.bf16.msrb.mxu3 %v3597_v15  ;;  %v9895_v41 = vmul.f32 %v2136_v45, %v9764_v33 }
 0x32e   : > { %v2672_v59 = vmul.f32 %v2671_v4, %v9534_v1  ;;  %v2696_v7 = vsel %vm2693_vm6, %v2695_v60, %v2691_v12  ;;  %v3306_v27 = vmul.f32 %v3305_v24, %v9831_v14  ;;  %v2725_v56 = vsub.f32 1.0, %v2724_v52 }
 0x32f   : > { %v2785_v49 = vadd.f32 0.0036580483, %v2784_v57  ;;  %v2798_v31 = vadd.f32 0.112945676, %v2797_v58  ;;  %v9900_v40 = vadd.f32 %v750_v8, %v7074_v17  ;;  %v2748_v13 = vmul.f32 %v2747_v30, %v9715_v2 }
 0x330   : > { %v9903_v32 = vadd.f32 1.0, %v2761_v35  ;;  %v3318_v15 = vadd.f32 0.112945676, %v3317_v6  ;;  %v3343_v26 = vadd.f32 0.00028619796, %v3342_v10  ;;  %5957 = vmatmul.msk.bf16.vlgmr.msrb.gmra.mxu3 %vm3639_vm10, %v9656_v55  ;;  %v9908_v1 = vmul.f32 %v9810_v29, %v2165_v36 }
 0x331   : > { %v2697_v33 = vmul.f32 %v2696_v7, %v2672_v59  ;;  %v9911_v45 = vmul.f32 %v2711_v0, %v9577_v9  ;;  %v3354_v4 = vadd.f32 0.001143296, %v3353_v51  ;;  %v2732_v12 = vand.u32 2147483647, %v9789_v44 }
 0x332   : > { %v3307_v52 = vadd.f32 0.05243302, %v3306_v27  ;;  %v3319_v30 = vmul.f32 %v3318_v15, %v9831_v14  ;;  %v3344_v57 = vmul.f32 %v3343_v26, %v9883_v46  ;;  %v2726_v58 = vmul.f32 %v9856_v50, %v2725_v56 }
 0x333   : > { %v2799_v24 = vmul.f32 %v2798_v31, %v9759_v63  ;;  %v3355_v60 = vmul.f32 %v3354_v4, %v9883_v46  ;;  %v9920_v36 = vmul.f32 0.70710677, %v9900_v40  ;;  %v2749_v35 = vadd.f32 0.18741608, %v2748_v13 }
 0x334   : > { %6219 = vrcp.f32 %v9903_v32  ;;  %v2786_v9 = vmul.f32 %v2785_v49, %v9759_v63  ;;  %v3320_v8 = vadd.f32 0.4994258, %v3319_v30  ;;  %v5926_v39 = vclamps-f32 %v2697_v33, 1.0  ;;  %v769_v33 = vpop.f32.mrf.mxu3 }
 0x335   : > { %vm2728_vm7 = vweird.f32 %v9789_v44  ;;  %v3345_v0 = vadd.f32 0.0036580483, %v3344_v57  ;;  %v3356_v26 = vadd.f32 0.014752088, %v3355_v60  ;;  %v2734_v6 = vand.u32 2147483648, %v9789_v44 }
 0x336   : > { %v3308_v10 = vmul.f32 %v3307_v52, %v9831_v14  ;;  %v3321_v51 = vmul.f32 %v3320_v8, %v9831_v14  ;;  %v3380_v59 = vmul.f32 %v9920_v36, %v9920_v36  ;;  %v2727_v7 = vadd.f32 %v9856_v50, %v2726_v58 }
 0x337   : > { %vm2729_vm8 = vweird.f32 %v9856_v50  ;;  %v2800_v27 = vadd.f32 0.4994258, %v2799_v24  ;;  %v3357_v56 = vmul.f32 %v3356_v26, %v9883_v46  ;;  %v2750_v49 = vmul.f32 %v2749_v35, %v9715_v2 }
 0x338   : > { %v2787_v31 = vadd.f32 0.05243302, %v2786_v9  ;;  %v9934_v13 = vadd.f32 1.0, %v3321_v51  ;;  %v9936_v15 = vmin.f32 %v3380_v59, 16.0  ;;  %v3504_v4 = vadd.f32 1.0, %v5926_v39  ;;  %vm9947_vm11 = vmor %vm2728_vm7, %vm2729_vm8 }
 0x339   : > { %vm9938_vm9 = vcmp.eq.f32.partialorder %v2732_v12, 8.507059e+37  ;;  %v3346_v30 = vmul.f32 %v3345_v0, %v9883_v46  ;;  %v3358_v57 = vadd.f32 0.112945676, %v3357_v56  ;;  %v2735_v24 = vor.u32 1.1754944e-38, %v2734_v6 }
 0x33a   : > { %v9943_v58 = vpop.eup %6219  ;;  %v9952_v60 = vmul.f32 0.5, %v9774_v11  ;;  %v3309_v35 = vadd.f32 0.18741608, %v3308_v10  ;;  %6221 = vrcp.f32 %v9934_v13  ;;  %v2731_v12 = vsel %vm9947_vm11, %v9856_v50, %v2727_v7 }
 0x33b   : > { %v2801_v9 = vmul.f32 %v2800_v27, %v9759_v63  ;;  %v3359_v8 = vmul.f32 %v3358_v57, %v9883_v46  ;;  %v9961_v44 = vadd.f32 %v769_v33, %v7074_v17  ;;  %v9963_v39 = vadd.f32 1.1283791, %v2750_v49 }
 0x33c   : > { %v9966_v0 = vmul.f32 %v2787_v31, %v9759_v63  ;;  %v3382_v11 = vmul.f32 2.1237322e-06, %v9936_v15  ;;  %v3393_v26 = vmul.f32 3.8918573e-05, %v9936_v15  ;;  %v9971_v6 = vmul.f32 %v3504_v4, %v9615_v25 }
 0x33d   : > { %v2764_v50 = vmul.f32 %v9943_v58, %v9903_v32  ;;  %v3347_v10 = vadd.f32 0.05243302, %v3346_v30  ;;  %v3360_v51 = vadd.f32 0.4994258, %v3359_v8  ;;  %v2736_v17 = vsel %vm9938_vm9, %v2735_v24, %v2731_v12 }
 0x33e   : > { %v3310_v59 = vmul.f32 %v3309_v35, %v9831_v14  ;;  %v3383_v7 = vadd.f32 0.00028619796, %v3382_v11  ;;  %v3394_v27 = vadd.f32 0.001143296, %v3393_v26  ;;  %v2772_v56 = vand.u32 2147483647, %v9903_v32 }
 0x33f   : > { %v9979_v49 = vadd.f32 1.0, %v2801_v9  ;;  %v3361_v31 = vmul.f32 %v3360_v51, %v9883_v46  ;;  %v9983_v25 = vmul.f32 0.70710677, %v9961_v44  ;;  %v3614_v52 = vpack.c.bf16 %v9334_v54, %v9189_v34  ;;  %v11898_v26 = vld [vmem:[#allocation17_spill] sm:$0xff] }
 0x340   : > { %v6222_v33 = vpop.eup %6221  ;;  %v3384_v4 = vmul.f32 %v3383_v7, %v9936_v15  ;;  %v3395_v30 = vmul.f32 %v3394_v27, %v9936_v15  ;;  %v3615_v14 = vpack.c.bf16 %v9400_v16, %v9192_v38  ;;  %v9992_v57 = vmul.f32 %v2736_v17, %v9911_v45 }
 0x341   : > { %v2765_v2 = vsub.f32 1.0, %v2764_v50  ;;  %v3324_v24 = vmul.f32 %v6222_v33, %v9934_v13  ;;  %v3348_v35 = vmul.f32 %v3347_v10, %v9883_v46  ;;  %v3311_v12 = vadd.f32 1.1283791, %v3310_v59  ;;  %3761 = vmatpush.bf16.msra.mxu0 %v3614_v52 }
 0x342   : > { %v9996_v9 = vadd.f32 1.0, %v3361_v31  ;;  %v3396_v8 = vadd.f32 0.014752088, %v3395_v30  ;;  %v3420_v11 = vmul.f32 %v9983_v25, %v9983_v25  ;;  %3775 = vmatpush.bf16.msra.mxu1 %v3615_v14  ;;  %6223 = vrcp.f32 %v9979_v49  ;;  %v11899_v31 = vld [vmem:[#allocation10_spill] sm:$0xff] }
 0x343   : > { %v3325_v34 = vsub.f32 1.0, %v3324_v24  ;;  %v3332_v38 = vand.u32 2147483647, %v9934_v13  ;;  %v3598_v16 = vpack.c.bf16 %v8903_v61, %v8667_v43  ;;  %v3334_v54 = vand.u32 2147483648, %v9934_v13 }
 0x344   : > { %6225 = vrcp.f32 %v9996_v9  ;;  %v3385_v45 = vadd.f32 0.0036580483, %v3384_v4  ;;  %v3599_v50 = vpack.c.bf16 %v11898_v26, %v8673_v22  ;;  %vm3329_vm12 = vweird.f32 %v6222_v33 }
 0x345   : > { %v3326_v10 = vmul.f32 %v6222_v33, %v3325_v34  ;;  %v3349_v51 = vadd.f32 0.18741608, %v3348_v35  ;;  %v3397_v17 = vmul.f32 %v3396_v8, %v9936_v15  ;;  %v2766_v59 = vmul.f32 %v9943_v58, %v2765_v2  ;;  %3762 = vmatpush.bf16.msra.mxu0 %v3598_v16  ;;  %v11904_v16 = vld [vmem:[#allocation15_spill] sm:$0xff] }
 0x346   : > { %v3312_v7 = vmul.f32 %v3311_v12, %v9792_v19  ;;  %v10011_v27 = vmin.f32 %v3420_v11, 16.0  ;;  %3776 = vmatpush.bf16.msra.mxu1 %v3599_v50  ;;  %v3616_v43 = vpack.c.bf16 %v9453_v23, %v9244_v48  ;;  %vm3328_vm13 = vweird.f32 %v9934_v13  ;;  %v11902_v11 = vld [vmem:[#allocation12_spill] sm:$0xff] }
 0x347   : > { %v3327_v61 = vadd.f32 %v6222_v33, %v3326_v10  ;;  %v3398_v22 = vadd.f32 0.112945676, %v3397_v17  ;;  %v3617_v4 = vpack.c.bf16 %v9525_v18, %v11899_v31  ;;  %vm10018_vm14 = vmor %vm3328_vm13, %vm3329_vm12  ;;  %v3335_v52 = vor.u32 1.1754944e-38, %v3334_v54  ;;  %v11905_v54 = vld [vmem:[#allocation18_spill] sm:$0xff] }
 0x348   : > { %v3386_v19 = vmul.f32 %v3385_v45, %v9936_v15  ;;  %v3422_v14 = vmul.f32 2.1237322e-06, %v10011_v27  ;;  %v3433_v2 = vmul.f32 3.8918573e-05, %v10011_v27  ;;  %3789 = vmatpush.bf16.msra.mxu2 %v3616_v43  ;;  %v10025_v48 = vpop.eup %6223  ;;  %vm3333_vm15 = vcmp.eq.f32.partialorder %v3332_v38, 8.507059e+37  ;;  %5958 = vmatmul.msk.bf16.vlgmr.msra.gmra.mxu0 %vm3639_vm10, %v9656_v55 }
 0x349   : > { %v3331_v23 = vsel %vm10018_vm14, %v6222_v33, %v3327_v61  ;;  %v3350_v18 = vmul.f32 %v3349_v51, %v9883_v46  ;;  %v3399_v13 = vmul.f32 %v3398_v22, %v9936_v15  ;;  %3803 = vmatpush.bf16.msra.mxu3 %v3617_v4  ;;  %vm2768_vm0 = vweird.f32 %v9903_v32  ;;  %5959 = vmatmul.msk.bf16.vlgmr.msra.gmra.mxu1 %vm3639_vm10, %v9656_v55  ;;  %v11903_v33 = vld [vmem:[#allocation16_spill] sm:$0xff] }
 0x34a   : > { %v6226_v24 = vpop.eup %6225  ;;  %v3336_v35 = vsel %vm3333_vm15, %v3335_v52, %v3331_v23  ;;  %v3423_v12 = vadd.f32 0.00028619796, %v3422_v14  ;;  %v3434_v8 = vadd.f32 0.001143296, %v3433_v2  ;;  %v3600_v34 = vpack.c.bf16 %v11903_v33, %v11902_v11 }
 0x34b   : > { %vm2769_vm1 = vweird.f32 %v9943_v58  ;;  %v3337_v46 = vmul.f32 %v3336_v35, %v3312_v7  ;;  %v3364_v38 = vmul.f32 %v6226_v24, %v9996_v9  ;;  %v3601_v45 = vpack.c.bf16 %v11905_v54, %v11904_v16 }
 0x34c   : > { %v3387_v26 = vadd.f32 0.05243302, %v3386_v19  ;;  %v3400_v50 = vadd.f32 0.4994258, %v3399_v13  ;;  %v3424_v10 = vmul.f32 %v3423_v12, %v10011_v27  ;;  %v3435_v51 = vmul.f32 %v3434_v8, %v10011_v27  ;;  %3790 = vmatpush.bf16.msra.mxu2 %v3600_v34  ;;  %vm10067_vm5 = vmor %vm2768_vm0, %vm2769_vm1 }
 0x34d   : > { %v2767_v17 = vadd.f32 %v9943_v58, %v2766_v59  ;;  %v2804_v43 = vmul.f32 %v10025_v48, %v9979_v49  ;;  %v5942_v61 = vclamps-f32 %v3337_v46, 1.0  ;;  %v3365_v22 = vsub.f32 1.0, %v3364_v38  ;;  %3804 = vmatpush.bf16.msra.mxu3 %v3601_v45 }
 0x34e   : > { %v3351_v7 = vadd.f32 1.1283791, %v3350_v18  ;;  %v3374_v31 = vand.u32 2147483648, %v9996_v9  ;;  %v3401_v4 = vmul.f32 %v3400_v50, %v9936_v15  ;;  %v3436_v30 = vadd.f32 0.014752088, %v3435_v51 }
 0x34f   : > { %v3520_v52 = vadd.f32 1.0, %v5942_v61  ;;  %v3366_v19 = vmul.f32 %v6226_v24, %v3365_v22  ;;  %vm3369_vm2 = vweird.f32 %v6226_v24  ;;  %v3372_v14 = vand.u32 2147483647, %v9996_v9  ;;  %5960 = vmatmul.msk.bf16.vlgmr.msra.gmra.mxu2 %vm3639_vm10, %v9656_v55 }
 0x350   : > { %v3388_v59 = vmul.f32 %v3387_v26, %v9936_v15  ;;  %v10053_v2 = vadd.f32 1.0, %v3401_v4  ;;  %v3425_v23 = vadd.f32 0.0036580483, %v3424_v10  ;;  %v3437_v18 = vmul.f32 %v3436_v30, %v10011_v27  ;;  %5961 = vmatmul.msk.bf16.vlgmr.msra.gmra.mxu3 %vm3639_vm10, %v9656_v55 }
 0x351   : > { %v2774_v13 = vand.u32 2147483648, %v9903_v32  ;;  %v3584_v35 = vmul.f32 %v3520_v52, %v9952_v60  ;;  %v3367_v12 = vadd.f32 %v6226_v24, %v3366_v19  ;;  %vm3368_vm3 = vweird.f32 %v9996_v9 }
 0x352   : > { %v5927_v8 = vclamps-f32 %v9992_v57, 1.0  ;;  %v2805_v11 = vsub.f32 1.0, %v2804_v43  ;;  %vm3370_vm4 = vmor %vm3368_vm3, %vm3369_vm2  ;;  %v3375_v33 = vor.u32 1.1754944e-38, %v3374_v31  ;;  %6227 = vrcp.f32 %v10053_v2 }
 0x353   : > { %v3352_v60 = vmul.f32 %v3351_v7, %v9843_v5  ;;  %v3371_v46 = vsel %vm3370_vm4, %v6226_v24, %v3367_v12  ;;  %vm3373_vm6 = vcmp.eq.f32.partialorder %v3372_v14, 8.507059e+37  ;;  %v3438_v9 = vadd.f32 0.112945676, %v3437_v18 }
 0x354   : > { %v2771_v57 = vsel %vm10067_vm5, %v9943_v58, %v2767_v17  ;;  %v3376_v38 = vsel %vm3373_vm6, %v3375_v33, %v3371_v46  ;;  %v3389_v16 = vadd.f32 0.18741608, %v3388_v59  ;;  %v3426_v54 = vmul.f32 %v3425_v23, %v10011_v27 }
 0x355   : > { %v2775_v45 = vor.u32 1.1754944e-38, %v2774_v13  ;;  %v3377_v26 = vmul.f32 %v3376_v38, %v3352_v60  ;;  %v3439_v50 = vmul.f32 %v3438_v9, %v10011_v27  ;;  %v3618_v10 = vpack.c.bf16 %v3584_v35, %v9971_v6  ;;  %v10134_v9 = vpop.permute.xlu2 %3626 }
 0x356   : > { %v10080_v5 = vmul.f32 %v9833_v21, %v9560_v42  ;;  %v3505_v24 = vadd.f32 1.0, %v5927_v8  ;;  %vm2773_vm7 = vcmp.eq.f32.partialorder %v2772_v56, 8.507059e+37  ;;  %v2789_v58 = vadd.f32 0.18741608, %v9966_v0 }
 0x357   : > { %vm2169_vm8 = vweird.f32 %v9810_v29  ;;  %v2776_v51 = vsel %vm2773_vm7, %v2775_v45, %v2771_v57  ;;  %v2806_v17 = vmul.f32 %v10025_v48, %v2805_v11  ;;  %v5943_v43 = vclamps-f32 %v3377_v26, 1.0  ;;  %3817 = vmatpush.bf16.msrb.mxu0 %v3618_v10  ;;  %v3652_v57 = vpop.f32.mrf.mxu0 }
 0x358   : > { %v3440_v61 = vadd.f32 0.4994258, %v3439_v50  ;;  %v6228_v22 = vpop.eup %6227  ;;  %v10089_v6 = vadd.f32 %v9810_v29, %v9908_v1  ;;  %v2752_v42 = vmul.f32 %v9963_v39, %v9696_v28  ;;  %v3390_v32 = vmul.f32 %v3389_v16, %v9936_v15 }
 0x359   : > { %v3427_v21 = vadd.f32 0.05243302, %v3426_v54  ;;  %vm2168_vm9 = vweird.f32 %v9753_v53  ;;  %v833_v0 = vmul.f32 0.5, %v9808_v37  ;;  %v3521_v56 = vadd.f32 1.0, %v5943_v43  ;;  %v11917_v43 = vld [vmem:[#allocation23_spill] sm:$0xff] }
 0x35a   : > { %v3404_v7 = vmul.f32 %v6228_v22, %v10053_v2  ;;  %v3602_v31 = vpack.c.bf16 %v9785_v20, %v9557_v47  ;;  %v3569_v4 = vmul.f32 %v3505_v24, %v9756_v3  ;;  %v2777_v1 = vmul.f32 %v2776_v51, %v2752_v42  ;;  %vm10145_vm3 = vmor %vm2168_vm9, %vm2169_vm8  ;;  %v11916_v24 = vld [vmem:[#allocation27_spill] sm:$0xff] }
 0x35b   : > { %v2790_v30 = vmul.f32 %v2789_v58, %v9759_v63  ;;  %v3441_v28 = vmul.f32 %v3440_v61, %v10011_v27  ;;  %v2807_v15 = vadd.f32 %v10025_v48, %v2806_v17  ;;  %vm2809_vm11 = vweird.f32 %v10025_v48 }
 0x35c   : > { %v3585_v39 = vmul.f32 %v3521_v56, %v833_v0  ;;  %v3405_v52 = vsub.f32 1.0, %v3404_v7  ;;  %3818 = vmatpush.bf16.msrb.mxu0 %v3602_v31  ;;  %v3391_v37 = vadd.f32 1.1283791, %v3390_v32  ;;  %v3414_v19 = vand.u32 2147483648, %v10053_v2 }
 0x35d   : > { %v3428_v14 = vmul.f32 %v3427_v21, %v10011_v27  ;;  %v10106_v47 = vadd.f32 1.0, %v3441_v28  ;;  %v11908_v3 = vand.u32 2147483647, %v9753_v53  ;;  %vm3409_vm13 = vweird.f32 %v6228_v22 }
 0x35e   : > { %v3406_v20 = vmul.f32 %v6228_v22, %v3405_v52  ;;  %v3412_v59 = vand.u32 2147483647, %v10053_v2  ;;  %v3619_v23 = vpack.c.bf16 %v3585_v39, %v3569_v4  ;;  %v5928_v18 = vclamps-f32 %v2777_v1, 1.0  ;;  %v11918_v39 = vld [vmem:[#allocation11_spill] sm:$0xff]  ;;  %v11919_v52 = vld [vmem:[#allocation30_spill] sm:$0xff] }
 0x35f   : > { %vm10110_vm12 = vcmp.eq.f32.partialorder %v11908_v3, 8.507059e+37  ;;  %vm2808_vm14 = vweird.f32 %v9979_v49  ;;  %v2814_v13 = vand.u32 2147483648, %v9979_v49  ;;  %6229 = vrcp.f32 %v10106_v47  ;;  %5962 = vmatmul.msk.bf16.vlgmr.msrb.gmra.mxu0 %vm3639_vm10, %v9656_v55  ;;  %v11921_v3 = vld [vmem:[#allocation20_spill] sm:$0xff] }
 0x360   : > { %v2791_v35 = vadd.f32 1.1283791, %v2790_v30  ;;  %vm10122_vm15 = vmor %vm2808_vm14, %vm2809_vm11  ;;  %v2812_v8 = vand.u32 2147483647, %v9979_v49  ;;  %v3407_v11 = vadd.f32 %v6228_v22, %v3406_v20  ;;  %vm3408_vm0 = vweird.f32 %v10053_v2  ;;  %3831 = vmatpush.bf16.msrb.mxu1 %v3619_v23 }
 0x361   : > { %v2811_v33 = vsel %vm10122_vm15, %v10025_v48, %v2807_v15  ;;  %vm3410_vm1 = vmor %vm3408_vm0, %vm3409_vm13  ;;  %v3415_v34 = vor.u32 1.1754944e-38, %v3414_v19  ;;  %v3429_v60 = vadd.f32 0.18741608, %v3428_v14  ;;  %v3603_v46 = vpack.c.bf16 %v10080_v5, %v9585_v62  ;;  %v11920_v19 = vld [vmem:[#allocation32_spill] sm:$0xff] }
 0x362   : > { %v3392_v49 = vmul.f32 %v3391_v37, %v9920_v36  ;;  %v3411_v38 = vsel %vm3410_vm1, %v6228_v22, %v3407_v11  ;;  %vm3413_vm2 = vcmp.eq.f32.partialorder %v3412_v59, 8.507059e+37  ;;  %v10138_v2 = vadd.f32 %v3652_v57, %v10134_v9 }
 0x363   : > { %v5912_v16 = vclamps-f32 %v9895_v41, 1.0  ;;  %v3506_v62 = vadd.f32 1.0, %v5928_v18  ;;  %v2815_v54 = vor.u32 1.1754944e-38, %v2814_v13  ;;  %v3416_v45 = vsel %vm3413_vm2, %v3415_v34, %v3411_v38  ;;  %v11922_v13 = vld [vmem:[#allocation33_spill] sm:$0xff] }
 0x364   : > { %v2171_v36 = vsel %vm10145_vm3, %v9810_v29, %v10089_v6  ;;  %vm2813_vm4 = vcmp.eq.f32.partialorder %v2812_v8, 8.507059e+37  ;;  %v3417_v26 = vmul.f32 %v3416_v45, %v3392_v49  ;;  %3832 = vmatpush.bf16.msrb.mxu1 %v3603_v46  ;;  %v10154_v41 = vmul.f32 0.70710677, %v10138_v2 }
 0x365   : > { %v6230_v50 = vpop.eup %6229  ;;  %v11915_v10 = vand.u32 2147483648, %v9753_v53  ;;  %v818_v58 = vmul.f32 0.5, %v11916_v24  ;;  %v2816_v51 = vsel %vm2813_vm4, %v2815_v54, %v2811_v33  ;;  %v3430_v17 = vmul.f32 %v3429_v60, %v10011_v27 }
 0x366   : > { %v2792_v61 = vmul.f32 %v2791_v35, %v11917_v43  ;;  %v5944_v22 = vclamps-f32 %v3417_v26, 1.0  ;;  %v3444_v29 = vmul.f32 %v6230_v50, %v10106_v47  ;;  %v3931_v6 = vmul.f32 %v10154_v41, %v10154_v41  ;;  %v11923_v35 = vld [vmem:[#allocation31_spill] sm:$0xff] }
 0x367   : > { %v2175_v5 = vor.u32 1.1754944e-38, %v11915_v10  ;;  %v3490_v42 = vadd.f32 1.0, %v5912_v16  ;;  %v3570_v21 = vmul.f32 %v3506_v62, %v818_v58  ;;  %v834_v53 = vmul.f32 0.5, %v9900_v40  ;;  %5963 = vmatmul.msk.bf16.vlgmr.msrb.gmra.mxu1 %vm3639_vm10, %v9656_v55 }
 0x368   : > { %v2817_v0 = vmul.f32 %v2816_v51, %v2792_v61  ;;  %v3522_v27 = vadd.f32 1.0, %v5944_v22  ;;  %v3445_v56 = vsub.f32 1.0, %v3444_v29  ;;  %v10169_v7 = vmin.f32 %v3931_v6, 16.0  ;;  %v11925_v51 = vld [vmem:[#allocation14_spill] sm:$0xff]  ;;  %v3666_v61 = vpop.f32.mrf.mxu1 }
 0x369   : > { %v2176_v32 = vsel %vm10110_vm12, %v2175_v5, %v2171_v36  ;;  %v3431_v31 = vadd.f32 1.1283791, %v3430_v17  ;;  %vm3449_vm5 = vweird.f32 %v6230_v50  ;;  %v3452_v4 = vand.u32 2147483647, %v10106_v47  ;;  %v11924_v36 = vld [vmem:[#allocation19_spill] sm:$0xff] }
 0x36a   : > { %v3454_v1 = vand.u32 2147483648, %v10106_v47  ;;  %v3586_v30 = vmul.f32 %v3522_v27, %v834_v53  ;;  %v3446_v28 = vmul.f32 %v6230_v50, %v3445_v56  ;;  %v3933_v15 = vmul.f32 2.1237322e-06, %v10169_v7 }
 0x36b   : > { %v3944_v40 = vmul.f32 3.8918573e-05, %v10169_v7  ;;  %v3538_v37 = vmul.f32 %v11919_v52, %v11918_v39  ;;  %v3554_v14 = vmul.f32 %v3490_v42, %v11920_v19  ;;  %v2177_v63 = vmul.f32 %v2176_v32, %v11921_v3  ;;  %v11926_v32 = vld [vmem:[#allocation13_spill] sm:$0xff]  ;;  %v6296_v52 = vld [vmem:[%s11636_s3] sm:$0xff] }
 0x36c   : > { %vm3448_vm6 = vweird.f32 %v10106_v47  ;;  %v3447_v20 = vadd.f32 %v6230_v50, %v3446_v28  ;;  %v3620_v59 = vpack.c.bf16 %v3586_v30, %v3570_v21  ;;  %v3934_v23 = vadd.f32 0.00028619796, %v3933_v15 }
 0x36d   : > { %v3945_v18 = vadd.f32 0.001143296, %v3944_v40  ;;  %v1537_v12 = vmul.f32 %v11923_v35, %v11922_v13  ;;  %v5929_v8 = vclamps-f32 %v2817_v0, 1.0  ;;  %v3432_v11 = vmul.f32 %v3431_v31, %v9983_v25  ;;  %vm3450_vm7 = vmor %vm3448_vm6, %vm3449_vm5 }
 0x36e   : > { %v3455_v33 = vor.u32 1.1754944e-38, %v3454_v1  ;;  %v3451_v34 = vsel %vm3450_vm7, %v6230_v50, %v3447_v20  ;;  %vm3453_vm8 = vcmp.eq.f32.partialorder %v3452_v4, 8.507059e+37  ;;  %3845 = vmatpush.bf16.msrb.mxu2 %v3620_v59  ;;  %v3935_v60 = vmul.f32 %v3934_v23, %v10169_v7  ;;  %v3654_v59 = vpop.f32.mrf.mxu0 }
 0x36f   : > { %v3946_v47 = vmul.f32 %v3945_v18, %v10169_v7  ;;  %v5913_v57 = vclamps-f32 %v2177_v63, 1.0  ;;  %v3604_v38 = vpack.c.bf16 %v3554_v14, %v3538_v37  ;;  %v5897_v48 = vclamps-f32 %v1537_v12, 1.0 }
 0x370   : > { %v3456_v46 = vsel %vm3453_vm8, %v3455_v33, %v3451_v34  ;;  %v3507_v62 = vadd.f32 1.0, %v5929_v8  ;;  %v3936_v25 = vadd.f32 0.0036580483, %v3935_v60  ;;  %v819_v26 = vmul.f32 0.5, %v11924_v36  ;;  %v3668_v23 = vpop.f32.mrf.mxu1 }
 0x371   : > { %v3457_v49 = vmul.f32 %v3456_v46, %v3432_v11  ;;  %v3947_v16 = vadd.f32 0.014752088, %v3946_v47  ;;  %v3491_v50 = vadd.f32 1.0, %v5913_v57  ;;  %v835_v10 = vmul.f32 0.5, %v9961_v44 }
 0x372   : > { %3846 = vmatpush.bf16.msrb.mxu2 %v3604_v38  ;;  %v3475_v58 = vadd.f32 1.0, %v5897_v48  ;;  %v803_v17 = vmul.f32 0.5, %v11925_v51  ;;  %v3571_v43 = vmul.f32 %v3507_v62, %v819_v26  ;;  %v3937_v29 = vmul.f32 %v3936_v25, %v10169_v7 }
 0x373   : > { %v5945_v54 = vclamps-f32 %v3457_v49, 1.0  ;;  %v3948_v45 = vmul.f32 %v3947_v16, %v10169_v7  ;;  %v10195_v42 = vadd.f32 %v3666_v61, %v10134_v9  ;;  %v787_v44 = vmul.f32 0.5, %v11926_v32  ;;  %v10215_v12 = vpop.permute.xlu2 %3631 }
 0x374   : > { %v3555_v21 = vmul.f32 %v3491_v50, %v803_v17  ;;  %v10219_v11 = vadd.f32 %v3654_v59, %v10215_v12  ;;  %v10222_v33 = vadd.f32 %v3668_v23, %v10215_v12 }
 0x375   : > { %v3523_v5 = vadd.f32 1.0, %v5945_v54  ;;  %v3949_v24 = vadd.f32 0.112945676, %v3948_v45  ;;  %5964 = vmatmul.msk.bf16.vlgmr.msrb.gmra.mxu2 %vm3639_vm10, %v9656_v55  ;;  %v10199_v27 = vmul.f32 0.70710677, %v10195_v42  ;;  %v3539_v56 = vmul.f32 %v3475_v58, %v787_v44 }
 0x376   : > { %v3938_v55 = vadd.f32 0.05243302, %v3937_v29  ;;  %v10227_v49 = vmul.f32 0.70710677, %v10219_v11  ;;  %v10230_v38 = vmul.f32 0.70710677, %v10222_v33 }
 0x377   : > { %v3587_v22 = vmul.f32 %v3523_v5, %v835_v10  ;;  %v3950_v6 = vmul.f32 %v3949_v24, %v10169_v7  ;;  %v3971_v4 = vmul.f32 %v10199_v27, %v10199_v27  ;;  %v3605_v1 = vpack.c.bf16 %v3555_v21, %v3539_v56 }
 0x378   : > { %v3939_v15 = vmul.f32 %v3938_v55, %v10169_v7  ;;  %v4571_v45 = vmul.f32 %v10227_v49, %v10227_v49  ;;  %v4611_v36 = vmul.f32 %v10230_v38, %v10230_v38 }
 0x379   : > { %v3621_v53 = vpack.c.bf16 %v3587_v22, %v3571_v43  ;;  %v3951_v0 = vadd.f32 0.4994258, %v3950_v6  ;;  %v10204_v28 = vmin.f32 %v3971_v4, 16.0 }
 0x37a   : > { %v3940_v14 = vadd.f32 0.18741608, %v3939_v15  ;;  %v10242_v24 = vmin.f32 %v4571_v45, 16.0  ;;  %v10244_v58 = vmin.f32 %v4611_v36, 16.0 }
 0x37b   : > { %3859 = vmatpush.bf16.msrb.mxu3 %v3621_v53  ;;  %v3952_v31 = vmul.f32 %v3951_v0, %v10169_v7  ;;  %v3973_v40 = vmul.f32 2.1237322e-06, %v10204_v28  ;;  %v3984_v39 = vmul.f32 3.8918573e-05, %v10204_v28 }
 0x37c   : > { %v3941_v8 = vmul.f32 %v3940_v14, %v10169_v7  ;;  %v3680_v7 = vpop.f32.mrf.mxu2  ;;  %v4573_v29 = vmul.f32 2.1237322e-06, %v10242_v24  ;;  %v4584_v6 = vmul.f32 3.8918573e-05, %v10242_v24  ;;  %v4613_v32 = vmul.f32 2.1237322e-06, %v10244_v58 }
 0x37d   : > { %v3953_v30 = vadd.f32 1.0, %v3952_v31  ;;  %v3974_v37 = vadd.f32 0.00028619796, %v3973_v40  ;;  %v3985_v19 = vadd.f32 0.001143296, %v3984_v39  ;;  %v10233_v54 = vadd.f32 %v3680_v7, %v10134_v9  ;;  %v3694_v40 = vpop.f32.mrf.mxu3 }
 0x37e   : > { %v3942_v25 = vadd.f32 1.1283791, %v3941_v8  ;;  %v4624_v53 = vmul.f32 3.8918573e-05, %v10244_v58  ;;  %v4574_v0 = vadd.f32 0.00028619796, %v4573_v29 }
 0x37f   : > { %3860 = vmatpush.bf16.msrb.mxu3 %v3605_v1  ;;  %6231 = vrcp.f32 %v3953_v30  ;;  %v3975_v3 = vmul.f32 %v3974_v37, %v10204_v28  ;;  %v3986_v63 = vmul.f32 %v3985_v19, %v10204_v28  ;;  %v3963_v60 = vand.u32 2147483647, %v3953_v30 }
 0x380   : > { %v3965_v57 = vand.u32 2147483648, %v3953_v30  ;;  %vm3959_vm9 = vweird.f32 %v3953_v30  ;;  %v10247_v51 = vmul.f32 0.70710677, %v10233_v54  ;;  %v3943_v44 = vmul.f32 %v3942_v25, %v10154_v41 }
 0x381   : > { %v3976_v13 = vadd.f32 0.0036580483, %v3975_v3  ;;  %v3987_v35 = vadd.f32 0.014752088, %v3986_v63  ;;  %vm3964_vm12 = vcmp.eq.f32.partialorder %v3963_v60, 8.507059e+37  ;;  %v4575_v41 = vmul.f32 %v4574_v0, %v10242_v24 }
 0x382   : > { %5965 = vmatmul.msk.bf16.vlgmr.msrb.gmra.mxu3 %vm3639_vm10, %v6296_v52  ;;  %v3966_v5 = vor.u32 1.1754944e-38, %v3965_v57  ;;  %v4585_v56 = vadd.f32 0.001143296, %v4584_v6  ;;  %v4614_v55 = vadd.f32 0.00028619796, %v4613_v32  ;;  %v4011_v31 = vmul.f32 %v10247_v51, %v10247_v51 }
 0x383   : > { %v3977_v47 = vmul.f32 %v3976_v13, %v10204_v28  ;;  %v3988_v46 = vmul.f32 %v3987_v35, %v10204_v28  ;;  %v4625_v15 = vadd.f32 0.001143296, %v4624_v53  ;;  %v10269_v19 = vmul.f32 0.5, %v10138_v2 }
 0x384   : > { %v4586_v39 = vmul.f32 %v4585_v56, %v10242_v24  ;;  %v4615_v52 = vmul.f32 %v4614_v55, %v10244_v58  ;;  %v10265_v37 = vmin.f32 %v4011_v31, 16.0  ;;  %v4576_v14 = vadd.f32 0.0036580483, %v4575_v41 }
 0x385   : > { %v6232_v20 = vpop.eup %6231  ;;  %v3978_v48 = vadd.f32 0.05243302, %v3977_v47  ;;  %v3989_v62 = vadd.f32 0.112945676, %v3988_v46  ;;  %v10273_v3 = vadd.f32 %v3694_v40, %v10134_v9 }
 0x386   : > { %v3955_v18 = vmul.f32 %v6232_v20, %v3953_v30  ;;  %vm3960_vm10 = vweird.f32 %v6232_v20  ;;  %v4587_v63 = vadd.f32 0.014752088, %v4586_v39  ;;  %v4013_v59 = vmul.f32 2.1237322e-06, %v10265_v37 }
 0x387   : > { %v3979_v50 = vmul.f32 %v3978_v48, %v10204_v28  ;;  %v3990_v10 = vmul.f32 %v3989_v62, %v10204_v28  ;;  %vm3961_vm11 = vmor %vm3959_vm9, %vm3960_vm10  ;;  %v4577_v13 = vmul.f32 %v4576_v14, %v10242_v24  ;;  %v4024_v60 = vmul.f32 3.8918573e-05, %v10265_v37 }
 0x388   : > { %v3956_v34 = vsub.f32 1.0, %v3955_v18  ;;  %v4588_v8 = vmul.f32 %v4587_v63, %v10242_v24  ;;  %v10285_v7 = vmul.f32 0.70710677, %v10273_v3 }
 0x389   : > { %v3980_v43 = vadd.f32 0.18741608, %v3979_v50  ;;  %v3991_v61 = vadd.f32 0.4994258, %v3990_v10  ;;  %v4578_v46 = vadd.f32 0.05243302, %v4577_v13 }
 0x38a   : > { %v3957_v16 = vmul.f32 %v6232_v20, %v3956_v34  ;;  %v4014_v34 = vadd.f32 0.00028619796, %v4013_v59  ;;  %v4589_v48 = vadd.f32 0.112945676, %v4588_v8  ;;  %v4025_v45 = vadd.f32 0.001143296, %v4024_v60  ;;  %v3682_v8 = vpop.f32.mrf.mxu2 }
 0x38b   : > { %v3992_v21 = vmul.f32 %v3991_v61, %v10204_v28  ;;  %v3981_v1 = vmul.f32 %v3980_v43, %v10204_v28  ;;  %v4626_v28 = vmul.f32 %v4625_v15, %v10244_v58  ;;  %v4579_v50 = vmul.f32 %v4578_v46, %v10242_v24 }
 0x38c   : > { %v3958_v26 = vadd.f32 %v6232_v20, %v3957_v16  ;;  %v4015_v25 = vmul.f32 %v4014_v34, %v10265_v37  ;;  %v4026_v61 = vmul.f32 %v4025_v45, %v10265_v37  ;;  %v4051_v32 = vmul.f32 %v10285_v7, %v10285_v7 }
 0x38d   : > { %v10260_v30 = vadd.f32 1.0, %v3992_v21  ;;  %v3982_v18 = vadd.f32 1.1283791, %v3981_v1  ;;  %v4627_v35 = vadd.f32 0.014752088, %v4626_v28  ;;  %v3868_v60 = vmul.f32 0.5, %v10195_v42 }
 0x38e   : > { %v3962_v17 = vsel %vm3961_vm11, %v6232_v20, %v3958_v26  ;;  %v4616_v20 = vadd.f32 0.0036580483, %v4615_v52  ;;  %v4016_v43 = vadd.f32 0.0036580483, %v4015_v25  ;;  %v4580_v29 = vadd.f32 0.18741608, %v4579_v50 }
 0x38f   : > { %v3967_v22 = vsel %vm3964_vm12, %v3966_v5, %v3962_v17  ;;  %6233 = vrcp.f32 %v10260_v30  ;;  %vm3999_vm13 = vweird.f32 %v10260_v30  ;;  %v4003_v47 = vand.u32 2147483647, %v10260_v30 }
 0x390   : > { %v10257_v4 = vmul.f32 %v3967_v22, %v3943_v44  ;;  %v4617_v2 = vmul.f32 %v4616_v20, %v10244_v58  ;;  %v4628_v57 = vmul.f32 %v4627_v35, %v10244_v58  ;;  %v4005_v26 = vand.u32 2147483648, %v10260_v30 }
 0x391   : > { %v4590_v5 = vmul.f32 %v4589_v48, %v10242_v24  ;;  %v4017_v53 = vmul.f32 %v4016_v43, %v10265_v37  ;;  %v4027_v0 = vadd.f32 0.014752088, %v4026_v61  ;;  %v10298_v31 = vmin.f32 %v4051_v32, 16.0  ;;  %v3696_v43 = vpop.f32.mrf.mxu3 }
 0x392   : > { %v5966_v23 = vclamps-f32 %v10257_v4, 1.0  ;;  %v4618_v62 = vadd.f32 0.05243302, %v4617_v2  ;;  %v4629_v10 = vadd.f32 0.112945676, %v4628_v57  ;;  %v4581_v4 = vmul.f32 %v4580_v29, %v10242_v24 }
 0x393   : > { %v4591_v44 = vadd.f32 0.4994258, %v4590_v5  ;;  %v4018_v15 = vadd.f32 0.05243302, %v4017_v53  ;;  %v4028_v40 = vmul.f32 %v4027_v0, %v10265_v37  ;;  %v4053_v14 = vmul.f32 2.1237322e-06, %v10298_v31 }
 0x394   : > { %v4619_v17 = vmul.f32 %v4618_v62, %v10244_v58  ;;  %v4630_v6 = vmul.f32 %v4629_v10, %v10244_v58  ;;  %v3983_v28 = vmul.f32 %v3982_v18, %v10199_v27  ;;  %vm4004_vm0 = vcmp.eq.f32.partialorder %v4003_v47, 8.507059e+37 }
 0x395   : > { %v6234_v16 = vpop.eup %6233  ;;  %v4592_v1 = vmul.f32 %v4591_v44, %v10242_v24  ;;  %v4006_v63 = vor.u32 1.1754944e-38, %v4005_v26  ;;  %v4019_v13 = vmul.f32 %v4018_v15, %v10265_v37  ;;  %v4029_v35 = vadd.f32 0.112945676, %v4028_v40 }
 0x396   : > { %v3995_v36 = vmul.f32 %v6234_v16, %v10260_v30  ;;  %v4620_v21 = vadd.f32 0.18741608, %v4619_v17  ;;  %vm4000_vm14 = vweird.f32 %v6234_v16  ;;  %v4631_v55 = vadd.f32 0.4994258, %v4630_v6 }
 0x397   : > { %vm4001_vm15 = vmor %vm3999_vm13, %vm4000_vm14  ;;  %v10309_v20 = vadd.f32 1.0, %v4592_v1  ;;  %v5211_v2 = vadd.f32 1.0, %v5966_v23  ;;  %v4054_v34 = vadd.f32 0.00028619796, %v4053_v14  ;;  %v4582_v18 = vadd.f32 1.1283791, %v4581_v4 }
 0x398   : > { %v3996_v22 = vsub.f32 1.0, %v3995_v36  ;;  %v4621_v39 = vmul.f32 %v4620_v21, %v10244_v58  ;;  %v4632_v52 = vmul.f32 %v4631_v55, %v10244_v58  ;;  %v10318_v47 = vmul.f32 0.5, %v10219_v11 }
 0x399   : > { %6235 = vrcp.f32 %v10309_v20  ;;  %v10321_v46 = vmul.f32 0.5, %v10222_v33  ;;  %v10324_v57 = vadd.f32 %v3682_v8, %v10215_v12  ;;  %v4603_v23 = vand.u32 2147483647, %v10309_v20 }
 0x39a   : > { %v3997_v56 = vmul.f32 %v6234_v16, %v3996_v22  ;;  %v10311_v59 = vadd.f32 1.0, %v4632_v52  ;;  %v4622_v30 = vadd.f32 1.1283791, %v4621_v39  ;;  %v4020_v48 = vadd.f32 0.18741608, %v4019_v13 }
 0x39b   : > { %v4030_v62 = vmul.f32 %v4029_v35, %v10265_v37  ;;  %v10330_v25 = vmul.f32 %v5211_v2, %v10269_v19  ;;  %v4055_v11 = vmul.f32 %v4054_v34, %v10298_v31  ;;  %v4064_v45 = vmul.f32 3.8918573e-05, %v10298_v31 }
 0x39c   : > { %v3998_v41 = vadd.f32 %v6234_v16, %v3997_v56  ;;  %6237 = vrcp.f32 %v10311_v59  ;;  %v4583_v33 = vmul.f32 %v4582_v18, %v10227_v49  ;;  %vm4599_vm1 = vweird.f32 %v10309_v20 }
 0x39d   : > { %v4623_v36 = vmul.f32 %v4622_v30, %v10230_v38  ;;  %v4031_v26 = vadd.f32 0.4994258, %v4030_v62  ;;  %vm4639_vm2 = vweird.f32 %v10311_v59  ;;  %v4021_v10 = vmul.f32 %v4020_v48, %v10265_v37 }
 0x39e   : > { %v4002_v24 = vsel %vm4001_vm15, %v6234_v16, %v3998_v41  ;;  %v4605_v16 = vand.u32 2147483648, %v10309_v20  ;;  %v4056_v5 = vadd.f32 0.0036580483, %v4055_v11  ;;  %v4065_v19 = vadd.f32 0.001143296, %v4064_v45 }
 0x39f   : > { %v4007_v58 = vsel %vm4004_vm0, %v4006_v63, %v4002_v24  ;;  %v6236_v50 = vpop.eup %6235  ;;  %v10340_v17 = vmul.f32 0.70710677, %v10324_v57  ;;  %vm10343_vm3 = vcmp.eq.f32.partialorder %v4603_v23, 8.507059e+37  ;;  %v4643_v29 = vand.u32 2147483647, %v10311_v59 }
 0x3a0   : > { %v4008_v27 = vmul.f32 %v4007_v58, %v3983_v28  ;;  %v4595_v22 = vmul.f32 %v6236_v50, %v10309_v20  ;;  %v4606_v38 = vor.u32 1.1754944e-38, %v4605_v16  ;;  %v4645_v6 = vand.u32 2147483648, %v10311_v59 }
 0x3a1   : > { %v4032_v21 = vmul.f32 %v4031_v26, %v10265_v37  ;;  %v4057_v53 = vmul.f32 %v4056_v5, %v10298_v31  ;;  %v4066_v56 = vmul.f32 %v4065_v19, %v10298_v31  ;;  %v4651_v55 = vmul.f32 %v10340_v17, %v10340_v17 }
 0x3a2   : > { %v5967_v42 = vclamps-f32 %v4008_v27, 1.0  ;;  %v6238_v61 = vpop.eup %6237  ;;  %v4596_v0 = vsub.f32 1.0, %v4595_v22  ;;  %v10356_v4 = vadd.f32 %v3696_v43, %v10215_v12  ;;  %vm4600_vm4 = vweird.f32 %v6236_v50 }
 0x3a3   : > { %v4635_v44 = vmul.f32 %v6238_v61, %v10311_v59  ;;  %v4022_v15 = vadd.f32 1.1283791, %v4021_v10  ;;  %v10358_v40 = vadd.f32 1.0, %v4032_v21  ;;  %v4058_v39 = vadd.f32 0.05243302, %v4057_v53  ;;  %vm4601_vm7 = vmor %vm4599_vm1, %vm4600_vm4 }
 0x3a4   : > { %v5212_v32 = vadd.f32 1.0, %v5967_v42  ;;  %v4597_v41 = vmul.f32 %v6236_v50, %v4596_v0  ;;  %v4067_v52 = vadd.f32 0.014752088, %v4066_v56  ;;  %v10360_v37 = vmin.f32 %v4651_v55, 16.0 }
 0x3a5   : > { %v4636_v1 = vsub.f32 1.0, %v4635_v44  ;;  %vm4640_vm5 = vweird.f32 %v6238_v61  ;;  %vm10362_vm6 = vcmp.eq.f32.partialorder %v4643_v29, 8.507059e+37  ;;  %6239 = vrcp.f32 %v10358_v40 }
 0x3a6   : > { %v10367_v63 = vmul.f32 %v5212_v32, %v3868_v60  ;;  %v4598_v24 = vadd.f32 %v6236_v50, %v4597_v41  ;;  %v4646_v13 = vor.u32 1.1754944e-38, %v4645_v6  ;;  %v4068_v35 = vmul.f32 %v4067_v52, %v10298_v31  ;;  %vm4641_vm8 = vmor %vm4639_vm2, %vm4640_vm5 }
 0x3a7   : > { %v4637_v14 = vmul.f32 %v6238_v61, %v4636_v1  ;;  %v4653_v2 = vmul.f32 2.1237322e-06, %v10360_v37  ;;  %v4664_v58 = vmul.f32 3.8918573e-05, %v10360_v37  ;;  %v10376_v34 = vmul.f32 0.70710677, %v10356_v4 }
 0x3a8   : > { %v4602_v27 = vsel %vm4601_vm7, %v6236_v50, %v4598_v24  ;;  %v4023_v18 = vmul.f32 %v4022_v15, %v10247_v51  ;;  %v4059_v30 = vmul.f32 %v4058_v39, %v10298_v31  ;;  %v4069_v60 = vadd.f32 0.112945676, %v4068_v35  ;;  %v3708_v15 = vpop.f32.mrf.mxu0 }
 0x3a9   : > { %v4638_v8 = vadd.f32 %v6238_v61, %v4637_v14  ;;  %v4607_v20 = vsel %vm10343_vm3, %v4606_v38, %v4602_v27  ;;  %v4654_v16 = vadd.f32 0.00028619796, %v4653_v2  ;;  %v4665_v48 = vadd.f32 0.001143296, %v4664_v58 }
 0x3aa   : > { %v4608_v62 = vmul.f32 %v4607_v20, %v4583_v33  ;;  %vm4039_vm10 = vweird.f32 %v10358_v40  ;;  %v4043_v59 = vand.u32 2147483647, %v10358_v40  ;;  %v4070_v11 = vmul.f32 %v4069_v60, %v10298_v31 }
 0x3ab   : > { %v4642_v23 = vsel %vm4641_vm8, %v6238_v61, %v4638_v8  ;;  %v6240_v51 = vpop.eup %6239  ;;  %v4655_v26 = vmul.f32 %v4654_v16, %v10360_v37  ;;  %v4666_v50 = vmul.f32 %v4665_v48, %v10360_v37  ;;  %v4691_v10 = vmul.f32 %v10376_v34, %v10376_v34 }
 0x3ac   : > { %v4647_v42 = vsel %vm10362_vm6, %v4646_v13, %v4642_v23  ;;  %v5982_v5 = vclamps-f32 %v4608_v62, 1.0  ;;  %v4035_v33 = vmul.f32 %v6240_v51, %v10358_v40  ;;  %v4045_v19 = vand.u32 2147483648, %v10358_v40 }
 0x3ad   : > { %v4648_v45 = vmul.f32 %v4647_v42, %v4623_v36  ;;  %v4060_v43 = vadd.f32 0.18741608, %v4059_v30  ;;  %v4071_v22 = vadd.f32 0.4994258, %v4070_v11  ;;  %v4656_v49 = vadd.f32 0.0036580483, %v4655_v26 }
 0x3ae   : > { %v10395_v38 = vmin.f32 %v4691_v10, 16.0  ;;  %v5227_v29 = vadd.f32 1.0, %v5982_v5  ;;  %v4036_v36 = vsub.f32 1.0, %v4035_v33  ;;  %vm4040_vm9 = vweird.f32 %v6240_v51 }
 0x3af   : > { %v5983_v61 = vclamps-f32 %v4648_v45, 1.0  ;;  %v4667_v6 = vadd.f32 0.014752088, %v4666_v50  ;;  %v4072_v44 = vmul.f32 %v4071_v22, %v10298_v31  ;;  %v4657_v21 = vmul.f32 %v4656_v49, %v10360_v37  ;;  %vm4041_vm11 = vmor %vm4039_vm10, %vm4040_vm9 }
 0x3b0   : > { %v4693_v53 = vmul.f32 2.1237322e-06, %v10395_v38  ;;  %v5259_v0 = vmul.f32 %v5227_v29, %v10318_v47  ;;  %v4037_v56 = vmul.f32 %v6240_v51, %v4036_v36  ;;  %v4704_v1 = vmul.f32 3.8918573e-05, %v10395_v38 }
 0x3b1   : > { %v5228_v32 = vadd.f32 1.0, %v5983_v61  ;;  %v4668_v55 = vmul.f32 %v4667_v6, %v10360_v37  ;;  %v10404_v39 = vadd.f32 1.0, %v4072_v44  ;;  %v4658_v52 = vadd.f32 0.05243302, %v4657_v21 }
 0x3b2   : > { %v4694_v14 = vadd.f32 0.00028619796, %v4693_v53  ;;  %v5279_v28 = vpack.c.bf16 %v5259_v0, %v10330_v25  ;;  %v4038_v24 = vadd.f32 %v6240_v51, %v4037_v56  ;;  %v4705_v35 = vadd.f32 0.001143296, %v4704_v1 }
 0x3b3   : > { %v5260_v41 = vmul.f32 %v5228_v32, %v10321_v46  ;;  %v4669_v13 = vadd.f32 0.112945676, %v4668_v55  ;;  %vm4044_vm12 = vcmp.eq.f32.partialorder %v4043_v59, 8.507059e+37  ;;  %v4046_v47 = vor.u32 1.1754944e-38, %v4045_v19  ;;  %v3710_v19 = vpop.f32.mrf.mxu0 }
 0x3b4   : > { %6241 = vrcp.f32 %v10404_v39  ;;  %v4042_v46 = vsel %vm4041_vm11, %v6240_v51, %v4038_v24  ;;  %v4061_v2 = vmul.f32 %v4060_v43, %v10298_v31  ;;  %v4659_v58 = vmul.f32 %v4658_v52, %v10360_v37  ;;  %5319 = vmatpush.bf16.msra.mxu0 %v5279_v28  ;;  %v3722_v31 = vpop.f32.mrf.mxu1 }
 0x3b5   : > { %v5280_v8 = vpack.c.bf16 %v5260_v41, %v10367_v63  ;;  %v4670_v25 = vmul.f32 %v4669_v13, %v10360_v37  ;;  %v4047_v27 = vsel %vm4044_vm12, %v4046_v47, %v4042_v46  ;;  %v4695_v30 = vmul.f32 %v4694_v14, %v10395_v38 }
 0x3b6   : > { %v4706_v63 = vmul.f32 %v4705_v35, %v10395_v38  ;;  %v4048_v40 = vmul.f32 %v4047_v27, %v4023_v18  ;;  %v4660_v60 = vadd.f32 0.18741608, %v4659_v58  ;;  %v10418_v48 = vadd.f32 %v3708_v15, %v10134_v9 }
 0x3b7   : > { %5338 = vmatpush.bf16.msra.mxu1 %v5280_v8  ;;  %v4671_v20 = vadd.f32 0.4994258, %v4670_v25  ;;  %v4696_v23 = vadd.f32 0.0036580483, %v4695_v30  ;;  %v3869_v62 = vmul.f32 0.5, %v10233_v54  ;;  %v4085_v45 = vand.u32 2147483648, %v10404_v39 }
 0x3b8   : > { %v4707_v16 = vadd.f32 0.014752088, %v4706_v63  ;;  %v4062_v42 = vadd.f32 1.1283791, %v4061_v2  ;;  %v4083_v59 = vand.u32 2147483647, %v10404_v39  ;;  %v4661_v54 = vmul.f32 %v4660_v60, %v10360_v37 }
 0x3b9   : > { %v4672_v11 = vmul.f32 %v4671_v20, %v10360_v37  ;;  %v4697_v18 = vmul.f32 %v4696_v23, %v10395_v38  ;;  %v10427_v50 = vmul.f32 0.70710677, %v10418_v48  ;;  %v5968_v10 = vclamps-f32 %v4048_v40, 1.0 }
 0x3ba   : > { %v6242_v51 = vpop.eup %6241  ;;  %v4708_v26 = vmul.f32 %v4707_v16, %v10395_v38  ;;  %v10432_v33 = vadd.f32 %v3722_v31, %v10134_v9  ;;  %v4063_v29 = vmul.f32 %v4062_v42, %v10285_v7  ;;  %vm4079_vm13 = vweird.f32 %v10404_v39 }
 0x3bb   : > { %v4075_v5 = vmul.f32 %v6242_v51, %v10404_v39  ;;  %v10434_v43 = vadd.f32 1.0, %v4672_v11  ;;  %v4698_v61 = vadd.f32 0.05243302, %v4697_v18  ;;  %v4091_v49 = vmul.f32 %v10427_v50, %v10427_v50 }
 0x3bc   : > { %v4709_v22 = vadd.f32 0.112945676, %v4708_v26  ;;  %v10441_v6 = vmul.f32 0.5, %v10324_v57  ;;  %vm4080_vm14 = vweird.f32 %v6242_v51  ;;  %vm10443_vm15 = vcmp.eq.f32.partialorder %v4083_v59, 8.507059e+37 }
 0x3bd   : > { %v4076_v36 = vsub.f32 1.0, %v4075_v5  ;;  %6243 = vrcp.f32 %v10434_v43  ;;  %v10449_v32 = vadd.f32 %v3710_v19, %v10215_v12  ;;  %v4699_v21 = vmul.f32 %v4698_v61, %v10395_v38  ;;  %vm4081_vm0 = vmor %vm4079_vm13, %vm4080_vm14 }
 0x3be   : > { %v4710_v7 = vmul.f32 %v4709_v22, %v10395_v38  ;;  %v10453_v53 = vmin.f32 %v4091_v49, 16.0  ;;  %v5213_v0 = vadd.f32 1.0, %v5968_v10  ;;  %v4086_v57 = vor.u32 1.1754944e-38, %v4085_v45 }
 0x3bf   : > { %v4077_v44 = vmul.f32 %v6242_v51, %v4076_v36  ;;  %v4662_v56 = vadd.f32 1.1283791, %v4661_v54  ;;  %v10456_v55 = vmul.f32 0.70710677, %v10432_v33  ;;  %v4700_v15 = vadd.f32 0.18741608, %v4699_v21 }
 0x3c0   : > { %v4711_v41 = vadd.f32 0.4994258, %v4710_v7  ;;  %v4093_v52 = vmul.f32 2.1237322e-06, %v10453_v53  ;;  %v4683_v14 = vand.u32 2147483647, %v10434_v43  ;;  %v10476_v30 = vmul.f32 %v5213_v0, %v3869_v62 }
 0x3c1   : > { %v4078_v1 = vadd.f32 %v6242_v51, %v4077_v44  ;;  %v4685_v28 = vand.u32 2147483648, %v10434_v43  ;;  %v4104_v24 = vmul.f32 3.8918573e-05, %v10453_v53  ;;  %v4131_v13 = vmul.f32 %v10456_v55, %v10456_v55 }
 0x3c2   : > { %v4712_v8 = vmul.f32 %v4711_v41, %v10395_v38  ;;  %v4094_v47 = vadd.f32 0.00028619796, %v4093_v52  ;;  %v10469_v46 = vmul.f32 0.70710677, %v10449_v32  ;;  %v4701_v58 = vmul.f32 %v4700_v15, %v10395_v38 }
 0x3c3   : > { %v4082_v35 = vsel %vm4081_vm0, %v6242_v51, %v4078_v1  ;;  %v6244_v2 = vpop.eup %6243  ;;  %v4105_v25 = vadd.f32 0.001143296, %v4104_v24  ;;  %v10474_v27 = vmin.f32 %v4131_v13, 16.0  ;;  %v4663_v40 = vmul.f32 %v4662_v56, %v10340_v17  ;;  %v3724_v17 = vpop.f32.mrf.mxu1 }
 0x3c4   : > { %v4087_v39 = vsel %vm10443_vm15, %v4086_v57, %v4082_v35  ;;  %v4675_v60 = vmul.f32 %v6244_v2, %v10434_v43  ;;  %v10482_v20 = vadd.f32 1.0, %v4712_v8  ;;  %v4095_v23 = vmul.f32 %v4094_v47, %v10453_v53 }
 0x3c5   : > { %v10478_v63 = vmul.f32 %v4087_v39, %v4063_v29  ;;  %v4106_v16 = vmul.f32 %v4105_v25, %v10453_v53  ;;  %v4133_v31 = vmul.f32 2.1237322e-06, %v10474_v27  ;;  %vm4679_vm1 = vweird.f32 %v10434_v43 }
 0x3c6   : > { %v4676_v38 = vsub.f32 1.0, %v4675_v60  ;;  %vm10488_vm2 = vcmp.eq.f32.partialorder %v4683_v14, 8.507059e+37  ;;  %v4144_v42 = vmul.f32 3.8918573e-05, %v10474_v27  ;;  %v4686_v59 = vor.u32 1.1754944e-38, %v4685_v28 }
 0x3c7   : > { %v4702_v11 = vadd.f32 1.1283791, %v4701_v58  ;;  %6245 = vrcp.f32 %v10482_v20  ;;  %v4731_v51 = vmul.f32 %v10469_v46, %v10469_v46  ;;  %vm4680_vm3 = vweird.f32 %v6244_v2 }
 0x3c8   : > { %v4677_v45 = vmul.f32 %v6244_v2, %v4676_v38  ;;  %v4096_v18 = vadd.f32 0.0036580483, %v4095_v23  ;;  %v4107_v26 = vadd.f32 0.014752088, %v4106_v16  ;;  %v5969_v10 = vclamps-f32 %v10478_v63, 1.0  ;;  %vm4681_vm4 = vmor %vm4679_vm1, %vm4680_vm3 }
 0x3c9   : > { %v4134_v5 = vadd.f32 0.00028619796, %v4133_v31  ;;  %v4145_v54 = vadd.f32 0.001143296, %v4144_v42  ;;  %v10498_v19 = vadd.f32 %v3724_v17, %v10215_v12  ;;  %v4723_v22 = vand.u32 2147483647, %v10482_v20 }
 0x3ca   : > { %v4678_v61 = vadd.f32 %v6244_v2, %v4677_v45  ;;  %v4097_v49 = vmul.f32 %v4096_v18, %v10453_v53  ;;  %v4108_v29 = vmul.f32 %v4107_v26, %v10453_v53  ;;  %v4703_v36 = vmul.f32 %v4702_v11, %v10376_v34 }
 0x3cb   : > { %v4135_v37 = vmul.f32 %v4134_v5, %v10474_v27  ;;  %v4146_v44 = vmul.f32 %v4145_v54, %v10474_v27  ;;  %v10508_v21 = vmin.f32 %v4731_v51, 16.0  ;;  %vm4719_vm5 = vweird.f32 %v10482_v20 }
 0x3cc   : > { %v4682_v7 = vsel %vm4681_vm4, %v6244_v2, %v4678_v61  ;;  %v4725_v0 = vand.u32 2147483648, %v10482_v20  ;;  %v4098_v57 = vadd.f32 0.05243302, %v4097_v49  ;;  %v4109_v56 = vadd.f32 0.112945676, %v4108_v29 }
 0x3cd   : > { %v6246_v1 = vpop.eup %6245  ;;  %v4687_v43 = vsel %vm10488_vm2, %v4686_v59, %v4682_v7  ;;  %v4136_v15 = vadd.f32 0.0036580483, %v4135_v37  ;;  %v4147_v41 = vadd.f32 0.014752088, %v4146_v44  ;;  %v4733_v34 = vmul.f32 2.1237322e-06, %v10508_v21 }
 0x3ce   : > { %v4688_v52 = vmul.f32 %v4687_v43, %v4663_v40  ;;  %v4715_v14 = vmul.f32 %v6246_v1, %v10482_v20  ;;  %vm10516_vm6 = vcmp.eq.f32.partialorder %v4723_v22, 8.507059e+37  ;;  %v4099_v24 = vmul.f32 %v4098_v57, %v10453_v53 }
 0x3cf   : > { %v4110_v13 = vmul.f32 %v4109_v56, %v10453_v53  ;;  %v4137_v35 = vmul.f32 %v4136_v15, %v10474_v27  ;;  %v4148_v8 = vmul.f32 %v4147_v41, %v10474_v27  ;;  %v4734_v47 = vadd.f32 0.00028619796, %v4733_v34  ;;  %v3736_v41 = vpop.f32.mrf.mxu2 }
 0x3d0   : > { %v5984_v2 = vclamps-f32 %v4688_v52, 1.0  ;;  %v4716_v39 = vsub.f32 1.0, %v4715_v14  ;;  %vm4720_vm7 = vweird.f32 %v6246_v1  ;;  %v4744_v58 = vmul.f32 3.8918573e-05, %v10508_v21 }
 0x3d1   : > { %v4111_v25 = vadd.f32 0.4994258, %v4110_v13  ;;  %v4138_v63 = vadd.f32 0.05243302, %v4137_v35  ;;  %v4149_v40 = vadd.f32 0.112945676, %v4148_v8  ;;  %v4735_v60 = vmul.f32 %v4734_v47, %v10508_v21  ;;  %vm4721_vm8 = vmor %vm4719_vm5, %vm4720_vm7 }
 0x3d2   : > { %v5229_v23 = vadd.f32 1.0, %v5984_v2  ;;  %v4717_v16 = vmul.f32 %v6246_v1, %v4716_v39  ;;  %v4100_v31 = vadd.f32 0.18741608, %v4099_v24  ;;  %v4745_v38 = vadd.f32 0.001143296, %v4744_v58 }
 0x3d3   : > { %v4726_v62 = vor.u32 1.1754944e-38, %v4725_v0  ;;  %v4112_v42 = vmul.f32 %v4111_v25, %v10453_v53  ;;  %v4150_v17 = vmul.f32 %v4149_v40, %v10474_v27  ;;  %v4736_v59 = vadd.f32 0.0036580483, %v4735_v60 }
 0x3d4   : > { %v5261_v11 = vmul.f32 %v5229_v23, %v10441_v6  ;;  %v4718_v51 = vadd.f32 %v6246_v1, %v4717_v16  ;;  %v4746_v45 = vmul.f32 %v4745_v38, %v10508_v21  ;;  %v10531_v18 = vmul.f32 0.70710677, %v10498_v19 }
 0x3d5   : > { %v10536_v26 = vadd.f32 1.0, %v4112_v42  ;;  %v4139_v5 = vmul.f32 %v4138_v63, %v10474_v27  ;;  %v4151_v54 = vadd.f32 0.4994258, %v4150_v17  ;;  %v4737_v61 = vmul.f32 %v4736_v59, %v10508_v21 }
 0x3d6   : > { %v5281_v22 = vpack.c.bf16 %v5261_v11, %v10476_v30  ;;  %v4722_v6 = vsel %vm4721_vm8, %v6246_v1, %v4718_v51  ;;  %v4101_v49 = vmul.f32 %v4100_v31, %v10453_v53  ;;  %v4747_v29 = vadd.f32 0.014752088, %v4746_v45 }
 0x3d7   : > { %v4727_v37 = vsel %vm10516_vm6, %v4726_v62, %v4722_v6  ;;  %6247 = vrcp.f32 %v10536_v26  ;;  %v5214_v20 = vadd.f32 1.0, %v5969_v10  ;;  %v4152_v7 = vmul.f32 %v4151_v54, %v10474_v27 }
 0x3d8   : > { %v4728_v44 = vmul.f32 %v4727_v37, %v4703_v36  ;;  %5357 = vmatpush.bf16.msra.mxu2 %v5281_v22  ;;  %v4140_v0 = vadd.f32 0.18741608, %v4139_v5  ;;  %v4738_v57 = vadd.f32 0.05243302, %v4737_v61  ;;  %v4748_v56 = vmul.f32 %v4747_v29, %v10508_v21  ;;  %v3750_v61 = vpop.f32.mrf.mxu3 }
 0x3d9   : > { %v4771_v30 = vmul.f32 %v10531_v18, %v10531_v18  ;;  %v3870_v53 = vmul.f32 0.5, %v10273_v3  ;;  %v4102_v43 = vadd.f32 1.1283791, %v4101_v49  ;;  %v10550_v15 = vadd.f32 1.0, %v4152_v7 }
 0x3da   : > { %v5985_v1 = vclamps-f32 %v4728_v44, 1.0  ;;  %v3886_v10 = vmul.f32 0.5, %v10356_v4  ;;  %v4739_v36 = vmul.f32 %v4738_v57, %v10508_v21  ;;  %v4749_v34 = vadd.f32 0.112945676, %v4748_v56 }
 0x3db   : > { %v10554_v52 = vmin.f32 %v4771_v30, 16.0  ;;  %v5246_v14 = vmul.f32 %v5214_v20, %v3870_v53  ;;  %v10557_v24 = vmul.f32 0.5, %v10418_v48  ;;  %6249 = vrcp.f32 %v10550_v15 }
 0x3dc   : > { %v5230_v28 = vadd.f32 1.0, %v5985_v1  ;;  %v4123_v13 = vand.u32 2147483647, %v10536_v26  ;;  %v4141_v35 = vmul.f32 %v4140_v0, %v10474_v27  ;;  %v4750_v8 = vmul.f32 %v4749_v34, %v10508_v21 }
 0x3dd   : > { %v6248_v3 = vpop.eup %6247  ;;  %v10564_v4 = vadd.f32 %v3736_v41, %v10134_v9  ;;  %v10567_v2 = vmul.f32 %v4102_v43, %v10427_v50  ;;  %v4773_v48 = vmul.f32 2.1237322e-06, %v10554_v52  ;;  %vm4119_vm10 = vweird.f32 %v10536_v26 }
 0x3de   : > { %v5262_v47 = vmul.f32 %v5230_v28, %v3886_v10  ;;  %v4115_v39 = vmul.f32 %v6248_v3, %v10536_v26  ;;  %v4125_v58 = vand.u32 2147483648, %v10536_v26  ;;  %v4740_v25 = vadd.f32 0.18741608, %v4739_v36 }
 0x3df   : > { %v4751_v63 = vadd.f32 0.4994258, %v4750_v8  ;;  %v4774_v60 = vadd.f32 0.00028619796, %v4773_v48  ;;  %v4784_v23 = vmul.f32 3.8918573e-05, %v10554_v52  ;;  %vm4120_vm11 = vweird.f32 %v6248_v3 }
 0x3e0   : > { %v5282_v27 = vpack.c.bf16 %v5262_v47, %v5246_v14  ;;  %v4116_v40 = vsub.f32 1.0, %v4115_v39  ;;  %vm10574_vm9 = vcmp.eq.f32.partialorder %v4123_v13, 8.507059e+37  ;;  %v4142_v50 = vadd.f32 1.1283791, %v4141_v35  ;;  %vm10596_vm12 = vmor %vm4119_vm10, %vm4120_vm11 }
 0x3e1   : > { %v4163_v31 = vand.u32 2147483647, %v10550_v15  ;;  %v4752_v38 = vmul.f32 %v4751_v63, %v10508_v21  ;;  %v10581_v62 = vmul.f32 0.70710677, %v10564_v4  ;;  %v6250_v42 = vpop.eup %6249  ;;  %v4165_v59 = vand.u32 2147483648, %v10550_v15 }
 0x3e2   : > { %v4117_v17 = vmul.f32 %v6248_v3, %v4116_v40  ;;  %v4775_v11 = vmul.f32 %v4774_v60, %v10554_v52  ;;  %v4785_v51 = vadd.f32 0.001143296, %v4784_v23  ;;  %5376 = vmatpush.bf16.msra.mxu3 %v5282_v27  ;;  %v4155_v45 = vmul.f32 %v6250_v42, %v10550_v15 }
 0x3e3   : > { %v4741_v5 = vmul.f32 %v4740_v25, %v10508_v21  ;;  %v10587_v54 = vadd.f32 1.0, %v4752_v38  ;;  %v4171_v29 = vmul.f32 %v10581_v62, %v10581_v62  ;;  %v4126_v37 = vor.u32 1.1754944e-38, %v4125_v58 }
 0x3e4   : > { %v4118_v22 = vadd.f32 %v6248_v3, %v4117_v17  ;;  %v4776_v6 = vadd.f32 0.0036580483, %v4775_v11  ;;  %v4786_v49 = vmul.f32 %v4785_v51, %v10554_v52  ;;  %v4143_v20 = vmul.f32 %v4142_v50, %v10456_v55  ;;  %v3738_v51 = vpop.f32.mrf.mxu2 }
 0x3e5   : > { %v4156_v44 = vsub.f32 1.0, %v4155_v45  ;;  %6251 = vrcp.f32 %v10587_v54  ;;  %vm4159_vm13 = vweird.f32 %v10550_v15  ;;  %v10603_v57 = vadd.f32 %v3750_v61, %v10134_v9 }
 0x3e6   : > { %v4777_v7 = vmul.f32 %v4776_v6, %v10554_v52  ;;  %v4787_v0 = vadd.f32 0.014752088, %v4786_v49  ;;  %v4122_v55 = vsel %vm10596_vm12, %v6248_v3, %v4118_v22  ;;  %vm4160_vm14 = vweird.f32 %v6250_v42 }
 0x3e7   : > { %v4157_v56 = vmul.f32 %v6250_v42, %v4156_v44  ;;  %v10607_v30 = vmin.f32 %v4171_v29, 16.0  ;;  %vm10609_vm15 = vcmp.eq.f32.partialorder %v4163_v31, 8.507059e+37  ;;  %v4166_v53 = vor.u32 1.1754944e-38, %v4165_v59  ;;  %vm4161_vm0 = vmor %vm4159_vm13, %vm4160_vm14 }
 0x3e8   : > { %v4742_v1 = vadd.f32 1.1283791, %v4741_v5  ;;  %v4788_v43 = vmul.f32 %v4787_v0, %v10554_v52  ;;  %v4778_v10 = vadd.f32 0.05243302, %v4777_v7  ;;  %v4127_v14 = vsel %vm10574_vm9, %v4126_v37, %v4122_v55 }
 0x3e9   : > { %v4158_v41 = vadd.f32 %v6250_v42, %v4157_v56  ;;  %v4173_v36 = vmul.f32 2.1237322e-06, %v10607_v30  ;;  %v4184_v34 = vmul.f32 3.8918573e-05, %v10607_v30  ;;  %v4763_v28 = vand.u32 2147483647, %v10587_v54 }
 0x3ea   : > { %v4789_v3 = vadd.f32 0.112945676, %v4788_v43  ;;  %v10622_v13 = vmul.f32 0.70710677, %v10603_v57  ;;  %v4765_v47 = vand.u32 2147483648, %v10587_v54  ;;  %v4743_v25 = vmul.f32 %v4742_v1, %v10469_v46 }
 0x3eb   : > { %v6252_v35 = vpop.eup %6251  ;;  %v4162_v8 = vsel %vm4161_vm0, %v6250_v42, %v4158_v41  ;;  %v4174_v39 = vadd.f32 0.00028619796, %v4173_v36  ;;  %v4185_v48 = vadd.f32 0.001143296, %v4184_v34  ;;  %vm4759_vm1 = vweird.f32 %v10587_v54 }
 0x3ec   : > { %v4167_v58 = vsel %vm10609_vm15, %v4166_v53, %v4162_v8  ;;  %v4755_v15 = vmul.f32 %v6252_v35, %v10587_v54  ;;  %v4128_v63 = vmul.f32 %v4127_v14, %v10567_v2  ;;  %v4779_v27 = vmul.f32 %v4778_v10, %v10554_v52 }
 0x3ed   : > { %v4790_v40 = vmul.f32 %v4789_v3, %v10554_v52  ;;  %v4175_v60 = vmul.f32 %v4174_v39, %v10607_v30  ;;  %vm10634_vm2 = vcmp.eq.f32.partialorder %v4763_v28, 8.507059e+37  ;;  %v4186_v50 = vmul.f32 %v4185_v48, %v10607_v30 }
 0x3ee   : > { %v4756_v23 = vsub.f32 1.0, %v4755_v15  ;;  %v4211_v46 = vmul.f32 %v10622_v13, %v10622_v13  ;;  %v4168_v31 = vmul.f32 %v4167_v58, %v4143_v20  ;;  %v4766_v38 = vor.u32 1.1754944e-38, %v4765_v47 }
 0x3ef   : > { %v4791_v42 = vadd.f32 0.4994258, %v4790_v40  ;;  %v4176_v2 = vadd.f32 0.0036580483, %v4175_v60  ;;  %vm4760_vm3 = vweird.f32 %v6252_v35  ;;  %v4187_v59 = vadd.f32 0.014752088, %v4186_v50 }
 0x3f0   : > { %v4757_v17 = vmul.f32 %v6252_v35, %v4756_v23  ;;  %v10641_v11 = vmin.f32 %v4211_v46, 16.0  ;;  %v5970_v45 = vclamps-f32 %v4128_v63, 1.0  ;;  %v4780_v5 = vadd.f32 0.18741608, %v4779_v27  ;;  %vm4761_vm4 = vmor %vm4759_vm1, %vm4760_vm3  ;;  %v3752_v27 = vpop.f32.mrf.mxu3 }
 0x3f1   : > { %v4792_v61 = vmul.f32 %v4791_v42, %v10554_v52  ;;  %v4177_v22 = vmul.f32 %v4176_v2, %v10607_v30  ;;  %v4188_v49 = vmul.f32 %v4187_v59, %v10607_v30  ;;  %v5971_v20 = vclamps-f32 %v4168_v31, 1.0 }
 0x3f2   : > { %v4758_v6 = vadd.f32 %v6252_v35, %v4757_v17  ;;  %v4213_v29 = vmul.f32 2.1237322e-06, %v10641_v11  ;;  %v4224_v37 = vmul.f32 3.8918573e-05, %v10641_v11  ;;  %v10653_v7 = vadd.f32 %v3738_v51, %v10215_v12 }
 0x3f3   : > { %v10650_v44 = vadd.f32 1.0, %v4792_v61  ;;  %v4178_v21 = vadd.f32 0.05243302, %v4177_v22  ;;  %v4189_v55 = vadd.f32 0.112945676, %v4188_v49  ;;  %v3872_v53 = vmul.f32 0.5, %v10432_v33 }
 0x3f4   : > { %v4762_v0 = vsel %vm4761_vm4, %v6252_v35, %v4758_v6  ;;  %v4214_v56 = vadd.f32 0.00028619796, %v4213_v29  ;;  %v4225_v26 = vadd.f32 0.001143296, %v4224_v37  ;;  %v4781_v43 = vmul.f32 %v4780_v5, %v10554_v52  ;;  %v3764_v5 = vpop.f32.mrf.mxu0 }
 0x3f5   : > { %v4767_v1 = vsel %vm10634_vm2, %v4766_v38, %v4762_v0  ;;  %6253 = vrcp.f32 %v10650_v44  ;;  %v3887_v54 = vmul.f32 0.5, %v10449_v32  ;;  %v4179_v10 = vmul.f32 %v4178_v21, %v10607_v30 }
 0x3f6   : > { %v4768_v41 = vmul.f32 %v4767_v1, %v4743_v25  ;;  %v4190_v36 = vmul.f32 %v4189_v55, %v10607_v30  ;;  %v5215_v34 = vadd.f32 1.0, %v5970_v45  ;;  %v4215_v14 = vmul.f32 %v4214_v56, %v10641_v11 }
 0x3f7   : > { %v4226_v28 = vmul.f32 %v4225_v26, %v10641_v11  ;;  %v10666_v33 = vmul.f32 0.70710677, %v10653_v7  ;;  %v5216_v3 = vadd.f32 1.0, %v5971_v20  ;;  %v4180_v52 = vadd.f32 0.18741608, %v4179_v10 }
 0x3f8   : > { %v5986_v35 = vclamps-f32 %v4768_v41, 1.0  ;;  %v4191_v8 = vadd.f32 0.4994258, %v4190_v36  ;;  %v4782_v47 = vadd.f32 1.1283791, %v4781_v43  ;;  %v10671_v25 = vmul.f32 0.5, %v10498_v19 }
 0x3f9   : > { %v4216_v39 = vadd.f32 0.0036580483, %v4215_v14  ;;  %v4227_v32 = vadd.f32 0.014752088, %v4226_v28  ;;  %v4811_v48 = vmul.f32 %v10666_v33, %v10666_v33  ;;  %v10674_v15 = vmul.f32 0.5, %v10564_v4 }
 0x3fa   : > { %v5231_v58 = vadd.f32 1.0, %v5986_v35  ;;  %v4192_v63 = vmul.f32 %v4191_v8, %v10607_v30  ;;  %v5247_v60 = vmul.f32 %v5215_v34, %v10557_v24  ;;  %v10682_v46 = vmul.f32 %v5216_v3, %v3872_v53 }
 0x3fb   : > { %v6254_v40 = vpop.eup %6253  ;;  %v4217_v23 = vmul.f32 %v4216_v39, %v10641_v11  ;;  %v4228_v16 = vmul.f32 %v4227_v32, %v10641_v11  ;;  %v10680_v50 = vmin.f32 %v4811_v48, 16.0  ;;  %v4181_v4 = vmul.f32 %v4180_v52, %v10607_v30 }
 0x3fc   : > { %v5263_v31 = vmul.f32 %v5231_v58, %v3887_v54  ;;  %v4795_v19 = vmul.f32 %v6254_v40, %v10650_v44  ;;  %v4783_v38 = vmul.f32 %v4782_v47, %v10531_v18  ;;  %v10687_v42 = vadd.f32 1.0, %v4192_v63 }
 0x3fd   : > { %v4229_v2 = vadd.f32 0.112945676, %v4228_v16  ;;  %v10690_v24 = vadd.f32 %v3752_v27, %v10215_v12  ;;  %v4218_v51 = vadd.f32 0.05243302, %v4217_v23  ;;  %v4813_v45 = vmul.f32 2.1237322e-06, %v10680_v50 }
 0x3fe   : > { %v5283_v17 = vpack.c.bf16 %v5263_v31, %v5247_v60  ;;  %v4796_v59 = vsub.f32 1.0, %v4795_v19  ;;  %vm4800_vm5 = vweird.f32 %v6254_v40  ;;  %v4803_v61 = vand.u32 2147483647, %v10650_v44 }
 0x3ff   : > { %v4805_v22 = vand.u32 2147483648, %v10650_v44  ;;  %6255 = vrcp.f32 %v10687_v42  ;;  %v4182_v30 = vadd.f32 1.1283791, %v4181_v4  ;;  %v4230_v6 = vmul.f32 %v4229_v2, %v10641_v11 }
 0x400   : > { %v4797_v18 = vmul.f32 %v6254_v40, %v4796_v59  ;;  %v4814_v49 = vadd.f32 0.00028619796, %v4813_v45  ;;  %5395 = vmatpush.bf16.msrb.mxu0 %v5283_v17  ;;  %vm4799_vm6 = vweird.f32 %v10650_v44  ;;  %v4824_v29 = vmul.f32 3.8918573e-05, %v10680_v50  ;;  %v3778_v17 = vpop.f32.mrf.mxu1 }
 0x401   : > { %v10700_v37 = vmul.f32 0.70710677, %v10690_v24  ;;  %v10703_v20 = vadd.f32 %v3764_v5, %v10134_v9  ;;  %v4219_v0 = vmul.f32 %v4218_v51, %v10641_v11  ;;  %v4231_v55 = vadd.f32 0.4994258, %v4230_v6  ;;  %vm4801_vm7 = vmor %vm4799_vm6, %vm4800_vm5 }
 0x402   : > { %v4798_v21 = vadd.f32 %v6254_v40, %v4797_v18  ;;  %v4815_v56 = vmul.f32 %v4814_v49, %v10680_v50  ;;  %vm4804_vm8 = vcmp.eq.f32.partialorder %v4803_v61, 8.507059e+37  ;;  %v4806_v26 = vor.u32 1.1754944e-38, %v4805_v22 }
 0x403   : > { %v4825_v53 = vadd.f32 0.001143296, %v4824_v29  ;;  %v4851_v44 = vmul.f32 %v10700_v37, %v10700_v37  ;;  %v4183_v43 = vmul.f32 %v4182_v30, %v10581_v62  ;;  %v4232_v54 = vmul.f32 %v4231_v55, %v10641_v11 }
 0x404   : > { %v4802_v1 = vsel %vm4801_vm7, %v6254_v40, %v4798_v21  ;;  %v4816_v41 = vadd.f32 0.0036580483, %v4815_v56  ;;  %v10716_v28 = vmul.f32 0.70710677, %v10703_v20  ;;  %v4203_v52 = vand.u32 2147483647, %v10687_v42 }
 0x405   : > { %v6256_v10 = vpop.eup %6255  ;;  %v4807_v36 = vsel %vm4804_vm8, %v4806_v26, %v4802_v1  ;;  %v4826_v34 = vmul.f32 %v4825_v53, %v10680_v50  ;;  %v10713_v14 = vmin.f32 %v4851_v44, 16.0  ;;  %v4220_v8 = vadd.f32 0.18741608, %v4219_v0 }
 0x406   : > { %v4808_v3 = vmul.f32 %v4807_v36, %v4783_v38  ;;  %v4195_v35 = vmul.f32 %v6256_v10, %v10687_v42  ;;  %v10720_v47 = vadd.f32 1.0, %v4232_v54  ;;  %v4817_v62 = vmul.f32 %v4816_v41, %v10680_v50 }
 0x407   : > { %v4827_v39 = vadd.f32 0.014752088, %v4826_v34  ;;  %v4853_v32 = vmul.f32 2.1237322e-06, %v10713_v14  ;;  %vm4199_vm10 = vweird.f32 %v10687_v42  ;;  %v4864_v63 = vmul.f32 3.8918573e-05, %v10713_v14 }
 0x408   : > { %v5987_v48 = vclamps-f32 %v4808_v3, 1.0  ;;  %v4196_v58 = vsub.f32 1.0, %v4195_v35  ;;  %vm4200_vm9 = vweird.f32 %v6256_v10  ;;  %v4205_v27 = vand.u32 2147483648, %v10687_v42 }
 0x409   : > { %6257 = vrcp.f32 %v10720_v47  ;;  %v4251_v40 = vmul.f32 %v10716_v28, %v10716_v28  ;;  %v4818_v16 = vadd.f32 0.05243302, %v4817_v62  ;;  %v4828_v31 = vmul.f32 %v4827_v39, %v10680_v50  ;;  %vm4201_vm12 = vmor %vm4199_vm10, %vm4200_vm9 }
 0x40a   : > { %v5232_v60 = vadd.f32 1.0, %v5987_v48  ;;  %v4197_v23 = vmul.f32 %v6256_v10, %v4196_v58  ;;  %vm10731_vm11 = vcmp.eq.f32.partialorder %v4203_v52, 8.507059e+37  ;;  %v4221_v4 = vmul.f32 %v4220_v8, %v10641_v11 }
 0x40b   : > { %v4854_v38 = vadd.f32 0.00028619796, %v4853_v32  ;;  %v4865_v2 = vadd.f32 0.001143296, %v4864_v63  ;;  %v4819_v45 = vmul.f32 %v4818_v16, %v10680_v50  ;;  %v4829_v5 = vadd.f32 0.112945676, %v4828_v31 }
 0x40c   : > { %v5264_v59 = vmul.f32 %v5232_v60, %v10671_v25  ;;  %v4198_v51 = vadd.f32 %v6256_v10, %v4197_v23  ;;  %v4206_v61 = vor.u32 1.1754944e-38, %v4205_v27  ;;  %v10743_v30 = vmin.f32 %v4251_v40, 16.0 }
 0x40d   : > { %v4855_v22 = vmul.f32 %v4854_v38, %v10713_v14  ;;  %v4866_v18 = vmul.f32 %v4865_v2, %v10713_v14  ;;  %v4830_v25 = vmul.f32 %v4829_v5, %v10680_v50  ;;  %v10748_v49 = vadd.f32 %v3778_v17, %v10134_v9  ;;  %v10776_v2 = vld [vmem:[%s11638_s5] sm:$0xff] }
 0x40e   : > { %v5284_v11 = vpack.c.bf16 %v5264_v59, %v10682_v46  ;;  %v4202_v6 = vsel %vm4201_vm12, %v6256_v10, %v4198_v51  ;;  %v4253_v55 = vmul.f32 2.1237322e-06, %v10743_v30  ;;  %v4222_v56 = vadd.f32 1.1283791, %v4221_v4 }
 0x40f   : > { %v6258_v29 = vpop.eup %6257  ;;  %v4207_v42 = vsel %vm10731_vm11, %v4206_v61, %v4202_v6  ;;  %v4856_v21 = vadd.f32 0.0036580483, %v4855_v22  ;;  %v4867_v0 = vadd.f32 0.014752088, %v4866_v18  ;;  %v4243_v53 = vand.u32 2147483647, %v10720_v47 }
 0x410   : > { %v4235_v26 = vmul.f32 %v6258_v29, %v10720_v47  ;;  %v4820_v46 = vadd.f32 0.18741608, %v4819_v45  ;;  %5414 = vmatpush.bf16.msrb.mxu1 %v5284_v11  ;;  %v4831_v44 = vadd.f32 0.4994258, %v4830_v25  ;;  %v4254_v41 = vadd.f32 0.00028619796, %v4253_v55 }
 0x411   : > { %v4857_v1 = vmul.f32 %v4856_v21, %v10713_v14  ;;  %v4868_v54 = vmul.f32 %v4867_v0, %v10713_v14  ;;  %v4208_v10 = vmul.f32 %v4207_v42, %v4183_v43  ;;  %v4245_v34 = vand.u32 2147483648, %v10720_v47 }
 0x412   : > { %v4236_v36 = vsub.f32 1.0, %v4235_v26  ;;  %v4264_v3 = vmul.f32 3.8918573e-05, %v10743_v30  ;;  %v4832_v35 = vmul.f32 %v4831_v44, %v10680_v50  ;;  %v4255_v62 = vmul.f32 %v4254_v41, %v10743_v30 }
 0x413   : > { %v4858_v52 = vadd.f32 0.05243302, %v4857_v1  ;;  %v4869_v8 = vadd.f32 0.112945676, %v4868_v54  ;;  %vm4240_vm13 = vweird.f32 %v6258_v29  ;;  %v4821_v32 = vmul.f32 %v4820_v46, %v10680_v50 }
 0x414   : > { %v4237_v39 = vmul.f32 %v6258_v29, %v4236_v36  ;;  %v4265_v48 = vadd.f32 0.001143296, %v4264_v3  ;;  %v10762_v58 = vadd.f32 1.0, %v4832_v35  ;;  %v4256_v27 = vadd.f32 0.0036580483, %v4255_v62 }
 0x415   : > { %v4859_v43 = vmul.f32 %v4858_v52, %v10713_v14  ;;  %v4870_v63 = vmul.f32 %v4869_v8, %v10713_v14  ;;  %v5972_v40 = vclamps-f32 %v4208_v10, 1.0  ;;  %vm4239_vm14 = vweird.f32 %v10720_v47  ;;  %v3766_v47 = vpop.f32.mrf.mxu0  ;;  %v3780_v8 = vpop.f32.mrf.mxu1 }
 0x416   : > { %v4238_v60 = vadd.f32 %v6258_v29, %v4237_v39  ;;  %v4266_v23 = vmul.f32 %v4265_v48, %v10743_v30  ;;  %v4223_v16 = vmul.f32 %v4222_v56, %v10622_v13  ;;  %vm4241_vm15 = vmor %vm4239_vm14, %vm4240_vm13  ;;  %v4246_v31 = vor.u32 1.1754944e-38, %v4245_v34 }
 0x417   : > { %6259 = vrcp.f32 %v10762_v58  ;;  %v10771_v50 = vmul.f32 0.70710677, %v10748_v49  ;;  %vm4244_vm0 = vcmp.eq.f32.partialorder %v4243_v53, 8.507059e+37  ;;  %v4860_v4 = vadd.f32 0.18741608, %v4859_v43 }
 0x418   : > { %v4242_v19 = vsel %vm4241_vm15, %v6258_v29, %v4238_v60  ;;  %v4871_v38 = vadd.f32 0.4994258, %v4870_v63  ;;  %v4822_v59 = vadd.f32 1.1283791, %v4821_v32  ;;  %v4257_v13 = vmul.f32 %v4256_v27, %v10743_v30 }
 0x419   : > { %v4247_v17 = vsel %vm4244_vm0, %v4246_v31, %v4242_v19  ;;  %v4267_v51 = vadd.f32 0.014752088, %v4266_v23  ;;  %v5217_v45 = vadd.f32 1.0, %v5972_v40  ;;  %v4861_v61 = vmul.f32 %v4860_v4, %v10713_v14 }
 0x41a   : > { %v4248_v5 = vmul.f32 %v4247_v17, %v4223_v16  ;;  %v4872_v22 = vmul.f32 %v4871_v38, %v10713_v14  ;;  %v4291_v11 = vmul.f32 %v10771_v50, %v10771_v50  ;;  %vm5305_vm1 = vcmask 130048  }
 0x41b   : > { %v4268_v18 = vmul.f32 %v4267_v51, %v10743_v30  ;;  %v10785_v6 = vadd.f32 %v3766_v47, %v10215_v12  ;;  %v3874_v25 = vmul.f32 0.5, %v10603_v57  ;;  %v10789_v29 = vmul.f32 0.5, %v10653_v7  ;;  %6006 = vmatmul.msk.bf16.vlgmr.msra.gmra.mxu0 %vm5305_vm1, %v10776_v2  ;;  %6008 = vmatmul.msk.bf16.vlgmr.msra.gmra.mxu1 %vm5305_vm1, %v10776_v2 }
 0x41c   : > { %v4843_v42 = vand.u32 2147483647, %v10762_v58  ;;  %v10792_v21 = vadd.f32 1.0, %v4872_v22  ;;  %v4845_v0 = vand.u32 2147483648, %v10762_v58  ;;  %v4258_v55 = vadd.f32 0.05243302, %v4257_v13  ;;  %6010 = vmatmul.msk.bf16.vlgmr.msra.gmra.mxu2 %vm5305_vm1, %v10776_v2  ;;  %6012 = vmatmul.msk.bf16.vlgmr.msra.gmra.mxu3 %vm5305_vm1, %v10776_v2 }
 0x41d   : > { %v6260_v14 = vpop.eup %6259  ;;  %v4269_v56 = vadd.f32 0.112945676, %v4268_v18  ;;  %v10799_v26 = vmin.f32 %v4291_v11, 16.0  ;;  %v4823_v57 = vmul.f32 %v4822_v59, %v10666_v33  ;;  %v10808_v53 = vmul.f32 0.5, %v10690_v24  ;;  %v10858_v18 = vld [vmem:[%s11638_s5 + $0x8] sm:$0xff] }
 0x41e   : > { %v4835_v7 = vmul.f32 %v6260_v14, %v10762_v58  ;;  %v10811_v46 = vmul.f32 0.70710677, %v10785_v6  ;;  %v10814_v44 = vmul.f32 %v5217_v45, %v10674_v15  ;;  %v5973_v1 = vclamps-f32 %v4248_v5, 1.0 }
 0x41f   : > { %v4862_v54 = vadd.f32 1.1283791, %v4861_v61  ;;  %6261 = vrcp.f32 %v10792_v21  ;;  %vm4839_vm2 = vweird.f32 %v10762_v58  ;;  %vm10818_vm3 = vcmp.eq.f32.partialorder %v4843_v42, 8.507059e+37 }
 0x420   : > { %v4836_v41 = vsub.f32 1.0, %v4835_v7  ;;  %v4270_v24 = vmul.f32 %v4269_v56, %v10743_v30  ;;  %v4846_v10 = vor.u32 1.1754944e-38, %v4845_v0  ;;  %v4259_v36 = vmul.f32 %v4258_v55, %v10743_v30 }
 0x421   : > { %v4293_v34 = vmul.f32 2.1237322e-06, %v10799_v26  ;;  %v4304_v15 = vmul.f32 3.8918573e-05, %v10799_v26  ;;  %vm4840_vm4 = vweird.f32 %v6260_v14  ;;  %v4891_v52 = vmul.f32 %v10811_v46, %v10811_v46 }
 0x422   : > { %v4837_v3 = vmul.f32 %v6260_v14, %v4836_v41  ;;  %v4271_v35 = vadd.f32 0.4994258, %v4270_v24  ;;  %v5218_v62 = vadd.f32 1.0, %v5973_v1  ;;  %v4863_v39 = vmul.f32 %v4862_v54, %v10700_v37  ;;  %vm4841_vm6 = vmor %vm4839_vm2, %vm4840_vm4 }
 0x423   : > { %v4294_v32 = vadd.f32 0.00028619796, %v4293_v34  ;;  %v4305_v48 = vadd.f32 0.001143296, %v4304_v15  ;;  %vm4879_vm5 = vweird.f32 %v10792_v21  ;;  %v10831_v27 = vmin.f32 %v4891_v52, 16.0 }
 0x424   : > { %v4838_v43 = vadd.f32 %v6260_v14, %v4837_v3  ;;  %v4272_v63 = vmul.f32 %v4271_v35, %v10743_v30  ;;  %v4883_v60 = vand.u32 2147483647, %v10792_v21  ;;  %v10839_v37 = vadd.f32 %v3780_v8, %v10215_v12 }
 0x425   : > { %v6262_v40 = vpop.eup %6261  ;;  %v4295_v23 = vmul.f32 %v4294_v32, %v10799_v26  ;;  %v4306_v16 = vmul.f32 %v4305_v48, %v10799_v26  ;;  %v4885_v4 = vand.u32 2147483648, %v10792_v21  ;;  %v4260_v38 = vadd.f32 0.18741608, %v4259_v36 }
 0x426   : > { %v4842_v31 = vsel %vm4841_vm6, %v6260_v14, %v4838_v43  ;;  %v4875_v19 = vmul.f32 %v6262_v40, %v10792_v21  ;;  %v10845_v58 = vadd.f32 1.0, %v4272_v63  ;;  %v4893_v45 = vmul.f32 2.1237322e-06, %v10831_v27 }
 0x427   : > { %v4847_v47 = vsel %vm10818_vm3, %v4846_v10, %v4842_v31  ;;  %v4296_v17 = vadd.f32 0.0036580483, %v4295_v23  ;;  %v4307_v59 = vadd.f32 0.014752088, %v4306_v16  ;;  %v4904_v5 = vmul.f32 3.8918573e-05, %v10831_v27 }
 0x428   : > { %v4848_v13 = vmul.f32 %v4847_v47, %v4823_v57  ;;  %v4876_v51 = vsub.f32 1.0, %v4875_v19  ;;  %v10849_v61 = vmul.f32 %v5218_v62, %v3874_v25  ;;  %vm4880_vm7 = vweird.f32 %v6262_v40  ;;  %v3792_v19 = vpop.f32.mrf.mxu2 }
 0x429   : > { %6263 = vrcp.f32 %v10845_v58  ;;  %v10853_v22 = vmul.f32 0.70710677, %v10839_v37  ;;  %v4297_v14 = vmul.f32 %v4296_v17, %v10799_v26  ;;  %v4308_v0 = vmul.f32 %v4307_v59, %v10799_v26  ;;  %vm4881_vm10 = vmor %vm4879_vm5, %vm4880_vm7 }
 0x42a   : > { %v5988_v11 = vclamps-f32 %v4848_v13, 1.0  ;;  %v4877_v42 = vmul.f32 %v6262_v40, %v4876_v51  ;;  %vm10862_vm8 = vcmp.eq.f32.partialorder %v4883_v60, 8.507059e+37  ;;  %v4261_v55 = vmul.f32 %v4260_v38, %v10743_v30 }
 0x42b   : > { %v4894_v56 = vadd.f32 0.00028619796, %v4893_v45  ;;  %v4905_v57 = vadd.f32 0.001143296, %v4904_v5  ;;  %v4298_v54 = vadd.f32 0.05243302, %v4297_v14  ;;  %6007 = vmatmul.msk.bf16.gmra.mxu0 %vm5305_vm1, %v10858_v18  ;;  %6009 = vmatmul.msk.bf16.gmra.mxu1 %vm5305_vm1, %v10858_v18  ;;  %v4931_v10 = vmul.f32 %v10853_v22, %v10853_v22 }
 0x42c   : > { %v5233_v7 = vadd.f32 1.0, %v5988_v11  ;;  %v4878_v1 = vadd.f32 %v6262_v40, %v4877_v42  ;;  %v4309_v41 = vadd.f32 0.112945676, %v4308_v0  ;;  %v4886_v33 = vor.u32 1.1754944e-38, %v4885_v4  ;;  %6011 = vmatmul.msk.bf16.gmra.mxu2 %vm5305_vm1, %v10858_v18  ;;  %6013 = vmatmul.msk.bf16.gmra.mxu3 %vm5305_vm1, %v10858_v18 }
 0x42d   : > { %v4895_v24 = vmul.f32 %v4894_v56, %v10831_v27  ;;  %v4906_v30 = vmul.f32 %v4905_v57, %v10831_v27  ;;  %v4299_v21 = vmul.f32 %v4298_v54, %v10799_v26  ;;  %v10887_v62 = vmin.f32 %v4931_v10, 16.0 }
 0x42e   : > { %v5265_v36 = vmul.f32 %v5233_v7, %v10789_v29  ;;  %v4882_v34 = vsel %vm4881_vm10, %v6262_v40, %v4878_v1  ;;  %v4310_v15 = vmul.f32 %v4309_v41, %v10799_v26  ;;  %vm4279_vm9 = vweird.f32 %v10845_v58 }
 0x42f   : > { %v6264_v3 = vpop.eup %6263  ;;  %v4887_v35 = vsel %vm10862_vm8, %v4886_v33, %v4882_v34  ;;  %v4896_v52 = vadd.f32 0.0036580483, %v4895_v24  ;;  %v4907_v8 = vadd.f32 0.014752088, %v4906_v30  ;;  %v4933_v16 = vmul.f32 2.1237322e-06, %v10887_v62  ;;  %v3806_v30 = vpop.f32.mrf.mxu3 }
 0x430   : > { %v5285_v32 = vpack.c.bf16 %v5265_v36, %v10814_v44  ;;  %v4888_v48 = vmul.f32 %v4887_v35, %v4863_v39  ;;  %v4275_v43 = vmul.f32 %v6264_v3, %v10845_v58  ;;  %vm4280_vm11 = vweird.f32 %v6264_v3 }
 0x431   : > { %v4311_v29 = vadd.f32 0.4994258, %v4310_v15  ;;  %v4897_v63 = vmul.f32 %v4896_v52, %v10831_v27  ;;  %v4908_v40 = vmul.f32 %v4907_v8, %v10831_v27  ;;  %v4944_v31 = vmul.f32 3.8918573e-05, %v10887_v62  ;;  %vm4281_vm12 = vmor %vm4279_vm9, %vm4280_vm11 }
 0x432   : > { %v5989_v60 = vclamps-f32 %v4888_v48, 1.0  ;;  %v4276_v23 = vsub.f32 1.0, %v4275_v43  ;;  %5433 = vmatpush.bf16.msrb.mxu2 %v5285_v32  ;;  %v4300_v44 = vadd.f32 0.18741608, %v4299_v21  ;;  %v4934_v59 = vadd.f32 0.00028619796, %v4933_v16 }
 0x433   : > { %v4312_v39 = vmul.f32 %v4311_v29, %v10799_v26  ;;  %v4898_v4 = vadd.f32 0.05243302, %v4897_v63  ;;  %v4909_v38 = vadd.f32 0.112945676, %v4908_v40  ;;  %v4945_v13 = vadd.f32 0.001143296, %v4944_v31 }
 0x434   : > { %v5234_v47 = vadd.f32 1.0, %v5989_v60  ;;  %v4277_v17 = vmul.f32 %v6264_v3, %v4276_v23  ;;  %v4283_v51 = vand.u32 2147483647, %v10845_v58  ;;  %v4285_v45 = vand.u32 2147483648, %v10845_v58 }
 0x435   : > { %v10899_v5 = vadd.f32 1.0, %v4312_v39  ;;  %v4910_v11 = vmul.f32 %v4909_v38, %v10831_v27  ;;  %v4935_v0 = vmul.f32 %v4934_v59, %v10887_v62  ;;  %v4946_v25 = vmul.f32 %v4945_v13, %v10887_v62 }
 0x436   : > { %v5266_v42 = vmul.f32 %v5234_v47, %v10808_v53  ;;  %v4278_v14 = vadd.f32 %v6264_v3, %v4277_v17  ;;  %v4262_v56 = vadd.f32 1.1283791, %v4261_v55  ;;  %v10910_v57 = vadd.f32 %v3792_v19, %v10134_v9 }
 0x437   : > { %6265 = vrcp.f32 %v10899_v5  ;;  %v4301_v53 = vmul.f32 %v4300_v44, %v10799_v26  ;;  %v4899_v54 = vmul.f32 %v4898_v4, %v10831_v27  ;;  %v4286_v41 = vor.u32 1.1754944e-38, %v4285_v45 }
 0x438   : > { %v5286_v7 = vpack.c.bf16 %v5266_v42, %v10849_v61  ;;  %v4282_v1 = vsel %vm4281_vm12, %v6264_v3, %v4278_v14  ;;  %v4911_v33 = vadd.f32 0.4994258, %v4910_v11  ;;  %v4936_v24 = vadd.f32 0.0036580483, %v4935_v0  ;;  %v3794_v3 = vpop.f32.mrf.mxu2 }
 0x439   : > { %vm4284_vm13 = vcmp.eq.f32.partialorder %v4283_v51, 8.507059e+37  ;;  %v4947_v55 = vadd.f32 0.014752088, %v4946_v25  ;;  %v10918_v34 = vmul.f32 0.70710677, %v10910_v57  ;;  %v4263_v61 = vmul.f32 %v4262_v56, %v10716_v28 }
 0x43a   : > { %5452 = vmatpush.bf16.msrb.mxu3 %v5286_v7  ;;  %v4287_v58 = vsel %vm4284_vm13, %v4286_v41, %v4282_v1  ;;  %v4912_v10 = vmul.f32 %v4911_v33, %v10831_v27  ;;  %v4937_v36 = vmul.f32 %v4936_v24, %v10887_v62  ;;  %v4302_v26 = vadd.f32 1.1283791, %v4301_v53 }
 0x43b   : > { %v4900_v21 = vadd.f32 0.18741608, %v4899_v54  ;;  %v4948_v15 = vmul.f32 %v4947_v55, %v10887_v62  ;;  %6014 = vmatmul.msk.bf16.vlgmr.msrb.gmra.mxu0 %vm5305_vm1, %v10776_v2  ;;  %6016 = vmatmul.msk.bf16.vlgmr.msrb.gmra.mxu1 %vm5305_vm1, %v10776_v2  ;;  %v4331_v32 = vmul.f32 %v10918_v34, %v10918_v34  ;;  %v10933_v28 = vadd.f32 %v3806_v30, %v10134_v9 }
 0x43c   : > { %v10928_v52 = vadd.f32 1.0, %v4912_v10  ;;  %v4938_v8 = vadd.f32 0.05243302, %v4937_v36  ;;  %6018 = vmatmul.msk.bf16.vlgmr.msrb.gmra.mxu2 %vm5305_vm1, %v10776_v2  ;;  %v4288_v48 = vmul.f32 %v4287_v58, %v4263_v61  ;;  %v3875_v29 = vmul.f32 0.5, %v10703_v20 }
 0x43d   : > { %v10926_v35 = vpop.eup %6265  ;;  %6020 = vmatmul.msk.bf16.vlgmr.msrb.gmra.mxu3 %vm5305_vm1, %v10776_v2  ;;  %v10943_v63 = vmul.f32 0.5, %v10785_v6  ;;  %v10947_v40 = vadd.f32 %v3794_v3, %v10215_v12  ;;  %v4901_v23 = vmul.f32 %v4900_v21, %v10831_v27  ;;  %v4949_v31 = vadd.f32 0.112945676, %v4948_v15 }
 0x43e   : > { %v4315_v43 = vmul.f32 %v10926_v35, %v10899_v5  ;;  %6267 = vrcp.f32 %v10928_v52  ;;  %v4939_v16 = vmul.f32 %v4938_v8, %v10887_v62  ;;  %v10952_v19 = vmul.f32 %v4302_v26, %v10771_v50 }
 0x43f   : > { %v4325_v44 = vand.u32 2147483648, %v10899_v5  ;;  %v10955_v20 = vmin.f32 %v4331_v32, 16.0  ;;  %v10958_v6 = vmul.f32 0.70710677, %v10933_v28  ;;  %v5974_v39 = vclamps-f32 %v4288_v48, 1.0 }
 0x440   : > { %v4316_v60 = vsub.f32 1.0, %v4315_v43  ;;  %v4323_v38 = vand.u32 2147483647, %v10899_v5  ;;  %v4950_v27 = vmul.f32 %v4949_v31, %v10887_v62  ;;  %v10968_v59 = vmul.f32 0.70710677, %v10947_v40 }
 0x441   : > { %v4333_v47 = vmul.f32 2.1237322e-06, %v10955_v20  ;;  %v4344_v17 = vmul.f32 3.8918573e-05, %v10955_v20  ;;  %v4371_v50 = vmul.f32 %v10958_v6, %v10958_v6  ;;  %vm4319_vm14 = vweird.f32 %v10899_v5 }
 0x442   : > { %v4317_v4 = vmul.f32 %v10926_v35, %v4316_v60  ;;  %v4902_v13 = vadd.f32 1.1283791, %v4901_v23  ;;  %v4940_v51 = vadd.f32 0.18741608, %v4939_v16  ;;  %v4951_v45 = vadd.f32 0.4994258, %v4950_v27 }
 0x443   : > { %v4326_v42 = vor.u32 1.1754944e-38, %v4325_v44  ;;  %v4334_v14 = vadd.f32 0.00028619796, %v4333_v47  ;;  %v4345_v0 = vadd.f32 0.001143296, %v4344_v17  ;;  %v10971_v25 = vmin.f32 %v4371_v50, 16.0 }
 0x444   : > { %v6268_v11 = vpop.eup %6267  ;;  %v5219_v56 = vadd.f32 1.0, %v5974_v39  ;;  %v4318_v7 = vadd.f32 %v10926_v35, %v4317_v4  ;;  %vm4320_vm15 = vweird.f32 %v10926_v35  ;;  %vm10975_vm0 = vcmp.eq.f32.partialorder %v4323_v38, 8.507059e+37  ;;  %v3808_v4 = vpop.f32.mrf.mxu3 }
 0x445   : > { %v4915_v53 = vmul.f32 %v6268_v11, %v10928_v52  ;;  %v4952_v54 = vmul.f32 %v4951_v45, %v10887_v62  ;;  %v4335_v41 = vmul.f32 %v4334_v14, %v10955_v20  ;;  %v4346_v33 = vmul.f32 %v4345_v0, %v10955_v20  ;;  %vm10995_vm2 = vmor %vm4319_vm14, %vm4320_vm15 }
 0x446   : > { %v4971_v24 = vmul.f32 %v10968_v59, %v10968_v59  ;;  %v4923_v30 = vand.u32 2147483647, %v10928_v52  ;;  %v4925_v58 = vand.u32 2147483648, %v10928_v52  ;;  %v4373_v10 = vmul.f32 2.1237322e-06, %v10971_v25 }
 0x447   : > { %v4916_v55 = vsub.f32 1.0, %v4915_v53  ;;  %v4941_v36 = vmul.f32 %v4940_v51, %v10887_v62  ;;  %v10989_v61 = vadd.f32 1.0, %v4952_v54  ;;  %v4336_v26 = vadd.f32 0.0036580483, %v4335_v41 }
 0x448   : > { %v4347_v21 = vadd.f32 0.014752088, %v4346_v33  ;;  %vm4920_vm3 = vweird.f32 %v6268_v11  ;;  %v4374_v8 = vadd.f32 0.00028619796, %v4373_v10  ;;  %v4384_v32 = vmul.f32 3.8918573e-05, %v10971_v25 }
 0x449   : > { %v4917_v3 = vmul.f32 %v6268_v11, %v4916_v55  ;;  %v4322_v62 = vsel %vm10995_vm2, %v10926_v35, %v4318_v7  ;;  %v4903_v48 = vmul.f32 %v4902_v13, %v10811_v46  ;;  %6269 = vrcp.f32 %v10989_v61 }
 0x44a   : > { %v11005_v43 = vmin.f32 %v4971_v24, 16.0  ;;  %vm4919_vm4 = vweird.f32 %v10928_v52  ;;  %v4337_v60 = vmul.f32 %v4336_v26, %v10955_v20  ;;  %v4348_v23 = vmul.f32 %v4347_v21, %v10955_v20 }
 0x44b   : > { %v4918_v5 = vadd.f32 %v6268_v11, %v4917_v3  ;;  %6015 = vmatmul.msk.bf16.gmra.mxu0 %vm5305_vm1, %v10858_v18  ;;  %6017 = vmatmul.msk.bf16.gmra.mxu1 %vm5305_vm1, %v10858_v18  ;;  %v11014_v35 = vmul.f32 %v5219_v56, %v3875_v29  ;;  %vm4921_vm5 = vmor %vm4919_vm4, %vm4920_vm3  ;;  %v4926_v46 = vor.u32 1.1754944e-38, %v4925_v58  ;;  %v4375_v16 = vmul.f32 %v4374_v8, %v10971_v25 }
 0x44c   : > { %v4385_v31 = vadd.f32 0.001143296, %v4384_v32  ;;  %6019 = vmatmul.msk.bf16.gmra.mxu2 %vm5305_vm1, %v10858_v18  ;;  %vm4924_vm6 = vcmp.eq.f32.partialorder %v4923_v30, 8.507059e+37  ;;  %v4942_v44 = vadd.f32 1.1283791, %v4941_v36  ;;  %v4327_v29 = vsel %vm10975_vm0, %v4326_v42, %v4322_v62 }
 0x44d   : > { %6021 = vmatmul.msk.bf16.gmra.mxu3 %vm5305_vm1, %v10858_v18  ;;  %v4922_v52 = vsel %vm4921_vm5, %v6268_v11, %v4918_v5  ;;  %v4349_v39 = vadd.f32 0.112945676, %v4348_v23  ;;  %v4973_v47 = vmul.f32 2.1237322e-06, %v11005_v43  ;;  %v4338_v50 = vadd.f32 0.05243302, %v4337_v60 }
 0x44e   : > { %v4927_v38 = vsel %vm4924_vm6, %v4926_v46, %v4922_v52  ;;  %v4386_v27 = vmul.f32 %v4385_v31, %v10971_v25  ;;  %v4984_v51 = vmul.f32 3.8918573e-05, %v11005_v43  ;;  %v4376_v11 = vadd.f32 0.0036580483, %v4375_v16 }
 0x44f   : > { %v4928_v17 = vmul.f32 %v4927_v38, %v4903_v48  ;;  %v4350_v13 = vmul.f32 %v4349_v39, %v10955_v20  ;;  %v6270_v45 = vpop.eup %6269  ;;  %v4974_v0 = vadd.f32 0.00028619796, %v4973_v47  ;;  %v11028_v56 = vadd.f32 %v3808_v4, %v10215_v12 }
 0x450   : > { %v4387_v14 = vadd.f32 0.014752088, %v4386_v27  ;;  %v4328_v42 = vmul.f32 %v4327_v29, %v10952_v19  ;;  %v4955_v1 = vmul.f32 %v6270_v45, %v10989_v61  ;;  %v4963_v53 = vand.u32 2147483647, %v10989_v61  ;;  %v3820_v29 = vpop.f32.mrf.mxu0 }
 0x451   : > { %v5990_v7 = vclamps-f32 %v4928_v17, 1.0  ;;  %v4965_v54 = vand.u32 2147483648, %v10989_v61  ;;  %v4351_v41 = vadd.f32 0.4994258, %v4350_v13  ;;  %v4975_v24 = vmul.f32 %v4974_v0, %v11005_v43 }
 0x452   : > { %v4388_v33 = vmul.f32 %v4387_v14, %v10971_v25  ;;  %v4956_v30 = vsub.f32 1.0, %v4955_v1  ;;  %v4339_v58 = vmul.f32 %v4338_v50, %v10955_v20  ;;  %v4985_v10 = vadd.f32 0.001143296, %v4984_v51 }
 0x453   : > { %v5235_v55 = vadd.f32 1.0, %v5990_v7  ;;  %v4352_v36 = vmul.f32 %v4351_v41, %v10955_v20  ;;  %v4377_v19 = vmul.f32 %v4376_v11, %v10971_v25  ;;  %v4976_v21 = vadd.f32 0.0036580483, %v4975_v24  ;;  %v3834_v24 = vpop.f32.mrf.mxu1 }
 0x454   : > { %v4389_v26 = vadd.f32 0.112945676, %v4388_v33  ;;  %v4957_v3 = vmul.f32 %v6270_v45, %v4956_v30  ;;  %vm4960_vm7 = vweird.f32 %v6270_v45  ;;  %v4986_v8 = vmul.f32 %v4985_v10, %v11005_v43 }
 0x455   : > { %v5267_v15 = vmul.f32 %v5235_v55, %v10943_v63  ;;  %v5975_v32 = vclamps-f32 %v4328_v42, 1.0  ;;  %v11041_v62 = vadd.f32 1.0, %v4352_v36  ;;  %v4977_v5 = vmul.f32 %v4976_v21, %v11005_v43 }
 0x456   : > { %v4390_v48 = vmul.f32 %v4389_v26, %v10971_v25  ;;  %v4958_v23 = vadd.f32 %v6270_v45, %v4957_v3  ;;  %vm4959_vm8 = vweird.f32 %v10989_v61  ;;  %v4987_v46 = vadd.f32 0.014752088, %v4986_v8 }
 0x457   : > { %v5287_v60 = vpack.c.bf16 %v5267_v15, %v11014_v35  ;;  %v4943_v16 = vmul.f32 %v4942_v44, %v10853_v22  ;;  %vm4961_vm10 = vmor %vm4959_vm8, %vm4960_vm7  ;;  %v4966_v63 = vor.u32 1.1754944e-38, %v4965_v54  ;;  %v4340_v31 = vadd.f32 0.18741608, %v4339_v58 }
 0x458   : > { %6271 = vrcp.f32 %v11041_v62  ;;  %v4962_v52 = vsel %vm4961_vm10, %v6270_v45, %v4958_v23  ;;  %vm4964_vm9 = vcmp.eq.f32.partialorder %v4963_v53, 8.507059e+37  ;;  %v4378_v39 = vadd.f32 0.05243302, %v4377_v19 }
 0x459   : > { %v4391_v4 = vadd.f32 0.4994258, %v4390_v48  ;;  %5471 = vmatpush.bf16.msra.mxu0 %v5287_v60  ;;  %v4967_v38 = vsel %vm4964_vm9, %v4966_v63, %v4962_v52  ;;  %v4978_v27 = vadd.f32 0.05243302, %v4977_v5  ;;  %v4988_v35 = vmul.f32 %v4987_v46, %v11005_v43 }
 0x45a   : > { %v5220_v47 = vadd.f32 1.0, %v5975_v32  ;;  %v4968_v61 = vmul.f32 %v4967_v38, %v4943_v16  ;;  %v4341_v22 = vmul.f32 %v4340_v31, %v10955_v20  ;;  %v11053_v50 = vmul.f32 0.70710677, %v11028_v56 }
 0x45b   : > { %v4392_v17 = vmul.f32 %v4391_v4, %v10971_v25  ;;  %v4989_v44 = vadd.f32 0.112945676, %v4988_v35  ;;  %v11056_v13 = vadd.f32 %v3820_v29, %v10134_v9  ;;  %v3876_v51 = vmul.f32 0.5, %v10748_v49 }
 0x45c   : > { %6022 = vmatmul.msk.bf16.vlgmr.msra.gmra.mxu0 %vm5305_vm1, %v10776_v2  ;;  %v5991_v45 = vclamps-f32 %v4968_v61, 1.0  ;;  %v4379_v11 = vmul.f32 %v4378_v39, %v10971_v25  ;;  %v4979_v20 = vmul.f32 %v4978_v27, %v11005_v43  ;;  %v5011_v7 = vmul.f32 %v11053_v50, %v11053_v50 }
 0x45d   : > { %v11062_v14 = vadd.f32 1.0, %v4392_v17  ;;  %v4990_v42 = vmul.f32 %v4989_v44, %v11005_v43  ;;  %v11071_v1 = vmul.f32 0.70710677, %v11056_v13  ;;  %v3892_v53 = vmul.f32 0.5, %v10839_v37 }
 0x45e   : > { %v11064_v0 = vpop.eup %6271  ;;  %v5236_v49 = vadd.f32 1.0, %v5991_v45  ;;  %v5252_v41 = vmul.f32 %v5220_v47, %v3876_v51  ;;  %v4342_v33 = vadd.f32 1.1283791, %v4341_v22  ;;  %v11077_v10 = vmin.f32 %v5011_v7, 16.0 }
 0x45f   : > { %v4355_v54 = vmul.f32 %v11064_v0, %v11041_v62  ;;  %6273 = vrcp.f32 %v11062_v14  ;;  %v4991_v58 = vadd.f32 0.4994258, %v4990_v42  ;;  %v4380_v36 = vadd.f32 0.18741608, %v4379_v11 }
 0x460   : > { %v5268_v55 = vmul.f32 %v5236_v49, %v3892_v53  ;;  %v4980_v19 = vadd.f32 0.18741608, %v4979_v20  ;;  %v4411_v26 = vmul.f32 %v11071_v1, %v11071_v1  ;;  %v5013_v15 = vmul.f32 2.1237322e-06, %v11077_v10 }
 0x461   : > { %v4356_v30 = vsub.f32 1.0, %v4355_v54  ;;  %v4992_v21 = vmul.f32 %v4991_v58, %v11005_v43  ;;  %v11084_v3 = vadd.f32 %v3834_v24, %v10134_v9  ;;  %v5024_v32 = vmul.f32 3.8918573e-05, %v11077_v10 }
 0x462   : > { %v5288_v37 = vpack.c.bf16 %v5268_v55, %v5252_v41  ;;  %v11088_v48 = vmin.f32 %v4411_v26, 16.0  ;;  %v4343_v60 = vmul.f32 %v4342_v33, %v10918_v34  ;;  %v4363_v23 = vand.u32 2147483647, %v11041_v62 }
 0x463   : > { %v4357_v8 = vmul.f32 %v11064_v0, %v4356_v30  ;;  %v11094_v46 = vadd.f32 1.0, %v4992_v21  ;;  %v5014_v16 = vadd.f32 0.00028619796, %v5013_v15  ;;  %v4365_v63 = vand.u32 2147483648, %v11041_v62 }
 0x464   : > { %5490 = vmatpush.bf16.msra.mxu1 %v5288_v37  ;;  %v4981_v52 = vmul.f32 %v4980_v19, %v11005_v43  ;;  %v5025_v39 = vadd.f32 0.001143296, %v5024_v32  ;;  %v4381_v4 = vmul.f32 %v4380_v36, %v10971_v25  ;;  %v4413_v34 = vmul.f32 2.1237322e-06, %v11088_v48 }
 0x465   : > { %v11090_v5 = vpop.eup %6273  ;;  %6275 = vrcp.f32 %v11094_v46  ;;  %v11104_v29 = vmul.f32 0.70710677, %v11084_v3  ;;  %v4358_v38 = vadd.f32 %v11064_v0, %v4357_v8  ;;  %vm4360_vm11 = vweird.f32 %v11064_v0 }
 0x466   : > { %v4395_v31 = vmul.f32 %v11090_v5, %v11062_v14  ;;  %v5015_v35 = vmul.f32 %v5014_v16, %v11077_v10  ;;  %vm11111_vm12 = vcmp.eq.f32.partialorder %v4363_v23, 8.507059e+37  ;;  %v4403_v25 = vand.u32 2147483647, %v11062_v14 }
 0x467   : > { %6024 = vmatmul.msk.bf16.vlgmr.msra.gmra.mxu1 %vm5305_vm1, %v10776_v2  ;;  %v4405_v47 = vand.u32 2147483648, %v11062_v14  ;;  %v5026_v61 = vmul.f32 %v5025_v39, %v11077_v10  ;;  %vm4359_vm13 = vweird.f32 %v11041_v62  ;;  %v4982_v17 = vadd.f32 1.1283791, %v4981_v52 }
 0x468   : > { %v4396_v27 = vsub.f32 1.0, %v4395_v31  ;;  %v5016_v22 = vadd.f32 0.0036580483, %v5015_v35  ;;  %v4424_v44 = vmul.f32 3.8918573e-05, %v11088_v48  ;;  %vm11120_vm14 = vmor %vm4359_vm13, %vm4360_vm11  ;;  %v4366_v45 = vor.u32 1.1754944e-38, %v4365_v63 }
 0x469   : > { %v5027_v11 = vadd.f32 0.014752088, %v5026_v61  ;;  %v4414_v20 = vadd.f32 0.00028619796, %v4413_v34  ;;  %v4451_v42 = vmul.f32 %v11104_v29, %v11104_v29  ;;  %v4362_v7 = vsel %vm11120_vm14, %v11064_v0, %v4358_v38 }
 0x46a   : > { %v4397_v62 = vmul.f32 %v11090_v5, %v4396_v27  ;;  %v5017_v53 = vmul.f32 %v5016_v22, %v11077_v10  ;;  %v4425_v49 = vadd.f32 0.001143296, %v4424_v44  ;;  %v4382_v41 = vadd.f32 1.1283791, %v4381_v4  ;;  %v3822_v44 = vpop.f32.mrf.mxu0 }
 0x46b   : > { %v6276_v54 = vpop.eup %6275  ;;  %vm4399_vm15 = vweird.f32 %v11062_v14  ;;  %v5028_v33 = vmul.f32 %v5027_v11, %v11077_v10  ;;  %v11135_v24 = vmin.f32 %v4451_v42, 16.0  ;;  %vm11137_vm0 = vcmp.eq.f32.partialorder %v4403_v25, 8.507059e+37 }
 0x46c   : > { %6023 = vmatmul.msk.bf16.gmra.mxu0 %vm5305_vm1, %v10858_v18  ;;  %v4406_v0 = vor.u32 1.1754944e-38, %v4405_v47  ;;  %v4983_v30 = vmul.f32 %v4982_v17, %v10968_v59  ;;  %v4995_v58 = vmul.f32 %v6276_v54, %v11094_v46  ;;  %v4367_v36 = vsel %vm11111_vm12, %v4366_v45, %v4362_v7 }
 0x46d   : > { %vm4400_vm2 = vweird.f32 %v11090_v5  ;;  %v5029_v19 = vadd.f32 0.112945676, %v5028_v33  ;;  %v4415_v26 = vmul.f32 %v4414_v20, %v11088_v48  ;;  %v4398_v37 = vadd.f32 %v11090_v5, %v4397_v62 }
 0x46e   : > { %v4996_v21 = vsub.f32 1.0, %v4995_v58  ;;  %v5018_v15 = vadd.f32 0.05243302, %v5017_v53  ;;  %v4426_v8 = vmul.f32 %v4425_v49, %v11088_v48  ;;  %v5003_v32 = vand.u32 2147483647, %v11094_v46  ;;  %vm11157_vm4 = vmor %vm4399_vm15, %vm4400_vm2  ;;  %v3836_v58 = vpop.f32.mrf.mxu1 }
 0x46f   : > { %v5005_v59 = vand.u32 2147483648, %v11094_v46  ;;  %v5030_v23 = vmul.f32 %v5029_v19, %v11077_v10  ;;  %v4464_v16 = vmul.f32 3.8918573e-05, %v11135_v24  ;;  %v4368_v63 = vmul.f32 %v4367_v36, %v4343_v60 }
 0x470   : > { %v4997_v31 = vmul.f32 %v6276_v54, %v4996_v21  ;;  %vm5000_vm3 = vweird.f32 %v6276_v54  ;;  %v4427_v52 = vadd.f32 0.014752088, %v4426_v8  ;;  %vm4999_vm5 = vweird.f32 %v11094_v46 }
 0x471   : > { %v5031_v4 = vadd.f32 0.4994258, %v5030_v23  ;;  %v4416_v34 = vadd.f32 0.0036580483, %v4415_v26  ;;  %v4465_v38 = vadd.f32 0.001143296, %v4464_v16  ;;  %v4402_v60 = vsel %vm11157_vm4, %v11090_v5, %v4398_v37  ;;  %vm5001_vm6 = vmor %vm4999_vm5, %vm5000_vm3 }
 0x472   : > { %v4998_v27 = vadd.f32 %v6276_v54, %v4997_v31  ;;  %v5019_v35 = vmul.f32 %v5018_v15, %v11077_v10  ;;  %v4428_v43 = vmul.f32 %v4427_v52, %v11088_v48  ;;  %v5006_v14 = vor.u32 1.1754944e-38, %v5005_v59 }
 0x473   : > { %v5032_v25 = vmul.f32 %v5031_v4, %v11077_v10  ;;  %v4453_v47 = vmul.f32 2.1237322e-06, %v11135_v24  ;;  %v4466_v46 = vmul.f32 %v4465_v38, %v11135_v24  ;;  %v5976_v61 = vclamps-f32 %v4368_v63, 1.0  ;;  %v3848_v38 = vpop.f32.mrf.mxu2 }
 0x474   : > { %v5002_v17 = vsel %vm5001_vm6, %v6276_v54, %v4998_v27  ;;  %vm5004_vm7 = vcmp.eq.f32.partialorder %v5003_v32, 8.507059e+37  ;;  %v4429_v22 = vadd.f32 0.112945676, %v4428_v43  ;;  %v4407_v5 = vsel %vm11137_vm0, %v4406_v0, %v4402_v60 }
 0x475   : > { %v5007_v51 = vsel %vm5004_vm7, %v5006_v14, %v5002_v17  ;;  %v11172_v45 = vadd.f32 1.0, %v5032_v25  ;;  %v4417_v11 = vmul.f32 %v4416_v34, %v11088_v48  ;;  %v5020_v42 = vadd.f32 0.18741608, %v5019_v35 }
 0x476   : > { %v5008_v20 = vmul.f32 %v5007_v51, %v4983_v30  ;;  %v4430_v7 = vmul.f32 %v4429_v22, %v11088_v48  ;;  %v4467_v62 = vadd.f32 0.014752088, %v4466_v46  ;;  %v4383_v53 = vmul.f32 %v4382_v41, %v10958_v6 }
 0x477   : > { %6025 = vmatmul.msk.bf16.gmra.mxu1 %vm5305_vm1, %v10858_v18  ;;  %6277 = vrcp.f32 %v11172_v45  ;;  %v4454_v49 = vadd.f32 0.00028619796, %v4453_v47  ;;  %v11181_v54 = vadd.f32 %v3822_v44, %v10215_v12  ;;  %v5221_v33 = vadd.f32 1.0, %v5976_v61 }
 0x478   : > { %v5992_v55 = vclamps-f32 %v5008_v20, 1.0  ;;  %v4431_v0 = vadd.f32 0.4994258, %v4430_v7  ;;  %v3877_v30 = vmul.f32 0.5, %v10910_v57  ;;  %v4408_v36 = vmul.f32 %v4407_v5, %v4383_v53 }
 0x479   : > { %v3893_v19 = vmul.f32 0.5, %v10947_v40  ;;  %v4468_v26 = vmul.f32 %v4467_v62, %v11135_v24  ;;  %v5021_v6 = vmul.f32 %v5020_v42, %v11077_v10  ;;  %v4418_v41 = vadd.f32 0.05243302, %v4417_v11 }
 0x47a   : > { %v5237_v37 = vadd.f32 1.0, %v5992_v55  ;;  %v4432_v21 = vmul.f32 %v4431_v0, %v11088_v48  ;;  %v4455_v15 = vmul.f32 %v4454_v49, %v11135_v24  ;;  %v11190_v32 = vmul.f32 0.70710677, %v11181_v54 }
 0x47b   : > { %v4469_v8 = vadd.f32 0.112945676, %v4468_v26  ;;  %v11193_v59 = vadd.f32 %v3836_v58, %v10215_v12  ;;  %v5253_v57 = vmul.f32 %v5221_v33, %v3877_v30  ;;  %v3878_v63 = vmul.f32 0.5, %v10933_v28 }
 0x47c   : > { %v5269_v23 = vmul.f32 %v5237_v37, %v3893_v19  ;;  %v11195_v40 = vadd.f32 1.0, %v4432_v21  ;;  %v5051_v31 = vmul.f32 %v11190_v32, %v11190_v32  ;;  %v11205_v4 = vmul.f32 0.5, %v11028_v56 }
 0x47d   : > { %v6278_v16 = vpop.eup %6277  ;;  %v4470_v10 = vmul.f32 %v4469_v8, %v11135_v24  ;;  %v11202_v52 = vmul.f32 0.70710677, %v11193_v59  ;;  %v5977_v60 = vclamps-f32 %v4408_v36, 1.0  ;;  %v5022_v27 = vadd.f32 1.1283791, %v5021_v6 }
 0x47e   : > { %v5289_v39 = vpack.c.bf16 %v5269_v23, %v5253_v57  ;;  %v5035_v34 = vmul.f32 %v6278_v16, %v11172_v45  ;;  %6279 = vrcp.f32 %v11195_v40  ;;  %v4419_v28 = vmul.f32 %v4418_v41, %v11088_v48 }
 0x47f   : > { %v4456_v35 = vadd.f32 0.0036580483, %v4455_v15  ;;  %v4471_v14 = vadd.f32 0.4994258, %v4470_v10  ;;  %v11210_v25 = vmin.f32 %v5051_v31, 16.0  ;;  %v5091_v47 = vmul.f32 %v11202_v52, %v11202_v52 }
 0x480   : > { %v5036_v43 = vsub.f32 1.0, %v5035_v34  ;;  %5509 = vmatpush.bf16.msra.mxu2 %v5289_v39  ;;  %vm5040_vm8 = vweird.f32 %v6278_v16  ;;  %v5043_v56 = vand.u32 2147483647, %v11172_v45  ;;  %v5045_v46 = vand.u32 2147483648, %v11172_v45 }
 0x481   : > { %v11217_v61 = vadd.f32 %v3848_v38, %v10134_v9  ;;  %v4472_v22 = vmul.f32 %v4471_v14, %v11135_v24  ;;  %v5053_v44 = vmul.f32 2.1237322e-06, %v11210_v25  ;;  %v5064_v5 = vmul.f32 3.8918573e-05, %v11210_v25 }
 0x482   : > { %v5037_v17 = vmul.f32 %v6278_v16, %v5036_v43  ;;  %v5023_v51 = vmul.f32 %v5022_v27, %v11053_v50  ;;  %vm5039_vm10 = vweird.f32 %v11172_v45  ;;  %v4420_v11 = vadd.f32 0.18741608, %v4419_v28 }
 0x483   : > { %v11224_v20 = vmin.f32 %v5091_v47, 16.0  ;;  %6026 = vmatmul.msk.bf16.vlgmr.msra.gmra.mxu2 %vm5305_vm1, %v10776_v2  ;;  %v11230_v62 = vadd.f32 1.0, %v4472_v22  ;;  %v5054_v53 = vadd.f32 0.00028619796, %v5053_v44  ;;  %v5065_v49 = vadd.f32 0.001143296, %v5064_v5  ;;  %vm5041_vm9 = vmor %vm5039_vm10, %vm5040_vm8 }
 0x484   : > { %v11228_v42 = vpop.eup %6279  ;;  %v5038_v7 = vadd.f32 %v6278_v16, %v5037_v17  ;;  %v5046_v33 = vor.u32 1.1754944e-38, %v5045_v46  ;;  %v4457_v45 = vmul.f32 %v4456_v35, %v11135_v24  ;;  %vm5044_vm11 = vcmp.eq.f32.partialorder %v5043_v56, 8.507059e+37  ;;  %v3862_v56 = vpop.f32.mrf.mxu3 }
 0x485   : > { %v4435_v50 = vmul.f32 %v11228_v42, %v11195_v40  ;;  %v5093_v55 = vmul.f32 2.1237322e-06, %v11224_v20  ;;  %6281 = vrcp.f32 %v11230_v62  ;;  %v11239_v2 = vmul.f32 0.70710677, %v11217_v61 }
 0x486   : > { %v5042_v0 = vsel %vm5041_vm9, %v6278_v16, %v5038_v7  ;;  %v5222_v58 = vadd.f32 1.0, %v5977_v60  ;;  %v5055_v19 = vmul.f32 %v5054_v53, %v11210_v25  ;;  %v4421_v37 = vmul.f32 %v4420_v11, %v11088_v48 }
 0x487   : > { %v5047_v30 = vsel %vm5044_vm11, %v5046_v33, %v5042_v0  ;;  %v4436_v36 = vsub.f32 1.0, %v4435_v50  ;;  %v5066_v6 = vmul.f32 %v5065_v49, %v11210_v25  ;;  %v5094_v41 = vadd.f32 0.00028619796, %v5093_v55 }
 0x488   : > { %v5048_v26 = vmul.f32 %v5047_v30, %v5023_v51  ;;  %v4458_v21 = vadd.f32 0.05243302, %v4457_v45  ;;  %v5056_v15 = vadd.f32 0.0036580483, %v5055_v19  ;;  %v5104_v8 = vmul.f32 3.8918573e-05, %v11224_v20 }
 0x489   : > { %v5067_v23 = vadd.f32 0.014752088, %v5066_v6  ;;  %v5095_v16 = vmul.f32 %v5094_v41, %v11224_v20  ;;  %v4491_v10 = vmul.f32 %v11239_v2, %v11239_v2  ;;  %v5254_v31 = vmul.f32 %v5222_v58, %v3878_v63 }
 0x48a   : > { %v5993_v57 = vclamps-f32 %v5048_v26, 1.0  ;;  %v4437_v39 = vmul.f32 %v11228_v42, %v4436_v36  ;;  %v5057_v34 = vmul.f32 %v5056_v15, %v11210_v25  ;;  %v5105_v48 = vadd.f32 0.001143296, %v5104_v8 }
 0x48b   : > { %v11250_v38 = vpop.eup %6281  ;;  %v4422_v27 = vadd.f32 1.1283791, %v4421_v37  ;;  %v5068_v28 = vmul.f32 %v5067_v23, %v11210_v25  ;;  %v5096_v35 = vadd.f32 0.0036580483, %v5095_v16  ;;  %v4443_v43 = vand.u32 2147483647, %v11195_v40 }
 0x48c   : > { %v5238_v60 = vadd.f32 1.0, %v5993_v57  ;;  %v4459_v14 = vmul.f32 %v4458_v21, %v11135_v24  ;;  %v4475_v47 = vmul.f32 %v11250_v38, %v11230_v62  ;;  %v5058_v63 = vadd.f32 0.05243302, %v5057_v34 }
 0x48d   : > { %v4445_v17 = vand.u32 2147483648, %v11195_v40  ;;  %v5069_v22 = vadd.f32 0.112945676, %v5068_v28  ;;  %v11259_v44 = vmin.f32 %v4491_v10, 16.0  ;;  %v4438_v5 = vadd.f32 %v11228_v42, %v4437_v39 }
 0x48e   : > { %v5270_v46 = vmul.f32 %v5238_v60, %v11205_v4  ;;  %vm4440_vm12 = vweird.f32 %v11228_v42  ;;  %v4476_v51 = vsub.f32 1.0, %v4475_v47  ;;  %v5106_v11 = vmul.f32 %v5105_v48, %v11224_v20 }
 0x48f   : > { %v5070_v53 = vmul.f32 %v5069_v22, %v11210_v25  ;;  %v5097_v49 = vmul.f32 %v5096_v35, %v11224_v20  ;;  %v11267_v33 = vadd.f32 %v3862_v56, %v10134_v9  ;;  %vm4439_vm13 = vweird.f32 %v11195_v40  ;;  %v3850_v22 = vpop.f32.mrf.mxu2 }
 0x490   : > { %v5290_v7 = vpack.c.bf16 %v5270_v46, %v5254_v31  ;;  %v4460_v4 = vadd.f32 0.18741608, %v4459_v14  ;;  %v5059_v50 = vmul.f32 %v5058_v63, %v11210_v25  ;;  %v5107_v45 = vadd.f32 0.014752088, %v5106_v11  ;;  %vm11272_vm14 = vmor %vm4439_vm13, %vm4440_vm12 }
 0x491   : > { %v4423_v55 = vmul.f32 %v4422_v27, %v11071_v1  ;;  %v4477_v58 = vmul.f32 %v11250_v38, %v4476_v51  ;;  %v5071_v30 = vadd.f32 0.4994258, %v5070_v53  ;;  %v4504_v36 = vmul.f32 3.8918573e-05, %v11259_v44 }
 0x492   : > { %5528 = vmatpush.bf16.msra.mxu3 %v5290_v7  ;;  %v4442_v9 = vsel %vm11272_vm14, %v11228_v42, %v4438_v5  ;;  %vm4444_vm15 = vcmp.eq.f32.partialorder %v4443_v43, 8.507059e+37  ;;  %v4446_v40 = vor.u32 1.1754944e-38, %v4445_v17  ;;  %v5108_v19 = vmul.f32 %v5107_v45, %v11224_v20  ;;  %v11293_v42 = vld [vmem:[%s11638_s5] sm:$0xff] }
 0x493   : > { %6027 = vmatmul.msk.bf16.gmra.mxu2 %vm5305_vm1, %v10858_v18  ;;  %v5072_v1 = vmul.f32 %v5071_v30, %v11210_v25  ;;  %v5098_v26 = vadd.f32 0.05243302, %v5097_v49  ;;  %v4493_v37 = vmul.f32 2.1237322e-06, %v11259_v44  ;;  %v4505_v6 = vadd.f32 0.001143296, %v4504_v36 }
 0x494   : > { %v4461_v41 = vmul.f32 %v4460_v4, %v11135_v24  ;;  %v5060_v21 = vadd.f32 0.18741608, %v5059_v50  ;;  %v5109_v15 = vadd.f32 0.112945676, %v5108_v19  ;;  %v11288_v8 = vmul.f32 0.70710677, %v11267_v33 }
 0x495   : > { %6028 = vmatmul.msk.bf16.vlgmr.msra.gmra.mxu3 %vm5305_vm1, %v11293_v42  ;;  %v4447_v18 = vsel %vm4444_vm15, %v4446_v40, %v4442_v9  ;;  %v4478_v57 = vadd.f32 %v11250_v38, %v4477_v58  ;;  %vm4480_vm0 = vweird.f32 %v11250_v38  ;;  %v11299_v23 = vadd.f32 1.0, %v5072_v1 }
 0x496   : > { %v4483_v24 = vand.u32 2147483647, %v11230_v62  ;;  %v4485_v16 = vand.u32 2147483648, %v11230_v62  ;;  %v5110_v10 = vmul.f32 %v5109_v15, %v11224_v20  ;;  %v4506_v31 = vmul.f32 %v4505_v6, %v11259_v44 }
 0x497   : > { %vm4479_vm2 = vweird.f32 %v11230_v62  ;;  %6283 = vrcp.f32 %v11299_v23  ;;  %v5099_v39 = vmul.f32 %v5098_v26, %v11224_v20  ;;  %v4494_v34 = vadd.f32 0.00028619796, %v4493_v37  ;;  %v3864_v37 = vpop.f32.mrf.mxu3 }
 0x498   : > { %v4448_v48 = vmul.f32 %v4447_v18, %v4423_v55  ;;  %vm11308_vm3 = vmor %vm4479_vm2, %vm4480_vm0  ;;  %v5061_v27 = vmul.f32 %v5060_v21, %v11210_v25  ;;  %v5111_v28 = vadd.f32 0.4994258, %v5110_v10  ;;  %v4462_v35 = vadd.f32 1.1283791, %v4461_v41 }
 0x499   : > { %v4482_v43 = vsel %vm11308_vm3, %v11250_v38, %v4478_v57  ;;  %v4507_v14 = vadd.f32 0.014752088, %v4506_v31  ;;  %v4531_v62 = vmul.f32 %v11288_v8, %v11288_v8  ;;  %vm4484_vm4 = vcmp.eq.f32.partialorder %v4483_v24, 8.507059e+37 }
 0x49a   : > { %v4486_v47 = vor.u32 1.1754944e-38, %v4485_v16  ;;  %v5112_v63 = vmul.f32 %v5111_v28, %v11224_v20  ;;  %v5100_v56 = vadd.f32 0.18741608, %v5099_v39  ;;  %v4495_v46 = vmul.f32 %v4494_v34, %v11259_v44  ;;  %v11361_v39 = vld [vmem:[%s11638_s5 + $0x8] sm:$0xff] }
 0x49b   : > { %v4508_v17 = vmul.f32 %v4507_v14, %v11259_v44  ;;  %v11321_v25 = vmin.f32 %v4531_v62, 16.0  ;;  %v5978_v5 = vclamps-f32 %v4448_v48, 1.0  ;;  %v5062_v11 = vadd.f32 1.1283791, %v5061_v27 }
 0x49c   : > { %v4487_v51 = vsel %vm4484_vm4, %v4486_v47, %v4482_v43  ;;  %v11323_v38 = vadd.f32 1.0, %v5112_v63  ;;  %v11326_v53 = vmul.f32 0.5, %v11056_v13  ;;  %v4463_v49 = vmul.f32 %v4462_v35, %v11104_v29 }
 0x49d   : > { %v6284_v7 = vpop.eup %6283  ;;  %v4509_v4 = vadd.f32 0.112945676, %v4508_v17  ;;  %v4544_v50 = vmul.f32 3.8918573e-05, %v11321_v25  ;;  %v11331_v45 = vmul.f32 0.5, %v11181_v54  ;;  %v11336_v0 = vadd.f32 %v3850_v22, %v10215_v12 }
 0x49e   : > { %v5075_v55 = vmul.f32 %v6284_v7, %v11299_v23  ;;  %6285 = vrcp.f32 %v11323_v38  ;;  %v11338_v58 = vmul.f32 %v4487_v51, %v4463_v49  ;;  %v5101_v13 = vmul.f32 %v5100_v56, %v11224_v20 }
 0x49f   : > { %v4496_v30 = vadd.f32 0.0036580483, %v4495_v46  ;;  %v4510_v29 = vmul.f32 %v4509_v4, %v11259_v44  ;;  %v5223_v36 = vadd.f32 1.0, %v5978_v5  ;;  %v5063_v9 = vmul.f32 %v5062_v11, %v11190_v32 }
 0x4a0   : > { %v5076_v40 = vsub.f32 1.0, %v5075_v55  ;;  %v4545_v54 = vadd.f32 0.001143296, %v4544_v50  ;;  %vm5079_vm5 = vweird.f32 %v11299_v23  ;;  %v5083_v19 = vand.u32 2147483647, %v11299_v23 }
 0x4a1   : > { %v5085_v1 = vand.u32 2147483648, %v11299_v23  ;;  %v4511_v26 = vadd.f32 0.4994258, %v4510_v29  ;;  %vm5080_vm6 = vweird.f32 %v6284_v7  ;;  %v11348_v41 = vmul.f32 0.70710677, %v11336_v0 }
 0x4a2   : > { %v5077_v6 = vmul.f32 %v6284_v7, %v5076_v40  ;;  %v4546_v20 = vmul.f32 %v4545_v54, %v11321_v25  ;;  %v5979_v21 = vclamps-f32 %v11338_v58, 1.0  ;;  %v5102_v32 = vadd.f32 1.1283791, %v5101_v13  ;;  %vm5081_vm7 = vmor %vm5079_vm5, %vm5080_vm6 }
 0x4a3   : > { %v4497_v15 = vmul.f32 %v4496_v30, %v11259_v44  ;;  %v4512_v18 = vmul.f32 %v4511_v26, %v11259_v44  ;;  %v5131_v10 = vmul.f32 %v11348_v41, %v11348_v41  ;;  %v11356_v31 = vadd.f32 %v3864_v37, %v10215_v12 }
 0x4a4   : > { %v6286_v57 = vpop.eup %6285  ;;  %v5078_v24 = vadd.f32 %v6284_v7, %v5077_v6  ;;  %v4547_v16 = vadd.f32 0.014752088, %v4546_v20  ;;  %vm5084_vm8 = vcmp.eq.f32.partialorder %v5083_v19, 8.507059e+37  ;;  %v5086_v34 = vor.u32 1.1754944e-38, %v5085_v1 }
 0x4a5   : > { %6029 = vmatmul.msk.bf16.gmra.mxu3 %vm5305_vm1, %v11361_v39  ;;  %v5115_v48 = vmul.f32 %v6286_v57, %v11323_v38  ;;  %v4533_v60 = vmul.f32 2.1237322e-06, %v11321_v25  ;;  %v11369_v12 = vadd.f32 1.0, %v4512_v18  ;;  %v11372_v35 = vmin.f32 %v5131_v10, 16.0 }
 0x4a6   : > { %v5082_v27 = vsel %vm5081_vm7, %v6284_v7, %v5078_v24  ;;  %v4548_v28 = vmul.f32 %v4547_v16, %v11321_v25  ;;  %v5103_v14 = vmul.f32 %v5102_v32, %v11202_v52  ;;  %v5123_v23 = vand.u32 2147483647, %v11323_v38 }
 0x4a7   : > { %v5087_v43 = vsel %vm5084_vm8, %v5086_v34, %v5082_v27  ;;  %v5116_v62 = vsub.f32 1.0, %v5115_v48  ;;  %vm5120_vm10 = vweird.f32 %v6286_v57  ;;  %v5125_v63 = vand.u32 2147483648, %v11323_v38 }
 0x4a8   : > { %v5088_v47 = vmul.f32 %v5087_v43, %v5063_v9  ;;  %v11378_v56 = vmul.f32 0.70710677, %v11356_v31  ;;  %v4549_v17 = vadd.f32 0.112945676, %v4548_v28  ;;  %v5133_v22 = vmul.f32 2.1237322e-06, %v11372_v35 }
 0x4a9   : > { %v5117_v46 = vmul.f32 %v6286_v57, %v5116_v62  ;;  %v5144_v5 = vmul.f32 3.8918573e-05, %v11372_v35  ;;  %vm5119_vm9 = vweird.f32 %v11323_v38  ;;  %6287 = vrcp.f32 %v11369_v12 }
 0x4aa   : > { %v5994_v51 = vclamps-f32 %v5088_v47, 1.0  ;;  %v4534_v52 = vadd.f32 0.00028619796, %v4533_v60  ;;  %v4550_v7 = vmul.f32 %v4549_v17, %v11321_v25  ;;  %v5134_v49 = vadd.f32 0.00028619796, %v5133_v22  ;;  %vm5121_vm11 = vmor %vm5119_vm9, %vm5120_vm10 }
 0x4ab   : > { %v5118_v11 = vadd.f32 %v6286_v57, %v5117_v46  ;;  %v5145_v4 = vadd.f32 0.001143296, %v5144_v5  ;;  %vm5124_vm12 = vcmp.eq.f32.partialorder %v5123_v23, 8.507059e+37  ;;  %v5126_v55 = vor.u32 1.1754944e-38, %v5125_v63 }
 0x4ac   : > { %v5239_v50 = vadd.f32 1.0, %v5994_v51  ;;  %v5171_v58 = vmul.f32 %v11378_v56, %v11378_v56  ;;  %v4551_v30 = vadd.f32 0.4994258, %v4550_v7  ;;  %v5135_v38 = vmul.f32 %v5134_v49, %v11372_v35 }
 0x4ad   : > { %v5122_v13 = vsel %vm5121_vm11, %v6286_v57, %v5118_v11  ;;  %v5146_v29 = vmul.f32 %v5145_v4, %v11372_v35  ;;  %v5255_v9 = vmul.f32 %v5223_v36, %v11326_v53  ;;  %v3880_v19 = vmul.f32 0.5, %v11084_v3 }
 0x4ae   : > { %v5271_v40 = vmul.f32 %v5239_v50, %v11331_v45  ;;  %v5127_v54 = vsel %vm5124_vm12, %v5126_v55, %v5122_v13  ;;  %v4552_v26 = vmul.f32 %v4551_v30, %v11321_v25  ;;  %v5224_v6 = vadd.f32 1.0, %v5979_v21 }
 0x4af   : > { %v5128_v1 = vmul.f32 %v5127_v54, %v5103_v14  ;;  %v11394_v37 = vpop.eup %6287  ;;  %v5147_v32 = vadd.f32 0.014752088, %v5146_v29  ;;  %v11396_v18 = vmin.f32 %v5171_v58, 16.0  ;;  %v4498_v24 = vadd.f32 0.05243302, %v4497_v15 }
 0x4b0   : > { %v5291_v20 = vpack.c.bf16 %v5271_v40, %v5255_v9  ;;  %v4535_v16 = vmul.f32 %v4534_v52, %v11321_v25  ;;  %v5136_v53 = vadd.f32 0.0036580483, %v5135_v38  ;;  %v11399_v36 = vadd.f32 1.0, %v4552_v26 }
 0x4b1   : > { %v5995_v57 = vclamps-f32 %v5128_v1, 1.0  ;;  %v5148_v45 = vmul.f32 %v5147_v32, %v11372_v35  ;;  %v5173_v3 = vmul.f32 2.1237322e-06, %v11396_v18  ;;  %v5184_v10 = vmul.f32 3.8918573e-05, %v11396_v18 }
 0x4b2   : > { %5547 = vmatpush.bf16.msrb.mxu0 %v5291_v20  ;;  %v3896_v21 = vmul.f32 0.5, %v11193_v59  ;;  %v4515_v48 = vmul.f32 %v11394_v37, %v11369_v12  ;;  %v5256_v60 = vmul.f32 %v5224_v6, %v3880_v19  ;;  %v4499_v14 = vmul.f32 %v4498_v24, %v11259_v44 }
 0x4b3   : > { %v5240_v34 = vadd.f32 1.0, %v5995_v57  ;;  %v5149_v27 = vadd.f32 0.112945676, %v5148_v45  ;;  %v5174_v28 = vadd.f32 0.00028619796, %v5173_v3  ;;  %6289 = vrcp.f32 %v11399_v36 }
 0x4b4   : > { %v5185_v43 = vadd.f32 0.001143296, %v5184_v10  ;;  %v4536_v62 = vadd.f32 0.0036580483, %v4535_v16  ;;  %v5137_v23 = vmul.f32 %v5136_v53, %v11372_v35  ;;  %v4516_v47 = vsub.f32 1.0, %v4515_v48 }
 0x4b5   : > { %v5272_v15 = vmul.f32 %v5240_v34, %v3896_v21  ;;  %6030 = vmatmul.msk.bf16.vlgmr.msrb.gmra.mxu0 %vm5305_vm1, %v11293_v42  ;;  %v5150_v63 = vmul.f32 %v5149_v27, %v11372_v35  ;;  %v5175_v22 = vmul.f32 %v5174_v28, %v11396_v18  ;;  %v4500_v5 = vadd.f32 0.18741608, %v4499_v14 }
 0x4b6   : > { %v5186_v46 = vmul.f32 %v5185_v43, %v11396_v18  ;;  %v4537_v51 = vmul.f32 %v4536_v62, %v11321_v25  ;;  %v5138_v52 = vadd.f32 0.05243302, %v5137_v23  ;;  %v4517_v11 = vmul.f32 %v11394_v37, %v4516_v47 }
 0x4b7   : > { %v5292_v59 = vpack.c.bf16 %v5272_v15, %v5256_v60  ;;  %v5151_v17 = vadd.f32 0.4994258, %v5150_v63  ;;  %v5176_v55 = vadd.f32 0.0036580483, %v5175_v22  ;;  %v4501_v13 = vmul.f32 %v4500_v5, %v11259_v44 }
 0x4b8   : > { %v5187_v49 = vadd.f32 0.014752088, %v5186_v46  ;;  %v4538_v30 = vadd.f32 0.05243302, %v4537_v51  ;;  %v5139_v38 = vmul.f32 %v5138_v52, %v11372_v35  ;;  %v4518_v29 = vadd.f32 %v11394_v37, %v4517_v11 }
 0x4b9   : > { %5566 = vmatpush.bf16.msrb.mxu1 %v5292_v59  ;;  %v5152_v7 = vmul.f32 %v5151_v17, %v11372_v35  ;;  %v11418_v4 = vpop.eup %6289  ;;  %vm4520_vm13 = vweird.f32 %v11394_v37  ;;  %v4525_v40 = vand.u32 2147483648, %v11369_v12  ;;  %vm4519_vm14 = vweird.f32 %v11369_v12 }
 0x4ba   : > { %v5188_v58 = vmul.f32 %v5187_v49, %v11396_v18  ;;  %v4555_v9 = vmul.f32 %v11418_v4, %v11399_v36  ;;  %v4523_v19 = vand.u32 2147483647, %v11369_v12  ;;  %v5177_v44 = vmul.f32 %v5176_v55, %v11396_v18  ;;  %vm4521_vm15 = vmor %vm4519_vm14, %vm4520_vm13 }
 0x4bb   : > { %v5153_v50 = vadd.f32 1.0, %v5152_v7  ;;  %v5140_v1 = vadd.f32 0.18741608, %v5139_v38  ;;  %v4502_v6 = vadd.f32 1.1283791, %v4501_v13  ;;  %v4522_v20 = vsel %vm4521_vm15, %v11394_v37, %v4518_v29 }
 0x4bc   : > { %6032 = vmatmul.msk.bf16.vlgmr.msrb.gmra.mxu1 %vm5305_vm1, %v11293_v42  ;;  %v5189_v54 = vadd.f32 0.112945676, %v5188_v58  ;;  %v4539_v32 = vmul.f32 %v4538_v30, %v11321_v25  ;;  %v4556_v57 = vsub.f32 1.0, %v4555_v9  ;;  %v4526_v24 = vor.u32 1.1754944e-38, %v4525_v40 }
 0x4bd   : > { %6291 = vrcp.f32 %v5153_v50  ;;  %vm4524_vm0 = vcmp.eq.f32.partialorder %v4523_v19, 8.507059e+37  ;;  %v5178_v45 = vadd.f32 0.05243302, %v5177_v44  ;;  %v5141_v3 = vmul.f32 %v5140_v1, %v11372_v35 }
 0x4be   : > { %v5190_v26 = vmul.f32 %v5189_v54, %v11396_v18  ;;  %v4527_v12 = vsel %vm4524_vm0, %v4526_v24, %v4522_v20  ;;  %v4503_v21 = vmul.f32 %v4502_v6, %v11239_v2  ;;  %v4540_v34 = vadd.f32 0.18741608, %v4539_v32 }
 0x4bf   : > { %v4557_v37 = vmul.f32 %v11418_v4, %v4556_v57  ;;  %v5165_v27 = vand.u32 2147483648, %v5153_v50  ;;  %v5179_v28 = vmul.f32 %v5178_v45, %v11396_v18  ;;  %v5142_v14 = vadd.f32 1.1283791, %v5141_v3 }
 0x4c0   : > { %v5191_v16 = vadd.f32 0.4994258, %v5190_v26  ;;  %v4528_v15 = vmul.f32 %v4527_v12, %v4503_v21  ;;  %v5163_v23 = vand.u32 2147483647, %v5153_v50  ;;  %v4541_v35 = vmul.f32 %v4540_v34, %v11321_v25 }
 0x4c1   : > { %v4558_v59 = vadd.f32 %v11418_v4, %v4557_v37  ;;  %vm4560_vm3 = vweird.f32 %v11418_v4  ;;  %vm4559_vm4 = vweird.f32 %v11399_v36  ;;  %v4565_v2 = vand.u32 2147483648, %v11399_v36 }
 0x4c2   : > { %v5192_v48 = vmul.f32 %v5191_v16, %v11396_v18  ;;  %vm5159_vm5 = vweird.f32 %v5153_v50  ;;  %v5980_v63 = vclamps-f32 %v4528_v15, 1.0  ;;  %v4563_v46 = vand.u32 2147483647, %v11399_v36  ;;  %vm4561_vm7 = vmor %vm4559_vm4, %vm4560_vm3  ;;  %v11462_v16 = vpop.f32.mrf.mxu2 }
 0x4c3   : > { %v6292_v53 = vpop.eup %6291  ;;  %v5166_v17 = vor.u32 1.1754944e-38, %v5165_v27  ;;  %v5180_v25 = vadd.f32 0.18741608, %v5179_v28  ;;  %v5143_v22 = vmul.f32 %v5142_v14, %v11348_v41  ;;  %vm5164_vm8 = vcmp.eq.f32.partialorder %v5163_v23, 8.507059e+37 }
 0x4c4   : > { %v5155_v10 = vmul.f32 %v6292_v53, %v5153_v50  ;;  %v5193_v43 = vadd.f32 1.0, %v5192_v48  ;;  %vm5160_vm2 = vweird.f32 %v6292_v53  ;;  %v4542_v51 = vadd.f32 1.1283791, %v4541_v35 }
 0x4c5   : > { %6031 = vmatmul.msk.bf16.gmra.mxu0 %vm5305_vm1, %v11361_v39  ;;  %vm5161_vm6 = vmor %vm5159_vm5, %vm5160_vm2  ;;  %v4562_v52 = vsel %vm4561_vm7, %v11418_v4, %v4558_v59  ;;  %v4566_v7 = vor.u32 1.1754944e-38, %v4565_v2  ;;  %v5225_v55 = vadd.f32 1.0, %v5980_v63  ;;  %vm4564_vm10 = vcmp.eq.f32.partialorder %v4563_v46, 8.507059e+37 }
 0x4c6   : > { %v5156_v60 = vsub.f32 1.0, %v5155_v10  ;;  %6293 = vrcp.f32 %v5193_v43  ;;  %v5181_v58 = vmul.f32 %v5180_v25, %v11396_v18  ;;  %v3881_v38 = vmul.f32 0.5, %v11217_v61  ;;  %v11457_v61 = vpop.f32.mrf.mxu0 }
 0x4c7   : > { %v4567_v36 = vsel %vm4564_vm10, %v4566_v7, %v4562_v52  ;;  %v4543_v41 = vmul.f32 %v4542_v51, %v11288_v8  ;;  %v3897_v29 = vmul.f32 0.5, %v11336_v0  ;;  %v5205_v44 = vand.u32 2147483648, %v5193_v43  ;;  %v11459_v8 = vpop.f32.mrf.mxu1 }
 0x4c8   : > { %v5157_v62 = vmul.f32 %v6292_v53, %v5156_v60  ;;  %v5257_v4 = vmul.f32 %v5225_v55, %v3881_v38  ;;  %v5182_v19 = vadd.f32 1.1283791, %v5181_v58  ;;  %v5203_v6 = vand.u32 2147483647, %v5193_v43 }
 0x4c9   : > { %v4568_v54 = vmul.f32 %v4567_v36, %v4543_v41  ;;  %vm5199_vm11 = vweird.f32 %v5193_v43  ;;  %v5206_v32 = vor.u32 1.1754944e-38, %v5205_v44  ;;  %v5616_v12 = vmax.f32 %v11457_v61, %v11462_v16 }
 0x4ca   : > { %v5158_v47 = vadd.f32 %v6292_v53, %v5157_v62  ;;  %v5183_v57 = vmul.f32 %v5182_v19, %v11378_v56  ;;  %vm5204_vm13 = vcmp.eq.f32.partialorder %v5203_v6, 8.507059e+37  ;;  %v3882_v34 = vmul.f32 0.5, %v11267_v33 }
 0x4cb   : > { %v5981_v0 = vclamps-f32 %v4568_v54, 1.0  ;;  %v3898_v37 = vmul.f32 0.5, %v11356_v31 }
 0x4cc   : > { %6033 = vmatmul.msk.bf16.gmra.mxu1 %vm5305_vm1, %v11361_v39  ;;  %v5162_v5 = vsel %vm5161_vm6, %v6292_v53, %v5158_v47  ;;  %v6294_v50 = vpop.eup %6293  ;;  %v11464_v53 = vpop.f32.mrf.mxu3 }
 0x4cd   : > { %v5167_v11 = vsel %vm5164_vm8, %v5166_v17, %v5162_v5  ;;  %v5195_v30 = vmul.f32 %v6294_v50, %v5193_v43  ;;  %vm5200_vm9 = vweird.f32 %v6294_v50  ;;  %v5617_v3 = vmax.f32 %v11459_v8, %v11464_v53  ;;  %v5361_v43 = vpop.f32.mrf.mxu2  ;;  %v11544_v5 = vpop.permute.xlu2 %5688 }
 0x4ce   : > { %v5168_v49 = vmul.f32 %v5167_v11, %v5143_v22  ;;  %vm5201_vm12 = vmor %vm5199_vm11, %vm5200_vm9  ;;  %v5226_v21 = vadd.f32 1.0, %v5981_v0  ;;  %v11474_v60 = vpop.f32.mrf.mxu0 }
 0x4cf   : > { %v5196_v40 = vsub.f32 1.0, %v5195_v30  ;;  %v11476_v15 = vpop.f32.mrf.mxu1  ;;  %v5618_v62 = vmax.f32 %v11474_v60, %v5361_v43  ;;  %v5679_v60 = vpop.permute.xlu0 %5678 }
 0x4d0   : > { %v5996_v13 = vclamps-f32 %v5168_v49, 1.0  ;;  %v5258_v27 = vmul.f32 %v5226_v21, %v3882_v34  ;;  %v11542_v34 = vpop.permute.xlu1 %5683 }
 0x4d1   : > { %v5197_v26 = vmul.f32 %v6294_v50, %v5196_v40 }
 0x4d2   : > { %v5241_v9 = vadd.f32 1.0, %v5996_v13 }
 0x4d3   : > { %v5198_v20 = vadd.f32 %v6294_v50, %v5197_v26 }
 0x4d4   : > { %v5273_v1 = vmul.f32 %v5241_v9, %v3897_v29  ;;  %v11478_v14 = vpop.f32.mrf.mxu3 }
 0x4d5   : > { %v5202_v24 = vsel %vm5201_vm12, %v6294_v50, %v5198_v20  ;;  %v5619_v23 = vmax.f32 %v11476_v15, %v11478_v14  ;;  %v11489_v59 = vpop.f32.mrf.mxu2 }
 0x4d6   : > { %v5293_v18 = vpack.c.bf16 %v5273_v1, %v5257_v4  ;;  %v5207_v45 = vsel %vm5204_vm13, %v5206_v32, %v5202_v24  ;;  %v11485_v33 = vpop.f32.mrf.mxu0 }
 0x4d7   : > { %v5208_v10 = vmul.f32 %v5207_v45, %v5183_v57  ;;  %v11487_v31 = vpop.f32.mrf.mxu1  ;;  %v5620_v47 = vmax.f32 %v11485_v33, %v11489_v59  ;;  %v11559_v8 = vpop.permute.xlu0 %5693 }
 0x4d8   : > { %5585 = vmatpush.bf16.msrb.mxu2 %v5293_v18 }
 0x4d9   : > { %v5997_v56 = vclamps-f32 %v5208_v10, 1.0 }
 0x4db   : > { %6034 = vmatmul.msk.bf16.vlgmr.msrb.gmra.mxu2 %vm5305_vm1, %v11293_v42  ;;  %v5242_v48 = vadd.f32 1.0, %v5997_v56 }
 0x4dc   : > { %v11491_v2 = vpop.f32.mrf.mxu3 }
 0x4dd   : > { %v5274_v28 = vmul.f32 %v5242_v48, %v3898_v37  ;;  %v11503_v17 = vpop.f32.mrf.mxu2 }
 0x4de   : > { %v11499_v46 = vpop.f32.mrf.mxu0 }
 0x4df   : > { %v5294_v35 = vpack.c.bf16 %v5274_v28, %v5258_v27  ;;  %v5622_v22 = vmax.f32 %v11499_v46, %v11503_v17 }
 0x4e1   : > { %5604 = vmatpush.bf16.msrb.mxu3 %v5294_v35 }
 0x4e4   : > { %6036 = vmatmul.msk.bf16.vlgmr.msrb.gmra.mxu3 %vm5305_vm1, %v11293_v42  ;;  %v11501_v42 = vpop.f32.mrf.mxu1  ;;  %v11505_v25 = vpop.f32.mrf.mxu3 }
 0x4e5   : > { %v5435_v11 = vpop.f32.mrf.mxu2 }
 0x4e6   : > { %v5397_v51 = vpop.f32.mrf.mxu0 }
 0x4e7   : > { %v5624_v45 = vmax.f32 %v5616_v12, %v5397_v51 }
 0x4e9   : > { %v5632_v56 = vmax.f32 %v5624_v45, %v5435_v11 }
 0x4eb   : > { %6035 = vmatmul.msk.bf16.gmra.mxu2 %vm5305_vm1, %v11361_v39 }
 0x4ec   : > { %v5416_v7 = vpop.f32.mrf.mxu1  ;;  %v5454_v58 = vpop.f32.mrf.mxu3 }
 0x4ed   : > { %v5437_v50 = vpop.f32.mrf.mxu2  ;;  %v5625_v51 = vmax.f32 %v5617_v3, %v5416_v7 }
 0x4ee   : > { %v5399_v52 = vpop.f32.mrf.mxu0 }
 0x4ef   : > { %v5626_v27 = vmax.f32 %v5618_v62, %v5399_v52  ;;  %v5633_v45 = vmax.f32 %v5625_v51, %v5454_v58  ;;  %v5716_v58 = vpop.permute.xlu2 %5715 }
 0x4f1   : > { %v5634_v63 = vmax.f32 %v5626_v27, %v5437_v50 }
 0x4f4   : > { %6037 = vmatmul.msk.bf16.gmra.mxu3 %vm5305_vm1, %v11361_v39  ;;  %v5418_v55 = vpop.f32.mrf.mxu1  ;;  %v11517_v38 = vpop.f32.mrf.mxu3 }
 0x4f5   : > { %v5440_v13 = vpop.f32.mrf.mxu2  ;;  %v5627_v33 = vmax.f32 %v5619_v23, %v5418_v55 }
 0x4f6   : > { %v5402_v49 = vpop.f32.mrf.mxu0 }
 0x4fc   : > { %v11515_v30 = vpop.f32.mrf.mxu1  ;;  %v11523_v39 = vpop.f32.mrf.mxu3 }
 0x4fd   : > { %v11519_v29 = vpop.f32.mrf.mxu2 }
 0x4fe   : > { %v11513_v36 = vpop.f32.mrf.mxu0 }
 0x504   : > { %v11521_v9 = vpop.f32.mrf.mxu1  ;;  %v11525_v19 = vpop.f32.mrf.mxu3 }
 0x506   : > { %v5473_v41 = vpop.f32.mrf.mxu0  ;;  %v5511_v4 = vpop.f32.mrf.mxu2 }
 0x507   : > { %v5640_v37 = vmax.f32 %v5632_v56, %v5473_v41 }
 0x509   : > { %v5648_v48 = vmax.f32 %v5640_v37, %v5511_v4  ;;  %v5711_v4 = vpop.permute.xlu1 %5710 }
 0x50c   : > { %v5492_v54 = vpop.f32.mrf.mxu1 }
 0x50d   : > { %v5641_v56 = vmax.f32 %v5633_v45, %v5492_v54 }
 0x50e   : > { %v5475_v40 = vpop.f32.mrf.mxu0  ;;  %v5513_v1 = vpop.f32.mrf.mxu2 }
 0x50f   : > { %v5642_v11 = vmax.f32 %v5634_v63, %v5475_v40 }
 0x511   : > { %v5650_v62 = vmax.f32 %v5642_v11, %v5513_v1  ;;  %v5635_v1 = vmax.f32 %v5627_v33, %v11517_v38 }
 0x514   : > { %v5494_v26 = vpop.f32.mrf.mxu1 }
 0x516   : > { %v5478_v44 = vpop.f32.mrf.mxu0  ;;  %v5516_v20 = vpop.f32.mrf.mxu2 }
 0x518   : > { %v5530_v6 = vpop.f32.mrf.mxu3 }
 0x519   : > { %v5649_v3 = vmax.f32 %v5641_v56, %v5530_v6  ;;  %v5630_v6 = vmax.f32 %v5622_v22, %v11513_v36 }
 0x51b   : > { %v5638_v55 = vmax.f32 %v5630_v6, %v11519_v29 }
 0x51c   : > { %v11529_v32 = vpop.f32.mrf.mxu1 }
 0x51e   : > { %v11527_v18 = vpop.f32.mrf.mxu0  ;;  %v11533_v24 = vpop.f32.mrf.mxu2 }
 0x51f   : > { %v5646_v46 = vmax.f32 %v5638_v55, %v11527_v18 }
 0x520   : > { %v11531_v0 = vpop.f32.mrf.mxu3 }
 0x524   : > { %v11538_v10 = vpop.f32.mrf.mxu1 }
 0x528   : > { %v11540_v21 = vpop.f32.mrf.mxu3 }
 0x530   : > { %v11546_v12 = vpop.f32.mrf.mxu3 }
 0x532   : > { %v5549_v57 = vpop.f32.mrf.mxu0 }
 0x533   : > { %v5656_v28 = vmax.f32 %v5648_v48, %v5549_v57  ;;  %v5628_v57 = vmax.f32 %v5620_v47, %v5402_v49 }
 0x535   : > { %v5636_v53 = vmax.f32 %v5628_v57, %v5440_v13 }
 0x537   : > { %v5644_v59 = vmax.f32 %v5636_v53, %v5478_v44 }
 0x539   : > { %v5568_v16 = vpop.f32.mrf.mxu1  ;;  %v5652_v48 = vmax.f32 %v5644_v59, %v5516_v20  ;;  %v5721_v20 = vpop.permute.xlu0 %5720 }
 0x53a   : > { %v5551_v43 = vpop.f32.mrf.mxu0  ;;  %v5657_v47 = vmax.f32 %v5649_v3, %v5568_v16 }
 0x53b   : > { %v5658_v50 = vmax.f32 %v5650_v62, %v5551_v43 }
 0x541   : > { %v5570_v40 = vpop.f32.mrf.mxu1 }
 0x542   : > { %v5554_v7 = vpop.f32.mrf.mxu0 }
 0x543   : > { %v5660_v15 = vmax.f32 %v5652_v48, %v5554_v7 }
 0x549   : > { %v5573_v51 = vpop.f32.mrf.mxu1 }
 0x54a   : > { %v5556_v36 = vpop.f32.mrf.mxu0 }
 0x55e   : > { %v5587_v35 = vpop.f32.mrf.mxu2 }
 0x55f   : > { %v5664_v61 = vmax.f32 %v5656_v28, %v5587_v35  ;;  %v5643_v28 = vmax.f32 %v5635_v1, %v5494_v26  ;;  %v11967_v35 = vmax.f32 %v11487_v31, %v11491_v2 }
 0x561   : > { %v5696_v41 = vmul.f32 %v5679_v60, %v5664_v61  ;;  %v5651_v44 = vmax.f32 %v5643_v28, %v11531_v0  ;;  %v5629_v61 = vmax.f32 %v11967_v35, %v11515_v30  ;;  %v5654_v0 = vmax.f32 %v5646_v46, %v11533_v24 }
 0x563   : > { %v5728_v52 = vadd.f32 %v5711_v4, %v5696_v41  ;;  %v5659_v17 = vmax.f32 %v5651_v44, %v5570_v40  ;;  %v5637_v29 = vmax.f32 %v5629_v61, %v11523_v39  ;;  %v5662_v2 = vmax.f32 %v5654_v0, %v5556_v36 }
 0x564   : > { %v11968_v39 = vmax.f32 %v11501_v42, %v11505_v25  ;;  %v5575_v42 = vpop.f32.mrf.mxu1 }
 0x565   : > { %5736 = vst [vmem:[%s11556_s15] sm:$0xff] %v5728_v52  ;;  %v5645_v31 = vmax.f32 %v5637_v29, %v11529_v32 }
 0x566   : > { %v5589_v37 = vpop.f32.mrf.mxu2  ;;  %v5631_v24 = vmax.f32 %v11968_v39, %v11521_v9 }
 0x567   : > { %v5666_v63 = vmax.f32 %v5658_v50, %v5589_v37  ;;  %v5606_v54 = vpop.f32.mrf.mxu3  ;;  %v5653_v11 = vmax.f32 %v5645_v31, %v11540_v21 }
 0x568   : > { %v5665_v27 = vmax.f32 %v5657_v47, %v5606_v54  ;;  %v5639_v52 = vmax.f32 %v5631_v24, %v11525_v19 }
 0x569   : > { %v5698_v49 = vmul.f32 %v11542_v34, %v5666_v63  ;;  %v5661_v45 = vmax.f32 %v5653_v11, %v5573_v51 }
 0x56a   : > { %v5697_v14 = vmul.f32 %v5679_v60, %v5665_v27  ;;  %v5647_v21 = vmax.f32 %v5639_v52, %v11538_v10 }
 0x56b   : > { %v5730_v13 = vadd.f32 %v5716_v58, %v5698_v49 }
 0x56c   : > { %v5729_v43 = vadd.f32 %v5711_v4, %v5697_v14  ;;  %v5655_v25 = vmax.f32 %v5647_v21, %v11546_v12 }
 0x56d   : > { %5738 = vst [vmem:[%s11556_s15 + $0x10] sm:$0xff] %v5730_v13 }
 0x56e   : > { %v5592_v23 = vpop.f32.mrf.mxu2  ;;  %5737 = vst [vmem:[%s11556_s15 + $0x8] sm:$0xff] %v5729_v43  ;;  %v5663_v37 = vmax.f32 %v5655_v25, %v5575_v42 }
 0x56f   : > { %v5668_v38 = vmax.f32 %v5660_v15, %v5592_v23  ;;  %v5608_v26 = vpop.f32.mrf.mxu3 }
 0x570   : > { %v5667_v60 = vmax.f32 %v5659_v17, %v5608_v26 }
 0x571   : > { %v5700_v22 = vmul.f32 %v11544_v5, %v5668_v38 }
 0x572   : > { %v5699_v30 = vmul.f32 %v11542_v34, %v5667_v60  ;;  %v5726_v34 = vpop.permute.xlu1 %5725 }
 0x573   : > { %v5732_v16 = vadd.f32 %v5721_v20, %v5700_v22 }
 0x574   : > { %v5731_v41 = vadd.f32 %v5716_v58, %v5699_v30 }
 0x575   : > { %5740 = vst [vmem:[%s11556_s15 + $0x20] sm:$0xff] %v5732_v16 }
 0x576   : > { %v5594_v18 = vpop.f32.mrf.mxu2  ;;  %5739 = vst [vmem:[%s11556_s15 + $0x18] sm:$0xff] %v5731_v41 }
 0x577   : > { %v5670_v4 = vmax.f32 %v5662_v2, %v5594_v18  ;;  %v5611_v62 = vpop.f32.mrf.mxu3 }
 0x578   : > { %v5669_v57 = vmax.f32 %v5661_v45, %v5611_v62 }
 0x579   : > { %v5702_v32 = vmul.f32 %v11559_v8, %v5670_v4 }
 0x57a   : > { %v5701_v50 = vmul.f32 %v11544_v5, %v5669_v57 }
 0x57b   : > { %v5734_v56 = vadd.f32 %v5726_v34, %v5702_v32 }
 0x57c   : > { %v5733_v9 = vadd.f32 %v5721_v20, %v5701_v50 }
 0x57d   : > { %5742 = vst [vmem:[%s11556_s15 + $0x30] sm:$0xff] %v5734_v56 }
 0x57e   : > { %5741 = vst [vmem:[%s11556_s15 + $0x28] sm:$0xff] %v5733_v9 }
 0x57f   : > { %v5613_v19 = vpop.f32.mrf.mxu3 }
 0x580   : > { %v5671_v10 = vmax.f32 %v5663_v37, %v5613_v19 }
 0x582   : > { %v5703_v5 = vmul.f32 %v11559_v8, %v5671_v10 }
 0x584   : > { %v5735_v53 = vadd.f32 %v5726_v34, %v5703_v5 }
 0x586   : > { %5743 = vst [vmem:[%s11556_s15 + $0x38] sm:$0xff] %v5735_v53 }
 0x587   : > { %6356 = shalt.err (!%p6353_p4)
}
 0x588   : > { %s6398_s19 = smov 256   ;;  %s6399_s15 = smov 1024  }
 0x589   : > { %s6400_s29 = smov 16  }
 0x58a   : > { %6052 = dma.vmem_to_hbm [thread:$0]  (%p6495_p10), %s5758_s24, 1024, %s5760_s25, %s5745_s9, %s6398_s19, %s6399_s15, %s6400_s29  }
 0x58b PF: > { %p6063_p5 = scmp.ge.s32.totalorder %s6395_s30, 2  ;;  %s5774_s22 = sand.u32 1, %s6383_s27  }
 0x58c   : > { %s5775_s23 = scalar_lea.sflag [#allocation4], %s5774_s22 }
 0x58d   : > { %p6059_p7 = pnand %p6063_p5, %p6499_p11 }
 0x58f   : > { %p6060_p8 = pneg %p6059_p7 }
 0x591   : > { %6378 = dma.done.wait (%p6060_p8), %s5775_s23, 1024  }
 0x592   : > { %6380 = vsyncadd (%p6060_p8), %s5775_s23, 4294966272  ;;  %s11969_s14 = sld [smem:[#allocation8_spill]]  ;;  %p21_p9 = scmp.ge.s32.totalorder %s6471_s11, 6  }
 0x593   : > { %s11970_s29 = sld [smem:[#allocation9_spill]]  ;;  %s11971_s27 = smov %s6387_s28 }
 0x594   : > { %s11973_s30 = smov %s6471_s11  ;;  %23 = sbr.rel (!%p21_p9) target bundleno = 5 (0x5), region = 97 }
 0x598   : > { %s11972_s28 = smov %s11969_s14 }
 0x599   :  { %5781 = vsyncpa [#allocation3], 1 }
 0x59a   :  { %5783 = vsyncpa [#allocation3 + $0x1], 1 }
 0x59b   :  { %5784 = vsyncpa [#allocation4], 1 }
 0x59c   :  { %5786 = vsyncpa [#allocation4 + $0x1], 1 }

</bundles_post_ra>
